<compile_context>
chip_gen: v5e
topology: v5e:2x2
jax: 0.10.0
libtpu: 0.0.40
codegen_flags: <defaults>
</compile_context>

<pallas_src>
import jax
import jax.numpy as jnp
from jax.experimental import pallas as pl
from jax.experimental.pallas import tpu as pltpu

LRELU_SLOPE = 0.2
IN_EPS = 1e-5
K = 4  # ConvTranspose2d kernel size for all three layers


def _lrelu(x):
    return jnp.where(x >= 0.0, x, LRELU_SLOPE * x)


# ----------------------------- fused Pallas kernel -----------------------------

def _decoder_kernel(xin_ref, wl_ref, bl_ref, scat1_ref,
                    w1_ref, b1_ref, p1_ref,
                    w2_ref, b2_ref, p2_ref,
                    w3_ref, b3_ref, r3_ref,
                    out_ref):
    # ---- merged style/class Linear (+bias) + LeakyReLU, rows ordered s*128+c ----
    emb = jnp.dot(wl_ref[...], xin_ref[...], preferred_element_type=jnp.float32)
    emb = _lrelu(emb + bl_ref[...])                           # (512, 1)

    # ---- scatter the 2x2x128 seed into block-1's padded image (128, 4x4) ----
    scat1 = scat1_ref[...]                                    # (4, 16) 0/1 rows
    padT = emb[0:128, :] * scat1[0:1, :]
    for s in range(1, 4):
        padT = padT + emb[s * 128:(s + 1) * 128, :] * scat1[s:s + 1, :]   # (128, 16)

    def conv_gemm(padT, w_ref, b_ref, Wp, T):
        # sub-pixel ConvTranspose(k=4, s=2): 4 taps packed along K, 4 output
        # parities along M; one fused GEMM per block.
        lhs = jnp.concatenate([padT[:, o:o + T] for o in (0, 1, Wp, Wp + 1)], axis=0)
        return jnp.dot(w_ref[...], lhs, preferred_element_type=jnp.float32) + b_ref[...]

    def inorm(acc, C, T, Wp, n_spatial):
        # InstanceNorm2d (biased stats, no affine); mask kills wrap-around columns.
        lane = jax.lax.broadcasted_iota(jnp.int32, (1, T), 1)
        msk = ((lane & (Wp - 1)) != (Wp - 1)).astype(jnp.float32)
        inv_n = 1.0 / float(n_spatial)
        s = jnp.sum(acc * msk, axis=1, keepdims=True)         # (4C, 1)
        tot = s[0:C] + s[C:2 * C] + s[2 * C:3 * C] + s[3 * C:4 * C]
        mean = jnp.concatenate([tot] * 4, axis=0) * inv_n
        d = (acc - mean) * msk
        v = jnp.sum(d * d, axis=1, keepdims=True)
        tot2 = v[0:C] + v[C:2 * C] + v[2 * C:3 * C] + v[3 * C:4 * C]
        var = jnp.concatenate([tot2] * 4, axis=0) * inv_n
        return (acc - mean) * jax.lax.rsqrt(var + IN_EPS)

    def scatter(act, C, p_ref):
        # parity planes -> next block's zero-padded input; ring zeros are implicit.
        nxt = jnp.dot(act[0:C, :], p_ref[0], preferred_element_type=jnp.float32)
        for g in range(1, 4):
            nxt = nxt + jnp.dot(act[g * C:(g + 1) * C, :], p_ref[g],
                                preferred_element_type=jnp.float32)
        return nxt

    # block 1: (128, 2x2) -> (32, 6x6), IN + LeakyReLU
    acc = conv_gemm(padT, w1_ref, b1_ref, 4, 11)              # (128, 11)
    act = _lrelu(inorm(acc, 32, 11, 4, 36))
    padT = scatter(act, 32, p1_ref)                           # (32, 64)

    # block 2: (32, 6x6) -> (16, 14x14), IN + LeakyReLU
    acc = conv_gemm(padT, w2_ref, b2_ref, 8, 55)              # (64, 55)
    act = _lrelu(inorm(acc, 16, 55, 8, 196))
    padT = scatter(act, 16, p2_ref)                           # (16, 256)

    # block 3: (16, 14x14) -> (3, 28x28), Sigmoid, emitted lane-dense as (3, 784)
    acc = conv_gemm(padT, w3_ref, b3_ref, 16, 239)            # (12, 239)
    act = jax.nn.sigmoid(acc)

    r3 = r3_ref[...]                                          # (222, 784) shared placement
    out = None
    for g, (rh, rw) in enumerate(((0, 0), (0, 1), (1, 0), (1, 1))):
        src, dst = 16 * rh + rw, 28 * rh + rw
        y = jnp.dot(act[3 * g:3 * g + 3, src:src + 222], r3,
                    preferred_element_type=jnp.float32)       # (3, 784)
        if dst:
            y = jnp.concatenate([jnp.zeros((3, dst), jnp.float32),
                                 y[:, :784 - dst]], axis=1)
        out = y if out is None else out + y
    out_ref[...] = out                                        # NCHW, lane-dense


# ------------------------------ param preparation ------------------------------

def prepare_params(params, style_dim, class_dim):
    """One-time rearrangement of PyTorch-layout params into kernel form."""
    f32 = jnp.float32
    D = style_dim + class_dim

    def make_wcat(wt, padding):
        # ConvTranspose2d weight (Cin, Cout, K, K) -> (4*Cin, 4*Cout):
        # rows grouped by (dh, dw) tap, cols by (rh, rw) output parity.
        cols = []
        for rh in (0, 1):
            for rw in (0, 1):
                rows = []
                for dh in (0, 1):
                    for dw in (0, 1):
                        kh = (rh + 2 - 2 * dh) if padding == 0 else (3 - rh - 2 * dh)
                        kw = (rw + 2 - 2 * dw) if padding == 0 else (3 - rw - 2 * dw)
                        rows.append(wt[:, :, kh, kw])
                cols.append(jnp.concatenate(rows, axis=0))
        return jnp.concatenate(cols, axis=1).astype(f32)

    def make_scatter(H, W, T):
        # padding=0 block: 0/1 matrices mapping GEMM rows of each parity plane to
        # the next block's flattened zero-padded image.  Shape (4, T, npad_next).
        Wp_cur, Wp_next = W + 2, 2 * W + 4
        npad = (2 * H + 4) * (2 * W + 4)
        m, j = jnp.meshgrid(jnp.arange(H + 1), jnp.arange(W + 1), indexing="ij")
        r = (m * Wp_cur + j).reshape(-1)
        base = ((2 * m + 1) * Wp_next + 2 * j + 1).reshape(-1)
        mats = []
        for rh in (0, 1):
            for rw in (0, 1):
                mats.append(jnp.zeros((T, npad), f32)
                            .at[r, base + rh * Wp_next + rw].set(1.0))
        return jnp.stack(mats, axis=0)

    # merged block-diagonal Linear; rows pre-permuted so row (s*128 + c) holds
    # the original NCHW output index 4*c + s  (s = 2*h + w).
    w_merged = jnp.zeros((D, 512), f32)
    w_merged = w_merged.at[:style_dim, :256].set(params["w_style"])
    w_merged = w_merged.at[style_dim:, 256:].set(params["w_class"])
    b_merged = jnp.concatenate([params["b_style"].reshape(256),
                                params["b_class"].reshape(256)]).astype(f32)
    u = jnp.arange(512)
    orig = (u % 128) * 4 + (u // 128)
    w_lin = w_merged[:, orig].T                       # (512, D)
    b_lin = b_merged[orig].reshape(512, 1)            # (512, 1)

    # seed scatter: spatial s = 2*i + j -> padded 4x4 position (i+1, j+1)
    s = jnp.arange(4)
    scat1 = jax.nn.one_hot(4 * (s // 2) + (s % 2) + 5, 16, dtype=f32)   # (4, 16)

    # block-3 shared placement: GEMM row 16m+j -> output column 56m+2j (parity 0,0)
    m, j = jnp.meshgrid(jnp.arange(14), jnp.arange(14), indexing="ij")
    r3 = jnp.zeros((222, 784), f32).at[(16 * m + j).reshape(-1),
                                       (56 * m + 2 * j).reshape(-1)].set(1.0)

    def tile_bias(b):
        return jnp.tile(b.reshape(-1, 1).astype(f32), (4, 1))

    return dict(
        w_lin=w_lin, b_lin=b_lin, scat1=scat1,
        w1=make_wcat(params["wt1"], 0).T, b1=tile_bias(params["bt1"]),
        p1=make_scatter(2, 2, 11),
        w2=make_wcat(params["wt2"], 0).T, b2=tile_bias(params["bt2"]),
        p2=make_scatter(6, 6, 55),
        w3=make_wcat(params["wt3"], 1).T, b3=tile_bias(params["bt3"]),
        r3=r3,
    )


# ----------------------------------- wrapper -----------------------------------

def decoder_forward(prep, style_emb, class_emb):
    B = style_emb.shape[0]
    D = style_emb.shape[1] + class_emb.shape[1]
    xin = jnp.concatenate([style_emb, class_emb], axis=1).reshape(B, D, 1)

    consts = (prep["w_lin"], prep["b_lin"], prep["scat1"],
              prep["w1"], prep["b1"], prep["p1"],
              prep["w2"], prep["b2"], prep["p2"],
              prep["w3"], prep["b3"], prep["r3"])

    def const_spec(a):
        nd = a.ndim
        return pl.BlockSpec(a.shape, lambda b, _n=nd: (0,) * _n)

    out = pl.pallas_call(
        _decoder_kernel,
        out_shape=jax.ShapeDtypeStruct((B, 3, 28 * 28), jnp.float32),
        grid=(B,),
        in_specs=[pl.BlockSpec((None, D, 1), lambda b: (b, 0, 0))]
                 + [const_spec(a) for a in consts],
        out_specs=pl.BlockSpec((None, 3, 28 * 28), lambda b: (b, 0, 0)),
        compiler_params=pltpu.CompilerParams(
            dimension_semantics=("parallel",)),
    )(xin, *consts)
    return out.reshape(B, 3, 28, 28)                  # NCHW, reshape is free


# -------------------------- params / plain-JAX reference ------------------------

def init_params(key, style_dim, class_dim):
    ks = jax.random.split(key, 10)

    def w(k, shape, scale=0.05):
        return (scale * jax.random.normal(k, shape)).astype(jnp.float32)

    return dict(
        w_style=w(ks[0], (style_dim, 256)), b_style=w(ks[1], (1, 256)),
        w_class=w(ks[2], (class_dim, 256)), b_class=w(ks[3], (1, 256)),
        wt1=w(ks[4], (128, 32, K, K)), bt1=w(ks[5], (32,)),
        wt2=w(ks[6], (32, 16, K, K)), bt2=w(ks[7], (16,)),
        wt3=w(ks[8], (16, 3, K, K)), bt3=w(ks[9], (3,)),
    )


def reference_forward(params, style_emb, class_emb):
    """Plain-JAX reference mirroring the PyTorch forward."""
    ys = _lrelu(style_emb @ params["w_style"] + params["b_style"])
    yc = _lrelu(class_emb @ params["w_class"] + params["b_class"])
    x = jnp.concatenate([ys, yc], axis=1).reshape(-1, 128, 2, 2)  # NCHW
    x = x.transpose(0, 2, 3, 1)                                   # NHWC

    def deconv(x, wt, b, p):
        w_hwio = jnp.flip(wt, axis=(2, 3)).transpose(2, 3, 0, 1)  # (K, K, Cin, Cout)
        pad = K - 1 - p
        y = jax.lax.conv_general_dilated(
            x, w_hwio, window_strides=(1, 1),
            padding=((pad, pad), (pad, pad)), lhs_dilation=(2, 2),
            dimension_numbers=("NHWC", "HWIO", "NHWC"))
        return y + b.reshape(1, 1, 1, -1)

    def inorm(x):
        m = jnp.mean(x, axis=(1, 2), keepdims=True)
        v = jnp.mean((x - m) ** 2, axis=(1, 2), keepdims=True)
        return (x - m) * jax.lax.rsqrt(v + IN_EPS)

    x = _lrelu(inorm(deconv(x, params["wt1"], params["bt1"], 0)))
    x = _lrelu(inorm(deconv(x, params["wt2"], params["bt2"], 0)))
    x = jax.nn.sigmoid(deconv(x, params["wt3"], params["bt3"], 1))
    return x.transpose(0, 3, 1, 2)


if __name__ == "__main__":
    B, style_dim, class_dim = 2, 16, 24
    key = jax.random.PRNGKey(0)
    k_p, k_s, k_c = jax.random.split(key, 3)
    params = init_params(k_p, style_dim, class_dim)
    prep = prepare_params(params, style_dim, class_dim)
    style = jax.random.normal(k_s, (B, style_dim), dtype=jnp.float32)
    cls = jax.random.normal(k_c, (B, class_dim), dtype=jnp.float32)

    fwd = jax.jit(decoder_forward)
    out = jax.block_until_ready(fwd(prep, style, cls))
    assert out.shape == (B, 3, 28, 28), out.shape

    ref = jax.block_until_ready(reference_forward(params, style, cls))
    max_err = float(jnp.max(jnp.abs(out - ref)))
    assert max_err < 5e-4, f"mismatch vs reference: {max_err}"

    print("KERNEL_OK")
</pallas_src>

<mosaic_0001>
module attributes {stable_mosaic.version = 11 : i64} {
  func.func @_decoder_kernel(%arg0: i32, %arg1: memref<1x40x1xf32, #tpu.memory_space<vmem>>, %arg2: memref<512x40xf32, #tpu.memory_space<vmem>>, %arg3: memref<512x1xf32, #tpu.memory_space<vmem>>, %arg4: memref<4x16xf32, #tpu.memory_space<vmem>>, %arg5: memref<128x512xf32, #tpu.memory_space<vmem>>, %arg6: memref<128x1xf32, #tpu.memory_space<vmem>>, %arg7: memref<4x11x64xf32, #tpu.memory_space<vmem>>, %arg8: memref<64x128xf32, #tpu.memory_space<vmem>>, %arg9: memref<64x1xf32, #tpu.memory_space<vmem>>, %arg10: memref<4x55x256xf32, #tpu.memory_space<vmem>>, %arg11: memref<12x64xf32, #tpu.memory_space<vmem>>, %arg12: memref<12x1xf32, #tpu.memory_space<vmem>>, %arg13: memref<222x784xf32, #tpu.memory_space<vmem>>, %arg14: memref<1x3x784xf32, #tpu.memory_space<vmem>>) attributes {dimension_semantics = [#tpu.dimension_semantics<parallel>], iteration_bounds = array<i64: 2>, scalar_prefetch = 0 : i64, scratch_operands = 0 : i64, tpu.core_type = #tpu.core_type<tc>, window_params = [{transform_indices = @transform_0, window_bounds = array<i64: 1, 40, 1>}, {pipeline_mode = #tpu.pipeline_mode<synchronous>, transform_indices = @transform_1, window_bounds = array<i64: 512, 40>}, {pipeline_mode = #tpu.pipeline_mode<synchronous>, transform_indices = @transform_2, window_bounds = array<i64: 512, 1>}, {pipeline_mode = #tpu.pipeline_mode<synchronous>, transform_indices = @transform_3, window_bounds = array<i64: 4, 16>}, {pipeline_mode = #tpu.pipeline_mode<synchronous>, transform_indices = @transform_4, window_bounds = array<i64: 128, 512>}, {pipeline_mode = #tpu.pipeline_mode<synchronous>, transform_indices = @transform_5, window_bounds = array<i64: 128, 1>}, {pipeline_mode = #tpu.pipeline_mode<synchronous>, transform_indices = @transform_6, window_bounds = array<i64: 4, 11, 64>}, {pipeline_mode = #tpu.pipeline_mode<synchronous>, transform_indices = @transform_7, window_bounds = array<i64: 64, 128>}, {pipeline_mode = #tpu.pipeline_mode<synchronous>, transform_indices = @transform_8, window_bounds = array<i64: 64, 1>}, {pipeline_mode = #tpu.pipeline_mode<synchronous>, transform_indices = @transform_9, window_bounds = array<i64: 4, 55, 256>}, {pipeline_mode = #tpu.pipeline_mode<synchronous>, transform_indices = @transform_10, window_bounds = array<i64: 12, 64>}, {pipeline_mode = #tpu.pipeline_mode<synchronous>, transform_indices = @transform_11, window_bounds = array<i64: 12, 1>}, {pipeline_mode = #tpu.pipeline_mode<synchronous>, transform_indices = @transform_12, window_bounds = array<i64: 222, 784>}, {transform_indices = @transform_13, window_bounds = array<i64: 1, 3, 784>}]} {
    %c0 = arith.constant 0 : index
    %c0_0 = arith.constant 0 : index
    %0 = vector.load %arg2[%c0, %c0_0] : memref<512x40xf32, #tpu.memory_space<vmem>>, vector<512x40xf32>
    %c0_1 = arith.constant 0 : index
    %c0_2 = arith.constant 0 : index
    %c0_3 = arith.constant 0 : index
    %1 = vector.load %arg1[%c0_1, %c0_2, %c0_3] : memref<1x40x1xf32, #tpu.memory_space<vmem>>, vector<1x40x1xf32>
    %2 = vector.shape_cast %1 : vector<1x40x1xf32> to vector<40x1xf32>
    %cst = arith.constant dense<0.000000e+00> : vector<512x1xf32>
    %3 = tpu.matmul %0, %2, %cst {dimension_numbers = #tpu.dot_dimension_numbers<[1], [0], [0], [1], [0, 0, 1, 1], [], []>} : vector<512x40xf32>, vector<40x1xf32>, vector<512x1xf32> -> vector<512x1xf32>
    %c0_4 = arith.constant 0 : index
    %c0_5 = arith.constant 0 : index
    %4 = vector.load %arg3[%c0_4, %c0_5] : memref<512x1xf32, #tpu.memory_space<vmem>>, vector<512x1xf32>
    %5 = arith.addf %3, %4 : vector<512x1xf32>
    %cst_6 = arith.constant 0.000000e+00 : f32
    %6 = vector.broadcast %cst_6 : f32 to vector<512x1xf32>
    %7 = arith.cmpf oge, %5, %6 : vector<512x1xf32>
    %cst_7 = arith.constant 2.000000e-01 : f32
    %8 = vector.broadcast %cst_7 : f32 to vector<512x1xf32>
    %9 = arith.mulf %8, %5 : vector<512x1xf32>
    %10 = arith.select %7, %5, %9 : vector<512x1xi1>, vector<512x1xf32>
    %c0_8 = arith.constant 0 : index
    %c0_9 = arith.constant 0 : index
    %11 = vector.load %arg4[%c0_8, %c0_9] : memref<4x16xf32, #tpu.memory_space<vmem>>, vector<4x16xf32>
    %12 = vector.extract_strided_slice %10 {offsets = [0, 0], sizes = [128, 1], strides = [1, 1]} : vector<512x1xf32> to vector<128x1xf32>
    %13 = vector.extract_strided_slice %11 {offsets = [0, 0], sizes = [1, 16], strides = [1, 1]} : vector<4x16xf32> to vector<1x16xf32>
    %14 = vector.broadcast %12 : vector<128x1xf32> to vector<128x16xf32>
    %15 = vector.broadcast %13 : vector<1x16xf32> to vector<128x16xf32>
    %16 = arith.mulf %14, %15 : vector<128x16xf32>
    %17 = vector.extract_strided_slice %10 {offsets = [128, 0], sizes = [128, 1], strides = [1, 1]} : vector<512x1xf32> to vector<128x1xf32>
    %18 = vector.extract_strided_slice %11 {offsets = [1, 0], sizes = [1, 16], strides = [1, 1]} : vector<4x16xf32> to vector<1x16xf32>
    %19 = vector.broadcast %17 : vector<128x1xf32> to vector<128x16xf32>
    %20 = vector.broadcast %18 : vector<1x16xf32> to vector<128x16xf32>
    %21 = arith.mulf %19, %20 : vector<128x16xf32>
    %22 = arith.addf %16, %21 : vector<128x16xf32>
    %23 = vector.extract_strided_slice %10 {offsets = [256, 0], sizes = [128, 1], strides = [1, 1]} : vector<512x1xf32> to vector<128x1xf32>
    %24 = vector.extract_strided_slice %11 {offsets = [2, 0], sizes = [1, 16], strides = [1, 1]} : vector<4x16xf32> to vector<1x16xf32>
    %25 = vector.broadcast %23 : vector<128x1xf32> to vector<128x16xf32>
    %26 = vector.broadcast %24 : vector<1x16xf32> to vector<128x16xf32>
    %27 = arith.mulf %25, %26 : vector<128x16xf32>
    %28 = arith.addf %22, %27 : vector<128x16xf32>
    %29 = vector.extract_strided_slice %10 {offsets = [384, 0], sizes = [128, 1], strides = [1, 1]} : vector<512x1xf32> to vector<128x1xf32>
    %30 = vector.extract_strided_slice %11 {offsets = [3, 0], sizes = [1, 16], strides = [1, 1]} : vector<4x16xf32> to vector<1x16xf32>
    %31 = vector.broadcast %29 : vector<128x1xf32> to vector<128x16xf32>
    %32 = vector.broadcast %30 : vector<1x16xf32> to vector<128x16xf32>
    %33 = arith.mulf %31, %32 : vector<128x16xf32>
    %34 = arith.addf %28, %33 : vector<128x16xf32>
    %35 = vector.extract_strided_slice %34 {offsets = [0, 0], sizes = [128, 11], strides = [1, 1]} : vector<128x16xf32> to vector<128x11xf32>
    %36 = vector.extract_strided_slice %34 {offsets = [0, 1], sizes = [128, 11], strides = [1, 1]} : vector<128x16xf32> to vector<128x11xf32>
    %37 = vector.extract_strided_slice %34 {offsets = [0, 4], sizes = [128, 11], strides = [1, 1]} : vector<128x16xf32> to vector<128x11xf32>
    %38 = vector.extract_strided_slice %34 {offsets = [0, 5], sizes = [128, 11], strides = [1, 1]} : vector<128x16xf32> to vector<128x11xf32>
    %39 = tpu.concatenate %35, %36, %37, %38 in 0 : vector<128x11xf32>, vector<128x11xf32>, vector<128x11xf32>, vector<128x11xf32> -> vector<512x11xf32>
    %c0_10 = arith.constant 0 : index
    %c0_11 = arith.constant 0 : index
    %40 = vector.load %arg5[%c0_10, %c0_11] : memref<128x512xf32, #tpu.memory_space<vmem>>, vector<128x512xf32>
    %cst_12 = arith.constant dense<0.000000e+00> : vector<128x11xf32>
    %41 = tpu.matmul %40, %39, %cst_12 {dimension_numbers = #tpu.dot_dimension_numbers<[1], [0], [0], [1], [0, 0, 1, 1], [], []>} : vector<128x512xf32>, vector<512x11xf32>, vector<128x11xf32> -> vector<128x11xf32>
    %c0_13 = arith.constant 0 : index
    %c0_14 = arith.constant 0 : index
    %42 = vector.load %arg6[%c0_13, %c0_14] : memref<128x1xf32, #tpu.memory_space<vmem>>, vector<128x1xf32>
    %43 = vector.broadcast %42 : vector<128x1xf32> to vector<128x11xf32>
    %44 = arith.addf %41, %43 : vector<128x11xf32>
    %45 = tpu.iota {dimensions = array<i32: 1>} : vector<1x11xi32>
    %c3_i32 = arith.constant 3 : i32
    %46 = vector.broadcast %c3_i32 : i32 to vector<1x11xi32>
    %47 = arith.andi %45, %46 : vector<1x11xi32>
    %c3_i32_15 = arith.constant 3 : i32
    %48 = vector.broadcast %c3_i32_15 : i32 to vector<1x11xi32>
    %49 = arith.cmpi ne, %47, %48 : vector<1x11xi32>
    %50 = arith.extui %49 : vector<1x11xi1> to vector<1x11xi32>
    %51 = arith.sitofp %50 : vector<1x11xi32> to vector<1x11xf32>
    %52 = vector.broadcast %51 : vector<1x11xf32> to vector<128x11xf32>
    %53 = arith.mulf %44, %52 : vector<128x11xf32>
    %cst_16 = arith.constant dense<0.000000e+00> : vector<128xf32>
    %54 = vector.multi_reduction <add>, %53, %cst_16 [1] : vector<128x11xf32> to vector<128xf32>
    %55 = vector.shape_cast %54 : vector<128xf32> to vector<128x1xf32>
    %56 = vector.extract_strided_slice %55 {offsets = [0, 0], sizes = [32, 1], strides = [1, 1]} : vector<128x1xf32> to vector<32x1xf32>
    %57 = vector.extract_strided_slice %55 {offsets = [32, 0], sizes = [32, 1], strides = [1, 1]} : vector<128x1xf32> to vector<32x1xf32>
    %58 = arith.addf %56, %57 : vector<32x1xf32>
    %59 = vector.extract_strided_slice %55 {offsets = [64, 0], sizes = [32, 1], strides = [1, 1]} : vector<128x1xf32> to vector<32x1xf32>
    %60 = arith.addf %58, %59 : vector<32x1xf32>
    %61 = vector.extract_strided_slice %55 {offsets = [96, 0], sizes = [32, 1], strides = [1, 1]} : vector<128x1xf32> to vector<32x1xf32>
    %62 = arith.addf %60, %61 : vector<32x1xf32>
    %63 = tpu.concatenate %62, %62, %62, %62 in 0 : vector<32x1xf32>, vector<32x1xf32>, vector<32x1xf32>, vector<32x1xf32> -> vector<128x1xf32>
    %cst_17 = arith.constant 0.027777778 : f32
    %64 = vector.broadcast %cst_17 : f32 to vector<128x1xf32>
    %65 = arith.mulf %63, %64 : vector<128x1xf32>
    %66 = vector.broadcast %65 : vector<128x1xf32> to vector<128x11xf32>
    %67 = arith.subf %44, %66 : vector<128x11xf32>
    %68 = vector.broadcast %51 : vector<1x11xf32> to vector<128x11xf32>
    %69 = arith.mulf %67, %68 : vector<128x11xf32>
    %70 = arith.mulf %69, %69 : vector<128x11xf32>
    %cst_18 = arith.constant dense<0.000000e+00> : vector<128xf32>
    %71 = vector.multi_reduction <add>, %70, %cst_18 [1] : vector<128x11xf32> to vector<128xf32>
    %72 = vector.shape_cast %71 : vector<128xf32> to vector<128x1xf32>
    %73 = vector.extract_strided_slice %72 {offsets = [0, 0], sizes = [32, 1], strides = [1, 1]} : vector<128x1xf32> to vector<32x1xf32>
    %74 = vector.extract_strided_slice %72 {offsets = [32, 0], sizes = [32, 1], strides = [1, 1]} : vector<128x1xf32> to vector<32x1xf32>
    %75 = arith.addf %73, %74 : vector<32x1xf32>
    %76 = vector.extract_strided_slice %72 {offsets = [64, 0], sizes = [32, 1], strides = [1, 1]} : vector<128x1xf32> to vector<32x1xf32>
    %77 = arith.addf %75, %76 : vector<32x1xf32>
    %78 = vector.extract_strided_slice %72 {offsets = [96, 0], sizes = [32, 1], strides = [1, 1]} : vector<128x1xf32> to vector<32x1xf32>
    %79 = arith.addf %77, %78 : vector<32x1xf32>
    %80 = tpu.concatenate %79, %79, %79, %79 in 0 : vector<32x1xf32>, vector<32x1xf32>, vector<32x1xf32>, vector<32x1xf32> -> vector<128x1xf32>
    %cst_19 = arith.constant 0.027777778 : f32
    %81 = vector.broadcast %cst_19 : f32 to vector<128x1xf32>
    %82 = arith.mulf %80, %81 : vector<128x1xf32>
    %83 = vector.broadcast %65 : vector<128x1xf32> to vector<128x11xf32>
    %84 = arith.subf %44, %83 : vector<128x11xf32>
    %cst_20 = arith.constant 9.99999974E-6 : f32
    %85 = vector.broadcast %cst_20 : f32 to vector<128x1xf32>
    %86 = arith.addf %82, %85 : vector<128x1xf32>
    %87 = math.rsqrt %86 : vector<128x1xf32>
    %88 = vector.broadcast %87 : vector<128x1xf32> to vector<128x11xf32>
    %89 = arith.mulf %84, %88 : vector<128x11xf32>
    %cst_21 = arith.constant 0.000000e+00 : f32
    %90 = vector.broadcast %cst_21 : f32 to vector<128x11xf32>
    %91 = arith.cmpf oge, %89, %90 : vector<128x11xf32>
    %cst_22 = arith.constant 2.000000e-01 : f32
    %92 = vector.broadcast %cst_22 : f32 to vector<128x11xf32>
    %93 = arith.mulf %92, %89 : vector<128x11xf32>
    %94 = arith.select %91, %89, %93 : vector<128x11xi1>, vector<128x11xf32>
    %95 = vector.extract_strided_slice %94 {offsets = [0, 0], sizes = [32, 11], strides = [1, 1]} : vector<128x11xf32> to vector<32x11xf32>
    %c0_23 = arith.constant 0 : index
    %c0_24 = arith.constant 0 : index
    %c0_25 = arith.constant 0 : index
    %96 = vector.load %arg7[%c0_23, %c0_24, %c0_25] : memref<4x11x64xf32, #tpu.memory_space<vmem>>, vector<1x11x64xf32>
    %97 = vector.shape_cast %96 : vector<1x11x64xf32> to vector<11x64xf32>
    %cst_26 = arith.constant dense<0.000000e+00> : vector<32x64xf32>
    %98 = tpu.matmul %95, %97, %cst_26 {dimension_numbers = #tpu.dot_dimension_numbers<[1], [0], [0], [1], [0, 0, 1, 1], [], []>} : vector<32x11xf32>, vector<11x64xf32>, vector<32x64xf32> -> vector<32x64xf32>
    %99 = vector.extract_strided_slice %94 {offsets = [32, 0], sizes = [32, 11], strides = [1, 1]} : vector<128x11xf32> to vector<32x11xf32>
    %c1 = arith.constant 1 : index
    %c0_27 = arith.constant 0 : index
    %c0_28 = arith.constant 0 : index
    %100 = vector.load %arg7[%c1, %c0_27, %c0_28] : memref<4x11x64xf32, #tpu.memory_space<vmem>>, vector<1x11x64xf32>
    %101 = vector.shape_cast %100 : vector<1x11x64xf32> to vector<11x64xf32>
    %cst_29 = arith.constant dense<0.000000e+00> : vector<32x64xf32>
    %102 = tpu.matmul %99, %101, %cst_29 {dimension_numbers = #tpu.dot_dimension_numbers<[1], [0], [0], [1], [0, 0, 1, 1], [], []>} : vector<32x11xf32>, vector<11x64xf32>, vector<32x64xf32> -> vector<32x64xf32>
    %103 = arith.addf %98, %102 : vector<32x64xf32>
    %104 = vector.extract_strided_slice %94 {offsets = [64, 0], sizes = [32, 11], strides = [1, 1]} : vector<128x11xf32> to vector<32x11xf32>
    %c2 = arith.constant 2 : index
    %c0_30 = arith.constant 0 : index
    %c0_31 = arith.constant 0 : index
    %105 = vector.load %arg7[%c2, %c0_30, %c0_31] : memref<4x11x64xf32, #tpu.memory_space<vmem>>, vector<1x11x64xf32>
    %106 = vector.shape_cast %105 : vector<1x11x64xf32> to vector<11x64xf32>
    %cst_32 = arith.constant dense<0.000000e+00> : vector<32x64xf32>
    %107 = tpu.matmul %104, %106, %cst_32 {dimension_numbers = #tpu.dot_dimension_numbers<[1], [0], [0], [1], [0, 0, 1, 1], [], []>} : vector<32x11xf32>, vector<11x64xf32>, vector<32x64xf32> -> vector<32x64xf32>
    %108 = arith.addf %103, %107 : vector<32x64xf32>
    %109 = vector.extract_strided_slice %94 {offsets = [96, 0], sizes = [32, 11], strides = [1, 1]} : vector<128x11xf32> to vector<32x11xf32>
    %c3 = arith.constant 3 : index
    %c0_33 = arith.constant 0 : index
    %c0_34 = arith.constant 0 : index
    %110 = vector.load %arg7[%c3, %c0_33, %c0_34] : memref<4x11x64xf32, #tpu.memory_space<vmem>>, vector<1x11x64xf32>
    %111 = vector.shape_cast %110 : vector<1x11x64xf32> to vector<11x64xf32>
    %cst_35 = arith.constant dense<0.000000e+00> : vector<32x64xf32>
    %112 = tpu.matmul %109, %111, %cst_35 {dimension_numbers = #tpu.dot_dimension_numbers<[1], [0], [0], [1], [0, 0, 1, 1], [], []>} : vector<32x11xf32>, vector<11x64xf32>, vector<32x64xf32> -> vector<32x64xf32>
    %113 = arith.addf %108, %112 : vector<32x64xf32>
    %114 = vector.extract_strided_slice %113 {offsets = [0, 0], sizes = [32, 55], strides = [1, 1]} : vector<32x64xf32> to vector<32x55xf32>
    %115 = vector.extract_strided_slice %113 {offsets = [0, 1], sizes = [32, 55], strides = [1, 1]} : vector<32x64xf32> to vector<32x55xf32>
    %116 = vector.extract_strided_slice %113 {offsets = [0, 8], sizes = [32, 55], strides = [1, 1]} : vector<32x64xf32> to vector<32x55xf32>
    %117 = vector.extract_strided_slice %113 {offsets = [0, 9], sizes = [32, 55], strides = [1, 1]} : vector<32x64xf32> to vector<32x55xf32>
    %118 = tpu.concatenate %114, %115, %116, %117 in 0 : vector<32x55xf32>, vector<32x55xf32>, vector<32x55xf32>, vector<32x55xf32> -> vector<128x55xf32>
    %c0_36 = arith.constant 0 : index
    %c0_37 = arith.constant 0 : index
    %119 = vector.load %arg8[%c0_36, %c0_37] : memref<64x128xf32, #tpu.memory_space<vmem>>, vector<64x128xf32>
    %cst_38 = arith.constant dense<0.000000e+00> : vector<64x55xf32>
    %120 = tpu.matmul %119, %118, %cst_38 {dimension_numbers = #tpu.dot_dimension_numbers<[1], [0], [0], [1], [0, 0, 1, 1], [], []>} : vector<64x128xf32>, vector<128x55xf32>, vector<64x55xf32> -> vector<64x55xf32>
    %c0_39 = arith.constant 0 : index
    %c0_40 = arith.constant 0 : index
    %121 = vector.load %arg9[%c0_39, %c0_40] : memref<64x1xf32, #tpu.memory_space<vmem>>, vector<64x1xf32>
    %122 = vector.broadcast %121 : vector<64x1xf32> to vector<64x55xf32>
    %123 = arith.addf %120, %122 : vector<64x55xf32>
    %124 = tpu.iota {dimensions = array<i32: 1>} : vector<1x55xi32>
    %c7_i32 = arith.constant 7 : i32
    %125 = vector.broadcast %c7_i32 : i32 to vector<1x55xi32>
    %126 = arith.andi %124, %125 : vector<1x55xi32>
    %c7_i32_41 = arith.constant 7 : i32
    %127 = vector.broadcast %c7_i32_41 : i32 to vector<1x55xi32>
    %128 = arith.cmpi ne, %126, %127 : vector<1x55xi32>
    %129 = arith.extui %128 : vector<1x55xi1> to vector<1x55xi32>
    %130 = arith.sitofp %129 : vector<1x55xi32> to vector<1x55xf32>
    %131 = vector.broadcast %130 : vector<1x55xf32> to vector<64x55xf32>
    %132 = arith.mulf %123, %131 : vector<64x55xf32>
    %cst_42 = arith.constant dense<0.000000e+00> : vector<64xf32>
    %133 = vector.multi_reduction <add>, %132, %cst_42 [1] : vector<64x55xf32> to vector<64xf32>
    %134 = vector.shape_cast %133 : vector<64xf32> to vector<64x1xf32>
    %135 = vector.extract_strided_slice %134 {offsets = [0, 0], sizes = [16, 1], strides = [1, 1]} : vector<64x1xf32> to vector<16x1xf32>
    %136 = vector.extract_strided_slice %134 {offsets = [16, 0], sizes = [16, 1], strides = [1, 1]} : vector<64x1xf32> to vector<16x1xf32>
    %137 = arith.addf %135, %136 : vector<16x1xf32>
    %138 = vector.extract_strided_slice %134 {offsets = [32, 0], sizes = [16, 1], strides = [1, 1]} : vector<64x1xf32> to vector<16x1xf32>
    %139 = arith.addf %137, %138 : vector<16x1xf32>
    %140 = vector.extract_strided_slice %134 {offsets = [48, 0], sizes = [16, 1], strides = [1, 1]} : vector<64x1xf32> to vector<16x1xf32>
    %141 = arith.addf %139, %140 : vector<16x1xf32>
    %142 = tpu.concatenate %141, %141, %141, %141 in 0 : vector<16x1xf32>, vector<16x1xf32>, vector<16x1xf32>, vector<16x1xf32> -> vector<64x1xf32>
    %cst_43 = arith.constant 0.00510204071 : f32
    %143 = vector.broadcast %cst_43 : f32 to vector<64x1xf32>
    %144 = arith.mulf %142, %143 : vector<64x1xf32>
    %145 = vector.broadcast %144 : vector<64x1xf32> to vector<64x55xf32>
    %146 = arith.subf %123, %145 : vector<64x55xf32>
    %147 = vector.broadcast %130 : vector<1x55xf32> to vector<64x55xf32>
    %148 = arith.mulf %146, %147 : vector<64x55xf32>
    %149 = arith.mulf %148, %148 : vector<64x55xf32>
    %cst_44 = arith.constant dense<0.000000e+00> : vector<64xf32>
    %150 = vector.multi_reduction <add>, %149, %cst_44 [1] : vector<64x55xf32> to vector<64xf32>
    %151 = vector.shape_cast %150 : vector<64xf32> to vector<64x1xf32>
    %152 = vector.extract_strided_slice %151 {offsets = [0, 0], sizes = [16, 1], strides = [1, 1]} : vector<64x1xf32> to vector<16x1xf32>
    %153 = vector.extract_strided_slice %151 {offsets = [16, 0], sizes = [16, 1], strides = [1, 1]} : vector<64x1xf32> to vector<16x1xf32>
    %154 = arith.addf %152, %153 : vector<16x1xf32>
    %155 = vector.extract_strided_slice %151 {offsets = [32, 0], sizes = [16, 1], strides = [1, 1]} : vector<64x1xf32> to vector<16x1xf32>
    %156 = arith.addf %154, %155 : vector<16x1xf32>
    %157 = vector.extract_strided_slice %151 {offsets = [48, 0], sizes = [16, 1], strides = [1, 1]} : vector<64x1xf32> to vector<16x1xf32>
    %158 = arith.addf %156, %157 : vector<16x1xf32>
    %159 = tpu.concatenate %158, %158, %158, %158 in 0 : vector<16x1xf32>, vector<16x1xf32>, vector<16x1xf32>, vector<16x1xf32> -> vector<64x1xf32>
    %cst_45 = arith.constant 0.00510204071 : f32
    %160 = vector.broadcast %cst_45 : f32 to vector<64x1xf32>
    %161 = arith.mulf %159, %160 : vector<64x1xf32>
    %162 = vector.broadcast %144 : vector<64x1xf32> to vector<64x55xf32>
    %163 = arith.subf %123, %162 : vector<64x55xf32>
    %cst_46 = arith.constant 9.99999974E-6 : f32
    %164 = vector.broadcast %cst_46 : f32 to vector<64x1xf32>
    %165 = arith.addf %161, %164 : vector<64x1xf32>
    %166 = math.rsqrt %165 : vector<64x1xf32>
    %167 = vector.broadcast %166 : vector<64x1xf32> to vector<64x55xf32>
    %168 = arith.mulf %163, %167 : vector<64x55xf32>
    %cst_47 = arith.constant 0.000000e+00 : f32
    %169 = vector.broadcast %cst_47 : f32 to vector<64x55xf32>
    %170 = arith.cmpf oge, %168, %169 : vector<64x55xf32>
    %cst_48 = arith.constant 2.000000e-01 : f32
    %171 = vector.broadcast %cst_48 : f32 to vector<64x55xf32>
    %172 = arith.mulf %171, %168 : vector<64x55xf32>
    %173 = arith.select %170, %168, %172 : vector<64x55xi1>, vector<64x55xf32>
    %174 = vector.extract_strided_slice %173 {offsets = [0, 0], sizes = [16, 55], strides = [1, 1]} : vector<64x55xf32> to vector<16x55xf32>
    %c0_49 = arith.constant 0 : index
    %c0_50 = arith.constant 0 : index
    %c0_51 = arith.constant 0 : index
    %175 = vector.load %arg10[%c0_49, %c0_50, %c0_51] : memref<4x55x256xf32, #tpu.memory_space<vmem>>, vector<1x55x256xf32>
    %176 = vector.shape_cast %175 : vector<1x55x256xf32> to vector<55x256xf32>
    %cst_52 = arith.constant dense<0.000000e+00> : vector<16x256xf32>
    %177 = tpu.matmul %174, %176, %cst_52 {dimension_numbers = #tpu.dot_dimension_numbers<[1], [0], [0], [1], [0, 0, 1, 1], [], []>} : vector<16x55xf32>, vector<55x256xf32>, vector<16x256xf32> -> vector<16x256xf32>
    %178 = vector.extract_strided_slice %173 {offsets = [16, 0], sizes = [16, 55], strides = [1, 1]} : vector<64x55xf32> to vector<16x55xf32>
    %c1_53 = arith.constant 1 : index
    %c0_54 = arith.constant 0 : index
    %c0_55 = arith.constant 0 : index
    %179 = vector.load %arg10[%c1_53, %c0_54, %c0_55] : memref<4x55x256xf32, #tpu.memory_space<vmem>>, vector<1x55x256xf32>
    %180 = vector.shape_cast %179 : vector<1x55x256xf32> to vector<55x256xf32>
    %cst_56 = arith.constant dense<0.000000e+00> : vector<16x256xf32>
    %181 = tpu.matmul %178, %180, %cst_56 {dimension_numbers = #tpu.dot_dimension_numbers<[1], [0], [0], [1], [0, 0, 1, 1], [], []>} : vector<16x55xf32>, vector<55x256xf32>, vector<16x256xf32> -> vector<16x256xf32>
    %182 = arith.addf %177, %181 : vector<16x256xf32>
    %183 = vector.extract_strided_slice %173 {offsets = [32, 0], sizes = [16, 55], strides = [1, 1]} : vector<64x55xf32> to vector<16x55xf32>
    %c2_57 = arith.constant 2 : index
    %c0_58 = arith.constant 0 : index
    %c0_59 = arith.constant 0 : index
    %184 = vector.load %arg10[%c2_57, %c0_58, %c0_59] : memref<4x55x256xf32, #tpu.memory_space<vmem>>, vector<1x55x256xf32>
    %185 = vector.shape_cast %184 : vector<1x55x256xf32> to vector<55x256xf32>
    %cst_60 = arith.constant dense<0.000000e+00> : vector<16x256xf32>
    %186 = tpu.matmul %183, %185, %cst_60 {dimension_numbers = #tpu.dot_dimension_numbers<[1], [0], [0], [1], [0, 0, 1, 1], [], []>} : vector<16x55xf32>, vector<55x256xf32>, vector<16x256xf32> -> vector<16x256xf32>
    %187 = arith.addf %182, %186 : vector<16x256xf32>
    %188 = vector.extract_strided_slice %173 {offsets = [48, 0], sizes = [16, 55], strides = [1, 1]} : vector<64x55xf32> to vector<16x55xf32>
    %c3_61 = arith.constant 3 : index
    %c0_62 = arith.constant 0 : index
    %c0_63 = arith.constant 0 : index
    %189 = vector.load %arg10[%c3_61, %c0_62, %c0_63] : memref<4x55x256xf32, #tpu.memory_space<vmem>>, vector<1x55x256xf32>
    %190 = vector.shape_cast %189 : vector<1x55x256xf32> to vector<55x256xf32>
    %cst_64 = arith.constant dense<0.000000e+00> : vector<16x256xf32>
    %191 = tpu.matmul %188, %190, %cst_64 {dimension_numbers = #tpu.dot_dimension_numbers<[1], [0], [0], [1], [0, 0, 1, 1], [], []>} : vector<16x55xf32>, vector<55x256xf32>, vector<16x256xf32> -> vector<16x256xf32>
    %192 = arith.addf %187, %191 : vector<16x256xf32>
    %193 = vector.extract_strided_slice %192 {offsets = [0, 0], sizes = [16, 239], strides = [1, 1]} : vector<16x256xf32> to vector<16x239xf32>
    %194 = vector.extract_strided_slice %192 {offsets = [0, 1], sizes = [16, 239], strides = [1, 1]} : vector<16x256xf32> to vector<16x239xf32>
    %195 = vector.extract_strided_slice %192 {offsets = [0, 16], sizes = [16, 239], strides = [1, 1]} : vector<16x256xf32> to vector<16x239xf32>
    %196 = vector.extract_strided_slice %192 {offsets = [0, 17], sizes = [16, 239], strides = [1, 1]} : vector<16x256xf32> to vector<16x239xf32>
    %197 = tpu.concatenate %193, %194, %195, %196 in 0 : vector<16x239xf32>, vector<16x239xf32>, vector<16x239xf32>, vector<16x239xf32> -> vector<64x239xf32>
    %c0_65 = arith.constant 0 : index
    %c0_66 = arith.constant 0 : index
    %198 = vector.load %arg11[%c0_65, %c0_66] : memref<12x64xf32, #tpu.memory_space<vmem>>, vector<12x64xf32>
    %cst_67 = arith.constant dense<0.000000e+00> : vector<12x239xf32>
    %199 = tpu.matmul %198, %197, %cst_67 {dimension_numbers = #tpu.dot_dimension_numbers<[1], [0], [0], [1], [0, 0, 1, 1], [], []>} : vector<12x64xf32>, vector<64x239xf32>, vector<12x239xf32> -> vector<12x239xf32>
    %c0_68 = arith.constant 0 : index
    %c0_69 = arith.constant 0 : index
    %200 = vector.load %arg12[%c0_68, %c0_69] : memref<12x1xf32, #tpu.memory_space<vmem>>, vector<12x1xf32>
    %201 = vector.broadcast %200 : vector<12x1xf32> to vector<12x239xf32>
    %202 = arith.addf %199, %201 : vector<12x239xf32>
    %203 = arith.negf %202 : vector<12x239xf32>
    %204 = math.exp %203 : vector<12x239xf32>
    %cst_70 = arith.constant 1.000000e+00 : f32
    %205 = vector.broadcast %cst_70 : f32 to vector<12x239xf32>
    %206 = arith.addf %205, %204 : vector<12x239xf32>
    %207 = arith.divf %205, %206 : vector<12x239xf32>
    %c0_71 = arith.constant 0 : index
    %c0_72 = arith.constant 0 : index
    %208 = vector.load %arg13[%c0_71, %c0_72] : memref<222x784xf32, #tpu.memory_space<vmem>>, vector<222x784xf32>
    %209 = vector.extract_strided_slice %207 {offsets = [0, 0], sizes = [3, 222], strides = [1, 1]} : vector<12x239xf32> to vector<3x222xf32>
    %cst_73 = arith.constant dense<0.000000e+00> : vector<3x784xf32>
    %210 = tpu.matmul %209, %208, %cst_73 {dimension_numbers = #tpu.dot_dimension_numbers<[1], [0], [0], [1], [0, 0, 1, 1], [], []>} : vector<3x222xf32>, vector<222x784xf32>, vector<3x784xf32> -> vector<3x784xf32>
    %211 = vector.extract_strided_slice %207 {offsets = [3, 1], sizes = [3, 222], strides = [1, 1]} : vector<12x239xf32> to vector<3x222xf32>
    %cst_74 = arith.constant dense<0.000000e+00> : vector<3x784xf32>
    %212 = tpu.matmul %211, %208, %cst_74 {dimension_numbers = #tpu.dot_dimension_numbers<[1], [0], [0], [1], [0, 0, 1, 1], [], []>} : vector<3x222xf32>, vector<222x784xf32>, vector<3x784xf32> -> vector<3x784xf32>
    %cst_75 = arith.constant 0.000000e+00 : f32
    %213 = vector.broadcast %cst_75 : f32 to vector<3x1xf32>
    %214 = vector.extract_strided_slice %212 {offsets = [0, 0], sizes = [3, 783], strides = [1, 1]} : vector<3x784xf32> to vector<3x783xf32>
    %215 = tpu.concatenate %213, %214 in 1 : vector<3x1xf32>, vector<3x783xf32> -> vector<3x784xf32>
    %216 = arith.addf %210, %215 : vector<3x784xf32>
    %217 = vector.extract_strided_slice %207 {offsets = [6, 16], sizes = [3, 222], strides = [1, 1]} : vector<12x239xf32> to vector<3x222xf32>
    %cst_76 = arith.constant dense<0.000000e+00> : vector<3x784xf32>
    %218 = tpu.matmul %217, %208, %cst_76 {dimension_numbers = #tpu.dot_dimension_numbers<[1], [0], [0], [1], [0, 0, 1, 1], [], []>} : vector<3x222xf32>, vector<222x784xf32>, vector<3x784xf32> -> vector<3x784xf32>
    %cst_77 = arith.constant 0.000000e+00 : f32
    %219 = vector.broadcast %cst_77 : f32 to vector<3x28xf32>
    %220 = vector.extract_strided_slice %218 {offsets = [0, 0], sizes = [3, 756], strides = [1, 1]} : vector<3x784xf32> to vector<3x756xf32>
    %221 = tpu.concatenate %219, %220 in 1 : vector<3x28xf32>, vector<3x756xf32> -> vector<3x784xf32>
    %222 = arith.addf %216, %221 : vector<3x784xf32>
    %223 = vector.extract_strided_slice %207 {offsets = [9, 17], sizes = [3, 222], strides = [1, 1]} : vector<12x239xf32> to vector<3x222xf32>
    %cst_78 = arith.constant dense<0.000000e+00> : vector<3x784xf32>
    %224 = tpu.matmul %223, %208, %cst_78 {dimension_numbers = #tpu.dot_dimension_numbers<[1], [0], [0], [1], [0, 0, 1, 1], [], []>} : vector<3x222xf32>, vector<222x784xf32>, vector<3x784xf32> -> vector<3x784xf32>
    %cst_79 = arith.constant 0.000000e+00 : f32
    %225 = vector.broadcast %cst_79 : f32 to vector<3x29xf32>
    %226 = vector.extract_strided_slice %224 {offsets = [0, 0], sizes = [3, 755], strides = [1, 1]} : vector<3x784xf32> to vector<3x755xf32>
    %227 = tpu.concatenate %225, %226 in 1 : vector<3x29xf32>, vector<3x755xf32> -> vector<3x784xf32>
    %228 = arith.addf %222, %227 : vector<3x784xf32>
    %c0_80 = arith.constant 0 : index
    %c0_81 = arith.constant 0 : index
    %c0_82 = arith.constant 0 : index
    %229 = vector.load %arg14[%c0_80, %c0_81, %c0_82] : memref<1x3x784xf32, #tpu.memory_space<vmem>>, vector<1x3x784xf32>
    %230 = vector.shape_cast %229 : vector<1x3x784xf32> to vector<3x784xf32>
    %231 = vector.shape_cast %228 : vector<3x784xf32> to vector<1x3x784xf32>
    tpu.vector_store %arg14[%c0_80, %c0_81, %c0_82], %231 {strides = array<i32>} : memref<1x3x784xf32, #tpu.memory_space<vmem>>, vector<1x3x784xf32>,
    return
  }
  func.func @transform_0(%arg0: i32) -> (i32, i32, i32) {
    %c0_i32 = arith.constant 0 : i32
    %c0_i32_0 = arith.constant 0 : i32
    %c0_i32_1 = arith.constant 0 : i32
    return %arg0, %c0_i32, %c0_i32_0 : i32, i32, i32
  }
  func.func @transform_1(%arg0: i32) -> (i32, i32) {
    %c0_i32 = arith.constant 0 : i32
    %c0_i32_0 = arith.constant 0 : i32
    %c0_i32_1 = arith.constant 0 : i32
    return %c0_i32, %c0_i32_0 : i32, i32
  }
  func.func @transform_2(%arg0: i32) -> (i32, i32) {
    %c0_i32 = arith.constant 0 : i32
    %c0_i32_0 = arith.constant 0 : i32
    %c0_i32_1 = arith.constant 0 : i32
    return %c0_i32, %c0_i32_0 : i32, i32
  }
  func.func @transform_3(%arg0: i32) -> (i32, i32) {
    %c0_i32 = arith.constant 0 : i32
    %c0_i32_0 = arith.constant 0 : i32
    %c0_i32_1 = arith.constant 0 : i32
    return %c0_i32, %c0_i32_0 : i32, i32
  }
  func.func @transform_4(%arg0: i32) -> (i32, i32) {
    %c0_i32 = arith.constant 0 : i32
    %c0_i32_0 = arith.constant 0 : i32
    %c0_i32_1 = arith.constant 0 : i32
    return %c0_i32, %c0_i32_0 : i32, i32
  }
  func.func @transform_5(%arg0: i32) -> (i32, i32) {
    %c0_i32 = arith.constant 0 : i32
    %c0_i32_0 = arith.constant 0 : i32
    %c0_i32_1 = arith.constant 0 : i32
    return %c0_i32, %c0_i32_0 : i32, i32
  }
  func.func @transform_6(%arg0: i32) -> (i32, i32, i32) {
    %c0_i32 = arith.constant 0 : i32
    %c0_i32_0 = arith.constant 0 : i32
    %c0_i32_1 = arith.constant 0 : i32
    %c0_i32_2 = arith.constant 0 : i32
    return %c0_i32, %c0_i32_0, %c0_i32_1 : i32, i32, i32
  }
  func.func @transform_7(%arg0: i32) -> (i32, i32) {
    %c0_i32 = arith.constant 0 : i32
    %c0_i32_0 = arith.constant 0 : i32
    %c0_i32_1 = arith.constant 0 : i32
    return %c0_i32, %c0_i32_0 : i32, i32
  }
  func.func @transform_8(%arg0: i32) -> (i32, i32) {
    %c0_i32 = arith.constant 0 : i32
    %c0_i32_0 = arith.constant 0 : i32
    %c0_i32_1 = arith.constant 0 : i32
    return %c0_i32, %c0_i32_0 : i32, i32
  }
  func.func @transform_9(%arg0: i32) -> (i32, i32, i32) {
    %c0_i32 = arith.constant 0 : i32
    %c0_i32_0 = arith.constant 0 : i32
    %c0_i32_1 = arith.constant 0 : i32
    %c0_i32_2 = arith.constant 0 : i32
    return %c0_i32, %c0_i32_0, %c0_i32_1 : i32, i32, i32
  }
  func.func @transform_10(%arg0: i32) -> (i32, i32) {
    %c0_i32 = arith.constant 0 : i32
    %c0_i32_0 = arith.constant 0 : i32
    %c0_i32_1 = arith.constant 0 : i32
    return %c0_i32, %c0_i32_0 : i32, i32
  }
  func.func @transform_11(%arg0: i32) -> (i32, i32) {
    %c0_i32 = arith.constant 0 : i32
    %c0_i32_0 = arith.constant 0 : i32
    %c0_i32_1 = arith.constant 0 : i32
    return %c0_i32, %c0_i32_0 : i32, i32
  }
  func.func @transform_12(%arg0: i32) -> (i32, i32) {
    %c0_i32 = arith.constant 0 : i32
    %c0_i32_0 = arith.constant 0 : i32
    %c0_i32_1 = arith.constant 0 : i32
    return %c0_i32, %c0_i32_0 : i32, i32
  }
  func.func @transform_13(%arg0: i32) -> (i32, i32, i32) {
    %c0_i32 = arith.constant 0 : i32
    %c0_i32_0 = arith.constant 0 : i32
    %c0_i32_1 = arith.constant 0 : i32
    return %arg0, %c0_i32, %c0_i32_0 : i32, i32, i32
  }
}

</mosaic_0001>

<bundles_post_ra>
// kernel: decoder_forward.1
= control target key start
LH: loop header
LB: loop body
LE: loop exit
PB: predicated region body
PF: predicated region fallthrough
CT: control target
= control target key end

     0   :  { %18 = vsyncpa [#allocation3], 0  ;;  %s5821_s25 = smov 0   ;;  %s8902_s0 = inlined_call_operand.vmem [shape: f32[2,40,1], index: 0, kind: input, shape index: {}]   ;;  %s8903_s1 = inlined_call_operand.vmem [shape: f32[512,40], index: 1, kind: input, shape index: {}]   ;;  %s8904_s2 = inlined_call_operand.vmem [shape: f32[512,1], index: 2, kind: input, shape index: {}]   ;;  %s8905_s3 = inlined_call_operand.vmem [shape: f32[4,16], index: 3, kind: input, shape index: {}]   ;;  %s8906_s4 = inlined_call_operand.vmem [shape: f32[128,512], index: 4, kind: input, shape index: {}]   ;;  %s8907_s5 = inlined_call_operand.vmem [shape: f32[128,1], index: 5, kind: input, shape index: {}]   ;;  %s8908_s6 = inlined_call_operand.vmem [shape: f32[4,11,64], index: 6, kind: input, shape index: {}]   ;;  %s8909_s7 = inlined_call_operand.vmem [shape: f32[64,128], index: 7, kind: input, shape index: {}]   ;;  %s8910_s8 = inlined_call_operand.vmem [shape: f32[64,1], index: 8, kind: input, shape index: {}]   ;;  %s8911_s9 = inlined_call_operand.vmem [shape: f32[4,55,256], index: 9, kind: input, shape index: {}]   ;;  %s8912_s10 = inlined_call_operand.vmem [shape: f32[12,64], index: 10, kind: input, shape index: {}]   ;;  %s8913_s11 = inlined_call_operand.vmem [shape: f32[12,1], index: 11, kind: input, shape index: {}]   ;;  %s8914_s12 = inlined_call_operand.hbm [shape: f32[222,784], index: 12, kind: input, shape index: {}]   ;;  %s8915_s13 = inlined_call_operand.vmem [shape: f32[2,3,784], index: 13, kind: output, shape index: {}]  }
   0x1 LB: > { %s377_s28 = sshll.u32 %s8914_s12, 4  ;;  %s5051_s29 = sadd.s32 4294967295, %s5734_s25   ;;  %s5734_s25 = sphi %s5821_s25, %s24_s25   ;;  %s378_s28 = int_to_ptr.hbm [resolvable:$true] %s377_s28 }
   0x2   : > { %p5053_p0 = scmp.ge.s32.totalorder %s5734_s25, 1  ;;  %p333_p1 = scmp.lt.s32.totalorder %s5734_s25, 3 }
   0x3   : > { %p5290_p2 = scmp.eq.s32.totalorder %s5051_s29, 0  ;;  %s5736_s30 = smov [#allocation2]  }
   0x4   : > { %p334_p3 = pnand %p5053_p0, %p333_p1  ;;  %s379_s14 = sshll.u32 %s5736_s30, 4  ;;  %s380_s14 = int_to_ptr.vmem [resolvable:$true] %s379_s14 }
   0x5   : > { %s5737_s15 = smov 896   ;;  %s5738_s16 = smov 56  }
   0x6   : > { %p5286_p4 = pneg %p334_p3  ;;  %403 = sbr.rel (%p334_p3) target bundleno = 3986 (0xf92), region = 72 }
   0x8   : > { %p5287_p5 = pnand %p5290_p2, %p5286_p4 }
   0xa   : > { %5289 = dma.hbm_to_vmem [thread:$0]  (!%p5287_p5), %s378_s28, 25088, %s380_s14, [#allocation3], %s5737_s15, %s5737_s15, %s5738_s16  }
   0xb   : > { %5729 = dma.done.wait (%p5290_p2), [#allocation3], 25088  }
   0xc   : > { %5731 = vsyncadd (%p5290_p2), [#allocation3], 4294942208  ;;  %p448_p6 = scmp.lt.s32.totalorder %s5051_s29, 1  ;;  %v458_v5 = vld [vmem:[%s8903_s1] sm:$0xff]  ;;  %vm591_vm0 = vcmask 326656   ;;  %v459_v6 = vld [vmem:[%s8903_s1 + $0x8] sm:$0xff] }
   0xd   : > { %v460_v7 = vld [vmem:[%s8903_s1 + $0x10] sm:$0xff]  ;;  %v461_v8 = vld [vmem:[%s8903_s1 + $0x18] sm:$0xff]  ;;  %v462_v9 = vld [vmem:[%s8903_s1 + $0x20] sm:$0xff]  ;;  %v5739_v20 = vmov 0   ;;  %s5740_s24 = smov 127   ;;  %s5741_s26 = smov 124  }
   0xe   : > { %s9367_s29 = smov (!%p448_p6, %s5051_s29), 1  ;;  %v463_v10 = vld [vmem:[%s8903_s1 + $0x28] sm:$0xff]  ;;  %v464_v11 = vld [vmem:[%s8903_s1 + $0x30] sm:$0xff]  ;;  %v465_v12 = vld [vmem:[%s8903_s1 + $0x38] sm:$0xff]  ;;  %5315 = vset.pattern.permute.xlu1 %v5739_v20  ;;  %5316 = vset.pattern.permute.xlu0 %v5739_v20  ;;  %s5742_s27 = smov 123  }
   0xf   : > { %s5280_s17 = smul.u32 40, %s9367_s29  ;;  %v466_v13 = vld [vmem:[%s8903_s1 + $0x40] sm:$0xff]  ;;  %v467_v14 = vld [vmem:[%s8903_s1 + $0x48] sm:$0xff]  ;;  %v468_v15 = vld [vmem:[%s8903_s1 + $0x50] sm:$0xff]  ;;  %5317 = vset.pattern.permute.xlu2 %v5739_v20  ;;  %s5745_s21 = smov 120  }
  0x10   : > { %v469_v16 = vld [vmem:[%s8903_s1 + $0x58] sm:$0xff]  ;;  %v470_v17 = vld [vmem:[%s8903_s1 + $0x60] sm:$0xff]  ;;  %v471_v18 = vld [vmem:[%s8903_s1 + $0x68] sm:$0xff]  ;;  %s5746_s28 = smov 112   ;;  %s5747_s30 = smov 111  }
  0x11   : > { %s452_s20 = scalar_lea.vmem %s8902_s0, %s5280_s17  ;;  %v472_v19 = vld [vmem:[%s8903_s1 + $0x70] sm:$0xff]  ;;  %v473_v21 = vld [vmem:[%s8903_s1 + $0x78] sm:$0xff]  ;;  %v474_v23 = vld [vmem:[%s8903_s1 + $0x80] sm:$0xff]  ;;  %s5749_s22 = smov 28  }
  0x12   : > { %v526_v0 = vld [vmem:[%s452_s20 + $0x20] sm:$0xff]  ;;  %v525_v1 = vld [vmem:[%s452_s20 + $0x18] sm:$0xff]  ;;  %v524_v2 = vld [vmem:[%s452_s20 + $0x10] sm:$0xff]  ;;  %s5750_s23 = smov 29  }
  0x13   : > { %795 = vmatpush.msra.mxu0 %v526_v0  ;;  %v523_v3 = vld [vmem:[%s452_s20 + $0x8] sm:$0xff]  ;;  %v522_v4 = vld [vmem:[%s452_s20] sm:$0xff]  ;;  %v529_v26 = vld [vmem:[%s8904_s2 + $0x10] sm:$0xff]  ;;  %s5744_s20 = smov 119  }
  0x14   : > { %v475_v25 = vld [vmem:[%s8903_s1 + $0x88] sm:$0xff]  ;;  %v476_v28 = vld [vmem:[%s8903_s1 + $0x90] sm:$0xff]  ;;  %v530_v32 = vld [vmem:[%s8904_s2 + $0x18] sm:$0xff] }
  0x15   : > { %796 = vmatpush.msra.mxu0 %v525_v1  ;;  %v477_v34 = vld [vmem:[%s8903_s1 + $0x98] sm:$0xff]  ;;  %v531_v38 = vld [vmem:[%s8904_s2 + $0x20] sm:$0xff]  ;;  %v532_v44 = vld [vmem:[%s8904_s2 + $0x28] sm:$0xff] }
  0x16   : > { %v478_v40 = vld [vmem:[%s8903_s1 + $0xa0] sm:$0xff]  ;;  %v479_v46 = vld [vmem:[%s8903_s1 + $0xa8] sm:$0xff]  ;;  %v533_v50 = vld [vmem:[%s8904_s2 + $0x30] sm:$0xff] }
  0x17   : > { %797 = vmatpush.msra.mxu0 %v524_v2  ;;  %v480_v52 = vld [vmem:[%s8903_s1 + $0xb0] sm:$0xff]  ;;  %v534_v56 = vld [vmem:[%s8904_s2 + $0x38] sm:$0xff]  ;;  %v535_v62 = vld [vmem:[%s8904_s2 + $0x40] sm:$0xff] }
  0x18   : > { %v481_v58 = vld [vmem:[%s8903_s1 + $0xb8] sm:$0xff]  ;;  %v482_v0 = vld [vmem:[%s8903_s1 + $0xc0] sm:$0xff] }
  0x19   : > { %798 = vmatpush.msra.mxu0 %v523_v3 }
  0x1b   : > { %799 = vmatpush.msra.mxu0 %v522_v4  ;;  %v536_v4 = vld [vmem:[%s8904_s2 + $0x48] sm:$0xff] }
  0x1c   : > { %5060 = vmatmul.msk.f32.vlgmr.msra.gmra.mxu0 %vm591_vm0, %v458_v5 }
  0x24   : > { %5061 = vmatmul.msk.f32.gmra.mxu0 %vm591_vm0, %v459_v6  ;;  %v483_v6 = vld [vmem:[%s8903_s1 + $0xc8] sm:$0xff] }
  0x2c   : > { %5062 = vmatmul.msk.f32.gmra.mxu0 %vm591_vm0, %v460_v7 }
  0x34   : > { %5063 = vmatmul.msk.f32.gmra.mxu0 %vm591_vm0, %v461_v8 }
  0x3c   : > { %5064 = vmatmul.msk.f32.gmra.mxu0 %vm591_vm0, %v462_v9 }
  0x44   : > { %5065 = vmatmul.msk.f32.gmra.mxu0 %vm591_vm0, %v463_v10  ;;  %v537_v10 = vld [vmem:[%s8904_s2 + $0x50] sm:$0xff] }
  0x4c   : > { %5066 = vmatmul.msk.f32.gmra.mxu0 %vm591_vm0, %v464_v11 }
  0x54   : > { %5067 = vmatmul.msk.f32.gmra.mxu0 %vm591_vm0, %v465_v12  ;;  %v484_v12 = vld [vmem:[%s8903_s1 + $0xd0] sm:$0xff] }
  0x5c   : > { %5068 = vmatmul.msk.f32.gmra.mxu0 %vm591_vm0, %v466_v13 }
  0x64   : > { %5069 = vmatmul.msk.f32.gmra.mxu0 %vm591_vm0, %v467_v14 }
  0x6c   : > { %5070 = vmatmul.msk.f32.gmra.mxu0 %vm591_vm0, %v468_v15 }
  0x74   : > { %5071 = vmatmul.msk.f32.gmra.mxu0 %vm591_vm0, %v469_v16  ;;  %v538_v16 = vld [vmem:[%s8904_s2 + $0x58] sm:$0xff] }
  0x7c   : > { %5072 = vmatmul.msk.f32.gmra.mxu0 %vm591_vm0, %v470_v17 }
  0x84   : > { %5073 = vmatmul.msk.f32.gmra.mxu0 %vm591_vm0, %v471_v18  ;;  %v485_v18 = vld [vmem:[%s8903_s1 + $0xd8] sm:$0xff] }
  0x8c   : > { %5074 = vmatmul.msk.f32.gmra.mxu0 %vm591_vm0, %v472_v19 }
  0x94   : > { %5075 = vmatmul.msk.f32.gmra.mxu0 %vm591_vm0, %v473_v21 }
  0x99   : > { %v5902_v22 = vpop.f32.mrf.mxu0 }
  0x9c   : > { %5076 = vmatmul.msk.f32.gmra.mxu0 %vm591_vm0, %v474_v23  ;;  %v539_v23 = vld [vmem:[%s8904_s2 + $0x60] sm:$0xff] }
  0xa1   : > { %v5908_v24 = vpop.f32.mrf.mxu0 }
  0xa4   : > { %5077 = vmatmul.msk.f32.gmra.mxu0 %vm591_vm0, %v475_v25 }
  0xa9   : > { %v807_v27 = vpop.f32.mrf.mxu0 }
  0xaa   : > { %v808_v29 = vadd.f32 %v807_v27, %v529_v26  ;;  %v486_v26 = vld [vmem:[%s8903_s1 + $0xe0] sm:$0xff] }
  0xac   : > { %5078 = vmatmul.msk.f32.gmra.mxu0 %vm591_vm0, %v476_v28  ;;  %vm995_vm1 = vcmp.ge.f32.partialorder %v808_v29, 0.0  ;;  %v1059_v30 = vmul.f32 0.2, %v808_v29 }
  0xae   : > { %v1123_v31 = vsel %vm995_vm1, %v808_v29, %v1059_v30  ;;  %v540_v30 = vld [vmem:[%s8904_s2 + $0x68] sm:$0xff] }
  0xaf   : > { %1198 = vperm.xlu1 %5315, %v1123_v31  }
  0xb1   : > { %v810_v33 = vpop.f32.mrf.mxu0 }
  0xb2   : > { %v811_v35 = vadd.f32 %v810_v33, %v530_v32  ;;  %v487_v32 = vld [vmem:[%s8903_s1 + $0xe8] sm:$0xff] }
  0xb4   : > { %5079 = vmatmul.msk.f32.gmra.mxu0 %vm591_vm0, %v477_v34  ;;  %vm996_vm2 = vcmp.ge.f32.partialorder %v811_v35, 0.0  ;;  %v1060_v36 = vmul.f32 0.2, %v811_v35 }
  0xb6   : > { %v1124_v37 = vsel %vm996_vm2, %v811_v35, %v1060_v36  ;;  %v541_v36 = vld [vmem:[%s8904_s2 + $0x70] sm:$0xff] }
  0xb7   : > { %1203 = vperm.xlu0 %5316, %v1124_v37  }
  0xb9   : > { %v813_v39 = vpop.f32.mrf.mxu0 }
  0xba   : > { %v814_v41 = vadd.f32 %v813_v39, %v531_v38  ;;  %v488_v38 = vld [vmem:[%s8903_s1 + $0xf0] sm:$0xff] }
  0xbc   : > { %5080 = vmatmul.msk.f32.gmra.mxu0 %vm591_vm0, %v478_v40  ;;  %vm997_vm3 = vcmp.ge.f32.partialorder %v814_v41, 0.0  ;;  %v1061_v42 = vmul.f32 0.2, %v814_v41 }
  0xbe   : > { %v1125_v43 = vsel %vm997_vm3, %v814_v41, %v1061_v42  ;;  %v542_v42 = vld [vmem:[%s8904_s2 + $0x78] sm:$0xff] }
  0xbf   : > { %1208 = vperm.xlu2 %5317, %v1125_v43  }
  0xc1   : > { %v816_v45 = vpop.f32.mrf.mxu0 }
  0xc2   : > { %v817_v47 = vadd.f32 %v816_v45, %v532_v44  ;;  %v489_v44 = vld [vmem:[%s8903_s1 + $0xf8] sm:$0xff] }
  0xc4   : > { %5081 = vmatmul.msk.f32.gmra.mxu0 %vm591_vm0, %v479_v46  ;;  %vm998_vm4 = vcmp.ge.f32.partialorder %v817_v47, 0.0  ;;  %v1062_v48 = vmul.f32 0.2, %v817_v47 }
  0xc6   : > { %v1126_v49 = vsel %vm998_vm4, %v817_v47, %v1062_v48 }
  0xc7   : > { %1213 = vperm.xlu1 %5315, %v1126_v49   ;;  %v490_v49 = vld [vmem:[%s8903_s1 + $0x100] sm:$0xff] }
  0xc9   : > { %v819_v51 = vpop.f32.mrf.mxu0 }
  0xca   : > { %v820_v53 = vadd.f32 %v819_v51, %v533_v50  ;;  %v491_v51 = vld [vmem:[%s8903_s1 + $0x108] sm:$0xff] }
  0xcc   : > { %5082 = vmatmul.msk.f32.gmra.mxu0 %vm591_vm0, %v480_v52  ;;  %vm999_vm5 = vcmp.ge.f32.partialorder %v820_v53, 0.0  ;;  %v1063_v54 = vmul.f32 0.2, %v820_v53  ;;  %v545_v52 = vld [vmem:[%s8904_s2 + $0x90] sm:$0xff] }
  0xce   : > { %v1127_v55 = vsel %vm999_vm5, %v820_v53, %v1063_v54  ;;  %v492_v54 = vld [vmem:[%s8903_s1 + $0x110] sm:$0xff] }
  0xcf   : > { %1218 = vperm.xlu0 %5316, %v1127_v55  }
  0xd1   : > { %v822_v57 = vpop.f32.mrf.mxu0 }
  0xd2   : > { %v823_v59 = vadd.f32 %v822_v57, %v534_v56 }
  0xd4   : > { %5083 = vmatmul.msk.f32.gmra.mxu0 %vm591_vm0, %v481_v58  ;;  %vm1000_vm6 = vcmp.ge.f32.partialorder %v823_v59, 0.0  ;;  %v1064_v60 = vmul.f32 0.2, %v823_v59  ;;  %v546_v58 = vld [vmem:[%s8904_s2 + $0x98] sm:$0xff] }
  0xd6   : > { %v1128_v61 = vsel %vm1000_vm6, %v823_v59, %v1064_v60  ;;  %v493_v60 = vld [vmem:[%s8903_s1 + $0x118] sm:$0xff] }
  0xd7   : > { %1223 = vperm.xlu2 %5317, %v1128_v61  }
  0xd9   : > { %v825_v63 = vpop.f32.mrf.mxu0 }
  0xda   : > { %v826_v1 = vadd.f32 %v825_v63, %v535_v62 }
  0xdc   : > { %5084 = vmatmul.msk.f32.gmra.mxu0 %vm591_vm0, %v482_v0  ;;  %vm1001_vm7 = vcmp.ge.f32.partialorder %v826_v1, 0.0  ;;  %v1065_v2 = vmul.f32 0.2, %v826_v1  ;;  %v547_v0 = vld [vmem:[%s8904_s2 + $0xa0] sm:$0xff] }
  0xde   : > { %v1129_v3 = vsel %vm1001_vm7, %v826_v1, %v1065_v2  ;;  %v494_v2 = vld [vmem:[%s8903_s1 + $0x120] sm:$0xff] }
  0xdf   : > { %1228 = vperm.xlu1 %5315, %v1129_v3  }
  0xe1   : > { %v828_v5 = vpop.f32.mrf.mxu0 }
  0xe2   : > { %v829_v7 = vadd.f32 %v828_v5, %v536_v4 }
  0xe4   : > { %5085 = vmatmul.msk.f32.gmra.mxu0 %vm591_vm0, %v483_v6  ;;  %vm1002_vm8 = vcmp.ge.f32.partialorder %v829_v7, 0.0  ;;  %v1066_v8 = vmul.f32 0.2, %v829_v7  ;;  %v548_v6 = vld [vmem:[%s8904_s2 + $0xa8] sm:$0xff] }
  0xe6   : > { %v1130_v9 = vsel %vm1002_vm8, %v829_v7, %v1066_v8  ;;  %v495_v8 = vld [vmem:[%s8903_s1 + $0x128] sm:$0xff] }
  0xe7   : > { %1233 = vperm.xlu0 %5316, %v1130_v9  }
  0xe9   : > { %v831_v11 = vpop.f32.mrf.mxu0 }
  0xea   : > { %v832_v13 = vadd.f32 %v831_v11, %v537_v10 }
  0xec   : > { %5086 = vmatmul.msk.f32.gmra.mxu0 %vm591_vm0, %v484_v12  ;;  %vm1003_vm9 = vcmp.ge.f32.partialorder %v832_v13, 0.0  ;;  %v1067_v14 = vmul.f32 0.2, %v832_v13  ;;  %v549_v12 = vld [vmem:[%s8904_s2 + $0xb0] sm:$0xff] }
  0xee   : > { %v1131_v15 = vsel %vm1003_vm9, %v832_v13, %v1067_v14  ;;  %v496_v14 = vld [vmem:[%s8903_s1 + $0x130] sm:$0xff] }
  0xef   : > { %1238 = vperm.xlu2 %5317, %v1131_v15  }
  0xf1   : > { %v834_v17 = vpop.f32.mrf.mxu0 }
  0xf2   : > { %v835_v19 = vadd.f32 %v834_v17, %v538_v16 }
  0xf4   : > { %5087 = vmatmul.msk.f32.gmra.mxu0 %vm591_vm0, %v485_v18  ;;  %vm1004_vm10 = vcmp.ge.f32.partialorder %v835_v19, 0.0  ;;  %v1068_v20 = vmul.f32 0.2, %v835_v19  ;;  %v550_v18 = vld [vmem:[%s8904_s2 + $0xb8] sm:$0xff] }
  0xf6   : > { %v1132_v21 = vsel %vm1004_vm10, %v835_v19, %v1068_v20  ;;  %v497_v20 = vld [vmem:[%s8903_s1 + $0x138] sm:$0xff] }
  0xf7   : > { %1243 = vperm.xlu1 %5315, %v1132_v21  }
  0xf9   : > { %v837_v25 = vpop.f32.mrf.mxu0 }
  0xfa   : > { %v838_v27 = vadd.f32 %v837_v25, %v539_v23 }
  0xfc   : > { %5088 = vmatmul.msk.f32.gmra.mxu0 %vm591_vm0, %v486_v26  ;;  %vm1005_vm11 = vcmp.ge.f32.partialorder %v838_v27, 0.0  ;;  %v1069_v28 = vmul.f32 0.2, %v838_v27  ;;  %v551_v26 = vld [vmem:[%s8904_s2 + $0xc0] sm:$0xff] }
  0xfe   : > { %v1133_v29 = vsel %vm1005_vm11, %v838_v27, %v1069_v28  ;;  %v498_v28 = vld [vmem:[%s8903_s1 + $0x140] sm:$0xff] }
  0xff   : > { %1248 = vperm.xlu0 %5316, %v1133_v29  }
 0x101   : > { %v840_v31 = vpop.f32.mrf.mxu0 }
 0x102   : > { %v841_v33 = vadd.f32 %v840_v31, %v540_v30 }
 0x104   : > { %5089 = vmatmul.msk.f32.gmra.mxu0 %vm591_vm0, %v487_v32  ;;  %vm1006_vm12 = vcmp.ge.f32.partialorder %v841_v33, 0.0  ;;  %v1070_v34 = vmul.f32 0.2, %v841_v33  ;;  %v552_v32 = vld [vmem:[%s8904_s2 + $0xc8] sm:$0xff] }
 0x106   : > { %v1134_v35 = vsel %vm1006_vm12, %v841_v33, %v1070_v34  ;;  %v499_v34 = vld [vmem:[%s8903_s1 + $0x148] sm:$0xff] }
 0x107   : > { %1253 = vperm.xlu2 %5317, %v1134_v35  }
 0x109   : > { %v843_v37 = vpop.f32.mrf.mxu0 }
 0x10a   : > { %v844_v39 = vadd.f32 %v843_v37, %v541_v36 }
 0x10c   : > { %5090 = vmatmul.msk.f32.gmra.mxu0 %vm591_vm0, %v488_v38  ;;  %vm1007_vm13 = vcmp.ge.f32.partialorder %v844_v39, 0.0  ;;  %v1071_v40 = vmul.f32 0.2, %v844_v39  ;;  %v553_v38 = vld [vmem:[%s8904_s2 + $0xd0] sm:$0xff] }
 0x10e   : > { %v1135_v41 = vsel %vm1007_vm13, %v844_v39, %v1071_v40  ;;  %v500_v40 = vld [vmem:[%s8903_s1 + $0x150] sm:$0xff] }
 0x10f   : > { %1258 = vperm.xlu1 %5315, %v1135_v41  }
 0x111   : > { %v846_v43 = vpop.f32.mrf.mxu0 }
 0x112   : > { %v847_v45 = vadd.f32 %v846_v43, %v542_v42 }
 0x114   : > { %5091 = vmatmul.msk.f32.gmra.mxu0 %vm591_vm0, %v489_v44  ;;  %vm1008_vm14 = vcmp.ge.f32.partialorder %v847_v45, 0.0  ;;  %v1072_v46 = vmul.f32 0.2, %v847_v45  ;;  %v554_v44 = vld [vmem:[%s8904_s2 + $0xd8] sm:$0xff] }
 0x116   : > { %v1136_v47 = vsel %vm1008_vm14, %v847_v45, %v1072_v46  ;;  %v501_v46 = vld [vmem:[%s8903_s1 + $0x158] sm:$0xff] }
 0x117   : > { %1263 = vperm.xlu0 %5316, %v1136_v47  }
 0x119   : > { %v6012_v48 = vpop.f32.mrf.mxu0 }
 0x11c   : > { %5092 = vmatmul.msk.f32.gmra.mxu0 %vm591_vm0, %v490_v49 }
 0x121   : > { %v6018_v50 = vpop.f32.mrf.mxu0 }
 0x124   : > { %5093 = vmatmul.msk.f32.gmra.mxu0 %vm591_vm0, %v491_v51 }
 0x129   : > { %v855_v53 = vpop.f32.mrf.mxu0 }
 0x12a   : > { %v856_v55 = vadd.f32 %v855_v53, %v545_v52  ;;  %v555_v52 = vld [vmem:[%s8904_s2 + $0xe0] sm:$0xff] }
 0x12c   : > { %5094 = vmatmul.msk.f32.gmra.mxu0 %vm591_vm0, %v492_v54  ;;  %vm1011_vm15 = vcmp.ge.f32.partialorder %v856_v55, 0.0  ;;  %v1075_v56 = vmul.f32 0.2, %v856_v55  ;;  %v502_v54 = vld [vmem:[%s8903_s1 + $0x160] sm:$0xff] }
 0x12e   : > { %v1139_v57 = vsel %vm1011_vm15, %v856_v55, %v1075_v56 }
 0x12f   : > { %1295 = vperm.xlu2 %5317, %v1139_v57  }
 0x131   : > { %v858_v59 = vpop.f32.mrf.mxu0 }
 0x132   : > { %v859_v61 = vadd.f32 %v858_v59, %v546_v58  ;;  %v556_v58 = vld [vmem:[%s8904_s2 + $0xe8] sm:$0xff] }
 0x134   : > { %5095 = vmatmul.msk.f32.gmra.mxu0 %vm591_vm0, %v493_v60  ;;  %vm1012_vm1 = vcmp.ge.f32.partialorder %v859_v61, 0.0  ;;  %v1076_v62 = vmul.f32 0.2, %v859_v61  ;;  %v503_v60 = vld [vmem:[%s8903_s1 + $0x168] sm:$0xff] }
 0x136   : > { %v1140_v63 = vsel %vm1012_vm1, %v859_v61, %v1076_v62 }
 0x137   : > { %1300 = vperm.xlu1 %5315, %v1140_v63  }
 0x139   : > { %v861_v1 = vpop.f32.mrf.mxu0 }
 0x13a   : > { %v862_v3 = vadd.f32 %v861_v1, %v547_v0  ;;  %v557_v0 = vld [vmem:[%s8904_s2 + $0xf0] sm:$0xff] }
 0x13c   : > { %5096 = vmatmul.msk.f32.gmra.mxu0 %vm591_vm0, %v494_v2  ;;  %vm1013_vm2 = vcmp.ge.f32.partialorder %v862_v3, 0.0  ;;  %v1077_v4 = vmul.f32 0.2, %v862_v3  ;;  %v504_v2 = vld [vmem:[%s8903_s1 + $0x170] sm:$0xff] }
 0x13e   : > { %v1141_v5 = vsel %vm1013_vm2, %v862_v3, %v1077_v4 }
 0x13f   : > { %1305 = vperm.xlu0 %5316, %v1141_v5  }
 0x141   : > { %v864_v7 = vpop.f32.mrf.mxu0 }
 0x142   : > { %v865_v9 = vadd.f32 %v864_v7, %v548_v6  ;;  %v558_v6 = vld [vmem:[%s8904_s2 + $0xf8] sm:$0xff] }
 0x144   : > { %5097 = vmatmul.msk.f32.gmra.mxu0 %vm591_vm0, %v495_v8  ;;  %vm1014_vm3 = vcmp.ge.f32.partialorder %v865_v9, 0.0  ;;  %v1078_v10 = vmul.f32 0.2, %v865_v9  ;;  %v505_v8 = vld [vmem:[%s8903_s1 + $0x178] sm:$0xff] }
 0x146   : > { %v1142_v11 = vsel %vm1014_vm3, %v865_v9, %v1078_v10 }
 0x147   : > { %1310 = vperm.xlu2 %5317, %v1142_v11  }
 0x149   : > { %v867_v13 = vpop.f32.mrf.mxu0 }
 0x14a   : > { %v868_v15 = vadd.f32 %v867_v13, %v549_v12  ;;  %v506_v13 = vld [vmem:[%s8903_s1 + $0x180] sm:$0xff] }
 0x14c   : > { %5098 = vmatmul.msk.f32.gmra.mxu0 %vm591_vm0, %v496_v14  ;;  %vm1015_vm4 = vcmp.ge.f32.partialorder %v868_v15, 0.0  ;;  %v1079_v16 = vmul.f32 0.2, %v868_v15 }
 0x14e   : > { %v1143_v17 = vsel %vm1015_vm4, %v868_v15, %v1079_v16  ;;  %v507_v15 = vld [vmem:[%s8903_s1 + $0x188] sm:$0xff] }
 0x14f   : > { %1315 = vperm.xlu1 %5315, %v1143_v17   ;;  %v508_v17 = vld [vmem:[%s8903_s1 + $0x190] sm:$0xff] }
 0x151   : > { %v870_v19 = vpop.f32.mrf.mxu0 }
 0x152   : > { %v871_v21 = vadd.f32 %v870_v19, %v550_v18  ;;  %v562_v18 = vld [vmem:[%s8904_s2 + $0x118] sm:$0xff] }
 0x154   : > { %5099 = vmatmul.msk.f32.gmra.mxu0 %vm591_vm0, %v497_v20  ;;  %vm1016_vm5 = vcmp.ge.f32.partialorder %v871_v21, 0.0  ;;  %v1080_v23 = vmul.f32 0.2, %v871_v21  ;;  %v509_v20 = vld [vmem:[%s8903_s1 + $0x198] sm:$0xff] }
 0x156   : > { %v1144_v25 = vsel %vm1016_vm5, %v871_v21, %v1080_v23 }
 0x157   : > { %1320 = vperm.xlu0 %5316, %v1144_v25  }
 0x159   : > { %v873_v27 = vpop.f32.mrf.mxu0 }
 0x15a   : > { %v874_v29 = vadd.f32 %v873_v27, %v551_v26  ;;  %v563_v26 = vld [vmem:[%s8904_s2 + $0x120] sm:$0xff] }
 0x15c   : > { %5100 = vmatmul.msk.f32.gmra.mxu0 %vm591_vm0, %v498_v28  ;;  %vm1017_vm6 = vcmp.ge.f32.partialorder %v874_v29, 0.0  ;;  %v1081_v30 = vmul.f32 0.2, %v874_v29  ;;  %v510_v28 = vld [vmem:[%s8903_s1 + $0x1a0] sm:$0xff] }
 0x15e   : > { %v1145_v31 = vsel %vm1017_vm6, %v874_v29, %v1081_v30 }
 0x15f   : > { %1325 = vperm.xlu2 %5317, %v1145_v31  }
 0x161   : > { %v876_v33 = vpop.f32.mrf.mxu0 }
 0x162   : > { %v877_v35 = vadd.f32 %v876_v33, %v552_v32  ;;  %v564_v32 = vld [vmem:[%s8904_s2 + $0x128] sm:$0xff] }
 0x164   : > { %5101 = vmatmul.msk.f32.gmra.mxu0 %vm591_vm0, %v499_v34  ;;  %vm1018_vm7 = vcmp.ge.f32.partialorder %v877_v35, 0.0  ;;  %v1082_v36 = vmul.f32 0.2, %v877_v35  ;;  %v511_v34 = vld [vmem:[%s8903_s1 + $0x1a8] sm:$0xff] }
 0x166   : > { %v1146_v37 = vsel %vm1018_vm7, %v877_v35, %v1082_v36 }
 0x167   : > { %1330 = vperm.xlu1 %5315, %v1146_v37  }
 0x169   : > { %v879_v39 = vpop.f32.mrf.mxu0 }
 0x16a   : > { %v880_v41 = vadd.f32 %v879_v39, %v553_v38  ;;  %v565_v38 = vld [vmem:[%s8904_s2 + $0x130] sm:$0xff] }
 0x16c   : > { %5102 = vmatmul.msk.f32.gmra.mxu0 %vm591_vm0, %v500_v40  ;;  %vm1019_vm8 = vcmp.ge.f32.partialorder %v880_v41, 0.0  ;;  %v1083_v42 = vmul.f32 0.2, %v880_v41  ;;  %v512_v40 = vld [vmem:[%s8903_s1 + $0x1b0] sm:$0xff] }
 0x16e   : > { %v1147_v43 = vsel %vm1019_vm8, %v880_v41, %v1083_v42 }
 0x16f   : > { %1335 = vperm.xlu0 %5316, %v1147_v43  }
 0x171   : > { %v882_v45 = vpop.f32.mrf.mxu0 }
 0x172   : > { %v883_v47 = vadd.f32 %v882_v45, %v554_v44  ;;  %v566_v44 = vld [vmem:[%s8904_s2 + $0x138] sm:$0xff] }
 0x174   : > { %5103 = vmatmul.msk.f32.gmra.mxu0 %vm591_vm0, %v501_v46  ;;  %vm1020_vm9 = vcmp.ge.f32.partialorder %v883_v47, 0.0  ;;  %v1084_v49 = vmul.f32 0.2, %v883_v47  ;;  %v513_v46 = vld [vmem:[%s8903_s1 + $0x1b8] sm:$0xff] }
 0x176   : > { %v1148_v51 = vsel %vm1020_vm9, %v883_v47, %v1084_v49 }
 0x177   : > { %1340 = vperm.xlu2 %5317, %v1148_v51  }
 0x179   : > { %v885_v53 = vpop.f32.mrf.mxu0 }
 0x17a   : > { %v886_v55 = vadd.f32 %v885_v53, %v555_v52  ;;  %v567_v52 = vld [vmem:[%s8904_s2 + $0x140] sm:$0xff] }
 0x17c   : > { %5104 = vmatmul.msk.f32.gmra.mxu0 %vm591_vm0, %v502_v54  ;;  %vm1021_vm10 = vcmp.ge.f32.partialorder %v886_v55, 0.0  ;;  %v1085_v56 = vmul.f32 0.2, %v886_v55  ;;  %v514_v54 = vld [vmem:[%s8903_s1 + $0x1c0] sm:$0xff] }
 0x17e   : > { %v1149_v57 = vsel %vm1021_vm10, %v886_v55, %v1085_v56 }
 0x17f   : > { %1345 = vperm.xlu1 %5315, %v1149_v57  }
 0x181   : > { %v888_v59 = vpop.f32.mrf.mxu0 }
 0x182   : > { %v889_v61 = vadd.f32 %v888_v59, %v556_v58  ;;  %v568_v58 = vld [vmem:[%s8904_s2 + $0x148] sm:$0xff] }
 0x184   : > { %5105 = vmatmul.msk.f32.gmra.mxu0 %vm591_vm0, %v503_v60  ;;  %vm1022_vm11 = vcmp.ge.f32.partialorder %v889_v61, 0.0  ;;  %v1086_v62 = vmul.f32 0.2, %v889_v61  ;;  %v515_v60 = vld [vmem:[%s8903_s1 + $0x1c8] sm:$0xff] }
 0x186   : > { %v1150_v63 = vsel %vm1022_vm11, %v889_v61, %v1086_v62 }
 0x187   : > { %1350 = vperm.xlu0 %5316, %v1150_v63  }
 0x189   : > { %v891_v1 = vpop.f32.mrf.mxu0 }
 0x18a   : > { %v892_v3 = vadd.f32 %v891_v1, %v557_v0  ;;  %v569_v0 = vld [vmem:[%s8904_s2 + $0x150] sm:$0xff] }
 0x18c   : > { %5106 = vmatmul.msk.f32.gmra.mxu0 %vm591_vm0, %v504_v2  ;;  %vm1023_vm12 = vcmp.ge.f32.partialorder %v892_v3, 0.0  ;;  %v1087_v4 = vmul.f32 0.2, %v892_v3  ;;  %v516_v2 = vld [vmem:[%s8903_s1 + $0x1d0] sm:$0xff] }
 0x18e   : > { %v1151_v5 = vsel %vm1023_vm12, %v892_v3, %v1087_v4 }
 0x18f   : > { %1355 = vperm.xlu1 %5315, %v1151_v5  }
 0x191   : > { %v894_v7 = vpop.f32.mrf.mxu0 }
 0x192   : > { %v895_v9 = vadd.f32 %v894_v7, %v558_v6  ;;  %v570_v6 = vld [vmem:[%s8904_s2 + $0x158] sm:$0xff] }
 0x194   : > { %5107 = vmatmul.msk.f32.gmra.mxu0 %vm591_vm0, %v505_v8  ;;  %vm1024_vm13 = vcmp.ge.f32.partialorder %v895_v9, 0.0  ;;  %v1088_v10 = vmul.f32 0.2, %v895_v9  ;;  %v517_v8 = vld [vmem:[%s8903_s1 + $0x1d8] sm:$0xff] }
 0x196   : > { %v1152_v11 = vsel %vm1024_vm13, %v895_v9, %v1088_v10 }
 0x197   : > { %1360 = vperm.xlu0 %5316, %v1152_v11  }
 0x199   : > { %v6122_v12 = vpop.f32.mrf.mxu0 }
 0x19c   : > { %5108 = vmatmul.msk.f32.gmra.mxu0 %vm591_vm0, %v506_v13  ;;  %v571_v13 = vld [vmem:[%s8904_s2 + $0x160] sm:$0xff] }
 0x1a1   : > { %v6128_v14 = vpop.f32.mrf.mxu0 }
 0x1a4   : > { %5109 = vmatmul.msk.f32.gmra.mxu0 %vm591_vm0, %v507_v15 }
 0x1a9   : > { %v6134_v16 = vpop.f32.mrf.mxu0 }
 0x1ac   : > { %5110 = vmatmul.msk.f32.gmra.mxu0 %vm591_vm0, %v508_v17  ;;  %v518_v17 = vld [vmem:[%s8903_s1 + $0x1e0] sm:$0xff] }
 0x1b1   : > { %v906_v19 = vpop.f32.mrf.mxu0 }
 0x1b2   : > { %v907_v21 = vadd.f32 %v906_v19, %v562_v18 }
 0x1b4   : > { %5111 = vmatmul.msk.f32.gmra.mxu0 %vm591_vm0, %v509_v20  ;;  %vm1028_vm14 = vcmp.ge.f32.partialorder %v907_v21, 0.0  ;;  %v1092_v23 = vmul.f32 0.2, %v907_v21 }
 0x1b6   : > { %v1156_v25 = vsel %vm1028_vm14, %v907_v21, %v1092_v23  ;;  %v572_v21 = vld [vmem:[%s8904_s2 + $0x168] sm:$0xff] }
 0x1b7   : > { %1413 = vperm.xlu0 %5316, %v1156_v25   ;;  %v519_v25 = vld [vmem:[%s8903_s1 + $0x1e8] sm:$0xff] }
 0x1b9   : > { %v909_v27 = vpop.f32.mrf.mxu0 }
 0x1ba   : > { %v910_v29 = vadd.f32 %v909_v27, %v563_v26 }
 0x1bc   : > { %5112 = vmatmul.msk.f32.gmra.mxu0 %vm591_vm0, %v510_v28  ;;  %vm1029_vm15 = vcmp.ge.f32.partialorder %v910_v29, 0.0  ;;  %v1093_v30 = vmul.f32 0.2, %v910_v29 }
 0x1be   : > { %v1157_v31 = vsel %vm1029_vm15, %v910_v29, %v1093_v30  ;;  %v573_v29 = vld [vmem:[%s8904_s2 + $0x170] sm:$0xff] }
 0x1bf   : > { %1418 = vperm.xlu2 %5317, %v1157_v31   ;;  %v520_v31 = vld [vmem:[%s8903_s1 + $0x1f0] sm:$0xff] }
 0x1c1   : > { %v912_v33 = vpop.f32.mrf.mxu0 }
 0x1c2   : > { %v913_v35 = vadd.f32 %v912_v33, %v564_v32 }
 0x1c4   : > { %5113 = vmatmul.msk.f32.gmra.mxu0 %vm591_vm0, %v511_v34  ;;  %vm1030_vm1 = vcmp.ge.f32.partialorder %v913_v35, 0.0  ;;  %v1094_v36 = vmul.f32 0.2, %v913_v35 }
 0x1c6   : > { %v1158_v37 = vsel %vm1030_vm1, %v913_v35, %v1094_v36  ;;  %v574_v35 = vld [vmem:[%s8904_s2 + $0x178] sm:$0xff] }
 0x1c7   : > { %1423 = vperm.xlu1 %5315, %v1158_v37   ;;  %v521_v37 = vld [vmem:[%s8903_s1 + $0x1f8] sm:$0xff] }
 0x1c9   : > { %v915_v39 = vpop.f32.mrf.mxu0 }
 0x1ca   : > { %v916_v41 = vadd.f32 %v915_v39, %v565_v38 }
 0x1cc   : > { %5114 = vmatmul.msk.f32.gmra.mxu0 %vm591_vm0, %v512_v40  ;;  %vm1031_vm2 = vcmp.ge.f32.partialorder %v916_v41, 0.0  ;;  %v1095_v42 = vmul.f32 0.2, %v916_v41 }
 0x1ce   : > { %v1159_v43 = vsel %vm1031_vm2, %v916_v41, %v1095_v42 }
 0x1cf   : > { %1428 = vperm.xlu0 %5316, %v1159_v43  }
 0x1d1   : > { %v918_v45 = vpop.f32.mrf.mxu0 }
 0x1d2   : > { %v919_v47 = vadd.f32 %v918_v45, %v566_v44  ;;  %v579_v45 = vld [vmem:[%s8904_s2 + $0x1a0] sm:$0xff] }
 0x1d4   : > { %5115 = vmatmul.msk.f32.gmra.mxu0 %vm591_vm0, %v513_v46  ;;  %vm1032_vm3 = vcmp.ge.f32.partialorder %v919_v47, 0.0  ;;  %v1096_v49 = vmul.f32 0.2, %v919_v47 }
 0x1d6   : > { %v1160_v51 = vsel %vm1032_vm3, %v919_v47, %v1096_v49 }
 0x1d7   : > { %1433 = vperm.xlu2 %5317, %v1160_v51  }
 0x1d9   : > { %v921_v53 = vpop.f32.mrf.mxu0 }
 0x1da   : > { %v922_v55 = vadd.f32 %v921_v53, %v567_v52  ;;  %v580_v52 = vld [vmem:[%s8904_s2 + $0x1a8] sm:$0xff] }
 0x1dc   : > { %5116 = vmatmul.msk.f32.gmra.mxu0 %vm591_vm0, %v514_v54  ;;  %vm1033_vm4 = vcmp.ge.f32.partialorder %v922_v55, 0.0  ;;  %v1097_v56 = vmul.f32 0.2, %v922_v55 }
 0x1de   : > { %v1161_v57 = vsel %vm1033_vm4, %v922_v55, %v1097_v56 }
 0x1df   : > { %1438 = vperm.xlu1 %5315, %v1161_v57   ;;  %v581_v57 = vld [vmem:[%s8904_s2 + $0x1b0] sm:$0xff] }
 0x1e1   : > { %v924_v59 = vpop.f32.mrf.mxu0 }
 0x1e2   : > { %v925_v61 = vadd.f32 %v924_v59, %v568_v58 }
 0x1e4   : > { %5117 = vmatmul.msk.f32.gmra.mxu0 %vm591_vm0, %v515_v60  ;;  %vm1034_vm5 = vcmp.ge.f32.partialorder %v925_v61, 0.0  ;;  %v1098_v62 = vmul.f32 0.2, %v925_v61 }
 0x1e6   : > { %v1162_v63 = vsel %vm1034_vm5, %v925_v61, %v1098_v62  ;;  %v582_v62 = vld [vmem:[%s8904_s2 + $0x1b8] sm:$0xff] }
 0x1e7   : > { %1443 = vperm.xlu0 %5316, %v1162_v63   ;;  %v6251_v63 = vpop.permute.xlu1 %1198 }
 0x1e9   : > { %v927_v1 = vpop.f32.mrf.mxu0 }
 0x1ea   : > { %v928_v3 = vadd.f32 %v927_v1, %v569_v0 }
 0x1ec   : > { %5118 = vmatmul.msk.f32.gmra.mxu0 %vm591_vm0, %v516_v2  ;;  %vm1035_vm6 = vcmp.ge.f32.partialorder %v928_v3, 0.0  ;;  %v1099_v4 = vmul.f32 0.2, %v928_v3 }
 0x1ee   : > { %v1163_v5 = vsel %vm1035_vm6, %v928_v3, %v1099_v4  ;;  %v583_v4 = vld [vmem:[%s8904_s2 + $0x1c0] sm:$0xff] }
 0x1ef   : > { %1448 = vperm.xlu2 %5317, %v1163_v5   ;;  %v6256_v5 = vpop.permute.xlu0 %1203 }
 0x1f1   : > { %v930_v7 = vpop.f32.mrf.mxu0 }
 0x1f2   : > { %v931_v9 = vadd.f32 %v930_v7, %v570_v6  ;;  %v6258_v6 = vpop.permute.xlu1 %1213 }
 0x1f4   : > { %5119 = vmatmul.msk.f32.gmra.mxu0 %vm591_vm0, %v517_v8  ;;  %vm1036_vm7 = vcmp.ge.f32.partialorder %v931_v9, 0.0  ;;  %v1100_v10 = vmul.f32 0.2, %v931_v9 }
 0x1f6   : > { %v1164_v11 = vsel %vm1036_vm7, %v931_v9, %v1100_v10  ;;  %v6260_v10 = vpop.permute.xlu2 %1208 }
 0x1f7   : > { %1453 = vperm.xlu1 %5315, %v1164_v11  }
 0x1f9   : > { %v933_v15 = vpop.f32.mrf.mxu0 }
 0x1fa   : > { %v934_v18 = vadd.f32 %v933_v15, %v571_v13  ;;  %v584_v13 = vld [vmem:[%s8904_s2 + $0x1c8] sm:$0xff]  ;;  %v6265_v15 = vpop.permute.xlu0 %1218 }
 0x1fc   : > { %5120 = vmatmul.msk.f32.gmra.mxu0 %vm591_vm0, %v518_v17  ;;  %vm1037_vm8 = vcmp.ge.f32.partialorder %v934_v18, 0.0  ;;  %v1101_v19 = vmul.f32 0.2, %v934_v18  ;;  %v6267_v17 = vpop.permute.xlu1 %1228 }
 0x1fe   : > { %v1165_v20 = vsel %vm1037_vm8, %v934_v18, %v1101_v19 }
 0x1ff   : > { %1458 = vperm.xlu0 %5316, %v1165_v20  }
 0x201   : > { %v936_v23 = vpop.f32.mrf.mxu0 }
 0x202   : > { %v937_v26 = vadd.f32 %v936_v23, %v572_v21  ;;  %v6269_v21 = vpop.permute.xlu2 %1223 }
 0x204   : > { %5121 = vmatmul.msk.f32.gmra.mxu0 %vm591_vm0, %v519_v25  ;;  %vm1038_vm9 = vcmp.ge.f32.partialorder %v937_v26, 0.0  ;;  %v1102_v27 = vmul.f32 0.2, %v937_v26  ;;  %v585_v25 = vld [vmem:[%s8904_s2 + $0x1d0] sm:$0xff] }
 0x206   : > { %v1166_v28 = vsel %vm1038_vm9, %v937_v26, %v1102_v27  ;;  %v6274_v26 = vpop.permute.xlu0 %1233  ;;  %v6276_v27 = vpop.permute.xlu1 %1243 }
 0x207   : > { %1463 = vperm.xlu2 %5317, %v1166_v28  }
 0x209   : > { %v939_v30 = vpop.f32.mrf.mxu0 }
 0x20a   : > { %v940_v32 = vadd.f32 %v939_v30, %v573_v29 }
 0x20c   : > { %5122 = vmatmul.msk.f32.gmra.mxu0 %vm591_vm0, %v520_v31  ;;  %vm1039_vm10 = vcmp.ge.f32.partialorder %v940_v32, 0.0  ;;  %v1103_v33 = vmul.f32 0.2, %v940_v32  ;;  %v6278_v31 = vpop.permute.xlu2 %1238 }
 0x20e   : > { %v1167_v34 = vsel %vm1039_vm10, %v940_v32, %v1103_v33  ;;  %v586_v33 = vld [vmem:[%s8904_s2 + $0x1d8] sm:$0xff] }
 0x20f   : > { %1468 = vperm.xlu1 %5315, %v1167_v34   ;;  %v6283_v34 = vpop.permute.xlu0 %1248 }
 0x211   : > { %v942_v36 = vpop.f32.mrf.mxu0 }
 0x212   : > { %v943_v38 = vadd.f32 %v942_v36, %v574_v35  ;;  %v6285_v35 = vpop.permute.xlu1 %1258 }
 0x214   : > { %5123 = vmatmul.msk.f32.gmra.mxu0 %vm591_vm0, %v521_v37  ;;  %vm1040_vm11 = vcmp.ge.f32.partialorder %v943_v38, 0.0  ;;  %v1104_v39 = vmul.f32 0.2, %v943_v38 }
 0x216   : > { %v1168_v40 = vsel %vm1040_vm11, %v943_v38, %v1104_v39  ;;  %v6287_v39 = vpop.permute.xlu2 %1253 }
 0x217   : > { %1473 = vperm.xlu2 %5317, %v1168_v40  }
 0x219   : > { %v6231_v41 = vpop.f32.mrf.mxu0 }
 0x221   : > { %v6233_v42 = vpop.f32.mrf.mxu0 }
 0x229   : > { %v6235_v43 = vpop.f32.mrf.mxu0 }
 0x231   : > { %v6237_v44 = vpop.f32.mrf.mxu0 }
 0x239   : > { %v957_v46 = vpop.f32.mrf.mxu0 }
 0x23a   : > { %v958_v47 = vadd.f32 %v957_v46, %v579_v45  ;;  %v587_v45 = vld [vmem:[%s8904_s2 + $0x1e0] sm:$0xff]  ;;  %v6292_v46 = vpop.permute.xlu0 %1263 }
 0x23c   : > { %v1109_v49 = vmul.f32 0.2, %v958_v47  ;;  %vm1045_vm0 = vcmp.ge.f32.partialorder %v958_v47, 0.0 }
 0x23e   : > { %v1173_v51 = vsel %vm1045_vm0, %v958_v47, %v1109_v49  ;;  %v6294_v47 = vpop.permute.xlu1 %1300 }
 0x23f   : > { %1531 = vperm.xlu1 %5315, %v1173_v51  }
 0x241   : > { %v960_v53 = vpop.f32.mrf.mxu0 }
 0x242   : > { %v961_v54 = vadd.f32 %v960_v53, %v580_v52  ;;  %v6296_v53 = vpop.permute.xlu2 %1295 }
 0x244   : > { %v1110_v55 = vmul.f32 0.2, %v961_v54  ;;  %vm1046_vm12 = vcmp.ge.f32.partialorder %v961_v54, 0.0 }
 0x246   : > { %v1174_v56 = vsel %vm1046_vm12, %v961_v54, %v1110_v55  ;;  %v588_v55 = vld [vmem:[%s8904_s2 + $0x1e8] sm:$0xff] }
 0x247   : > { %1536 = vperm.xlu0 %5316, %v1174_v56   ;;  %v6301_v56 = vpop.permute.xlu0 %1305 }
 0x249   : > { %v963_v58 = vpop.f32.mrf.mxu0 }
 0x24a   : > { %v964_v59 = vadd.f32 %v963_v58, %v581_v57  ;;  %v6303_v57 = vpop.permute.xlu1 %1315 }
 0x24c   : > { %v1111_v60 = vmul.f32 0.2, %v964_v59  ;;  %vm1047_vm13 = vcmp.ge.f32.partialorder %v964_v59, 0.0 }
 0x24e   : > { %v1175_v61 = vsel %vm1047_vm13, %v964_v59, %v1111_v60  ;;  %v561_v60 = vld [vmem:[%s8904_s2 + $0x110] sm:$0xff] }
 0x24f   : > { %1541 = vperm.xlu2 %5317, %v1175_v61  }
 0x251   : > { %v966_v0 = vpop.f32.mrf.mxu0 }
 0x252   : > { %v967_v1 = vadd.f32 %v966_v0, %v582_v62  ;;  %v6308_v62 = vpop.permute.xlu2 %1310  ;;  %v904_v0 = vadd.f32 %v6134_v16, %v561_v60  ;;  %v543_v16 = vld [vmem:[%s8904_s2 + $0x80] sm:$0xff] }
 0x254   : > { %v1112_v2 = vmul.f32 0.2, %v967_v1  ;;  %vm1048_vm14 = vcmp.ge.f32.partialorder %v967_v1, 0.0  ;;  %vm1027_vm6 = vcmp.ge.f32.partialorder %v904_v0, 0.0 }
 0x256   : > { %v1176_v3 = vsel %vm1048_vm14, %v967_v1, %v1112_v2  ;;  %v589_v2 = vld [vmem:[%s8904_s2 + $0x1f0] sm:$0xff] }
 0x257   : > { %1546 = vperm.xlu1 %5315, %v1176_v3   ;;  %v6314_v3 = vpop.permute.xlu0 %1320 }
 0x259   : > { %v969_v7 = vpop.f32.mrf.mxu0 }
 0x25a   : > { %v970_v8 = vadd.f32 %v969_v7, %v583_v4  ;;  %v6316_v4 = vpop.permute.xlu1 %1330 }
 0x25c   : > { %v1113_v9 = vmul.f32 0.2, %v970_v8  ;;  %vm1049_vm15 = vcmp.ge.f32.partialorder %v970_v8, 0.0 }
 0x25e   : > { %v1177_v11 = vsel %vm1049_vm15, %v970_v8, %v1113_v9  ;;  %v1091_v9 = vmul.f32 0.2, %v904_v0 }
 0x25f   : > { %1551 = vperm.xlu0 %5316, %v1177_v11   ;;  %v544_v11 = vld [vmem:[%s8904_s2 + $0x88] sm:$0xff] }
 0x261   : > { %v972_v18 = vpop.f32.mrf.mxu0 }
 0x262   : > { %v973_v19 = vadd.f32 %v972_v18, %v584_v13  ;;  %v6324_v18 = vpop.permute.xlu2 %1325 }
 0x264   : > { %v1114_v20 = vmul.f32 0.2, %v973_v19  ;;  %vm1050_vm1 = vcmp.ge.f32.partialorder %v973_v19, 0.0 }
 0x266   : > { %v1178_v23 = vsel %vm1050_vm1, %v973_v19, %v1114_v20  ;;  %v853_v19 = vadd.f32 %v6018_v50, %v544_v11  ;;  %v527_v50 = vld [vmem:[%s8904_s2] sm:$0xff] }
 0x267   : > { %1556 = vperm.xlu2 %5317, %v1178_v23   ;;  %v1155_v23 = vsel %vm1027_vm6, %v904_v0, %v1091_v9 }
 0x268   : > { %vm1010_vm8 = vcmp.ge.f32.partialorder %v853_v19, 0.0 }
 0x269   : > { %v975_v28 = vpop.f32.mrf.mxu0 }
 0x26a   : > { %v976_v29 = vadd.f32 %v975_v28, %v585_v25  ;;  %v850_v25 = vadd.f32 %v6012_v48, %v543_v16  ;;  %v590_v28 = vld [vmem:[%s8904_s2 + $0x1f8] sm:$0xff]  ;;  %v528_v48 = vld [vmem:[%s8904_s2 + $0x8] sm:$0xff] }
 0x26c   : > { %v1115_v30 = vmul.f32 0.2, %v976_v29  ;;  %vm1051_vm2 = vcmp.ge.f32.partialorder %v976_v29, 0.0  ;;  %vm1009_vm10 = vcmp.ge.f32.partialorder %v850_v25, 0.0 }
 0x26e   : > { %v1179_v32 = vsel %vm1051_vm2, %v976_v29, %v1115_v30  ;;  %v6331_v29 = vpop.permute.xlu0 %1335  ;;  %v6333_v30 = vpop.permute.xlu1 %1345 }
 0x26f   : > { %1561 = vperm.xlu1 %5315, %v1179_v32  }
 0x271   : > { %v978_v36 = vpop.f32.mrf.mxu0 }
 0x272   : > { %v979_v37 = vadd.f32 %v978_v36, %v586_v33  ;;  %v1074_v36 = vmul.f32 0.2, %v853_v19 }
 0x274   : > { %v1116_v38 = vmul.f32 0.2, %v979_v37  ;;  %vm1052_vm3 = vcmp.ge.f32.partialorder %v979_v37, 0.0 }
 0x276   : > { %v1180_v40 = vsel %vm1052_vm3, %v979_v37, %v1116_v38  ;;  %v1073_v37 = vmul.f32 0.2, %v850_v25  ;;  %v559_v38 = vld [vmem:[%s8904_s2 + $0x100] sm:$0xff]  ;;  %v6351_v60 = vpop.permute.xlu1 %1355 }
 0x277   : > { %1566 = vperm.xlu0 %5316, %v1180_v40  }
 0x279   : > { %v981_v49 = vpop.f32.mrf.mxu0 }
 0x27a   : > { %v982_v51 = vadd.f32 %v981_v49, %v587_v45  ;;  %v6344_v45 = vpop.permute.xlu2 %1340  ;;  %v802_v49 = vadd.f32 %v5902_v22, %v527_v50  ;;  %v577_v22 = vld [vmem:[%s8904_s2 + $0x190] sm:$0xff] }
 0x27c   : > { %v1117_v52 = vmul.f32 0.2, %v982_v51  ;;  %vm1053_vm4 = vcmp.ge.f32.partialorder %v982_v51, 0.0  ;;  %v1057_v0 = vmul.f32 0.2, %v802_v49  ;;  %vm993_vm0 = vcmp.ge.f32.partialorder %v802_v49, 0.0 }
 0x27e   : > { %v1181_v54 = vsel %vm1053_vm4, %v982_v51, %v1117_v52  ;;  %v805_v51 = vadd.f32 %v5908_v24, %v528_v48  ;;  %v578_v24 = vld [vmem:[%s8904_s2 + $0x198] sm:$0xff]  ;;  %v1121_v9 = vsel %vm993_vm0, %v802_v49, %v1057_v0  ;;  %vm2224_vm4 = vcmask 89088  }
 0x27f   : > { %1571 = vperm.xlu2 %5317, %v1181_v54   ;;  %v1138_v54 = vsel %vm1010_vm8, %v853_v19, %v1074_v36 }
 0x280   : > { %vm994_vm11 = vcmp.ge.f32.partialorder %v805_v51, 0.0 }
 0x281   : > { %v984_v58 = vpop.f32.mrf.mxu0 }
 0x282   : > { %v985_v59 = vadd.f32 %v984_v58, %v588_v55  ;;  %v898_v55 = vadd.f32 %v6122_v12, %v559_v38  ;;  %v1137_v58 = vsel %vm1009_vm10, %v850_v25, %v1073_v37  ;;  %v6359_v12 = vpop.permute.xlu2 %1418  ;;  %v576_v38 = vld [vmem:[%s8904_s2 + $0x188] sm:$0xff] }
 0x284   : > { %v1118_v61 = vmul.f32 0.2, %v985_v59  ;;  %vm1054_vm5 = vcmp.ge.f32.partialorder %v985_v59, 0.0  ;;  %vm1025_vm12 = vcmp.ge.f32.partialorder %v898_v55, 0.0 }
 0x286   : > { %v1182_v1 = vsel %vm1054_vm5, %v985_v59, %v1118_v61  ;;  %v6349_v59 = vpop.permute.xlu0 %1350  ;;  %v1058_v61 = vmul.f32 0.2, %v805_v51 }
 0x287   : > { %1576 = vperm.xlu1 %5315, %v1182_v1   ;;  %v1089_v1 = vmul.f32 0.2, %v898_v55 }
 0x289   : > { %v987_v7 = vpop.f32.mrf.mxu0  ;;  %v1153_v11 = vsel %vm1025_vm12, %v898_v55, %v1089_v1 }
 0x28a   : > { %v988_v8 = vadd.f32 %v987_v7, %v589_v2  ;;  %v952_v2 = vadd.f32 %v6235_v43, %v577_v22  ;;  %v955_v7 = vadd.f32 %v6237_v44, %v578_v24  ;;  %v575_v43 = vld [vmem:[%s8904_s2 + $0x180] sm:$0xff]  ;;  %v1434_v44 = vpop.permute.xlu2 %1433 }
 0x28c   : > { %v1119_v13 = vmul.f32 0.2, %v988_v8  ;;  %vm1055_vm7 = vcmp.ge.f32.partialorder %v988_v8, 0.0  ;;  %v1107_v19 = vmul.f32 0.2, %v952_v2  ;;  %vm1044_vm13 = vcmp.ge.f32.partialorder %v955_v7, 0.0 }
 0x28d   : > { %vm1043_vm14 = vcmp.ge.f32.partialorder %v952_v2, 0.0 }
 0x28e   : > { %v1183_v20 = vsel %vm1055_vm7, %v988_v8, %v1119_v13  ;;  %v1122_v8 = vsel %vm994_vm11, %v805_v51, %v1058_v61  ;;  %v6363_v16 = vpop.permute.xlu0 %1360  ;;  %v6365_v13 = vpop.permute.xlu1 %1423 }
 0x28f   : > { %1581 = vperm.xlu0 %5316, %v1183_v20   ;;  %1408 = vperm.xlu1 %5315, %v1155_v23   ;;  %v1108_v20 = vmul.f32 0.2, %v955_v7  ;;  %v560_v23 = vld [vmem:[%s8904_s2 + $0x108] sm:$0xff] }
 0x290   : > { %v901_v25 = vadd.f32 %v6128_v14, %v560_v23  ;;  %v949_v14 = vadd.f32 %v6233_v42, %v576_v38  ;;  %v1185_v42 = vld [vmem:[%s8905_s3] sm:$0xf] }
 0x291   : > { %v990_v32 = vpop.f32.mrf.mxu0 }
 0x292   : > { %v991_v33 = vadd.f32 %v990_v32, %v590_v28  ;;  %v946_v28 = vadd.f32 %v6231_v41, %v575_v43  ;;  %v1172_v32 = vsel %vm1044_vm13, %v955_v7, %v1108_v20  ;;  %v1090_v37 = vmul.f32 0.2, %v901_v25 }
 0x293   : > { %vm1026_vm15 = vcmp.ge.f32.partialorder %v901_v25, 0.0  ;;  %vm1042_vm2 = vcmp.ge.f32.partialorder %v949_v14, 0.0  ;;  %v6398_v7 = vperm.slane %v1185_v42, 0 }
 0x294   : > { %v1120_v40 = vmul.f32 0.2, %v991_v33  ;;  %vm1056_vm9 = vcmp.ge.f32.partialorder %v991_v33, 0.0  ;;  %v1105_v48 = vmul.f32 0.2, %v946_v28  ;;  %vm1041_vm1 = vcmp.ge.f32.partialorder %v946_v28, 0.0 }
 0x295   : > { %v1154_v41 = vsel %vm1026_vm15, %v901_v25, %v1090_v37  ;;  %v1274_v23 = vmul.f32 %v6398_v7, %v6269_v21  ;;  %v1273_v43 = vmul.f32 %v6398_v7, %v6265_v15 }
 0x296   : > { %v1184_v52 = vsel %vm1056_vm9, %v991_v33, %v1120_v40  ;;  %v1171_v33 = vsel %vm1043_vm14, %v952_v2, %v1107_v19  ;;  %v6375_v36 = vpop.permute.xlu0 %1413  ;;  %v1439_v50 = vpop.permute.xlu1 %1438  ;;  %v1169_v49 = vsel %vm1041_vm1, %v946_v28, %v1105_v48  ;;  %v6396_v2 = vperm.slane %v1185_v42, 1 }
 0x297   : > { %1586 = vperm.xlu2 %5317, %v1184_v52   ;;  %1290 = vperm.xlu0 %5316, %v1138_v54   ;;  %v6380_v40 = vpop.permute.xlu2 %1448  ;;  %v1106_v54 = vmul.f32 0.2, %v949_v14  ;;  %v6406_v19 = vperm.slane %v1185_v42, 3  ;;  %vm2566_vm1 = vcmask 1042432  }
 0x298   : > { %1285 = vperm.xlu1 %5315, %v1137_v58   ;;  %v1372_v21 = vmul.f32 %v6396_v2, %v6324_v18  ;;  %v1373_v15 = vmul.f32 %v6396_v2, %v6316_v4 }
 0x299   : > { %v1170_v58 = vsel %vm1042_vm2, %v949_v14, %v1106_v54  ;;  %v1276_v54 = vmul.f32 %v6398_v7, %v6274_v26 }
 0x29e   : > { %v1429_v51 = vpop.permute.xlu0 %1428  ;;  %v1454_v52 = vpop.permute.xlu1 %1453 }
 0x29f   : > { %1193 = vperm.xlu2 %5317, %v1122_v8   ;;  %1188 = vperm.xlu0 %5316, %v1121_v9   ;;  %v6383_v55 = vpop.permute.xlu2 %1463  ;;  %v1370_v8 = vmul.f32 %v6396_v2, %v6303_v57  ;;  %v1371_v9 = vmul.f32 %v6396_v2, %v6314_v3 }
 0x2a0   : > { %1398 = vperm.xlu1 %5315, %v1153_v11   ;;  %v6404_v11 = vperm.slane %v1185_v42, 2 }
 0x2a1   : > { %v1387_v57 = vadd.f32 %v1371_v9, %v1274_v23 }
 0x2a2   : > { %v1484_v25 = vmul.f32 %v6404_v11, %v1434_v44  ;;  %v1483_v28 = vmul.f32 %v6404_v11, %v1429_v51 }
 0x2a4   : > { %v1500_v37 = vadd.f32 %v1484_v25, %v1387_v57  ;;  %v1375_v25 = vmul.f32 %v6396_v2, %v6344_v45  ;;  %v1277_v57 = vmul.f32 %v6398_v7, %v6278_v31  ;;  %v1379_v31 = vmul.f32 %v6396_v2, %v6363_v16 }
 0x2a6   : > { %v1444_v61 = vpop.permute.xlu0 %1443  ;;  %v6385_v0 = vpop.permute.xlu1 %1468 }
 0x2a7   : > { %1526 = vperm.xlu2 %5317, %v1172_v32   ;;  %1521 = vperm.xlu0 %5316, %v1171_v33   ;;  %v6387_v22 = vpop.permute.xlu2 %1473  ;;  %v1386_v32 = vadd.f32 %v1370_v8, %v1273_v43  ;;  %v1486_v42 = vmul.f32 %v6404_v11, %v1444_v61  ;;  %v1389_v8 = vadd.f32 %v1373_v15, %v1276_v54 }
 0x2a9   : > { %v1499_v38 = vadd.f32 %v1483_v28, %v1386_v32  ;;  %v1502_v23 = vadd.f32 %v1486_v42, %v1389_v8  ;;  %v1374_v28 = vmul.f32 %v6396_v2, %v6331_v29 }
 0x2ae   : > { %v6392_v24 = vpop.permute.xlu0 %1458 }
 0x2af   : > { %1403 = vperm.xlu2 %5317, %v1154_v41   ;;  %1511 = vperm.xlu0 %5316, %v1169_v49   ;;  %v1542_v20 = vpop.permute.xlu2 %1541  ;;  %v1275_v49 = vmul.f32 %v6398_v7, %v6267_v17 }
 0x2b0   : > { %v1596_v33 = vmul.f32 %v6406_v19, %v1542_v20 }
 0x2b1   : > { %v6394_v1 = vpop.permute.xlu1 %1531  ;;  %v1388_v4 = vadd.f32 %v1372_v21, %v1275_v49 }
 0x2b2   : > { %v6422_v44 = vadd.f32 %v1596_v33, %v1499_v38  ;;  %v1278_v33 = vmul.f32 %v6398_v7, %v6276_v27 }
 0x2b4   : > { %v1391_v38 = vadd.f32 %v1375_v25, %v1278_v33 }
 0x2b7   : > { %1516 = vperm.xlu2 %5317, %v1170_v58   ;;  %v1485_v58 = vmul.f32 %v6404_v11, %v1439_v50 }
 0x2b9   : > { %v6415_v3 = vpop.permute.xlu0 %1536  ;;  %v1501_v20 = vadd.f32 %v1485_v58, %v1388_v4 }
 0x2c1   : > { %v1557_v51 = vpop.permute.xlu2 %1556 }
 0x2c2   : > { %v1599_v9 = vmul.f32 %v6406_v19, %v1557_v51 }
 0x2c4   : > { %v6440_v50 = vadd.f32 %v1599_v9, %v1502_v23  ;;  %v1490_v23 = vmul.f32 %v6404_v11, %v6383_v55  ;;  %v1281_v55 = vmul.f32 %v6398_v7, %v6285_v35  ;;  %v1272_v35 = vmul.f32 %v6398_v7, %v6258_v6 }
 0x2c9   : > { %v1547_v48 = vpop.permute.xlu1 %1546 }
 0x2ca   : > { %v1597_v14 = vmul.f32 %v6406_v19, %v1547_v48  ;;  %v1487_v48 = vmul.f32 %v6404_v11, %v6380_v40  ;;  %v1282_v40 = vmul.f32 %v6398_v7, %v6292_v46  ;;  %v1376_v46 = vmul.f32 %v6396_v2, %v6333_v30 }
 0x2cc   : > { %v6424_v41 = vadd.f32 %v1597_v14, %v1500_v37  ;;  %v1488_v37 = vmul.f32 %v6404_v11, %v1454_v52  ;;  %v1390_v14 = vadd.f32 %v1374_v28, %v1277_v57  ;;  %v1492_v52 = vmul.f32 %v6404_v11, %v6387_v22 }
 0x2cd   : > { %v1395_v42 = vadd.f32 %v1379_v31, %v1282_v40  ;;  %v1377_v22 = vmul.f32 %v6396_v2, %v6349_v59  ;;  %v1271_v31 = vmul.f32 %v6398_v7, %v6260_v10 }
 0x2ce   : > { %v6434_v18 = vpack.i.bf16 %v6422_v44, %v6424_v41  ;;  %v1503_v49 = vadd.f32 %v1487_v48, %v1390_v14  ;;  %v1504_v29 = vadd.f32 %v1488_v37, %v1391_v38 }
 0x2cf   : > { %v1508_v4 = vadd.f32 %v1492_v52, %v1395_v42 }
 0x2d0   : > { %5319 = vrot.lane.b32.xlu2 %v6434_v18, %s5740_s24 }
 0x2d1   : > { %v1552_v17 = vpop.permute.xlu0 %1551 }
 0x2d2   : > { %v1598_v26 = vmul.f32 %v6406_v19, %v1552_v17  ;;  %v1280_v17 = vmul.f32 %v6398_v7, %v6287_v39 }
 0x2d4   : > { %v6442_v61 = vadd.f32 %v1598_v26, %v1501_v20  ;;  %v1279_v20 = vmul.f32 %v6398_v7, %v6283_v34  ;;  %v1489_v26 = vmul.f32 %v6404_v11, %v6392_v24  ;;  %v1393_v28 = vadd.f32 %v1377_v22, %v1280_v17 }
 0x2d5   : > { %v1378_v34 = vmul.f32 %v6396_v2, %v6351_v60  ;;  %v1491_v24 = vmul.f32 %v6404_v11, %v6385_v0  ;;  %v1369_v60 = vmul.f32 %v6396_v2, %v6308_v62  ;;  %v1368_v0 = vmul.f32 %v6396_v2, %v6301_v56 }
 0x2d6   : > { %v6446_v43 = vpack.i.bf16 %v6442_v61, %v6440_v50  ;;  %v1392_v25 = vadd.f32 %v1376_v46, %v1279_v20  ;;  %v1506_v59 = vadd.f32 %v1490_v23, %v1393_v28  ;;  %v1481_v62 = vmul.f32 %v6404_v11, %v6359_v12 }
 0x2d7   : > { %v1394_v14 = vadd.f32 %v1378_v34, %v1281_v55  ;;  %v1385_v52 = vadd.f32 %v1369_v60, %v1272_v35  ;;  %v1384_v6 = vadd.f32 %v1368_v0, %v1271_v31  ;;  %v1367_v46 = vmul.f32 %v6396_v2, %v6294_v47  ;;  %v1858_v60 = vld [vmem:[%s8907_s5 + $0x60] sm:$0xff]  ;;  %v1855_v0 = vld [vmem:[%s8907_s5 + $0x48] sm:$0xff] }
 0x2d8   : > { %5324 = vrot.lane.b32.xlu2 %v6446_v43, %s5740_s24  ;;  %5329 = vrot.lane.b32.xlu0 %v6446_v43, %s5741_s26  ;;  %v1505_v57 = vadd.f32 %v1489_v26, %v1392_v25  ;;  %v1270_v22 = vmul.f32 %v6398_v7, %v6256_v5  ;;  %v1798_v35 = vld [vmem:[%s8906_s4 + $0x80] sm:$0xff]  ;;  %v1859_v31 = vld [vmem:[%s8907_s5 + $0x68] sm:$0xff] }
 0x2d9   : > { %v1572_v45 = vpop.permute.xlu2 %1571  ;;  %v1497_v12 = vadd.f32 %v1481_v62, %v1384_v6  ;;  %v1852_v62 = vld [vmem:[%s8907_s5 + $0x30] sm:$0xff] }
 0x2da   : > { %v1602_v30 = vmul.f32 %v6406_v19, %v1572_v45  ;;  %v1507_v45 = vadd.f32 %v1491_v24, %v1394_v14  ;;  %v1383_v47 = vadd.f32 %v1367_v46, %v1270_v22  ;;  %v1782_v14 = vld [vmem:[%s8906_s4] sm:$0xff]  ;;  %v1856_v6 = vld [vmem:[%s8907_s5 + $0x50] sm:$0xff] }
 0x2dc   : > { %v1618_v48 = vadd.f32 %v1602_v30, %v1505_v57 }
 0x2e1   : > { %v1562_v32 = vpop.permute.xlu1 %1561 }
 0x2e2   : > { %v1600_v21 = vmul.f32 %v6406_v19, %v1562_v32 }
 0x2e4   : > { %v6467_v54 = vadd.f32 %v1600_v21, %v1503_v49 }
 0x2e9   : > { %v1567_v15 = vpop.permute.xlu0 %1566 }
 0x2ea   : > { %v1601_v51 = vmul.f32 %v6406_v19, %v1567_v15 }
 0x2ec   : > { %v6469_v27 = vadd.f32 %v1601_v51, %v1504_v29  ;;  %v1482_v51 = vmul.f32 %v6404_v11, %v6365_v13  ;;  %v1594_v13 = vmul.f32 %v6406_v19, %v6394_v1 }
 0x2ee   : > { %v5353_v58 = vpack.i.bf16 %v6467_v54, %v6469_v27  ;;  %v1498_v56 = vadd.f32 %v1482_v51, %v1385_v52  ;;  %v1848_v51 = vld [vmem:[%s8907_s5 + $0x10] sm:$0xff]  ;;  %v1802_v52 = vld [vmem:[%s8906_s4 + $0xa0] sm:$0xff] }
 0x2f0   : > { %5354 = vrot.lane.b32.xlu1 %v5353_v58, %s5742_s27  ;;  %5334 = vrot.lane.b32.xlu2 %v5353_v58, %s5740_s24 }
 0x2f1   : > { %5339 = vrot.lane.b32.xlu0 %v5353_v58, %s5741_s26  ;;  %v1587_v16 = vpop.permute.xlu2 %1586  ;;  %v1595_v58 = vmul.f32 %v6406_v19, %v6415_v3  ;;  %v1610_v3 = vadd.f32 %v1594_v13, %v1497_v12  ;;  %v1806_v13 = vld [vmem:[%s8906_s4 + $0xc0] sm:$0xff]  ;;  %v1853_v12 = vld [vmem:[%s8907_s5 + $0x38] sm:$0xff] }
 0x2f2   : > { %v1605_v8 = vmul.f32 %v6406_v19, %v1587_v16 }
 0x2f3   : > { %v1611_v16 = vadd.f32 %v1595_v58, %v1498_v56  ;;  %v1860_v58 = vld [vmem:[%s8907_s5 + $0x70] sm:$0xff] }
 0x2f4   : > { %v1621_v9 = vadd.f32 %v1605_v8, %v1508_v4 }
 0x2f5   : > { %v5378_v8 = vpack.i.bf16 %v1610_v3, %v1611_v16 }
 0x2f6   : > { %1942 = vmatpush.msra.mxu1 %v1621_v9 }
 0x2f9   : > { %v1577_v32 = vpop.permute.xlu1 %1576  ;;  %v1194_v39 = vpop.permute.xlu2 %1193 }
 0x2fa   : > { %v1603_v33 = vmul.f32 %v6406_v19, %v1577_v32  ;;  %v1268_v5 = vmul.f32 %v6398_v7, %v1194_v39 }
 0x2fc   : > { %v1619_v37 = vadd.f32 %v1603_v33, %v1506_v59 }
 0x2fe   : > { %v5358_v38 = vpack.i.bf16 %v1618_v48, %v1619_v37 }
 0x300   : > { %5359 = vrot.lane.b32.xlu1 %v5358_v38, %s5741_s26  ;;  %5344 = vrot.lane.b32.xlu0 %v5358_v38, %s5740_s24 }
 0x301   : > { %v1582_v21 = vpop.permute.xlu0 %1581  ;;  %v1527_v29 = vpop.permute.xlu2 %1526 }
 0x302   : > { %v1604_v15 = vmul.f32 %v6406_v19, %v1582_v21  ;;  %v1409_v42 = vpop.permute.xlu1 %1408  ;;  %v1593_v20 = vmul.f32 %v6406_v19, %v1527_v29  ;;  %v1847_v29 = vld [vmem:[%s8907_s5 + $0x8] sm:$0xff] }
 0x304   : > { %v1620_v49 = vadd.f32 %v1604_v15, %v1507_v45  ;;  %v1850_v45 = vld [vmem:[%s8907_s5 + $0x20] sm:$0xff] }
 0x305   : > { %v1794_v15 = vld [vmem:[%s8906_s4 + $0x60] sm:$0xff] }
 0x306   : > { %1943 = vmatpush.msra.mxu1 %v1620_v49  ;;  %v5373_v40 = vpack.i.bf16 %v1620_v49, %v1621_v9  ;;  %v1269_v9 = vmul.f32 %v6398_v7, %v6251_v63  ;;  %v1851_v49 = vld [vmem:[%s8907_s5 + $0x28] sm:$0xff] }
 0x308   : > { %5364 = vrot.lane.b32.xlu1 %v5358_v38, %s5742_s27  ;;  %1944 = vmatpush.msra.mxu1 %v1619_v37 }
 0x309   : > { %5374 = vrot.lane.b32.xlu2 %v5373_v40, %s5741_s26  ;;  %5349 = vrot.lane.b32.xlu0 %v6434_v18, %s5741_s26  ;;  %v1291_v10 = vpop.permute.xlu0 %1290  ;;  %v1404_v4 = vpop.permute.xlu2 %1403 }
 0x30a   : > { %1945 = vmatpush.msra.mxu1 %v1618_v48  ;;  %v1365_v17 = vmul.f32 %v6396_v2, %v1291_v10  ;;  %v1478_v32 = vmul.f32 %v6404_v11, %v1404_v4  ;;  %v1857_v10 = vld [vmem:[%s8907_s5 + $0x58] sm:$0xff] }
 0x30b   : > { %v1861_v4 = vld [vmem:[%s8907_s5 + $0x78] sm:$0xff] }
 0x30c   : > { %1946 = vmatpush.msra.mxu1 %v6469_v27  ;;  %v1286_v27 = vpop.permute.xlu1 %1285 }
 0x30d   : > { %v1364_v59 = vmul.f32 %v6396_v2, %v1286_v27  ;;  %v1814_v27 = vld [vmem:[%s8906_s4 + $0x100] sm:$0xff] }
 0x30e   : > { %1947 = vmatpush.msra.mxu1 %v6467_v54  ;;  %v1366_v54 = vmul.f32 %v6396_v2, %v6296_v53 }
 0x310   : > { %5369 = vrot.lane.b32.xlu1 %v5373_v40, %s5740_s24  ;;  %1948 = vmatpush.msra.mxu1 %v6440_v50  ;;  %v1480_v50 = vmul.f32 %v6404_v11, %v6375_v36  ;;  %v1382_v53 = vadd.f32 %v1366_v54, %v1269_v9  ;;  %v1381_v36 = vadd.f32 %v1365_v17, %v1268_v5  ;;  %v1818_v9 = vld [vmem:[%s8906_s4 + $0x120] sm:$0xff] }
 0x311   : > { %5379 = vrot.lane.b32.xlu2 %v5378_v8, %s5740_s24  ;;  %5384 = vrot.lane.b32.xlu0 %v5378_v8, %s5741_s26  ;;  %v1189_v1 = vpop.permute.xlu0 %1188  ;;  %v1517_v26 = vpop.permute.xlu2 %1516 }
 0x312   : > { %1949 = vmatpush.msra.mxu1 %v6442_v61  ;;  %v1479_v61 = vmul.f32 %v6404_v11, %v1409_v42  ;;  %v1496_v23 = vadd.f32 %v1480_v50, %v1383_v47  ;;  %v1267_v28 = vmul.f32 %v6398_v7, %v1189_v1  ;;  %v1494_v33 = vadd.f32 %v1478_v32, %v1381_v36  ;;  %v1849_v42 = vld [vmem:[%s8907_s5 + $0x18] sm:$0xff] }
 0x314   : > { %1950 = vmatpush.msra.mxu1 %v6424_v41  ;;  %v1495_v63 = vadd.f32 %v1479_v61, %v1382_v53  ;;  %v1609_v25 = vadd.f32 %v1593_v20, %v1496_v23  ;;  %v1399_v39 = vpop.permute.xlu1 %1398  ;;  %v1380_v34 = vadd.f32 %v1364_v59, %v1267_v28  ;;  %v1822_v20 = vld [vmem:[%s8906_s4 + $0x140] sm:$0xff] }
 0x315   : > { %v1477_v55 = vmul.f32 %v6404_v11, %v1399_v39  ;;  %v1786_v11 = vld [vmem:[%s8906_s4 + $0x20] sm:$0xff] }
 0x316   : > { %1951 = vmatpush.msra.mxu1 %v6422_v44  ;;  %v1591_v44 = vmul.f32 %v6406_v19, %v1517_v26 }
 0x317   : > { %v1493_v2 = vadd.f32 %v1477_v55, %v1380_v34 }
 0x318   : > { %5389 = vrot.lane.b32.xlu1 %v5373_v40, %s5742_s27  ;;  %1952 = vmatpush.msra.mxu1 %v1611_v16  ;;  %v1607_v37 = vadd.f32 %v1591_v44, %v1494_v33  ;;  %v1830_v33 = vld [vmem:[%s8906_s4 + $0x180] sm:$0xff] }
 0x319   : > { %v1522_v41 = vpop.permute.xlu0 %1521 }
 0x31a   : > { %v1592_v30 = vmul.f32 %v6406_v19, %v1522_v41  ;;  %1953 = vmatpush.msra.mxu1 %v1610_v3  ;;  %v1810_v3 = vld [vmem:[%s8906_s4 + $0xe0] sm:$0xff] }
 0x31c   : > { %v1608_v57 = vadd.f32 %v1592_v30, %v1495_v63  ;;  %1954 = vmatpush.msra.mxu1 %v1609_v25  ;;  %v1826_v63 = vld [vmem:[%s8906_s4 + $0x160] sm:$0xff] }
 0x31e   : > { %1955 = vmatpush.msra.mxu1 %v1608_v57  ;;  %v5403_v48 = vpack.i.bf16 %v1608_v57, %v1609_v25 }
 0x320   : > { %5394 = vrot.lane.b32.xlu1 %v6446_v43, %s5742_s27  ;;  %5404 = vrot.lane.b32.xlu0 %v5403_v48, %s5741_s26  ;;  %v1854_v43 = vld [vmem:[%s8907_s5 + $0x40] sm:$0xff] }
 0x321   : > { %5399 = vrot.lane.b32.xlu2 %v5403_v48, %s5740_s24  ;;  %1956 = vmatpush.msra.mxu1 %v1607_v37  ;;  %v1512_v7 = vpop.permute.xlu0 %1511 }
 0x322   : > { %v1590_v24 = vmul.f32 %v6406_v19, %v1512_v7  ;;  %v1790_v19 = vld [vmem:[%s8906_s4 + $0x40] sm:$0xff] }
 0x324   : > { %v1606_v38 = vadd.f32 %v1590_v24, %v1493_v2 }
 0x326   : > { %1957 = vmatpush.msra.mxu1 %v1606_v38  ;;  %v5418_v21 = vpack.i.bf16 %v1606_v38, %v1607_v37  ;;  %v1834_v38 = vld [vmem:[%s8906_s4 + $0x1a0] sm:$0xff] }
 0x327   : > { %1958 = vmatmul.f32.vlgmr.msra.gmra.mxu1 %v1782_v14 }
 0x328   : > { %5409 = vrot.lane.b32.xlu1 %v6434_v18, %s5742_s27  ;;  %5419 = vrot.lane.b32.xlu0 %v5418_v21, %s5741_s26  ;;  %v1846_v18 = vld [vmem:[%s8907_s5] sm:$0xff]  ;;  %s5281_s26 = smul.u32 28, %s9367_s29 }
 0x329   : > { %5414 = vrot.lane.b32.xlu2 %v5418_v21, %s5740_s24 }
 0x32a   : > { %v6608_v40 = vpop.permute.xlu2 %5319 }
 0x32f   : > { %1961 = vmatmul.f32.gmra.mxu1 %v1786_v11 }
 0x330   : > { %5424 = vrot.lane.b32.xlu1 %v5378_v8, %s5742_s27  ;;  %5434 = vrot.lane.b32.xlu0 %v5418_v21, %s5742_s27 }
 0x331   : > { %5429 = vrot.lane.b32.xlu2 %v5403_v48, %s5742_s27 }
 0x332   : > { %v6622_v56 = vpop.permute.xlu2 %5324 }
 0x337   : > { %1964 = vmatmul.f32.gmra.mxu1 %v1790_v19  ;;  %v5326_v19 = vunpack.i.l.bf16 %v6622_v56 }
 0x338   : > { %1864 = vperm.xlu1 %5315, %v1846_v18   ;;  %1904 = vperm.xlu0 %5316, %v1854_v43   ;;  %v5327_v43 = vunpack.i.h.bf16 %v6622_v56 }
 0x339   : > { %1884 = vperm.xlu2 %5317, %v1850_v45  }
 0x33f   : > { %1967 = vmatmul.f32.gmra.mxu1 %v1794_v15 }
 0x340   : > { %1924 = vperm.xlu1 %5315, %v1858_v60   ;;  %1889 = vperm.xlu0 %5316, %v1851_v49   ;;  %v5321_v49 = vunpack.i.l.bf16 %v6608_v40 }
 0x341   : > { %1869 = vperm.xlu2 %5317, %v1847_v29  }
 0x347   : > { %1970 = vmatmul.f32.gmra.mxu1 %v1798_v35 }
 0x348   : > { %1909 = vperm.xlu1 %5315, %v1855_v0   ;;  %1874 = vperm.xlu0 %5316, %v1848_v51   ;;  %v1838_v0 = vld [vmem:[%s8906_s4 + $0x1c0] sm:$0xff]  ;;  %v5322_v51 = vunpack.i.h.bf16 %v6608_v40 }
 0x349   : > { %1929 = vperm.xlu2 %5317, %v1859_v31  }
 0x34a   : > { %v6636_v16 = vpop.permute.xlu2 %5334  ;;  %v5330_v8 = vpop.permute.xlu0 %5329 }
 0x34b   : > { %v5331_v41 = vunpack.i.l.bf16 %v5330_v8  ;;  %v5332_v25 = vunpack.i.h.bf16 %v5330_v8  ;;  %v5336_v2 = vunpack.i.l.bf16 %v6636_v16  ;;  %v5337_v14 = vunpack.i.h.bf16 %v6636_v16 }
 0x34f   : > { %1973 = vmatmul.f32.gmra.mxu1 %v1802_v52 }
 0x350   : > { %1894 = vperm.xlu1 %5315, %v1852_v62   ;;  %1934 = vperm.xlu0 %5316, %v1860_v58  }
 0x351   : > { %1914 = vperm.xlu2 %5317, %v1856_v6  }
 0x357   : > { %1976 = vmatmul.f32.gmra.mxu1 %v1806_v13 }
 0x358   : > { %1879 = vperm.xlu1 %5315, %v1849_v42   ;;  %1919 = vperm.xlu0 %5316, %v1857_v10  }
 0x359   : > { %1899 = vperm.xlu2 %5317, %v1853_v12  }
 0x35f   : > { %1979 = vmatmul.f32.gmra.mxu1 %v1810_v3  ;;  %v1842_v3 = vld [vmem:[%s8906_s4 + $0x1e0] sm:$0xff] }
 0x360   : > { %1939 = vperm.xlu1 %5315, %v1861_v4  }
 0x362   : > { %v6647_v54 = vpop.permute.xlu1 %5354 }
 0x363   : > { %v5375_v1 = vpop.permute.xlu2 %5374  ;;  %v5340_v50 = vpop.permute.xlu0 %5339  ;;  %v5356_v35 = vunpack.i.l.bf16 %v6647_v54  ;;  %v5357_v52 = vunpack.i.h.bf16 %v6647_v54  ;;  %v1783_v54 = vld [vmem:[%s8906_s4 + $0x8] sm:$0xff] }
 0x364   : > { %v5376_v46 = vunpack.i.l.bf16 %v5375_v1  ;;  %v5377_v22 = vunpack.i.h.bf16 %v5375_v1  ;;  %v5341_v53 = vunpack.i.l.bf16 %v5340_v50  ;;  %v5342_v23 = vunpack.i.h.bf16 %v5340_v50 }
 0x366   : > { %2072 = vmatpush.msra.mxu3 %v5376_v46  ;;  %v1784_v46 = vld [vmem:[%s8906_s4 + $0x10] sm:$0xff] }
 0x367   : > { %1982 = vmatmul.f32.gmra.mxu1 %v1814_v27 }
 0x368   : > { %2073 = vmatpush.msra.mxu3 %v5377_v22 }
 0x36b   : > { %v5380_v48 = vpop.permute.xlu2 %5379 }
 0x36c   : > { %v5381_v62 = vunpack.i.l.bf16 %v5380_v48  ;;  %v5382_v56 = vunpack.i.h.bf16 %v5380_v48  ;;  %v1799_v48 = vld [vmem:[%s8906_s4 + $0x88] sm:$0xff] }
 0x36f   : > { %1985 = vmatmul.f32.gmra.mxu1 %v1818_v9 }
 0x372   : > { %v5360_v17 = vpop.permute.xlu1 %5359  ;;  %v5345_v47 = vpop.permute.xlu0 %5344 }
 0x373   : > { %v5361_v61 = vunpack.i.l.bf16 %v5360_v17  ;;  %v5362_v5 = vunpack.i.h.bf16 %v5360_v17  ;;  %v5346_v37 = vunpack.i.l.bf16 %v5345_v47  ;;  %v5347_v55 = vunpack.i.h.bf16 %v5345_v47 }
 0x375   : > { %2074 = vmatpush.msra.mxu3 %v5361_v61 }
 0x377   : > { %1988 = vmatmul.f32.gmra.mxu1 %v1822_v20  ;;  %2075 = vmatpush.msra.mxu3 %v5362_v5  ;;  %v1788_v20 = vld [vmem:[%s8906_s4 + $0x30] sm:$0xff] }
 0x379   : > { %2076 = vmatpush.msra.mxu3 %v5341_v53 }
 0x37a   : > { %v5365_v26 = vpop.permute.xlu1 %5364 }
 0x37b   : > { %v5350_v36 = vpop.permute.xlu0 %5349  ;;  %2077 = vmatpush.msra.mxu3 %v5342_v23  ;;  %v5400_v11 = vpop.permute.xlu2 %5399  ;;  %v5366_v18 = vunpack.i.l.bf16 %v5365_v26  ;;  %v5367_v60 = vunpack.i.h.bf16 %v5365_v26  ;;  %v1787_v26 = vld [vmem:[%s8906_s4 + $0x28] sm:$0xff] }
 0x37c   : > { %v5351_v28 = vunpack.i.l.bf16 %v5350_v36  ;;  %v5352_v30 = vunpack.i.h.bf16 %v5350_v36  ;;  %v5401_v12 = vunpack.i.l.bf16 %v5400_v11  ;;  %v5402_v4 = vunpack.i.h.bf16 %v5400_v11 }
 0x37d   : > { %2078 = vmatpush.msra.mxu3 %v5331_v41 }
 0x37f   : > { %1991 = vmatmul.f32.gmra.mxu1 %v1826_v63  ;;  %2079 = vmatpush.msra.mxu3 %v5332_v25  ;;  %v1785_v25 = vld [vmem:[%s8906_s4 + $0x18] sm:$0xff] }
 0x381   : > { %2080 = vmatpush.msra.mxu3 %v5351_v28  ;;  %v1792_v28 = vld [vmem:[%s8906_s4 + $0x50] sm:$0xff] }
 0x382   : > { %v5370_v32 = vpop.permute.xlu1 %5369 }
 0x383   : > { %v5385_v44 = vpop.permute.xlu0 %5384  ;;  %2081 = vmatpush.msra.mxu3 %v5352_v30  ;;  %v5371_v59 = vunpack.i.l.bf16 %v5370_v32  ;;  %v5372_v39 = vunpack.i.h.bf16 %v5370_v32  ;;  %v5415_v6 = vpop.permute.xlu2 %5414  ;;  %v1791_v30 = vld [vmem:[%s8906_s4 + $0x48] sm:$0xff] }
 0x384   : > { %v5386_v57 = vunpack.i.l.bf16 %v5385_v44  ;;  %v5387_v34 = vunpack.i.h.bf16 %v5385_v44  ;;  %v5416_v27 = vunpack.i.l.bf16 %v5415_v6  ;;  %v5417_v22 = vunpack.i.h.bf16 %v5415_v6  ;;  %v1789_v44 = vld [vmem:[%s8906_s4 + $0x38] sm:$0xff] }
 0x385   : > { %2007 = vmatpush.msra.mxu2 %v5371_v59  ;;  %v1796_v59 = vld [vmem:[%s8906_s4 + $0x70] sm:$0xff] }
 0x386   : > { %2082 = vmatpush.msra.mxu3 %v5386_v57  ;;  %v1795_v57 = vld [vmem:[%s8906_s4 + $0x68] sm:$0xff] }
 0x387   : > { %1994 = vmatmul.f32.gmra.mxu1 %v1830_v33  ;;  %2008 = vmatpush.msra.mxu2 %v5372_v39  ;;  %v1793_v39 = vld [vmem:[%s8906_s4 + $0x58] sm:$0xff] }
 0x388   : > { %2083 = vmatpush.msra.mxu3 %v5387_v34  ;;  %v1800_v34 = vld [vmem:[%s8906_s4 + $0x90] sm:$0xff] }
 0x389   : > { %2009 = vmatpush.msra.mxu2 %v5346_v37 }
 0x38a   : > { %v5390_v7 = vpop.permute.xlu1 %5389 }
 0x38b   : > { %2010 = vmatpush.msra.mxu2 %v5347_v55  ;;  %v5391_v24 = vunpack.i.l.bf16 %v5390_v7  ;;  %v5392_v21 = vunpack.i.h.bf16 %v5390_v7  ;;  %v5430_v17 = vpop.permute.xlu2 %5429  ;;  %v1797_v55 = vld [vmem:[%s8906_s4 + $0x78] sm:$0xff]  ;;  %v1804_v7 = vld [vmem:[%s8906_s4 + $0xb0] sm:$0xff] }
 0x38c   : > { %v5431_v5 = vunpack.i.l.bf16 %v5430_v17  ;;  %v5432_v23 = vunpack.i.h.bf16 %v5430_v17  ;;  %v1843_v17 = vld [vmem:[%s8906_s4 + $0x1e8] sm:$0xff] }
 0x38d   : > { %2011 = vmatpush.msra.mxu2 %v5336_v2  ;;  %2137 = vmatpush.msrb.mxu1 %v5391_v24  ;;  %v1803_v2 = vld [vmem:[%s8906_s4 + $0xa8] sm:$0xff] }
 0x38f   : > { %1997 = vmatmul.f32.gmra.mxu1 %v1834_v38  ;;  %2012 = vmatpush.msra.mxu2 %v5337_v14  ;;  %v1801_v38 = vld [vmem:[%s8906_s4 + $0x98] sm:$0xff]  ;;  %v1808_v14 = vld [vmem:[%s8906_s4 + $0xd0] sm:$0xff] }
 0x390   : > { %2138 = vmatpush.msrb.mxu1 %v5392_v21  ;;  %v1807_v21 = vld [vmem:[%s8906_s4 + $0xc8] sm:$0xff] }
 0x391   : > { %2013 = vmatpush.msra.mxu2 %v5326_v19  ;;  %v1805_v19 = vld [vmem:[%s8906_s4 + $0xb8] sm:$0xff] }
 0x392   : > { %2139 = vmatpush.msrb.mxu1 %v5366_v18  ;;  %v5395_v45 = vpop.permute.xlu1 %5394  ;;  %v5405_v15 = vpop.permute.xlu0 %5404  ;;  %v1812_v18 = vld [vmem:[%s8906_s4 + $0xf0] sm:$0xff] }
 0x393   : > { %2014 = vmatpush.msra.mxu2 %v5327_v43  ;;  %v5406_v29 = vunpack.i.l.bf16 %v5405_v15  ;;  %v5407_v31 = vunpack.i.h.bf16 %v5405_v15  ;;  %v5396_v58 = vunpack.i.l.bf16 %v5395_v45  ;;  %v5397_v10 = vunpack.i.h.bf16 %v5395_v45  ;;  %v1811_v43 = vld [vmem:[%s8906_s4 + $0xe8] sm:$0xff]  ;;  %v1809_v15 = vld [vmem:[%s8906_s4 + $0xd8] sm:$0xff] }
 0x394   : > { %2140 = vmatpush.msrb.mxu1 %v5367_v60  ;;  %v1816_v60 = vld [vmem:[%s8906_s4 + $0x110] sm:$0xff] }
 0x395   : > { %2015 = vmatpush.msra.mxu2 %v5321_v49  ;;  %2084 = vmatpush.msra.mxu3 %v5406_v29  ;;  %v1815_v49 = vld [vmem:[%s8906_s4 + $0x108] sm:$0xff] }
 0x396   : > { %2141 = vmatpush.msrb.mxu1 %v5356_v35  ;;  %v1813_v35 = vld [vmem:[%s8906_s4 + $0xf8] sm:$0xff] }
 0x397   : > { %2000 = vmatmul.f32.gmra.mxu1 %v1838_v0  ;;  %2016 = vmatpush.msra.mxu2 %v5322_v51  ;;  %v1820_v0 = vld [vmem:[%s8906_s4 + $0x130] sm:$0xff]  ;;  %v1819_v51 = vld [vmem:[%s8906_s4 + $0x128] sm:$0xff] }
 0x398   : > { %2085 = vmatpush.msra.mxu3 %v5407_v31  ;;  %2142 = vmatpush.msrb.mxu1 %v5357_v52  ;;  %v1817_v52 = vld [vmem:[%s8906_s4 + $0x118] sm:$0xff] }
 0x399   : > { %2017 = vmatpush.msra.mxu2 %v5381_v62  ;;  %v1824_v62 = vld [vmem:[%s8906_s4 + $0x150] sm:$0xff] }
 0x39a   : > { %2143 = vmatpush.msrb.mxu1 %v5396_v58  ;;  %v5410_v13 = vpop.permute.xlu1 %5409  ;;  %v5420_v42 = vpop.permute.xlu0 %5419  ;;  %v1823_v58 = vld [vmem:[%s8906_s4 + $0x148] sm:$0xff] }
 0x39b   : > { %2018 = vmatpush.msra.mxu2 %v5382_v56  ;;  %v5421_v40 = vunpack.i.l.bf16 %v5420_v42  ;;  %v5411_v16 = vunpack.i.l.bf16 %v5410_v13  ;;  %v5422_v8 = vunpack.i.h.bf16 %v5420_v42  ;;  %v5412_v1 = vunpack.i.h.bf16 %v5410_v13  ;;  %v1821_v56 = vld [vmem:[%s8906_s4 + $0x138] sm:$0xff]  ;;  %v1828_v13 = vld [vmem:[%s8906_s4 + $0x170] sm:$0xff]  ;;  %v1827_v42 = vld [vmem:[%s8906_s4 + $0x168] sm:$0xff] }
 0x39c   : > { %2144 = vmatpush.msrb.mxu1 %v5397_v10 }
 0x39d   : > { %2019 = vmatpush.msra.mxu2 %v5401_v12  ;;  %2086 = vmatpush.msra.mxu3 %v5421_v40  ;;  %v1825_v12 = vld [vmem:[%s8906_s4 + $0x158] sm:$0xff]  ;;  %v1832_v40 = vld [vmem:[%s8906_s4 + $0x190] sm:$0xff] }
 0x39e   : > { %2145 = vmatpush.msrb.mxu1 %v5411_v16  ;;  %v1831_v16 = vld [vmem:[%s8906_s4 + $0x188] sm:$0xff] }
 0x39f   : > { %2003 = vmatmul.f32.gmra.mxu1 %v1842_v3  ;;  %2020 = vmatpush.msra.mxu2 %v5402_v4  ;;  %v1829_v3 = vld [vmem:[%s8906_s4 + $0x178] sm:$0xff]  ;;  %v1836_v4 = vld [vmem:[%s8906_s4 + $0x1b0] sm:$0xff] }
 0x3a0   : > { %2087 = vmatpush.msra.mxu3 %v5422_v8  ;;  %2146 = vmatpush.msrb.mxu1 %v5412_v1  ;;  %v1835_v1 = vld [vmem:[%s8906_s4 + $0x1a8] sm:$0xff] }
 0x3a1   : > { %2021 = vmatpush.msra.mxu2 %v5416_v27  ;;  %2088 = vmatmul.f32.vlgmr.msra.gmra.mxu3 %v1784_v46  ;;  %v1833_v46 = vld [vmem:[%s8906_s4 + $0x198] sm:$0xff]  ;;  %v1840_v27 = vld [vmem:[%s8906_s4 + $0x1d0] sm:$0xff] }
 0x3a2   : > { %v5425_v50 = vpop.permute.xlu1 %5424  ;;  %v5435_v53 = vpop.permute.xlu0 %5434 }
 0x3a3   : > { %2022 = vmatpush.msra.mxu2 %v5417_v22  ;;  %v5426_v9 = vunpack.i.l.bf16 %v5425_v50  ;;  %v5427_v61 = vunpack.i.h.bf16 %v5425_v50  ;;  %v5436_v36 = vunpack.i.l.bf16 %v5435_v53  ;;  %v5437_v63 = vunpack.i.h.bf16 %v5435_v53  ;;  %v1837_v50 = vld [vmem:[%s8906_s4 + $0x1b8] sm:$0xff] }
 0x3a4   : > { %v6684_v47 = vpop.f32.mrf.mxu1  ;;  %2023 = vmatmul.f32.vlgmr.msra.gmra.mxu2 %v1783_v54  ;;  %v1839_v54 = vld [vmem:[%s8906_s4 + $0x1c8] sm:$0xff] }
 0x3a5   : > { %2147 = vmatpush.msrb.mxu1 %v5426_v9  ;;  %v1844_v9 = vld [vmem:[%s8906_s4 + $0x1f0] sm:$0xff] }
 0x3a7   : > { %2148 = vmatpush.msrb.mxu1 %v5427_v61 }
 0x3a9   : > { %2149 = vmatpush.msrb.mxu1 %v5431_v5  ;;  %2091 = vmatmul.f32.gmra.mxu3 %v1788_v20  ;;  %v1841_v20 = vld [vmem:[%s8906_s4 + $0x1d8] sm:$0xff]  ;;  %v2202_v5 = vlaneseq }
 0x3aa   : > { %v6849_v53 = vpop.permute.xlu0 %1904 }
 0x3ab   : > { %2150 = vmatpush.msrb.mxu1 %v5432_v23  ;;  %v6851_v23 = vand.u32 127, %v2202_v5 }
 0x3ac   : > { %v6692_v41 = vpop.f32.mrf.mxu1  ;;  %2026 = vmatmul.f32.gmra.mxu2 %v1787_v26  ;;  %v1885_v26 = vpop.permute.xlu2 %1884 }
 0x3ad   : > { %2151 = vmatpush.msrb.mxu1 %v5436_v36  ;;  %v1865_v36 = vpop.permute.xlu1 %1864 }
 0x3af   : > { %2152 = vmatpush.msrb.mxu1 %v5437_v63 }
 0x3b0   : > { %2153 = vmatmul.f32.vlgmr.msrb.gmra.mxu1 %v1785_v25 }
 0x3b1   : > { %2094 = vmatmul.f32.gmra.mxu3 %v1792_v28  ;;  %v1845_v28 = vld [vmem:[%s8906_s4 + $0x1f8] sm:$0xff] }
 0x3b4   : > { %v6703_v32 = vpop.f32.mrf.mxu1  ;;  %2029 = vmatmul.f32.gmra.mxu2 %v1791_v30  ;;  %v1960_v30 = vadd.f32 %v6684_v47, %v1865_v36 }
 0x3b8   : > { %2156 = vmatmul.f32.gmra.mxu1 %v1789_v44  ;;  %v2204_v44 = vand.u32 3, %v6851_v23 }
 0x3b9   : > { %2097 = vmatmul.f32.gmra.mxu3 %v1796_v59 }
 0x3ba   : > { %vm2205_vm3 = vcmp.ne.s32.totalorder %v2204_v44, 3 }
 0x3bc   : > { %v6714_v33 = vpop.f32.mrf.mxu1  ;;  %2032 = vmatmul.f32.gmra.mxu2 %v1795_v57 }
 0x3c0   : > { %2159 = vmatmul.f32.gmra.mxu1 %v1793_v39  ;;  %v1890_v39 = vpop.permute.xlu0 %1889 }
 0x3c1   : > { %2100 = vmatmul.f32.gmra.mxu3 %v1800_v34 }
 0x3c4   : > { %v6725_v37 = vpop.f32.mrf.mxu1  ;;  %2035 = vmatmul.f32.gmra.mxu2 %v1799_v48 }
 0x3c8   : > { %2162 = vmatmul.f32.gmra.mxu1 %v1797_v55  ;;  %v1870_v55 = vpop.permute.xlu2 %1869 }
 0x3c9   : > { %2103 = vmatmul.f32.gmra.mxu3 %v1804_v7 }
 0x3cc   : > { %v6736_v24 = vpop.f32.mrf.mxu1  ;;  %2038 = vmatmul.f32.gmra.mxu2 %v1803_v2  ;;  %v5743_v2 = vmov 0.0  }
 0x3cd   : > { %v1975_v36 = vadd.f32 %v6736_v24, %v1890_v39 }
 0x3d0   : > { %2165 = vmatmul.f32.gmra.mxu1 %v1801_v38  ;;  %v6861_v38 = vsel %vm2205_vm3, 1.0, %v5743_v2 }
 0x3d1   : > { %2106 = vmatmul.f32.gmra.mxu3 %v1808_v14  ;;  %v1963_v14 = vadd.f32 %v6692_v41, %v1870_v55 }
 0x3d4   : > { %v6747_v11 = vpop.f32.mrf.mxu1  ;;  %2041 = vmatmul.f32.gmra.mxu2 %v1807_v21 }
 0x3d8   : > { %2168 = vmatmul.f32.gmra.mxu1 %v1805_v19 }
 0x3d9   : > { %2109 = vmatmul.f32.gmra.mxu3 %v1812_v18 }
 0x3dc   : > { %v6758_v45 = vpop.f32.mrf.mxu1  ;;  %2044 = vmatmul.f32.gmra.mxu2 %v1811_v43 }
 0x3e0   : > { %2171 = vmatmul.f32.gmra.mxu1 %v1809_v15  ;;  %v1875_v15 = vpop.permute.xlu0 %1874 }
 0x3e1   : > { %2112 = vmatmul.f32.gmra.mxu3 %v1816_v60 }
 0x3e4   : > { %v6769_v29 = vpop.f32.mrf.mxu1  ;;  %2047 = vmatmul.f32.gmra.mxu2 %v1815_v49 }
 0x3e8   : > { %2174 = vmatmul.f32.gmra.mxu1 %v1813_v35 }
 0x3e9   : > { %2115 = vmatmul.f32.gmra.mxu3 %v1820_v0  ;;  %v1966_v0 = vadd.f32 %v6703_v32, %v1875_v15 }
 0x3ec   : > { %v6780_v31 = vpop.f32.mrf.mxu1  ;;  %2050 = vmatmul.f32.gmra.mxu2 %v1819_v51 }
 0x3f0   : > { %2177 = vmatmul.f32.gmra.mxu1 %v1817_v52 }
 0x3f1   : > { %2118 = vmatmul.f32.gmra.mxu3 %v1824_v62 }
 0x3f4   : > { %v6791_v6 = vpop.f32.mrf.mxu1  ;;  %2053 = vmatmul.f32.gmra.mxu2 %v1823_v58 }
 0x3f8   : > { %2180 = vmatmul.f32.gmra.mxu1 %v1821_v56 }
 0x3f9   : > { %2121 = vmatmul.f32.gmra.mxu3 %v1828_v13 }
 0x3fc   : > { %2056 = vmatmul.f32.gmra.mxu2 %v1827_v42  ;;  %v6802_v10 = vpop.f32.mrf.mxu1 }
 0x400   : > { %2183 = vmatmul.f32.gmra.mxu1 %v1825_v12 }
 0x401   : > { %2124 = vmatmul.f32.gmra.mxu3 %v1832_v40 }
 0x404   : > { %2059 = vmatmul.f32.gmra.mxu2 %v1831_v16  ;;  %v6819_v8 = vpop.f32.mrf.mxu1  ;;  %v6883_v16 = vpop.permute.xlu1 %1924 }
 0x408   : > { %2186 = vmatmul.f32.gmra.mxu1 %v1829_v3 }
 0x409   : > { %2127 = vmatmul.f32.gmra.mxu3 %v1836_v4 }
 0x40c   : > { %2062 = vmatmul.f32.gmra.mxu2 %v1835_v1  ;;  %v6830_v22 = vpop.f32.mrf.mxu1 }
 0x410   : > { %2189 = vmatmul.f32.gmra.mxu1 %v1833_v46  ;;  %v1972_v46 = vadd.f32 %v6725_v37, %v1885_v26 }
 0x411   : > { %2130 = vmatmul.f32.gmra.mxu3 %v1840_v27 }
 0x414   : > { %2065 = vmatmul.f32.gmra.mxu2 %v1839_v54  ;;  %v6844_v61 = vpop.f32.mrf.mxu1 }
 0x418   : > { %2192 = vmatmul.f32.gmra.mxu1 %v1837_v50  ;;  %v6889_v50 = vpop.permute.xlu2 %1929 }
 0x419   : > { %2133 = vmatmul.f32.gmra.mxu3 %v1844_v9  ;;  %v1910_v9 = vpop.permute.xlu1 %1909 }
 0x41c   : > { %2068 = vmatmul.f32.gmra.mxu2 %v1843_v17  ;;  %v6853_v25 = vpop.f32.mrf.mxu1 }
 0x420   : > { %2195 = vmatmul.f32.gmra.mxu1 %v1841_v20  ;;  %v1915_v37 = vpop.permute.xlu2 %1914 }
 0x424   : > { %v2089_v63 = vpop.f32.mrf.mxu3 }
 0x427   : > { %v2024_v59 = vpop.f32.mrf.mxu2 }
 0x428   : > { %v2025_v57 = vadd.f32 %v2024_v59, %v1960_v30  ;;  %2198 = vmatmul.f32.gmra.mxu1 %v1845_v28 }
 0x42a   : > { %v2090_v34 = vadd.f32 %v2089_v63, %v2025_v57 }
 0x42c   : > { %v2092_v48 = vpop.f32.mrf.mxu3 }
 0x42d   : > { %v2154_v7 = vpop.f32.mrf.mxu1 }
 0x42e   : > { %v6864_v21 = vadd.f32 %v2154_v7, %v2090_v34  ;;  %v1895_v34 = vpop.permute.xlu1 %1894 }
 0x42f   : > { %v2027_v47 = vpop.f32.mrf.mxu2  ;;  %v1978_v55 = vadd.f32 %v6747_v11, %v1895_v34 }
 0x430   : > { %v2028_v19 = vadd.f32 %v2027_v47, %v1963_v14  ;;  %v2208_v18 = vmul.f32 %v6861_v38, %v6864_v21 }
 0x432   : > { %v2225_v43 = vsel %vm2224_vm4, %v2208_v18, 0.0  ;;  %v2093_v60 = vadd.f32 %v2092_v48, %v2028_v19 }
 0x433   : > { %2226 = vadd.xlane.f32.xlu2 %v2225_v43  ;;  %v1900_v43 = vpop.permute.xlu2 %1899 }
 0x434   : > { %v2095_v49 = vpop.f32.mrf.mxu3 }
 0x435   : > { %v2157_v35 = vpop.f32.mrf.mxu1 }
 0x436   : > { %v6870_v51 = vadd.f32 %v2157_v35, %v2093_v60  ;;  %v1981_v60 = vadd.f32 %v6758_v45, %v1900_v43 }
 0x437   : > { %v2030_v41 = vpop.f32.mrf.mxu2 }
 0x438   : > { %v2031_v52 = vadd.f32 %v2030_v41, %v1966_v0  ;;  %v2209_v62 = vmul.f32 %v6861_v38, %v6870_v51 }
 0x43a   : > { %v2228_v58 = vsel %vm2224_vm4, %v2209_v62, 0.0  ;;  %v2096_v56 = vadd.f32 %v2095_v49, %v2031_v52 }
 0x43b   : > { %2229 = vadd.xlane.f32.xlu2 %v2228_v58 }
 0x43c   : > { %v6875_v13 = vpop.f32.mrf.mxu3 }
 0x43d   : > { %v2160_v42 = vpop.f32.mrf.mxu1 }
 0x43e   : > { %v6877_v12 = vadd.f32 %v2160_v42, %v2096_v56  ;;  %v1984_v56 = vadd.f32 %v6769_v29, %v6849_v53 }
 0x43f   : > { %v6879_v40 = vpop.f32.mrf.mxu2 }
 0x440   : > { %v2210_v32 = vmul.f32 %v6861_v38, %v6877_v12 }
 0x442   : > { %v2231_v3 = vsel %vm2224_vm4, %v2210_v32, 0.0 }
 0x443   : > { %2232 = vadd.xlane.f32.xlu0 %v2231_v3 }
 0x444   : > { %v2101_v4 = vpop.f32.mrf.mxu3 }
 0x445   : > { %v6886_v1 = vpop.f32.mrf.mxu1 }
 0x447   : > { %v2036_v27 = vpop.f32.mrf.mxu2 }
 0x448   : > { %v2037_v54 = vadd.f32 %v2036_v27, %v1972_v46 }
 0x44a   : > { %v2102_v17 = vadd.f32 %v2101_v4, %v2037_v54 }
 0x44c   : > { %v2104_v20 = vpop.f32.mrf.mxu3 }
 0x44d   : > { %v2166_v5 = vpop.f32.mrf.mxu1 }
 0x44e   : > { %v6892_v63 = vadd.f32 %v2166_v5, %v2102_v17  ;;  %v1987_v17 = vadd.f32 %v6780_v31, %v1910_v9  ;;  %v1880_v5 = vpop.permute.xlu1 %1879  ;;  %v1990_v31 = vadd.f32 %v6791_v6, %v1915_v37 }
 0x44f   : > { %v2039_v28 = vpop.f32.mrf.mxu2 }
 0x450   : > { %v2040_v30 = vadd.f32 %v2039_v28, %v1975_v36  ;;  %v2212_v44 = vmul.f32 %v6861_v38, %v6892_v63  ;;  %v1969_v28 = vadd.f32 %v6714_v33, %v1880_v5 }
 0x452   : > { %v2237_v59 = vsel %vm2224_vm4, %v2212_v44, 0.0  ;;  %v2105_v26 = vadd.f32 %v2104_v20, %v2040_v30  ;;  %v1935_v44 = vpop.permute.xlu0 %1934 }
 0x453   : > { %2238 = vadd.xlane.f32.xlu0 %v2237_v59  ;;  %v2034_v59 = vadd.f32 %v6879_v40, %v1969_v28 }
 0x454   : > { %v2107_v57 = vpop.f32.mrf.mxu3 }
 0x455   : > { %v2169_v48 = vpop.f32.mrf.mxu1 }
 0x456   : > { %v6898_v7 = vadd.f32 %v2169_v48, %v2105_v26 }
 0x457   : > { %v2042_v24 = vpop.f32.mrf.mxu2 }
 0x458   : > { %v2043_v39 = vadd.f32 %v2042_v24, %v1978_v55  ;;  %v2213_v14 = vmul.f32 %v6861_v38, %v6898_v7  ;;  %v2099_v55 = vadd.f32 %v6875_v13, %v2034_v59 }
 0x45a   : > { %v2240_v47 = vsel %vm2224_vm4, %v2213_v14, 0.0  ;;  %v2108_v19 = vadd.f32 %v2107_v57, %v2043_v39  ;;  %v6931_v39 = vadd.f32 %v6886_v1, %v2099_v55 }
 0x45b   : > { %2241 = vadd.xlane.f32.xlu0 %v2240_v47 }
 0x45c   : > { %v2110_v18 = vpop.f32.mrf.mxu3  ;;  %v2211_v13 = vmul.f32 %v6861_v38, %v6931_v39 }
 0x45d   : > { %v2172_v15 = vpop.f32.mrf.mxu1 }
 0x45e   : > { %v6904_v49 = vadd.f32 %v2172_v15, %v2108_v19  ;;  %v1920_v19 = vpop.permute.xlu0 %1919 }
 0x45f   : > { %v2045_v35 = vpop.f32.mrf.mxu2  ;;  %v1993_v6 = vadd.f32 %v6802_v10, %v1920_v19  ;;  %v1996_v10 = vadd.f32 %v6819_v8, %v6883_v16 }
 0x460   : > { %v2046_v11 = vadd.f32 %v2045_v35, %v1981_v60  ;;  %v2214_v0 = vmul.f32 %v6861_v38, %v6904_v49  ;;  %v2234_v60 = vsel %vm2224_vm4, %v2211_v13, 0.0 }
 0x462   : > { %v2243_v41 = vsel %vm2224_vm4, %v2214_v0, 0.0  ;;  %v2111_v52 = vadd.f32 %v2110_v18, %v2046_v11 }
 0x463   : > { %2244 = vadd.xlane.f32.xlu1 %v2243_v41 }
 0x464   : > { %v2113_v62 = vpop.f32.mrf.mxu3 }
 0x465   : > { %v2175_v58 = vpop.f32.mrf.mxu1 }
 0x466   : > { %v6911_v42 = vadd.f32 %v2175_v58, %v2111_v52 }
 0x467   : > { %v2048_v32 = vpop.f32.mrf.mxu2 }
 0x468   : > { %v2049_v45 = vadd.f32 %v2048_v32, %v1984_v56  ;;  %v2215_v3 = vmul.f32 %v6861_v38, %v6911_v42 }
 0x46a   : > { %v2246_v4 = vsel %vm2224_vm4, %v2215_v3, 0.0  ;;  %v2114_v46 = vadd.f32 %v2113_v62, %v2049_v45 }
 0x46b   : > { %2247 = vadd.xlane.f32.xlu2 %v2246_v4 }
 0x46c   : > { %v2116_v27 = vpop.f32.mrf.mxu3 }
 0x46d   : > { %v2178_v54 = vpop.f32.mrf.mxu1 }
 0x46e   : > { %v6917_v20 = vadd.f32 %v2178_v54, %v2114_v46  ;;  %v1999_v46 = vadd.f32 %v6830_v22, %v6889_v50 }
 0x46f   : > { %v2051_v36 = vpop.f32.mrf.mxu2 }
 0x470   : > { %v2052_v29 = vadd.f32 %v2051_v36, %v1987_v17  ;;  %v2216_v53 = vmul.f32 %v6861_v38, %v6917_v20 }
 0x472   : > { %v2249_v30 = vsel %vm2224_vm4, %v2216_v53, 0.0  ;;  %v2117_v26 = vadd.f32 %v2116_v27, %v2052_v29  ;;  %v2002_v29 = vadd.f32 %v6844_v61, %v1935_v44 }
 0x473   : > { %2250 = vadd.xlane.f32.xlu1 %v2249_v30 }
 0x474   : > { %v2119_v57 = vpop.f32.mrf.mxu3 }
 0x475   : > { %v2181_v34 = vpop.f32.mrf.mxu1 }
 0x476   : > { %v6925_v9 = vadd.f32 %v2181_v34, %v2117_v26 }
 0x477   : > { %v2054_v48 = vpop.f32.mrf.mxu2 }
 0x478   : > { %v2055_v24 = vadd.f32 %v2054_v48, %v1990_v31  ;;  %v2217_v33 = vmul.f32 %v6861_v38, %v6925_v9 }
 0x47a   : > { %v2252_v14 = vsel %vm2224_vm4, %v2217_v33, 0.0  ;;  %v2120_v40 = vadd.f32 %v2119_v57, %v2055_v24  ;;  %v1940_v57 = vpop.permute.xlu1 %1939 }
 0x47b   : > { %2253 = vadd.xlane.f32.xlu1 %v2252_v14  ;;  %v2005_v31 = vadd.f32 %v6853_v25, %v1940_v57 }
 0x47c   : > { %v2122_v47 = vpop.f32.mrf.mxu3 }
 0x47d   : > { %v2184_v18 = vpop.f32.mrf.mxu1 }
 0x47e   : > { %v6935_v37 = vadd.f32 %v2184_v18, %v2120_v40 }
 0x47f   : > { %v2057_v43 = vpop.f32.mrf.mxu2 }
 0x480   : > { %v2058_v15 = vadd.f32 %v2057_v43, %v1993_v6  ;;  %v2218_v1 = vmul.f32 %v6861_v38, %v6935_v37 }
 0x482   : > { %v2255_v35 = vsel %vm2224_vm4, %v2218_v1, 0.0  ;;  %v2123_v11 = vadd.f32 %v2122_v47, %v2058_v15 }
 0x483   : > { %2235 = vadd.xlane.f32.xlu1 %v2234_v60  ;;  %2256 = vadd.xlane.f32.xlu2 %v2255_v35 }
 0x484   : > { %v2125_v0 = vpop.f32.mrf.mxu3 }
 0x485   : > { %v2187_v41 = vpop.f32.mrf.mxu1 }
 0x486   : > { %v6945_v52 = vadd.f32 %v2187_v41, %v2123_v11 }
 0x487   : > { %v2060_v62 = vpop.f32.mrf.mxu2 }
 0x488   : > { %v2061_v58 = vadd.f32 %v2060_v62, %v1996_v10  ;;  %v2219_v56 = vmul.f32 %v6861_v38, %v6945_v52 }
 0x48a   : > { %v2258_v32 = vsel %vm2224_vm4, %v2219_v56, 0.0  ;;  %v2126_v45 = vadd.f32 %v2125_v0, %v2061_v58 }
 0x48b   : > { %2259 = vadd.xlane.f32.xlu0 %v2258_v32 }
 0x48c   : > { %v2128_v4 = vpop.f32.mrf.mxu3 }
 0x48d   : > { %v2190_v3 = vpop.f32.mrf.mxu1 }
 0x48e   : > { %v6952_v27 = vadd.f32 %v2190_v3, %v2126_v45 }
 0x48f   : > { %v2063_v54 = vpop.f32.mrf.mxu2 }
 0x490   : > { %v2064_v8 = vadd.f32 %v2063_v54, %v1999_v46  ;;  %v2220_v16 = vmul.f32 %v6861_v38, %v6952_v27 }
 0x492   : > { %v2261_v17 = vsel %vm2224_vm4, %v2220_v16, 0.0  ;;  %v2129_v5 = vadd.f32 %v2128_v4, %v2064_v8 }
 0x493   : > { %2262 = vadd.xlane.f32.xlu2 %v2261_v17 }
 0x494   : > { %v2131_v30 = vpop.f32.mrf.mxu3 }
 0x495   : > { %v2193_v36 = vpop.f32.mrf.mxu1 }
 0x496   : > { %v6958_v53 = vadd.f32 %v2193_v36, %v2129_v5 }
 0x497   : > { %v2066_v28 = vpop.f32.mrf.mxu2 }
 0x498   : > { %v2067_v59 = vadd.f32 %v2066_v28, %v2002_v29  ;;  %v2221_v22 = vmul.f32 %v6861_v38, %v6958_v53 }
 0x49a   : > { %v2264_v50 = vsel %vm2224_vm4, %v2221_v22, 0.0  ;;  %v2132_v26 = vadd.f32 %v2131_v30, %v2067_v59 }
 0x49b   : > { %2265 = vadd.xlane.f32.xlu2 %v2264_v50 }
 0x49c   : > { %v2134_v24 = vpop.f32.mrf.mxu3 }
 0x49d   : > { %v2196_v34 = vpop.f32.mrf.mxu1 }
 0x49e   : > { %v6964_v48 = vadd.f32 %v2196_v34, %v2132_v26 }
 0x49f   : > { %v2069_v55 = vpop.f32.mrf.mxu2 }
 0x4a0   : > { %v2070_v61 = vadd.f32 %v2069_v55, %v2005_v31  ;;  %v2222_v44 = vmul.f32 %v6861_v38, %v6964_v48 }
 0x4a2   : > { %v2267_v33 = vsel %vm2224_vm4, %v2222_v44, 0.0  ;;  %v2135_v14 = vadd.f32 %v2134_v24, %v2070_v61 }
 0x4a3   : > { %2268 = vadd.xlane.f32.xlu0 %v2267_v33 }
 0x4a5   : > { %v2199_v40 = vpop.f32.mrf.mxu1 }
 0x4a6   : > { %v6969_v47 = vadd.f32 %v2199_v40, %v2135_v14  ;;  %v2227_v18 = vpop.xlane.xlu2 %2226 }
 0x4a8   : > { %v2223_v19 = vmul.f32 %v6861_v38, %v6969_v47 }
 0x4aa   : > { %v2270_v25 = vsel %vm2224_vm4, %v2223_v19, 0.0 }
 0x4ab   : > { %2271 = vadd.xlane.f32.xlu1 %v2270_v25 }
 0x4ae   : > { %v2230_v6 = vpop.xlane.xlu2 %2229 }
 0x4b6   : > { %v2233_v13 = vpop.xlane.xlu0 %2232 }
 0x4c6   : > { %v2239_v1 = vpop.xlane.xlu0 %2238 }
 0x4c7   : > { %v2273_v11 = vadd.f32 %v2239_v1, %v2227_v18 }
 0x4ce   : > { %v2242_v41 = vpop.xlane.xlu0 %2241 }
 0x4cf   : > { %v2274_v32 = vadd.f32 %v2242_v41, %v2230_v6 }
 0x4d6   : > { %v2245_v15 = vpop.xlane.xlu1 %2244 }
 0x4d7   : > { %v2275_v8 = vadd.f32 %v2245_v15, %v2233_v13 }
 0x4de   : > { %v2248_v43 = vpop.xlane.xlu2 %2247 }
 0x4e6   : > { %v2251_v35 = vpop.xlane.xlu1 %2250 }
 0x4e7   : > { %v2277_v0 = vadd.f32 %v2273_v11, %v2251_v35 }
 0x4ee   : > { %v2254_v56 = vpop.xlane.xlu1 %2253 }
 0x4ef   : > { %v2278_v45 = vadd.f32 %v2274_v32, %v2254_v56 }
 0x4f6   : > { %v2257_v60 = vpop.xlane.xlu2 %2256  ;;  %v2236_v17 = vpop.xlane.xlu1 %2235 }
 0x4f7   : > { %v2279_v16 = vadd.f32 %v2275_v8, %v2257_v60  ;;  %v2276_v28 = vadd.f32 %v2248_v43, %v2236_v17 }
 0x4fe   : > { %v2260_v3 = vpop.xlane.xlu0 %2259 }
 0x4ff   : > { %v2280_v30 = vadd.f32 %v2276_v28, %v2260_v3 }
 0x506   : > { %v2263_v10 = vpop.xlane.xlu2 %2262 }
 0x507   : > { %v2281_v62 = vadd.f32 %v2277_v0, %v2263_v10 }
 0x509   : > { %v2285_v58 = vmul.f32 0.027777778, %v2281_v62 }
 0x50b   : > { %2291 = vperm.xlu2 %5317, %v2285_v58  }
 0x50e   : > { %v2266_v4 = vpop.xlane.xlu2 %2265 }
 0x50f   : > { %v2282_v46 = vadd.f32 %v2278_v45, %v2266_v4 }
 0x511   : > { %v2286_v54 = vmul.f32 0.027777778, %v2282_v46 }
 0x513   : > { %2296 = vperm.xlu0 %5316, %v2286_v54  }
 0x516   : > { %v2269_v5 = vpop.xlane.xlu0 %2268 }
 0x517   : > { %v2283_v36 = vadd.f32 %v2279_v16, %v2269_v5 }
 0x519   : > { %v2287_v29 = vmul.f32 0.027777778, %v2283_v36 }
 0x51b   : > { %2301 = vperm.xlu1 %5315, %v2287_v29  }
 0x51e   : > { %v2272_v59 = vpop.xlane.xlu1 %2271 }
 0x51f   : > { %v2284_v22 = vadd.f32 %v2280_v30, %v2272_v59 }
 0x521   : > { %v2288_v50 = vmul.f32 0.027777778, %v2284_v22 }
 0x523   : > { %2306 = vperm.xlu0 %5316, %v2288_v50  }
 0x565   : > { %v2292_v26 = vpop.permute.xlu2 %2291 }
 0x566   : > { %v6975_v57 = vsub.f32 %v6917_v20, %v2292_v26  ;;  %v6978_v34 = vsub.f32 %v6892_v63, %v2292_v26  ;;  %v6981_v31 = vsub.f32 %v6864_v21, %v2292_v26  ;;  %v6990_v24 = vsub.f32 %v6952_v27, %v2292_v26 }
 0x568   : > { %v2333_v55 = vmul.f32 %v6861_v38, %v6975_v57  ;;  %v2329_v61 = vmul.f32 %v6861_v38, %v6978_v34  ;;  %v2325_v44 = vmul.f32 %v6861_v38, %v6981_v31  ;;  %v2337_v19 = vmul.f32 %v6861_v38, %v6990_v24 }
 0x56a   : > { %v2349_v20 = vmul.f32 %v2333_v55, %v2333_v55  ;;  %v2345_v33 = vmul.f32 %v2329_v61, %v2329_v61  ;;  %v2341_v14 = vmul.f32 %v2325_v44, %v2325_v44  ;;  %v2353_v25 = vmul.f32 %v2337_v19, %v2337_v19 }
 0x56c   : > { %v2381_v63 = vsel %vm2224_vm4, %v2349_v20, 0.0  ;;  %v2369_v21 = vsel %vm2224_vm4, %v2345_v33, 0.0  ;;  %v2357_v40 = vsel %vm2224_vm4, %v2341_v14, 0.0  ;;  %v2393_v18 = vsel %vm2224_vm4, %v2353_v25, 0.0 }
 0x56d   : > { %2382 = vadd.xlane.f32.xlu0 %v2381_v63  ;;  %2370 = vadd.xlane.f32.xlu1 %v2369_v21 }
 0x56e   : > { %2358 = vadd.xlane.f32.xlu2 %v2357_v40 }
 0x576   : > { %2394 = vadd.xlane.f32.xlu2 %v2393_v18 }
 0x585   : > { %v2297_v27 = vpop.permute.xlu0 %2296 }
 0x586   : > { %v6999_v6 = vsub.f32 %v6898_v7, %v2297_v27  ;;  %v7002_v13 = vsub.f32 %v6870_v51, %v2297_v27  ;;  %v7005_v43 = vsub.f32 %v6925_v9, %v2297_v27  ;;  %v7014_v35 = vsub.f32 %v6958_v53, %v2297_v27 }
 0x588   : > { %v2330_v15 = vmul.f32 %v6861_v38, %v6999_v6  ;;  %v2326_v1 = vmul.f32 %v6861_v38, %v7002_v13  ;;  %v2334_v60 = vmul.f32 %v6861_v38, %v7005_v43  ;;  %v2338_v10 = vmul.f32 %v6861_v38, %v7014_v35 }
 0x58a   : > { %v2346_v7 = vmul.f32 %v2330_v15, %v2330_v15  ;;  %v2342_v11 = vmul.f32 %v2326_v1, %v2326_v1  ;;  %v2350_v0 = vmul.f32 %v2334_v60, %v2334_v60  ;;  %v2354_v45 = vmul.f32 %v2338_v10, %v2338_v10 }
 0x58c   : > { %v2372_v51 = vsel %vm2224_vm4, %v2346_v7, 0.0  ;;  %v2360_v9 = vsel %vm2224_vm4, %v2342_v11, 0.0  ;;  %v2384_v41 = vsel %vm2224_vm4, %v2350_v0, 0.0 }
 0x58d   : > { %v2302_v62 = vpop.permute.xlu1 %2301  ;;  %2373 = vadd.xlane.f32.xlu0 %v2372_v51  ;;  %2361 = vadd.xlane.f32.xlu1 %v2360_v9 }
 0x58e   : > { %2385 = vadd.xlane.f32.xlu2 %v2384_v41  ;;  %v7022_v58 = vsub.f32 %v6877_v12, %v2302_v62  ;;  %v7025_v53 = vsub.f32 %v6904_v49, %v2302_v62  ;;  %v7028_v56 = vsub.f32 %v6964_v48, %v2302_v62  ;;  %v7035_v4 = vsub.f32 %v6935_v37, %v2302_v62 }
 0x58f   : > { %v2396_v48 = vsel %vm2224_vm4, %v2354_v45, 0.0 }
 0x590   : > { %v2327_v32 = vmul.f32 %v6861_v38, %v7022_v58  ;;  %v2331_v3 = vmul.f32 %v6861_v38, %v7025_v53  ;;  %v2339_v12 = vmul.f32 %v6861_v38, %v7028_v56  ;;  %v2335_v16 = vmul.f32 %v6861_v38, %v7035_v4 }
 0x592   : > { %v2343_v46 = vmul.f32 %v2327_v32, %v2327_v32  ;;  %v2347_v54 = vmul.f32 %v2331_v3, %v2331_v3  ;;  %v2355_v5 = vmul.f32 %v2339_v12, %v2339_v12  ;;  %v2351_v36 = vmul.f32 %v2335_v16, %v2335_v16 }
 0x594   : > { %v2363_v49 = vsel %vm2224_vm4, %v2343_v46, 0.0  ;;  %v2375_v8 = vsel %vm2224_vm4, %v2347_v54, 0.0  ;;  %v2399_v50 = vsel %vm2224_vm4, %v2355_v5, 0.0 }
 0x595   : > { %v2307_v17 = vpop.permute.xlu0 %2306  ;;  %2364 = vadd.xlane.f32.xlu0 %v2363_v49  ;;  %2397 = vadd.xlane.f32.xlu1 %v2396_v48 }
 0x596   : > { %2376 = vadd.xlane.f32.xlu2 %v2375_v8  ;;  %v7045_v37 = vsub.f32 %v6931_v39, %v2307_v17  ;;  %v7050_v28 = vsub.f32 %v6945_v52, %v2307_v17  ;;  %v7053_v30 = vsub.f32 %v6911_v42, %v2307_v17  ;;  %v7056_v59 = vsub.f32 %v6969_v47, %v2307_v17 }
 0x597   : > { %v2387_v39 = vsel %vm2224_vm4, %v2351_v36, 0.0 }
 0x598   : > { %v2328_v29 = vmul.f32 %v6861_v38, %v7045_v37  ;;  %v2336_v55 = vmul.f32 %v6861_v38, %v7050_v28  ;;  %v2332_v52 = vmul.f32 %v6861_v38, %v7053_v30  ;;  %v2340_v42 = vmul.f32 %v6861_v38, %v7056_v59 }
 0x59a   : > { %v2344_v22 = vmul.f32 %v2328_v29, %v2328_v29  ;;  %v2352_v47 = vmul.f32 %v2336_v55, %v2336_v55  ;;  %v2348_v61 = vmul.f32 %v2332_v52, %v2332_v52  ;;  %v2356_v44 = vmul.f32 %v2340_v42, %v2340_v42 }
 0x59c   : > { %v2366_v26 = vsel %vm2224_vm4, %v2344_v22, 0.0  ;;  %v2390_v20 = vsel %vm2224_vm4, %v2352_v47, 0.0  ;;  %v2378_v33 = vsel %vm2224_vm4, %v2348_v61, 0.0  ;;  %v2402_v14 = vsel %vm2224_vm4, %v2356_v44, 0.0 }
 0x59d   : > { %2400 = vadd.xlane.f32.xlu0 %v2399_v50  ;;  %2388 = vadd.xlane.f32.xlu1 %v2387_v39 }
 0x59e   : > { %2367 = vadd.xlane.f32.xlu2 %v2366_v26 }
 0x5a5   : > { %2391 = vadd.xlane.f32.xlu0 %v2390_v20  ;;  %2379 = vadd.xlane.f32.xlu1 %v2378_v33 }
 0x5a6   : > { %2403 = vadd.xlane.f32.xlu2 %v2402_v14 }
 0x5e0   : > { %v2371_v63 = vpop.xlane.xlu1 %2370  ;;  %v2383_v19 = vpop.xlane.xlu0 %2382 }
 0x5e1   : > { %v2359_v21 = vpop.xlane.xlu2 %2358 }
 0x5e2   : > { %v2405_v40 = vadd.f32 %v2371_v63, %v2359_v21 }
 0x5e4   : > { %v2409_v25 = vadd.f32 %v2405_v40, %v2383_v19 }
 0x5e9   : > { %v2395_v18 = vpop.xlane.xlu2 %2394 }
 0x5ea   : > { %v2413_v38 = vadd.f32 %v2409_v25, %v2395_v18 }
 0x5ec   : > { %v2417_v27 = vmul.f32 0.027777778, %v2413_v38 }
 0x5ee   : > { %v2421_v15 = vadd.f32 1e-05, %v2417_v27 }
 0x5f0   : > { %5498 = vrsqrt.f32 %v2421_v15  ;;  %vm2431_vm6 = vweird.f32 %v2421_v15 }
 0x5f6   : > { %v5499_v1 = vpop.eup %5498 }
 0x5f7   : > { %v2426_v60 = vmul.f32 %v5499_v1, %v2421_v15  ;;  %vm2432_vm5 = vweird.f32 %v5499_v1 }
 0x5f8   : > { %vm2433_vm7 = vmor %vm2431_vm6, %vm2432_vm5 }
 0x5f9   : > { %v2427_v7 = vmul.f32 %v5499_v1, %v2426_v60 }
 0x5fb   : > { %v2428_v11 = vmul.f32 0.5, %v2427_v7 }
 0x5fd   : > { %v2429_v0 = vsub.f32 1.5, %v2428_v11 }
 0x5ff   : > { %v2430_v51 = vmul.f32 %v5499_v1, %v2429_v0 }
 0x600   : > { %v2374_v9 = vpop.xlane.xlu0 %2373  ;;  %v2362_v41 = vpop.xlane.xlu1 %2361 }
 0x601   : > { %v2386_v10 = vpop.xlane.xlu2 %2385  ;;  %v2434_v62 = vsel %vm2433_vm7, %v5499_v1, %v2430_v51  ;;  %v2406_v32 = vadd.f32 %v2374_v9, %v2362_v41 }
 0x602   : > { %2467 = vperm.xlu1 %5315, %v2434_v62   ;;  %v5126_v62 = vld [vmem:[%s8908_s6 + $0x18] sm:$0x7] }
 0x603   : > { %v2410_v45 = vadd.f32 %v2406_v32, %v2386_v10  ;;  %v2550_v32 = vld [vmem:[%s8908_s6 + $0x8] sm:$0x7]  ;;  %5127 = vmatpush.msk.msrb.mxu2 %vm2566_vm1, %v5126_v62 }
 0x604   : > { %5132 = vmatpush.msk.msrb.mxu3 %vm2566_vm1, %v2550_v32 }
 0x608   : > { %v2365_v3 = vpop.xlane.xlu0 %2364  ;;  %v2398_v46 = vpop.xlane.xlu1 %2397 }
 0x609   : > { %v2414_v54 = vadd.f32 %v2410_v45, %v2398_v46  ;;  %v2377_v12 = vpop.xlane.xlu2 %2376  ;;  %v5125_v45 = vld [vmem:[%s8908_s6 + $0x10] sm:$0xff] }
 0x60a   : > { %v2407_v8 = vadd.f32 %v2377_v12, %v2365_v3  ;;  %v2549_v3 = vld [vmem:[%s8908_s6] sm:$0xff]  ;;  %2585 = vmatpush.msrb.mxu2 %v5125_v45 }
 0x60b   : > { %v2418_v49 = vmul.f32 0.027777778, %v2414_v54  ;;  %2629 = vmatpush.msrb.mxu3 %v2549_v3 }
 0x60d   : > { %v2422_v48 = vadd.f32 1e-05, %v2418_v49 }
 0x60f   : > { %5500 = vrsqrt.f32 %v2422_v48  ;;  %vm2441_vm9 = vweird.f32 %v2422_v48 }
 0x610   : > { %v2401_v16 = vpop.xlane.xlu0 %2400  ;;  %v2389_v17 = vpop.xlane.xlu1 %2388 }
 0x611   : > { %v2411_v5 = vadd.f32 %v2407_v8, %v2389_v17  ;;  %v2368_v36 = vpop.xlane.xlu2 %2367  ;;  %v5138_v17 = vld [vmem:[%s8908_s6 + $0x28] sm:$0x7] }
 0x612   : > { %5139 = vmatpush.msk.msra.mxu2 %vm2566_vm1, %v5138_v17 }
 0x613   : > { %v2415_v29 = vadd.f32 %v2411_v5, %v2401_v16  ;;  %v5144_v5 = vld [vmem:[%s8908_s6 + $0x30] sm:$0xff] }
 0x615   : > { %v5501_v22 = vpop.eup %5500  ;;  %v2419_v50 = vmul.f32 0.027777778, %v2415_v29 }
 0x616   : > { %v2436_v39 = vmul.f32 %v5501_v22, %v2422_v48  ;;  %vm2442_vm8 = vweird.f32 %v5501_v22 }
 0x617   : > { %v2423_v26 = vadd.f32 1e-05, %v2419_v50  ;;  %vm2443_vm10 = vmor %vm2441_vm9, %vm2442_vm8 }
 0x618   : > { %v2437_v55 = vmul.f32 %v5501_v22, %v2436_v39  ;;  %v2380_v52 = vpop.xlane.xlu1 %2379  ;;  %v2392_v61 = vpop.xlane.xlu0 %2391 }
 0x619   : > { %5502 = vrsqrt.f32 %v2423_v26  ;;  %v2408_v42 = vadd.f32 %v2380_v52, %v2368_v36  ;;  %v2404_v20 = vpop.xlane.xlu2 %2403  ;;  %vm2451_vm0 = vweird.f32 %v2423_v26 }
 0x61a   : > { %v2438_v47 = vmul.f32 0.5, %v2437_v55 }
 0x61b   : > { %v2412_v44 = vadd.f32 %v2408_v42, %v2392_v61 }
 0x61c   : > { %v2439_v33 = vsub.f32 1.5, %v2438_v47 }
 0x61d   : > { %v2416_v14 = vadd.f32 %v2412_v44, %v2404_v20 }
 0x61e   : > { %v2440_v63 = vmul.f32 %v5501_v22, %v2439_v33 }
 0x61f   : > { %v5503_v21 = vpop.eup %5502  ;;  %v2420_v40 = vmul.f32 0.027777778, %v2416_v14 }
 0x620   : > { %v2446_v19 = vmul.f32 %v5503_v21, %v2423_v26  ;;  %v2444_v25 = vsel %vm2443_vm10, %v5501_v22, %v2440_v63  ;;  %vm2452_vm11 = vweird.f32 %v5503_v21 }
 0x621   : > { %v2424_v18 = vadd.f32 1e-05, %v2420_v40  ;;  %2472 = vperm.xlu0 %5316, %v2444_v25   ;;  %vm2453_vm12 = vmor %vm2451_vm0, %vm2452_vm11 }
 0x622   : > { %v2447_v38 = vmul.f32 %v5503_v21, %v2446_v19 }
 0x623   : > { %5504 = vrsqrt.f32 %v2424_v18  ;;  %vm2461_vm14 = vweird.f32 %v2424_v18 }
 0x624   : > { %v2448_v27 = vmul.f32 0.5, %v2447_v38 }
 0x626   : > { %v2449_v15 = vsub.f32 1.5, %v2448_v27 }
 0x628   : > { %v2450_v1 = vmul.f32 %v5503_v21, %v2449_v15 }
 0x629   : > { %v5505_v60 = vpop.eup %5504 }
 0x62a   : > { %v2456_v7 = vmul.f32 %v5505_v60, %v2424_v18  ;;  %v2454_v11 = vsel %vm2453_vm12, %v5503_v21, %v2450_v1  ;;  %vm2462_vm13 = vweird.f32 %v5505_v60 }
 0x62b   : > { %2477 = vperm.xlu2 %5317, %v2454_v11   ;;  %vm2463_vm15 = vmor %vm2461_vm14, %vm2462_vm13 }
 0x62c   : > { %v2457_v0 = vmul.f32 %v5505_v60, %v2456_v7 }
 0x62e   : > { %v2458_v51 = vmul.f32 0.5, %v2457_v0 }
 0x630   : > { %v2459_v9 = vsub.f32 1.5, %v2458_v51 }
 0x632   : > { %v2460_v41 = vmul.f32 %v5505_v60, %v2459_v9 }
 0x634   : > { %v2464_v10 = vsel %vm2463_vm15, %v5505_v60, %v2460_v41 }
 0x635   : > { %2482 = vperm.xlu0 %5316, %v2464_v10  }
 0x674   : > { %v2468_v46 = vpop.permute.xlu1 %2467 }
 0x675   : > { %v2485_v54 = vmul.f32 %v2468_v46, %v6981_v31  ;;  %v2489_v12 = vmul.f32 %v2468_v46, %v6978_v34  ;;  %v5145_v31 = vld [vmem:[%s8908_s6 + $0x38] sm:$0x7]  ;;  %v5137_v34 = vld [vmem:[%s8908_s6 + $0x20] sm:$0xff]  ;;  %v2493_v63 = vmul.f32 %v2468_v46, %v6975_v57  ;;  %v2497_v21 = vmul.f32 %v2468_v46, %v6990_v24 }
 0x676   : > { %5146 = vmatpush.msk.msra.mxu3 %vm2566_vm1, %v5145_v31  ;;  %2676 = vmatpush.msra.mxu2 %v5137_v34 }
 0x677   : > { %vm2505_vm2 = vcmp.ge.f32.partialorder %v2489_v12, 0.0  ;;  %v2521_v49 = vmul.f32 0.2, %v2489_v12  ;;  %vm2501_vm3 = vcmp.ge.f32.partialorder %v2485_v54, 0.0  ;;  %v2517_v48 = vmul.f32 0.2, %v2485_v54 }
 0x678   : > { %2727 = vmatpush.msra.mxu3 %v5144_v5  ;;  %v2525_v25 = vmul.f32 0.2, %v2493_v63  ;;  %v2529_v18 = vmul.f32 0.2, %v2497_v21  ;;  %vm2509_vm11 = vcmp.ge.f32.partialorder %v2493_v63, 0.0  ;;  %vm2513_vm0 = vcmp.ge.f32.partialorder %v2497_v21, 0.0 }
 0x679   : > { %v2537_v8 = vsel %vm2505_vm2, %v2489_v12, %v2521_v49  ;;  %v2533_v16 = vsel %vm2501_vm3, %v2485_v54, %v2517_v48  ;;  %vm2894_vm3 = vcmask 449536  }
 0x67a   : > { %5128 = vmatmul.msk.f32.vlgmr.msrb.gmra.mxu2 %vm2224_vm4, %v2537_v8  ;;  %5133 = vmatmul.msk.f32.vlgmr.msrb.gmra.mxu3 %vm2224_vm4, %v2533_v16  ;;  %v2541_v38 = vsel %vm2509_vm11, %v2493_v63, %v2525_v25  ;;  %v2545_v27 = vsel %vm2513_vm0, %v2497_v21, %v2529_v18  ;;  %v2799_v63 = vld [vmem:[%s8910_s8 + $0x30] sm:$0xff]  ;;  %v2798_v21 = vld [vmem:[%s8910_s8 + $0x28] sm:$0xff] }
 0x685   : > { %v2478_v50 = vpop.permute.xlu2 %2477 }
 0x686   : > { %v2487_v55 = vmul.f32 %v2478_v50, %v7022_v58  ;;  %v2491_v52 = vmul.f32 %v2478_v50, %v7025_v53  ;;  %v2495_v15 = vmul.f32 %v2478_v50, %v7035_v4  ;;  %v2499_v1 = vmul.f32 %v2478_v50, %v7028_v56 }
 0x688   : > { %v2523_v61 = vmul.f32 0.2, %v2491_v52  ;;  %v2519_v44 = vmul.f32 0.2, %v2487_v55  ;;  %vm2507_vm7 = vcmp.ge.f32.partialorder %v2491_v52, 0.0  ;;  %vm2503_vm8 = vcmp.ge.f32.partialorder %v2487_v55, 0.0 }
 0x689   : > { %vm2511_vm14 = vcmp.ge.f32.partialorder %v2495_v15, 0.0  ;;  %vm2515_vm15 = vcmp.ge.f32.partialorder %v2499_v1, 0.0 }
 0x693   : > { %v2473_v36 = vpop.permute.xlu0 %2472 }
 0x694   : > { %v2486_v29 = vmul.f32 %v2473_v36, %v7002_v13  ;;  %v2490_v22 = vmul.f32 %v2473_v36, %v6999_v6  ;;  %v2539_v6 = vsel %vm2507_vm7, %v2491_v52, %v2523_v61  ;;  %v2535_v13 = vsel %vm2503_vm8, %v2487_v55, %v2519_v44 }
 0x695   : > { %vm3092_vm8 = vcmask 1046528  }
 0x696   : > { %vm2506_vm5 = vcmp.ge.f32.partialorder %v2490_v22, 0.0  ;;  %v2522_v39 = vmul.f32 0.2, %v2490_v22  ;;  %vm2502_vm6 = vcmp.ge.f32.partialorder %v2486_v29, 0.0  ;;  %v2518_v26 = vmul.f32 0.2, %v2486_v29 }
 0x698   : > { %v2538_v42 = vsel %vm2506_vm5, %v2490_v22, %v2522_v39  ;;  %v2534_v47 = vsel %vm2502_vm6, %v2486_v29, %v2518_v26 }
 0x699   : > { %5129 = vmatmul.msk.f32.gmra.mxu2 %vm2224_vm4, %v2538_v42  ;;  %5134 = vmatmul.msk.f32.gmra.mxu3 %vm2224_vm4, %v2534_v47 }
 0x6a1   : > { %5130 = vmatmul.msk.f32.gmra.mxu2 %vm2224_vm4, %v2539_v6  ;;  %5135 = vmatmul.msk.f32.gmra.mxu3 %vm2224_vm4, %v2535_v13  ;;  %v2795_v13 = vld [vmem:[%s8910_s8 + $0x10] sm:$0xff] }
 0x6a7   : > { %v2483_v20 = vpop.permute.xlu0 %2482 }
 0x6a8   : > { %v2488_v58 = vmul.f32 %v2483_v20, %v7045_v37  ;;  %v2492_v53 = vmul.f32 %v2483_v20, %v7053_v30  ;;  %v2494_v37 = vmul.f32 %v2473_v36, %v7005_v43  ;;  %v2498_v30 = vmul.f32 %v2473_v36, %v7014_v35 }
 0x6a9   : > { %v2527_v43 = vmul.f32 0.2, %v2495_v15  ;;  %v2531_v35 = vmul.f32 0.2, %v2499_v1  ;;  %v2496_v11 = vmul.f32 %v2483_v20, %v7050_v28  ;;  %v2500_v0 = vmul.f32 %v2483_v20, %v7056_v59  ;;  %v2794_v20 = vld [vmem:[%s8910_s8 + $0x8] sm:$0xff] }
 0x6aa   : > { %vm2508_vm9 = vcmp.ge.f32.partialorder %v2492_v53, 0.0  ;;  %v2524_v33 = vmul.f32 0.2, %v2492_v53  ;;  %vm2504_vm10 = vcmp.ge.f32.partialorder %v2488_v58, 0.0  ;;  %v2520_v14 = vmul.f32 0.2, %v2488_v58 }
 0x6ab   : > { %v2526_v57 = vmul.f32 0.2, %v2494_v37  ;;  %v2530_v24 = vmul.f32 0.2, %v2498_v30  ;;  %vm2510_vm12 = vcmp.ge.f32.partialorder %v2494_v37, 0.0  ;;  %vm2514_vm13 = vcmp.ge.f32.partialorder %v2498_v30, 0.0 }
 0x6ac   : > { %v2540_v40 = vsel %vm2508_vm9, %v2492_v53, %v2524_v33  ;;  %v2536_v19 = vsel %vm2504_vm10, %v2488_v58, %v2520_v14  ;;  %v2543_v51 = vsel %vm2511_vm14, %v2495_v15, %v2527_v43  ;;  %v2547_v9 = vsel %vm2515_vm15, %v2499_v1, %v2531_v35  ;;  %v2797_v58 = vld [vmem:[%s8910_s8 + $0x20] sm:$0xff]  ;;  %v2800_v33 = vld [vmem:[%s8910_s8 + $0x38] sm:$0xff] }
 0x6ad   : > { %5131 = vmatmul.msk.f32.gmra.mxu2 %vm2224_vm4, %v2540_v40  ;;  %5136 = vmatmul.msk.f32.gmra.mxu3 %vm2224_vm4, %v2536_v19  ;;  %v2542_v60 = vsel %vm2510_vm12, %v2494_v37, %v2526_v57  ;;  %v2546_v7 = vsel %vm2514_vm13, %v2498_v30, %v2530_v24  ;;  %v2528_v56 = vmul.f32 0.2, %v2496_v11  ;;  %v2532_v4 = vmul.f32 0.2, %v2500_v0  ;;  %v2793_v53 = vld [vmem:[%s8910_s8] sm:$0xff]  ;;  %v2796_v14 = vld [vmem:[%s8910_s8 + $0x18] sm:$0xff] }
 0x6ae   : > { %vm2512_vm1 = vcmp.ge.f32.partialorder %v2496_v11, 0.0  ;;  %vm2516_vm2 = vcmp.ge.f32.partialorder %v2500_v0, 0.0 }
 0x6af   : > { %v2544_v41 = vsel %vm2512_vm1, %v2496_v11, %v2528_v56  ;;  %v2548_v10 = vsel %vm2516_vm2, %v2500_v0, %v2532_v4  ;;  %v2787_v56 = vld [vmem:[%s8909_s7 + $0x10] sm:$0xff]  ;;  %v2788_v4 = vld [vmem:[%s8909_s7 + $0x18] sm:$0xff] }
 0x6b5   : > { %5140 = vmatmul.msk.f32.vlgmr.msra.gmra.mxu2 %vm2224_vm4, %v2541_v38  ;;  %5147 = vmatmul.msk.f32.vlgmr.msra.gmra.mxu3 %vm2224_vm4, %v2545_v27 }
 0x6bd   : > { %5141 = vmatmul.msk.f32.gmra.mxu2 %vm2224_vm4, %v2542_v60  ;;  %5148 = vmatmul.msk.f32.gmra.mxu3 %vm2224_vm4, %v2546_v7 }
 0x6c5   : > { %5142 = vmatmul.msk.f32.gmra.mxu2 %vm2224_vm4, %v2543_v51  ;;  %5149 = vmatmul.msk.f32.gmra.mxu3 %vm2224_vm4, %v2547_v9  ;;  %v2785_v51 = vld [vmem:[%s8909_s7] sm:$0xff]  ;;  %v2786_v9 = vld [vmem:[%s8909_s7 + $0x8] sm:$0xff] }
 0x6cd   : > { %5143 = vmatmul.msk.f32.gmra.mxu2 %vm2224_vm4, %v2544_v41  ;;  %5150 = vmatmul.msk.f32.gmra.mxu3 %vm2224_vm4, %v2548_v10  ;;  %v2789_v41 = vld [vmem:[%s8909_s7 + $0x20] sm:$0xff]  ;;  %v2790_v10 = vld [vmem:[%s8909_s7 + $0x28] sm:$0xff] }
 0x6fd   : > { %v2587_v62 = vpop.f32.mrf.mxu2  ;;  %v2631_v28 = vpop.f32.mrf.mxu3 }
 0x6fe   : > { %v2632_v48 = vadd.f32 %v2631_v28, %v2587_v62  ;;  %v2791_v62 = vld [vmem:[%s8909_s7 + $0x30] sm:$0xff]  ;;  %v2792_v28 = vld [vmem:[%s8909_s7 + $0x38] sm:$0xff] }
 0x71c   : > { %v2590_v32 = vpop.f32.mrf.mxu2  ;;  %v2634_v59 = vpop.f32.mrf.mxu3 }
 0x71d   : > { %v2635_v8 = vadd.f32 %v2634_v59, %v2590_v32  ;;  %v2882_v32 = vand.u32 7, %v6851_v23 }
 0x71f   : > { %vm2883_vm4 = vcmp.ne.s32.totalorder %v2882_v32, 7 }
 0x724   : > { %v2593_v45 = vpop.f32.mrf.mxu2  ;;  %v2637_v3 = vpop.f32.mrf.mxu3 }
 0x725   : > { %v2638_v39 = vadd.f32 %v2637_v3, %v2593_v45  ;;  %v7190_v3 = vsel %vm2883_vm4, 1.0, %v5743_v2 }
 0x730   : > { %v2596_v46 = vpop.f32.mrf.mxu2  ;;  %v2640_v54 = vpop.f32.mrf.mxu3 }
 0x731   : > { %v2641_v26 = vadd.f32 %v2640_v54, %v2596_v46 }
 0x738   : > { %v2678_v12 = vpop.f32.mrf.mxu2  ;;  %v2729_v49 = vpop.f32.mrf.mxu3 }
 0x739   : > { %v2690_v16 = vadd.f32 %v2678_v12, %v2632_v48 }
 0x73b   : > { %v7130_v5 = vadd.f32 %v2729_v49, %v2690_v16 }
 0x740   : > { %v2681_v17 = vpop.f32.mrf.mxu2  ;;  %v2732_v31 = vpop.f32.mrf.mxu3 }
 0x741   : > { %v2691_v34 = vadd.f32 %v2681_v17, %v2635_v8 }
 0x743   : > { %v7132_v36 = vadd.f32 %v2732_v31, %v2691_v34 }
 0x745   : > { %v5443_v29 = vpack.i.bf16 %v7130_v5, %v7132_v36 }
 0x747   : > { %5444 = vrot.lane.b32.xlu2 %v5443_v29, %s5744_s20 }
 0x748   : > { %v2684_v22 = vpop.f32.mrf.mxu2  ;;  %v2735_v50 = vpop.f32.mrf.mxu3 }
 0x749   : > { %v2692_v55 = vadd.f32 %v2684_v22, %v2638_v39 }
 0x74b   : > { %v2743_v61 = vadd.f32 %v2735_v50, %v2692_v55 }
 0x750   : > { %v2687_v52 = vpop.f32.mrf.mxu2  ;;  %v2738_v47 = vpop.f32.mrf.mxu3 }
 0x751   : > { %v2693_v42 = vadd.f32 %v2687_v52, %v2641_v26 }
 0x753   : > { %v2744_v44 = vadd.f32 %v2738_v47, %v2693_v42 }
 0x755   : > { %v5458_v6 = vpack.i.bf16 %v2743_v61, %v2744_v44 }
 0x757   : > { %5459 = vrot.lane.b32.xlu2 %v5458_v6, %s5740_s24  ;;  %5449 = vrot.lane.b32.xlu0 %v5458_v6, %s5745_s21 }
 0x758   : > { %5439 = vrot.lane.b32.xlu1 %v5458_v6, %s5744_s20 }
 0x75f   : > { %2813 = vperm.xlu2 %5317, %v2795_v13   ;;  %5464 = vrot.lane.b32.xlu0 %v5443_v29, %s5740_s24 }
 0x760   : > { %5454 = vrot.lane.b32.xlu1 %v5443_v29, %s5745_s21 }
 0x767   : > { %2808 = vperm.xlu2 %5317, %v2794_v20   ;;  %2823 = vperm.xlu0 %5316, %v2797_v58  }
 0x768   : > { %2803 = vperm.xlu1 %5315, %v2793_v53  }
 0x76f   : > { %2838 = vperm.xlu2 %5317, %v2800_v33   ;;  %2818 = vperm.xlu0 %5316, %v2796_v14  }
 0x770   : > { %2833 = vperm.xlu1 %5315, %v2799_v63  }
 0x778   : > { %2828 = vperm.xlu1 %5315, %v2798_v21  }
 0x7a1   : > { %v5445_v25 = vpop.permute.xlu2 %5444 }
 0x7a2   : > { %v5446_v37 = vunpack.i.l.bf16 %v5445_v25  ;;  %v5447_v38 = vunpack.i.h.bf16 %v5445_v25 }
 0x7b1   : > { %v5460_v1 = vpop.permute.xlu2 %5459 }
 0x7b2   : > { %v5461_v7 = vunpack.i.l.bf16 %v5460_v1  ;;  %v5462_v35 = vunpack.i.h.bf16 %v5460_v1 }
 0x7b9   : > { %v2814_v48 = vpop.permute.xlu2 %2813 }
 0x7c1   : > { %v2809_v17 = vpop.permute.xlu2 %2808 }
 0x7c9   : > { %v5450_v30 = vpop.permute.xlu0 %5449  ;;  %v2839_v14 = vpop.permute.xlu2 %2838 }
 0x7ca   : > { %v5440_v40 = vpop.permute.xlu1 %5439  ;;  %v5451_v27 = vunpack.i.l.bf16 %v5450_v30  ;;  %v5452_v24 = vunpack.i.h.bf16 %v5450_v30 }
 0x7cb   : > { %v5441_v19 = vunpack.i.l.bf16 %v5440_v40  ;;  %v5442_v18 = vunpack.i.h.bf16 %v5440_v40 }
 0x7cd   : > { %2841 = vmatpush.msrb.mxu2 %v5441_v19 }
 0x7cf   : > { %2842 = vmatpush.msrb.mxu2 %v5442_v18 }
 0x7d1   : > { %2843 = vmatpush.msrb.mxu2 %v5446_v37  ;;  %v5465_v43 = vpop.permute.xlu0 %5464 }
 0x7d2   : > { %v5455_v57 = vpop.permute.xlu1 %5454  ;;  %v5466_v11 = vunpack.i.l.bf16 %v5465_v43  ;;  %v5467_v0 = vunpack.i.h.bf16 %v5465_v43 }
 0x7d3   : > { %2844 = vmatpush.msrb.mxu2 %v5447_v38  ;;  %v5456_v15 = vunpack.i.l.bf16 %v5455_v57  ;;  %v5457_v60 = vunpack.i.h.bf16 %v5455_v57 }
 0x7d5   : > { %2845 = vmatpush.msrb.mxu2 %v5451_v27 }
 0x7d7   : > { %2846 = vmatpush.msrb.mxu2 %v5452_v24 }
 0x7d9   : > { %2847 = vmatpush.msrb.mxu2 %v5456_v15 }
 0x7da   : > { %v2804_v59 = vpop.permute.xlu1 %2803 }
 0x7db   : > { %2848 = vmatpush.msrb.mxu2 %v5457_v60 }
 0x7dd   : > { %2849 = vmatpush.msrb.mxu2 %v5461_v7 }
 0x7df   : > { %2850 = vmatpush.msrb.mxu2 %v5462_v35 }
 0x7e1   : > { %2851 = vmatpush.msrb.mxu2 %v5466_v11 }
 0x7e3   : > { %2852 = vmatpush.msrb.mxu2 %v5467_v0 }
 0x7e5   : > { %2853 = vmatpush.msrb.mxu2 %v2744_v44 }
 0x7e7   : > { %2854 = vmatpush.msrb.mxu2 %v2743_v61  ;;  %v2834_v61 = vpop.permute.xlu1 %2833 }
 0x7e9   : > { %2855 = vmatpush.msrb.mxu2 %v7132_v36  ;;  %v2824_v36 = vpop.permute.xlu0 %2823 }
 0x7eb   : > { %2856 = vmatpush.msrb.mxu2 %v7130_v5 }
 0x7ec   : > { %2857 = vmatmul.f32.vlgmr.msrb.gmra.mxu2 %v2785_v51 }
 0x7ef   : > { %v2829_v58 = vpop.permute.xlu1 %2828 }
 0x7f1   : > { %v2819_v26 = vpop.permute.xlu0 %2818 }
 0x7f4   : > { %2860 = vmatmul.f32.gmra.mxu2 %v2786_v9 }
 0x7fc   : > { %2863 = vmatmul.f32.gmra.mxu2 %v2787_v56 }
 0x804   : > { %2866 = vmatmul.f32.gmra.mxu2 %v2788_v4 }
 0x80c   : > { %2869 = vmatmul.f32.gmra.mxu2 %v2789_v41 }
 0x814   : > { %2872 = vmatmul.f32.gmra.mxu2 %v2790_v10 }
 0x81c   : > { %2875 = vmatmul.f32.gmra.mxu2 %v2791_v62 }
 0x824   : > { %2878 = vmatmul.f32.gmra.mxu2 %v2792_v28 }
 0x86f   : > { %v2858_v45 = vpop.f32.mrf.mxu2 }
 0x870   : > { %v7192_v46 = vadd.f32 %v2858_v45, %v2804_v59 }
 0x872   : > { %v2886_v54 = vmul.f32 %v7190_v3, %v7192_v46 }
 0x874   : > { %v2895_v12 = vsel %vm2894_vm3, %v2886_v54, 0.0 }
 0x875   : > { %2896 = vadd.xlane.f32.xlu0 %v2895_v12 }
 0x877   : > { %v2861_v49 = vpop.f32.mrf.mxu2 }
 0x878   : > { %v7198_v31 = vadd.f32 %v2861_v49, %v2809_v17 }
 0x87a   : > { %v2887_v5 = vmul.f32 %v7190_v3, %v7198_v31 }
 0x87c   : > { %v2898_v29 = vsel %vm2894_vm3, %v2887_v5, 0.0 }
 0x87f   : > { %v2864_v8 = vpop.f32.mrf.mxu2 }
 0x880   : > { %v2865_v16 = vadd.f32 %v2864_v8, %v2814_v48 }
 0x882   : > { %v2888_v23 = vmul.f32 %v7190_v3, %v2865_v16 }
 0x884   : > { %v2901_v2 = vsel %vm2894_vm3, %v2888_v23, 0.0 }
 0x885   : > { %2902 = vadd.xlane.f32.xlu1 %v2901_v2 }
 0x887   : > { %v2867_v34 = vpop.f32.mrf.mxu2 }
 0x888   : > { %v7205_v55 = vadd.f32 %v2867_v34, %v2819_v26 }
 0x88a   : > { %v2889_v47 = vmul.f32 %v7190_v3, %v7205_v55 }
 0x88c   : > { %v2904_v44 = vsel %vm2894_vm3, %v2889_v47, 0.0 }
 0x88d   : > { %2899 = vadd.xlane.f32.xlu1 %v2898_v29 }
 0x88f   : > { %v2870_v22 = vpop.f32.mrf.mxu2 }
 0x890   : > { %v2871_v50 = vadd.f32 %v2870_v22, %v2824_v36 }
 0x892   : > { %v2890_v39 = vmul.f32 %v7190_v3, %v2871_v50 }
 0x894   : > { %v2907_v52 = vsel %vm2894_vm3, %v2890_v39, 0.0 }
 0x895   : > { %2908 = vadd.xlane.f32.xlu2 %v2907_v52 }
 0x897   : > { %v2873_v42 = vpop.f32.mrf.mxu2 }
 0x898   : > { %v2874_v53 = vadd.f32 %v2873_v42, %v2829_v58 }
 0x89a   : > { %v2891_v21 = vmul.f32 %v7190_v3, %v2874_v53 }
 0x89c   : > { %v2910_v18 = vsel %vm2894_vm3, %v2891_v21, 0.0 }
 0x89d   : > { %2905 = vadd.xlane.f32.xlu2 %v2904_v44 }
 0x89f   : > { %v2876_v6 = vpop.f32.mrf.mxu2 }
 0x8a0   : > { %v2877_v13 = vadd.f32 %v2876_v6, %v2834_v61 }
 0x8a2   : > { %v2892_v20 = vmul.f32 %v7190_v3, %v2877_v13 }
 0x8a4   : > { %v2913_v33 = vsel %vm2894_vm3, %v2892_v20, 0.0 }
 0x8a5   : > { %2914 = vadd.xlane.f32.xlu0 %v2913_v33 }
 0x8a7   : > { %v2879_v63 = vpop.f32.mrf.mxu2 }
 0x8a8   : > { %v2880_v40 = vadd.f32 %v2879_v63, %v2839_v14 }
 0x8aa   : > { %v2893_v19 = vmul.f32 %v7190_v3, %v2880_v40 }
 0x8ac   : > { %v2916_v25 = vsel %vm2894_vm3, %v2893_v19, 0.0 }
 0x8ad   : > { %2917 = vadd.xlane.f32.xlu1 %v2916_v25  ;;  %2911 = vadd.xlane.f32.xlu0 %v2910_v18 }
 0x8e8   : > { %v2897_v37 = vpop.xlane.xlu0 %2896 }
 0x8f8   : > { %v2903_v30 = vpop.xlane.xlu1 %2902 }
 0x8f9   : > { %v2919_v27 = vadd.f32 %v2903_v30, %v2897_v37 }
 0x900   : > { %v2900_v1 = vpop.xlane.xlu1 %2899 }
 0x908   : > { %v2909_v38 = vpop.xlane.xlu2 %2908 }
 0x909   : > { %v2921_v57 = vadd.f32 %v2919_v27, %v2909_v38 }
 0x910   : > { %v2906_v7 = vpop.xlane.xlu2 %2905 }
 0x911   : > { %v2920_v43 = vadd.f32 %v2906_v7, %v2900_v1  ;;  %v5188_v7 = vld [vmem:[%s8911_s9 + $0x130] sm:$0xff] }
 0x918   : > { %v2915_v24 = vpop.xlane.xlu0 %2914 }
 0x919   : > { %v2923_v15 = vadd.f32 %v2921_v57, %v2915_v24  ;;  %v5164_v57 = vld [vmem:[%s8911_s9 + $0xd0] sm:$0x7f]  ;;  %v5190_v24 = vld [vmem:[%s8911_s9 + $0x140] sm:$0x7f] }
 0x91a   : > { %5166 = vmatpush.msk.msrb.mxu3 %vm3092_vm8, %v5164_v57  ;;  %5192 = vmatpush.msk.msra.mxu1 %vm3092_vm8, %v5190_v24  ;;  %v3065_v57 = vld [vmem:[%s8911_s9 + $0x40] sm:$0xff]  ;;  %v3063_v24 = vld [vmem:[%s8911_s9 + $0x30] sm:$0xff] }
 0x91b   : > { %v2925_v60 = vmul.f32 0.0051020407, %v2923_v15  ;;  %v5162_v15 = vld [vmem:[%s8911_s9 + $0xc0] sm:$0xff] }
 0x91c   : > { %3109 = vmatpush.msrb.mxu3 %v5162_v15  ;;  %3240 = vmatpush.msra.mxu1 %v5188_v7  ;;  %v3061_v15 = vld [vmem:[%s8911_s9 + $0x20] sm:$0xff] }
 0x91d   : > { %2929 = vperm.xlu2 %5317, %v2925_v60   ;;  %v5191_v60 = vld [vmem:[%s8911_s9 + $0x148] sm:$0x7f] }
 0x91e   : > { %5195 = vmatpush.msk.msra.mxu2 %vm3092_vm8, %v5191_v60  ;;  %v3057_v60 = vld [vmem:[%s8911_s9] sm:$0xff] }
 0x920   : > { %v2912_v35 = vpop.xlane.xlu0 %2911  ;;  %v2918_v0 = vpop.xlane.xlu1 %2917 }
 0x921   : > { %v2922_v11 = vadd.f32 %v2920_v43, %v2912_v35  ;;  %v5189_v43 = vld [vmem:[%s8911_s9 + $0x138] sm:$0xff]  ;;  %v5160_v35 = vld [vmem:[%s8911_s9 + $0xb0] sm:$0xff] }
 0x922   : > { %3263 = vmatpush.msra.mxu2 %v5189_v43  ;;  %3110 = vmatpush.msrb.mxu3 %v5160_v35 }
 0x923   : > { %v2924_v51 = vadd.f32 %v2922_v11, %v2918_v0  ;;  %v5186_v11 = vld [vmem:[%s8911_s9 + $0x120] sm:$0xff]  ;;  %v5187_v0 = vld [vmem:[%s8911_s9 + $0x128] sm:$0xff] }
 0x924   : > { %3241 = vmatpush.msra.mxu1 %v5186_v11  ;;  %3264 = vmatpush.msra.mxu2 %v5187_v0 }
 0x925   : > { %v2926_v9 = vmul.f32 0.0051020407, %v2924_v51 }
 0x927   : > { %2934 = vperm.xlu0 %5316, %v2926_v9   ;;  %v5158_v9 = vld [vmem:[%s8911_s9 + $0xa0] sm:$0xff] }
 0x928   : > { %3111 = vmatpush.msrb.mxu3 %v5158_v9 }
 0x977   : > { %v2930_v56 = vpop.permute.xlu2 %2929 }
 0x978   : > { %v7218_v4 = vsub.f32 %v7192_v46, %v2930_v56  ;;  %v7220_v41 = vsub.f32 %v2877_v13, %v2930_v56  ;;  %v7222_v10 = vsub.f32 %v2865_v16, %v2930_v56  ;;  %v7232_v12 = vsub.f32 %v2871_v50, %v2930_v56  ;;  %v5184_v56 = vld [vmem:[%s8911_s9 + $0x110] sm:$0xff] }
 0x979   : > { %3242 = vmatpush.msra.mxu1 %v5184_v56 }
 0x97a   : > { %v2945_v62 = vmul.f32 %v7190_v3, %v7218_v4  ;;  %v2951_v28 = vmul.f32 %v7190_v3, %v7220_v41  ;;  %v2947_v46 = vmul.f32 %v7190_v3, %v7222_v10  ;;  %v2949_v8 = vmul.f32 %v7190_v3, %v7232_v12 }
 0x97c   : > { %v2953_v32 = vmul.f32 %v2945_v62, %v2945_v62  ;;  %v2959_v59 = vmul.f32 %v2951_v28, %v2951_v28  ;;  %v2955_v49 = vmul.f32 %v2947_v46, %v2947_v46  ;;  %v2957_v16 = vmul.f32 %v2949_v8, %v2949_v8  ;;  %v5185_v62 = vld [vmem:[%s8911_s9 + $0x118] sm:$0xff] }
 0x97d   : > { %3265 = vmatpush.msra.mxu2 %v5185_v62 }
 0x97e   : > { %v2961_v45 = vsel %vm2894_vm3, %v2953_v32, 0.0  ;;  %v2979_v54 = vsel %vm2894_vm3, %v2959_v59, 0.0  ;;  %v2967_v48 = vsel %vm2894_vm3, %v2955_v49, 0.0  ;;  %v2973_v23 = vsel %vm2894_vm3, %v2957_v16, 0.0 }
 0x97f   : > { %2962 = vadd.xlane.f32.xlu1 %v2961_v45  ;;  %2980 = vadd.xlane.f32.xlu0 %v2979_v54 }
 0x987   : > { %2968 = vadd.xlane.f32.xlu1 %v2967_v48 }
 0x98f   : > { %2974 = vadd.xlane.f32.xlu1 %v2973_v23 }
 0x999   : > { %v2935_v17 = vpop.permute.xlu0 %2934 }
 0x99a   : > { %v7239_v2 = vsub.f32 %v7198_v31, %v2935_v17  ;;  %v7242_v34 = vsub.f32 %v7205_v55, %v2935_v17  ;;  %v7244_v5 = vsub.f32 %v2874_v53, %v2935_v17  ;;  %v7254_v55 = vsub.f32 %v2880_v40, %v2935_v17 }
 0x99c   : > { %v2948_v36 = vmul.f32 %v7190_v3, %v7242_v34  ;;  %v2946_v29 = vmul.f32 %v7190_v3, %v7239_v2  ;;  %v2950_v31 = vmul.f32 %v7190_v3, %v7244_v5  ;;  %v2952_v47 = vmul.f32 %v7190_v3, %v7254_v55 }
 0x99e   : > { %v2956_v22 = vmul.f32 %v2948_v36, %v2948_v36  ;;  %v2954_v50 = vmul.f32 %v2946_v29, %v2946_v29  ;;  %v2958_v52 = vmul.f32 %v2950_v31, %v2950_v31  ;;  %v2960_v61 = vmul.f32 %v2952_v47, %v2952_v47  ;;  %v5156_v36 = vld [vmem:[%s8911_s9 + $0x90] sm:$0xff]  ;;  %v5182_v29 = vld [vmem:[%s8911_s9 + $0x100] sm:$0xff] }
 0x99f   : > { %3112 = vmatpush.msrb.mxu3 %v5156_v36  ;;  %3243 = vmatpush.msra.mxu1 %v5182_v29  ;;  %v5152_v31 = vld [vmem:[%s8911_s9 + $0x70] sm:$0xff] }
 0x9a0   : > { %v2970_v39 = vsel %vm2894_vm3, %v2956_v22, 0.0  ;;  %v2964_v26 = vsel %vm2894_vm3, %v2954_v50, 0.0  ;;  %v2976_v42 = vsel %vm2894_vm3, %v2958_v52, 0.0  ;;  %v2982_v44 = vsel %vm2894_vm3, %v2960_v61, 0.0  ;;  %v5183_v22 = vld [vmem:[%s8911_s9 + $0x108] sm:$0xff]  ;;  %v5154_v50 = vld [vmem:[%s8911_s9 + $0x80] sm:$0xff] }
 0x9a1   : > { %2971 = vadd.xlane.f32.xlu1 %v2970_v39  ;;  %2965 = vadd.xlane.f32.xlu2 %v2964_v26  ;;  %v5180_v39 = vld [vmem:[%s8911_s9 + $0xf0] sm:$0xff]  ;;  %v5181_v26 = vld [vmem:[%s8911_s9 + $0xf8] sm:$0xff]  ;;  %v5178_v52 = vld [vmem:[%s8911_s9 + $0xe0] sm:$0xff] }
 0x9a2   : > { %3266 = vmatpush.msra.mxu2 %v5183_v22  ;;  %3113 = vmatpush.msrb.mxu3 %v5154_v50  ;;  %v5206_v36 = vld [vmem:[%s8911_s9 + $0x190] sm:$0xff] }
 0x9a3   : > { %3244 = vmatpush.msra.mxu1 %v5180_v39  ;;  %v5202_v22 = vld [vmem:[%s8911_s9 + $0x170] sm:$0xff]  ;;  %v5200_v39 = vld [vmem:[%s8911_s9 + $0x160] sm:$0xff] }
 0x9a4   : > { %3267 = vmatpush.msra.mxu2 %v5181_v26  ;;  %3114 = vmatpush.msrb.mxu3 %v5152_v31  ;;  %v5198_v26 = vld [vmem:[%s8911_s9 + $0x150] sm:$0xff] }
 0x9a5   : > { %3245 = vmatpush.msra.mxu1 %v5178_v52 }
 0x9a9   : > { %2977 = vadd.xlane.f32.xlu1 %v2976_v42  ;;  %v5179_v42 = vld [vmem:[%s8911_s9 + $0xe8] sm:$0xff] }
 0x9aa   : > { %3268 = vmatpush.msra.mxu2 %v5179_v42 }
 0x9b1   : > { %2983 = vadd.xlane.f32.xlu1 %v2982_v44 }
 0x9f2   : > { %v2963_v6 = vpop.xlane.xlu1 %2962  ;;  %v2981_v33 = vpop.xlane.xlu0 %2980 }
 0x9fa   : > { %v2969_v13 = vpop.xlane.xlu1 %2968 }
 0x9fb   : > { %v2985_v20 = vadd.f32 %v2969_v13, %v2963_v6  ;;  %v5165_v6 = vld [vmem:[%s8911_s9 + $0xd8] sm:$0x7f] }
 0x9fc   : > { %v5211_v13 = vld [vmem:[%s8911_s9 + $0x1b8] sm:$0x7f]  ;;  %5169 = vmatpush.msk.msra.mxu3 %vm3092_vm8, %v5165_v6 }
 0x9fd   : > { %5215 = vmatpush.msk.msrb.mxu1 %vm3092_vm8, %v5211_v13 }
 0xa02   : > { %v2975_v58 = vpop.xlane.xlu1 %2974 }
 0xa03   : > { %v2987_v53 = vadd.f32 %v2985_v20, %v2975_v58  ;;  %v5163_v20 = vld [vmem:[%s8911_s9 + $0xc8] sm:$0xff]  ;;  %v5207_v58 = vld [vmem:[%s8911_s9 + $0x198] sm:$0xff] }
 0xa04   : > { %3132 = vmatpush.msra.mxu3 %v5163_v20 }
 0xa05   : > { %v2989_v14 = vadd.f32 %v2987_v53, %v2981_v33 }
 0xa07   : > { %v2991_v63 = vmul.f32 0.0051020407, %v2989_v14 }
 0xa09   : > { %v2993_v21 = vadd.f32 1e-05, %v2991_v63 }
 0xa0b   : > { %5506 = vrsqrt.f32 %v2993_v21  ;;  %vm3001_vm6 = vweird.f32 %v2993_v21 }
 0xa11   : > { %v5507_v40 = vpop.eup %5506 }
 0xa12   : > { %v2996_v19 = vmul.f32 %v5507_v40, %v2993_v21  ;;  %vm3002_vm5 = vweird.f32 %v5507_v40  ;;  %v5159_v21 = vld [vmem:[%s8911_s9 + $0xa8] sm:$0xff] }
 0xa13   : > { %vm3003_vm7 = vmor %vm3001_vm6, %vm3002_vm5  ;;  %vm3420_vm5 = vcmask 523264   ;;  %vm3384_vm6 = vcmask 916480  }
 0xa14   : > { %v2997_v25 = vmul.f32 %v5507_v40, %v2996_v19  ;;  %v2972_v18 = vpop.xlane.xlu1 %2971  ;;  %v2966_v1 = vpop.xlane.xlu2 %2965  ;;  %v5157_v19 = vld [vmem:[%s8911_s9 + $0x98] sm:$0xff] }
 0xa15   : > { %v2986_v51 = vadd.f32 %v2972_v18, %v2966_v1  ;;  %v5155_v18 = vld [vmem:[%s8911_s9 + $0x88] sm:$0xff]  ;;  %v3059_v1 = vld [vmem:[%s8911_s9 + $0x10] sm:$0xff] }
 0xa16   : > { %v2998_v3 = vmul.f32 0.5, %v2997_v25  ;;  %v5203_v25 = vld [vmem:[%s8911_s9 + $0x178] sm:$0xff] }
 0xa18   : > { %v2999_v37 = vsub.f32 1.5, %v2998_v3  ;;  %v5201_v3 = vld [vmem:[%s8911_s9 + $0x168] sm:$0xff] }
 0xa1a   : > { %v3000_v30 = vmul.f32 %v5507_v40, %v2999_v37  ;;  %v5153_v37 = vld [vmem:[%s8911_s9 + $0x78] sm:$0xff] }
 0xa1c   : > { %v2978_v38 = vpop.xlane.xlu1 %2977  ;;  %v3004_v27 = vsel %vm3003_vm7, %v5507_v40, %v3000_v30  ;;  %v5205_v40 = vld [vmem:[%s8911_s9 + $0x188] sm:$0xff]  ;;  %v5199_v30 = vld [vmem:[%s8911_s9 + $0x158] sm:$0xff]  ;;  %vm3369_vm7 = vcmask 1039360  }
 0xa1d   : > { %3017 = vperm.xlu1 %5315, %v3004_v27   ;;  %v2988_v28 = vadd.f32 %v2986_v51, %v2978_v38  ;;  %v3069_v38 = vld [vmem:[%s8911_s9 + $0x60] sm:$0x7f]  ;;  %v3067_v27 = vld [vmem:[%s8911_s9 + $0x50] sm:$0xff] }
 0xa24   : > { %v2984_v32 = vpop.xlane.xlu1 %2983 }
 0xa25   : > { %v2990_v59 = vadd.f32 %v2988_v28, %v2984_v32  ;;  %v3066_v32 = vld [vmem:[%s8911_s9 + $0x48] sm:$0xff] }
 0xa27   : > { %v2992_v45 = vmul.f32 0.0051020407, %v2990_v59 }
 0xa29   : > { %v2994_v54 = vadd.f32 1e-05, %v2992_v45  ;;  %v3062_v45 = vld [vmem:[%s8911_s9 + $0x28] sm:$0xff] }
 0xa2b   : > { %5508 = vrsqrt.f32 %v2994_v54  ;;  %vm3011_vm10 = vweird.f32 %v2994_v54 }
 0xa31   : > { %v5509_v46 = vpop.eup %5508 }
 0xa32   : > { %v3006_v49 = vmul.f32 %v5509_v46, %v2994_v54  ;;  %vm3012_vm9 = vweird.f32 %v5509_v46 }
 0xa33   : > { %vm3013_vm11 = vmor %vm3011_vm10, %vm3012_vm9 }
 0xa34   : > { %v3007_v48 = vmul.f32 %v5509_v46, %v3006_v49  ;;  %v3060_v49 = vld [vmem:[%s8911_s9 + $0x18] sm:$0xff] }
 0xa36   : > { %v3008_v8 = vmul.f32 0.5, %v3007_v48  ;;  %v3058_v48 = vld [vmem:[%s8911_s9 + $0x8] sm:$0xff] }
 0xa38   : > { %v3009_v16 = vsub.f32 1.5, %v3008_v8 }
 0xa3a   : > { %v3010_v23 = vmul.f32 %v5509_v46, %v3009_v16 }
 0xa3c   : > { %v3014_v17 = vsel %vm3013_vm11, %v5509_v46, %v3010_v23 }
 0xa3d   : > { %3022 = vperm.xlu0 %5316, %v3014_v17   ;;  %v5208_v17 = vld [vmem:[%s8911_s9 + $0x1a0] sm:$0xff] }
 0xa8f   : > { %v7326_v47 = vpop.permute.xlu1 %3017 }
 0xa90   : > { %v3027_v61 = vmul.f32 %v7326_v47, %v7222_v10  ;;  %v3029_v44 = vmul.f32 %v7326_v47, %v7232_v12  ;;  %v5209_v10 = vld [vmem:[%s8911_s9 + $0x1a8] sm:$0xff]  ;;  %v5161_v12 = vld [vmem:[%s8911_s9 + $0xb8] sm:$0xff]  ;;  %v3031_v51 = vmul.f32 %v7326_v47, %v7220_v41  ;;  %v3025_v54 = vmul.f32 %v7326_v47, %v7218_v4  ;;  %v5210_v4 = vld [vmem:[%s8911_s9 + $0x1b0] sm:$0x7f] }
 0xa91   : > { %3340 = vmatpush.msrb.mxu1 %v5209_v10  ;;  %3133 = vmatpush.msra.mxu3 %v5161_v12  ;;  %v3068_v41 = vld [vmem:[%s8911_s9 + $0x58] sm:$0xff] }
 0xa92   : > { %vm3035_vm0 = vcmp.ge.f32.partialorder %v3027_v61, 0.0  ;;  %vm3037_vm12 = vcmp.ge.f32.partialorder %v3029_v44, 0.0  ;;  %v3043_v53 = vmul.f32 0.2, %v3027_v61  ;;  %v3045_v33 = vmul.f32 0.2, %v3029_v44 }
 0xa93   : > { %3341 = vmatpush.msrb.mxu1 %v5207_v58  ;;  %3134 = vmatpush.msra.mxu3 %v5159_v21  ;;  %v3047_v62 = vmul.f32 0.2, %v3031_v51  ;;  %vm3039_vm15 = vcmp.ge.f32.partialorder %v3031_v51, 0.0  ;;  %v3041_v8 = vmul.f32 0.2, %v3025_v54  ;;  %vm3033_vm2 = vcmp.ge.f32.partialorder %v3025_v54, 0.0 }
 0xa94   : > { %v3051_v14 = vsel %vm3035_vm0, %v3027_v61, %v3043_v53  ;;  %v3053_v63 = vsel %vm3037_vm12, %v3029_v44, %v3045_v33 }
 0xa95   : > { %5167 = vmatmul.msk.f32.vlgmr.msrb.gmra.mxu3 %vm2894_vm3, %v3051_v14  ;;  %5193 = vmatmul.msk.f32.vlgmr.msra.gmra.mxu1 %vm2894_vm3, %v3053_v63  ;;  %v3055_v28 = vsel %vm3039_vm15, %v3031_v51, %v3047_v62  ;;  %v3049_v23 = vsel %vm3033_vm2, %v3025_v54, %v3041_v8  ;;  %v7486_v62 = vld [vmem:[#allocation2 + $0x330] sm:$0xff] }
 0xa96   : > { %5196 = vmatmul.msk.f32.vlgmr.msra.gmra.mxu2 %vm2894_vm3, %v3053_v63  ;;  %3342 = vmatpush.msrb.mxu1 %v5205_v40 }
 0xa97   : > { %3135 = vmatpush.msra.mxu3 %v5157_v19 }
 0xa98   : > { %3343 = vmatpush.msrb.mxu1 %v5203_v25 }
 0xa99   : > { %3136 = vmatpush.msra.mxu3 %v5155_v18 }
 0xa9a   : > { %3344 = vmatpush.msrb.mxu1 %v5201_v3 }
 0xa9b   : > { %3137 = vmatpush.msra.mxu3 %v5153_v37 }
 0xa9c   : > { %3345 = vmatpush.msrb.mxu1 %v5199_v30 }
 0xa9d   : > { %5172 = vmatpush.msk.msrb.mxu3 %vm3092_vm8, %v3069_v38 }
 0xa9f   : > { %3167 = vmatpush.msrb.mxu3 %v3067_v27 }
 0xaa1   : > { %3168 = vmatpush.msrb.mxu3 %v3065_v57 }
 0xaa3   : > { %3169 = vmatpush.msrb.mxu3 %v3063_v24 }
 0xaa5   : > { %3170 = vmatpush.msrb.mxu3 %v3061_v15 }
 0xaa7   : > { %3171 = vmatpush.msrb.mxu3 %v3059_v1 }
 0xaa9   : > { %3172 = vmatpush.msrb.mxu3 %v3057_v60  ;;  %v3408_v60 = vld [vmem:[%s8913_s11] sm:$0xff] }
 0xaaf   : > { %v3023_v7 = vpop.permute.xlu0 %3022 }
 0xab0   : > { %v3028_v43 = vmul.f32 %v3023_v7, %v7242_v34  ;;  %v3030_v35 = vmul.f32 %v3023_v7, %v7244_v5  ;;  %v3070_v34 = vld [vmem:[%s8911_s9 + $0x68] sm:$0x7f]  ;;  %v3032_v5 = vmul.f32 %v3023_v7, %v7254_v55  ;;  %v3064_v55 = vld [vmem:[%s8911_s9 + $0x38] sm:$0xff]  ;;  %v3026_v16 = vmul.f32 %v3023_v7, %v7239_v2  ;;  %v5204_v2 = vld [vmem:[%s8911_s9 + $0x180] sm:$0xff] }
 0xab1   : > { %v3409_v7 = vld [vmem:[%s8913_s11 + $0x8] sm:$0xf] }
 0xab2   : > { %vm3036_vm13 = vcmp.ge.f32.partialorder %v3028_v43, 0.0  ;;  %v3044_v11 = vmul.f32 0.2, %v3028_v43  ;;  %vm3038_vm14 = vcmp.ge.f32.partialorder %v3030_v35, 0.0  ;;  %v3046_v0 = vmul.f32 0.2, %v3030_v35 }
 0xab3   : > { %v3048_v59 = vmul.f32 0.2, %v3032_v5  ;;  %vm3040_vm1 = vcmp.ge.f32.partialorder %v3032_v5, 0.0  ;;  %v3042_v29 = vmul.f32 0.2, %v3026_v16  ;;  %vm3034_vm4 = vcmp.ge.f32.partialorder %v3026_v16, 0.0 }
 0xab4   : > { %v3052_v9 = vsel %vm3036_vm13, %v3028_v43, %v3044_v11  ;;  %v3054_v56 = vsel %vm3038_vm14, %v3030_v35, %v3046_v0 }
 0xab5   : > { %5168 = vmatmul.msk.f32.gmra.mxu3 %vm2894_vm3, %v3052_v9  ;;  %5194 = vmatmul.msk.f32.gmra.mxu1 %vm2894_vm3, %v3054_v56  ;;  %v3056_v46 = vsel %vm3040_vm1, %v3032_v5, %v3048_v59  ;;  %v3050_v50 = vsel %vm3034_vm4, %v3026_v16, %v3042_v29  ;;  %vm4380_vm1 = vcmask 1041408  }
 0xab6   : > { %5197 = vmatmul.msk.f32.gmra.mxu2 %vm2894_vm3, %v3054_v56  ;;  %v7484_v56 = vld [vmem:[#allocation2 + $0x368] sm:$0xff] }
 0xab7   : > { %4258 = vmatpush.msrb.mxu0 %v7484_v56 }
 0xab9   : > { %4259 = vmatpush.msrb.mxu0 %v7486_v62 }
 0xabd   : > { %5170 = vmatmul.msk.f32.vlgmr.msra.gmra.mxu3 %vm2894_vm3, %v3051_v14  ;;  %5216 = vmatmul.msk.f32.vlgmr.msrb.gmra.mxu1 %vm2894_vm3, %v3055_v28 }
 0xabe   : > { %5175 = vmatpush.msk.msra.mxu3 %vm3092_vm8, %v3070_v34 }
 0xac0   : > { %3190 = vmatpush.msra.mxu3 %v3068_v41 }
 0xac2   : > { %3191 = vmatpush.msra.mxu3 %v3066_v32  ;;  %v7492_v32 = vld [vmem:[#allocation2 + $0x2c0] sm:$0xff] }
 0xac4   : > { %3192 = vmatpush.msra.mxu3 %v3064_v55 }
 0xac5   : > { %5171 = vmatmul.msk.f32.gmra.mxu3 %vm2894_vm3, %v3052_v9  ;;  %5217 = vmatmul.msk.f32.gmra.mxu1 %vm2894_vm3, %v3056_v46 }
 0xac6   : > { %3193 = vmatpush.msra.mxu3 %v3062_v45 }
 0xac8   : > { %3194 = vmatpush.msra.mxu3 %v3060_v49  ;;  %v3406_v49 = vld [vmem:[%s8912_s10] sm:$0xff] }
 0xaca   : > { %3195 = vmatpush.msra.mxu3 %v3058_v48 }
 0xacd   : > { %5173 = vmatmul.msk.f32.vlgmr.msrb.gmra.mxu3 %vm2894_vm3, %v3049_v23 }
 0xace   : > { %5212 = vmatpush.msk.msrb.mxu3 %vm3092_vm8, %v5210_v4  ;;  %vm3758_vm8 = vcmask 1045504  }
 0xad0   : > { %3317 = vmatpush.msrb.mxu3 %v5208_v17 }
 0xad2   : > { %3318 = vmatpush.msrb.mxu3 %v5206_v36 }
 0xad4   : > { %3319 = vmatpush.msrb.mxu3 %v5204_v2 }
 0xad5   : > { %5174 = vmatmul.msk.f32.gmra.mxu3 %vm2894_vm3, %v3050_v50 }
 0xad6   : > { %3320 = vmatpush.msrb.mxu3 %v5202_v22  ;;  %v3407_v22 = vld [vmem:[%s8912_s10 + $0x8] sm:$0xf] }
 0xad8   : > { %3321 = vmatpush.msrb.mxu3 %v5200_v39  ;;  %v7514_v39 = vld [vmem:[#allocation2 + $0x288] sm:$0xff] }
 0xada   : > { %3322 = vmatpush.msrb.mxu3 %v5198_v26  ;;  %v7517_v26 = vld [vmem:[#allocation2 + $0x250] sm:$0xff] }
 0xadd   : > { %5176 = vmatmul.msk.f32.vlgmr.msra.gmra.mxu3 %vm2894_vm3, %v3049_v23 }
 0xae5   : > { %5177 = vmatmul.msk.f32.gmra.mxu3 %vm2894_vm3, %v3050_v50 }
 0xaed   : > { %5213 = vmatmul.msk.f32.vlgmr.msrb.gmra.mxu3 %vm2894_vm3, %v3055_v28  ;;  %v7489_v28 = vld [vmem:[#allocation2 + $0x2f8] sm:$0xff] }
 0xaee   : > { %4260 = vmatpush.msrb.mxu0 %v7489_v28 }
 0xaf0   : > { %4261 = vmatpush.msrb.mxu0 %v7492_v32 }
 0xaf2   : > { %4262 = vmatpush.msrb.mxu0 %v7514_v39 }
 0xaf4   : > { %4263 = vmatpush.msrb.mxu0 %v7517_v26 }
 0xaf5   : > { %5214 = vmatmul.msk.f32.gmra.mxu3 %vm2894_vm3, %v3056_v46  ;;  %vm3399_vm3 = vcmask 908288  }
 0xb12   : > { %v3247_v61 = vpop.f32.mrf.mxu1 }
 0xb18   : > { %v3116_v31 = vpop.f32.mrf.mxu3 }
 0xb19   : > { %v3270_v10 = vpop.f32.mrf.mxu2 }
 0xb32   : > { %v3250_v6 = vpop.f32.mrf.mxu1 }
 0xb38   : > { %v3119_v52 = vpop.f32.mrf.mxu3 }
 0xb39   : > { %v3273_v63 = vpop.f32.mrf.mxu2 }
 0xb3a   : > { %v3347_v12 = vpop.f32.mrf.mxu1 }
 0xb40   : > { %v3139_v42 = vpop.f32.mrf.mxu3 }
 0xb42   : > { %v3350_v40 = vpop.f32.mrf.mxu1 }
 0xb48   : > { %v3142_v47 = vpop.f32.mrf.mxu3 }
 0xb50   : > { %v3174_v44 = vpop.f32.mrf.mxu3 }
 0xb51   : > { %v3175_v37 = vadd.f32 %v3174_v44, %v3116_v31  ;;  %v7520_v31 = vld [vmem:[#allocation2 + $0x218] sm:$0xff]  ;;  %v7535_v44 = vld [vmem:[#allocation2 + $0x100] sm:$0xff] }
 0xb52   : > { %4264 = vmatpush.msrb.mxu0 %v7520_v31 }
 0xb53   : > { %v3276_v38 = vadd.f32 %v3247_v61, %v3175_v37  ;;  %v7532_v61 = vld [vmem:[#allocation2 + $0x138] sm:$0xff] }
 0xb58   : > { %v3177_v13 = vpop.f32.mrf.mxu3 }
 0xb59   : > { %v3178_v30 = vadd.f32 %v3177_v13, %v3119_v52  ;;  %v7523_v52 = vld [vmem:[#allocation2 + $0x1e0] sm:$0xff]  ;;  %v7541_v13 = vld [vmem:[#allocation2 + $0x90] sm:$0xff] }
 0xb5a   : > { %4265 = vmatpush.msrb.mxu0 %v7523_v52 }
 0xb5b   : > { %v3278_v27 = vadd.f32 %v3250_v6, %v3178_v30  ;;  %v7538_v6 = vld [vmem:[#allocation2 + $0xc8] sm:$0xff] }
 0xb5c   : > { %v3702_v30 = vld [vmem:[#allocation2 + $0x4c8] sm:$0xff] }
 0xb60   : > { %v3197_v20 = vpop.f32.mrf.mxu3 }
 0xb61   : > { %v3198_v58 = vadd.f32 %v3197_v20, %v3139_v42  ;;  %v7526_v42 = vld [vmem:[#allocation2 + $0x1a8] sm:$0xff]  ;;  %v7544_v20 = vld [vmem:[#allocation2 + $0x58] sm:$0xff] }
 0xb62   : > { %4266 = vmatpush.msrb.mxu0 %v7526_v42 }
 0xb63   : > { %v3277_v33 = vadd.f32 %v3270_v10, %v3198_v58  ;;  %v7547_v10 = vld [vmem:[#allocation2 + $0x20] sm:$0xff]  ;;  %v3744_v58 = vld [vmem:[#allocation2 + $0x618] sm:$0x3f] }
 0xb65   : > { %v3354_v19 = vadd.f32 %v3347_v12, %v3277_v33  ;;  %v3737_v33 = vld [vmem:[#allocation2 + $0x5e0] sm:$0xff] }
 0xb68   : > { %v3200_v53 = vpop.f32.mrf.mxu3 }
 0xb69   : > { %v3201_v14 = vadd.f32 %v3200_v53, %v3142_v47  ;;  %v7529_v47 = vld [vmem:[#allocation2 + $0x170] sm:$0xff] }
 0xb6a   : > { %4267 = vmatpush.msrb.mxu0 %v7529_v47 }
 0xb6b   : > { %v3279_v21 = vadd.f32 %v3273_v63, %v3201_v14  ;;  %v3730_v63 = vld [vmem:[#allocation2 + $0x5a8] sm:$0xff] }
 0xb6c   : > { %4268 = vmatpush.msrb.mxu0 %v7532_v61 }
 0xb6d   : > { %v3356_v25 = vadd.f32 %v3350_v40, %v3279_v21  ;;  %v3723_v40 = vld [vmem:[#allocation2 + $0x570] sm:$0xff] }
 0xb6e   : > { %4269 = vmatpush.msrb.mxu0 %v7535_v44 }
 0xb6f   : > { %v5473_v18 = vpack.i.bf16 %v3354_v19, %v3356_v25 }
 0xb70   : > { %v3324_v3 = vpop.f32.mrf.mxu3  ;;  %4270 = vmatpush.msrb.mxu0 %v7538_v6 }
 0xb71   : > { %5474 = vrot.lane.b32.xlu1 %v5473_v18, %s5746_s28  ;;  %5469 = vrot.lane.b32.xlu2 %v5473_v18, %s5747_s30  ;;  %v7468_v24 = vadd.f32 %v3324_v3, %v3276_v38  ;;  %v3709_v3 = vld [vmem:[#allocation2 + $0x500] sm:$0xff] }
 0xb72   : > { %4271 = vmatpush.msrb.mxu0 %v7541_v13 }
 0xb74   : > { %4272 = vmatpush.msrb.mxu0 %v7544_v20 }
 0xb76   : > { %4273 = vmatpush.msrb.mxu0 %v7547_v10 }
 0xb78   : > { %v3327_v57 = vpop.f32.mrf.mxu3  ;;  %5252 = vmatpush.msk.msra.mxu0 %vm3758_vm8, %v3744_v58 }
 0xb79   : > { %v7470_v15 = vadd.f32 %v3327_v57, %v3278_v27  ;;  %5479 = vrot.lane.b32.xlu1 %v5473_v18, %s5740_s24 }
 0xb7a   : > { %4363 = vmatpush.msra.mxu0 %v3737_v33 }
 0xb7b   : > { %v5488_v1 = vpack.i.bf16 %v7468_v24, %v7470_v15 }
 0xb7c   : > { %4364 = vmatpush.msra.mxu0 %v3730_v63  ;;  %v7585_v63 = vld [vmem:[#allocation2 + $0x350] sm:$0xff] }
 0xb7d   : > { %5489 = vrot.lane.b32.xlu2 %v5488_v1, %s5746_s28  ;;  %5484 = vrot.lane.b32.xlu0 %v5488_v1, %s5747_s30 }
 0xb7e   : > { %4365 = vmatpush.msra.mxu0 %v3723_v40 }
 0xb81   : > { %3412 = vperm.xlu1 %5315, %v3408_v60  }
 0xb85   : > { %5494 = vrot.lane.b32.xlu0 %v5488_v1, %s5740_s24  ;;  %v3688_v1 = vld [vmem:[#allocation2 + $0x458] sm:$0xff] }
 0xb89   : > { %3417 = vperm.xlu1 %5315, %v3409_v7   ;;  %v3681_v7 = vld [vmem:[#allocation2 + $0x420] sm:$0xff] }
 0xbcb   : > { %v5470_v43 = vpop.permute.xlu2 %5469 }
 0xbcc   : > { %v5471_v35 = vunpack.i.l.bf16 %v5470_v43  ;;  %v5472_v11 = vunpack.i.h.bf16 %v5470_v43  ;;  %v3674_v43 = vld [vmem:[#allocation2 + $0x3e8] sm:$0xff] }
 0xbce   : > { %3458 = vmatpush.msra.mxu3 %v5471_v35 }
 0xbd0   : > { %3459 = vmatpush.msra.mxu3 %v5472_v11 }
 0xbd7   : > { %v5490_v54 = vpop.permute.xlu2 %5489 }
 0xbd8   : > { %v5491_v48 = vunpack.i.l.bf16 %v5490_v54  ;;  %v5492_v4 = vunpack.i.h.bf16 %v5490_v54 }
 0xbe3   : > { %v5475_v0 = vpop.permute.xlu1 %5474 }
 0xbe4   : > { %v5476_v51 = vunpack.i.l.bf16 %v5475_v0  ;;  %v5477_v9 = vunpack.i.h.bf16 %v5475_v0 }
 0xbe6   : > { %3460 = vmatpush.msra.mxu3 %v5476_v51  ;;  %v3386_v16 = vsel %vm3384_vm6, %v5491_v48, %v5476_v51  ;;  %v3385_v29 = vsel %vm3384_vm6, %v5492_v4, %v5477_v9  ;;  %v7560_v4 = vld [vmem:[#allocation2 + $0x578] sm:$0xff] }
 0xbe8   : > { %3461 = vmatpush.msra.mxu3 %v5477_v9 }
 0xbeb   : > { %v5480_v34 = vpop.permute.xlu1 %5479 }
 0xbec   : > { %v5481_v5 = vunpack.i.l.bf16 %v5480_v34  ;;  %v5482_v41 = vunpack.i.h.bf16 %v5480_v34 }
 0xbee   : > { %3462 = vmatpush.msra.mxu3 %v5481_v5 }
 0xbef   : > { %v5485_v59 = vpop.permute.xlu0 %5484 }
 0xbf0   : > { %v5487_v55 = vunpack.i.h.bf16 %v5485_v59  ;;  %v5486_v45 = vunpack.i.l.bf16 %v5485_v59  ;;  %3463 = vmatpush.msra.mxu3 %v5482_v41 }
 0xbf2   : > { %3464 = vmatpush.msra.mxu3 %v3356_v25  ;;  %v3401_v46 = vsel %vm3399_vm3, %v5486_v45, %v5471_v35  ;;  %v3400_v8 = vsel %vm3399_vm3, %v5487_v55, %v5472_v11  ;;  %v3667_v11 = vld [vmem:[#allocation2 + $0x3b0] sm:$0xff]  ;;  %v7554_v55 = vld [vmem:[#allocation2 + $0x5e8] sm:$0x3f] }
 0xbf3   : > { %3435 = vmatpush.msrb.mxu2 %v3401_v46  ;;  %v3413_v12 = vpop.permute.xlu1 %3412  ;;  %v7556_v45 = vld [vmem:[#allocation2 + $0x5b0] sm:$0xff] }
 0xbf4   : > { %3465 = vmatpush.msra.mxu3 %v3354_v19  ;;  %v3716_v19 = vld [vmem:[#allocation2 + $0x538] sm:$0xff] }
 0xbf5   : > { %3436 = vmatpush.msrb.mxu2 %v3400_v8  ;;  %5220 = vmatmul.msk.f32.vlgmr.msra.gmra.mxu3 %vm3420_vm5, %v3406_v49 }
 0xbf6   : > { %4366 = vmatpush.msra.mxu0 %v3716_v19  ;;  %v7588_v19 = vld [vmem:[#allocation2 + $0x4d0] sm:$0xff]  ;;  %3820 = vmatpush.msrb.mxu3 %v7585_v63 }
 0xbf7   : > { %v5495_v23 = vpop.permute.xlu0 %5494  ;;  %3437 = vmatpush.msrb.mxu2 %v3386_v16 }
 0xbf8   : > { %v5497_v17 = vunpack.i.h.bf16 %v5495_v23  ;;  %v5496_v36 = vunpack.i.l.bf16 %v5495_v23  ;;  %4367 = vmatpush.msra.mxu0 %v3709_v3  ;;  %v7565_v23 = vld [vmem:[#allocation2 + $0x348] sm:$0xff] }
 0xbf9   : > { %3438 = vmatpush.msrb.mxu2 %v3385_v29  ;;  %3780 = vmatpush.msra.mxu1 %v7565_v23  ;;  %v7570_v29 = vld [vmem:[#allocation2 + $0x310] sm:$0xff] }
 0xbfa   : > { %v3371_v2 = vsel %vm3369_vm7, %v5496_v36, %v5481_v5  ;;  %v3370_v50 = vsel %vm3369_vm7, %v5497_v17, %v5482_v41  ;;  %4368 = vmatpush.msra.mxu0 %v3702_v30  ;;  %v7567_v36 = vld [vmem:[#allocation2 + $0x540] sm:$0xff] }
 0xbfb   : > { %3439 = vmatpush.msrb.mxu2 %v3371_v2  ;;  %v3418_v25 = vpop.permute.xlu1 %3417  ;;  %3781 = vmatpush.msra.mxu1 %v7570_v29 }
 0xbfd   : > { %3440 = vmatpush.msrb.mxu2 %v3370_v50  ;;  %5221 = vmatmul.msk.f32.gmra.mxu3 %vm3420_vm5, %v3407_v22  ;;  %v7574_v50 = vld [vmem:[#allocation2 + $0x2d8] sm:$0xff] }
 0xbfe   : > { %3782 = vmatpush.msra.mxu1 %v7574_v50 }
 0xbff   : > { %3441 = vmatpush.msrb.mxu2 %v7470_v15 }
 0xc01   : > { %3442 = vmatpush.msrb.mxu2 %v7468_v24  ;;  %v3695_v24 = vld [vmem:[#allocation2 + $0x490] sm:$0xff] }
 0xc02   : > { %5218 = vmatmul.msk.f32.vlgmr.msrb.gmra.mxu2 %vm3420_vm5, %v3406_v49  ;;  %4369 = vmatpush.msra.mxu0 %v3695_v24  ;;  %v7605_v24 = vld [vmem:[#allocation2 + $0x2e0] sm:$0xff] }
 0xc03   : > { %5226 = vmatpush.msk.msra.mxu2 %vm3758_vm8, %v7554_v55 }
 0xc04   : > { %4370 = vmatpush.msra.mxu0 %v3688_v1  ;;  %v7608_v1 = vld [vmem:[#allocation2 + $0x230] sm:$0xff] }
 0xc05   : > { %3805 = vmatpush.msra.mxu2 %v7556_v45 }
 0xc06   : > { %4371 = vmatpush.msra.mxu0 %v3681_v7 }
 0xc07   : > { %3806 = vmatpush.msra.mxu2 %v7560_v4 }
 0xc08   : > { %4372 = vmatpush.msra.mxu0 %v3674_v43  ;;  %v7614_v43 = vld [vmem:[#allocation2 + $0x460] sm:$0xff] }
 0xc09   : > { %3807 = vmatpush.msra.mxu2 %v7567_v36 }
 0xc0a   : > { %5219 = vmatmul.msk.f32.gmra.mxu2 %vm3420_vm5, %v3407_v22  ;;  %4373 = vmatpush.msra.mxu0 %v3667_v11 }
 0xc78   : > { %v3467_v53 = vpop.f32.mrf.mxu3 }
 0xc79   : > { %v3468_v14 = vadd.f32 %v3467_v53, %v3413_v12  ;;  %v7577_v53 = vld [vmem:[#allocation2 + $0x508] sm:$0xff] }
 0xc7a   : > { %3808 = vmatpush.msra.mxu2 %v7577_v53 }
 0xc7b   : > { %v5223_v21 = vmul.f32 -1.442695, %v3468_v14  ;;  %v7583_v14 = vld [vmem:[#allocation2 + $0x2a0] sm:$0xff] }
 0xc7c   : > { %3783 = vmatpush.msra.mxu1 %v7583_v14  ;;  %3809 = vmatpush.msra.mxu2 %v7588_v19 }
 0xc7d   : > { %5510 = vpow2.f32 %v5223_v21 }
 0xc80   : > { %v3470_v18 = vpop.f32.mrf.mxu3 }
 0xc81   : > { %v3471_v37 = vadd.f32 %v3470_v18, %v3418_v25 }
 0xc83   : > { %v5511_v38 = vpop.eup %5510  ;;  %v5225_v27 = vmul.f32 -1.442695, %v3471_v37  ;;  %v7596_v37 = vld [vmem:[#allocation2 + $0x268] sm:$0xff] }
 0xc84   : > { %v3486_v57 = vadd.f32 1.0, %v5511_v38  ;;  %3784 = vmatpush.msra.mxu1 %v7596_v37 }
 0xc85   : > { %5512 = vpow2.f32 %v5225_v27  ;;  %v3444_v15 = vpop.f32.mrf.mxu2 }
 0xc86   : > { %5514 = vrcp.f32 %v3486_v57  ;;  %v3445_v60 = vadd.f32 %v3444_v15, %v3413_v12  ;;  %v3515_v54 = vand.u32 2147483648, %v3486_v57  ;;  %v3513_v8 = vand.u32 2147483647, %v3486_v57  ;;  %3785 = vmatpush.msra.mxu1 %v7608_v1 }
 0xc87   : > { %vm3509_vm10 = vweird.f32 %v3486_v57 }
 0xc88   : > { %v5222_v35 = vmul.f32 -1.442695, %v3445_v60  ;;  %v3516_v22 = vor.u32 1.1754944e-38, %v3515_v54  ;;  %vm3514_vm0 = vcmp.eq.f32.partialorder %v3513_v8, 8.507059e+37 }
 0xc8a   : > { %5516 = vpow2.f32 %v5222_v35  ;;  %v7617_v35 = vld [vmem:[#allocation2 + $0x2a8] sm:$0xff] }
 0xc8b   : > { %v5513_v0 = vpop.eup %5512 }
 0xc8c   : > { %v5515_v51 = vpop.eup %5514  ;;  %v7551_v9 = vadd.f32 1.0, %v5513_v0  ;;  %v7621_v0 = vld [vmem:[#allocation2 + $0x1f8] sm:$0xff] }
 0xc8d   : > { %v3505_v34 = vmul.f32 %v5515_v51, %v3486_v57  ;;  %v3447_v5 = vpop.f32.mrf.mxu2  ;;  %vm3510_vm9 = vweird.f32 %v5515_v51  ;;  %v7602_v57 = vld [vmem:[#allocation2 + $0x498] sm:$0xff]  ;;  %9087 = vst [vmem:[#allocation6_spill] sm:$0xff] %v7621_v0  ;;  %3786 = vmatpush.msra.mxu1 %v7621_v0  ;;  %v7937_v0 = vld [vmem:[#allocation2 + $0x130] sm:$0xff] }
 0xc8e   : > { %5518 = vrcp.f32 %v7551_v9  ;;  %v3448_v41 = vadd.f32 %v3447_v5, %v3418_v25  ;;  %vm3511_vm11 = vmor %vm3509_vm10, %vm3510_vm9  ;;  %v7592_v25 = vld [vmem:[#allocation2 + $0x318] sm:$0xff]  ;;  %v3545_v3 = vand.u32 2147483648, %v7551_v9  ;;  %v3543_v27 = vand.u32 2147483647, %v7551_v9  ;;  %3810 = vmatpush.msra.mxu2 %v7602_v57  ;;  %v7624_v5 = vld [vmem:[#allocation2 + $0x428] sm:$0xff]  ;;  %9150 = vst [vmem:[#allocation69_spill] sm:$0xff] %v7937_v0 }
 0xc8f   : > { %v3506_v59 = vsub.f32 1.0, %v3505_v34  ;;  %3821 = vmatpush.msrb.mxu3 %v7592_v25  ;;  %vm3539_vm13 = vweird.f32 %v7551_v9 }
 0xc90   : > { %v5224_v46 = vmul.f32 -1.442695, %v3448_v41  ;;  %v5517_v49 = vpop.eup %5516  ;;  %v3546_v11 = vor.u32 1.1754944e-38, %v3545_v3  ;;  %vm3544_vm15 = vcmp.eq.f32.partialorder %v3543_v27, 8.507059e+37  ;;  %3811 = vmatpush.msra.mxu2 %v7614_v43 }
 0xc91   : > { %v3507_v48 = vmul.f32 %v5515_v51, %v3506_v59  ;;  %v7562_v16 = vadd.f32 1.0, %v5517_v49  ;;  %3822 = vmatpush.msrb.mxu3 %v7605_v24 }
 0xc92   : > { %5520 = vpow2.f32 %v5224_v46  ;;  %v7632_v46 = vld [vmem:[#allocation2 + $0x1c0] sm:$0xff]  ;;  %3812 = vmatpush.msra.mxu2 %v7624_v5 }
 0xc93   : > { %v3508_v17 = vadd.f32 %v5515_v51, %v3507_v48  ;;  %5522 = vrcp.f32 %v7562_v16  ;;  %v3498_v41 = vand.u32 2147483647, %v7562_v16  ;;  %v3500_v59 = vand.u32 2147483648, %v7562_v16  ;;  %9089 = vst [vmem:[#allocation8_spill] sm:$0xff] %v7632_v46  ;;  %3823 = vmatpush.msrb.mxu3 %v7617_v35  ;;  %3787 = vmatpush.msra.mxu1 %v7632_v46  ;;  %v7900_v46 = vld [vmem:[#allocation2 + $0x390] sm:$0xff] }
 0xc94   : > { %v5519_v2 = vpop.eup %5518  ;;  %vm3494_vm4 = vweird.f32 %v7562_v16  ;;  %9144 = vst [vmem:[#allocation63_spill] sm:$0xff] %v7900_v46 }
 0xc95   : > { %v3512_v12 = vsel %vm3511_vm11, %v5515_v51, %v3508_v17  ;;  %v3535_v58 = vmul.f32 %v5519_v2, %v7551_v9  ;;  %vm3540_vm12 = vweird.f32 %v5519_v2  ;;  %v7627_v9 = vld [vmem:[#allocation2 + $0x270] sm:$0xff]  ;;  %vm3499_vm9 = vcmp.eq.f32.partialorder %v3498_v41, 8.507059e+37 }
 0xc96   : > { %v7580_v33 = vsel %vm3514_vm0, %v3516_v22, %v3512_v12  ;;  %vm3541_vm14 = vmor %vm3539_vm13, %vm3540_vm12  ;;  %9088 = vst [vmem:[#allocation7_spill] sm:$0xff] %v7627_v9  ;;  %v7636_v17 = vld [vmem:[#allocation2 + $0x3f0] sm:$0xff]  ;;  %3824 = vmatpush.msrb.mxu3 %v7627_v9  ;;  %v7643_v22 = vld [vmem:[#allocation2 + $0x238] sm:$0xff]  ;;  %vm3755_vm12 = vcmask 769024  }
 0xc97   : > { %9086 = vst [vmem:[#allocation5_spill] sm:$0xff] %v7580_v33  ;;  %v3536_v21 = vsub.f32 1.0, %v3535_v58  ;;  %v3748_v40 = vrot.slane %v7580_v33, 3  ;;  %v4384_v48 = vrot.slane %v7580_v33, 6  ;;  %3813 = vmatpush.msra.mxu2 %v7636_v17 }
 0xc98   : > { %v5521_v18 = vpop.eup %5520  ;;  %9090 = vst [vmem:[#allocation9_spill] sm:$0xff] %v7636_v17  ;;  %3825 = vmatpush.msrb.mxu3 %v7643_v22  ;;  %v7949_v17 = vld [vmem:[#allocation2 + $0x50] sm:$0xff] }
 0xc99   : > { %v7598_v30 = vadd.f32 1.0, %v5521_v18  ;;  %3751 = vrot.lane.b32.xlu2 %v3748_v40, %s5740_s24  ;;  %v3537_v38 = vmul.f32 %v5519_v2, %v3536_v21  ;;  %v5523_v15 = vpop.eup %5522  ;;  %9092 = vst [vmem:[#allocation11_spill] sm:$0xff] %v7643_v22  ;;  %v7647_v40 = vld [vmem:[#allocation2 + $0x3b8] sm:$0xff]  ;;  %v3501_v18 = vor.u32 1.1754944e-38, %v3500_v59 }
 0xc9a   : > { %v3490_v60 = vmul.f32 %v5523_v15, %v7562_v16  ;;  %vm3495_vm2 = vweird.f32 %v5523_v15  ;;  %9093 = vst [vmem:[#allocation12_spill] sm:$0xff] %v7647_v40  ;;  %v7656_v16 = vld [vmem:[#allocation2 + $0x380] sm:$0xff]  ;;  %3814 = vmatpush.msra.mxu2 %v7647_v40  ;;  %v7931_v40 = vld [vmem:[#allocation2 + $0x168] sm:$0xff] }
 0xc9b   : > { %5524 = vrcp.f32 %v7598_v30  ;;  %v3538_v7 = vadd.f32 %v5519_v2, %v3537_v38  ;;  %vm3496_vm5 = vmor %vm3494_vm4, %vm3495_vm2  ;;  %v7654_v38 = vld [vmem:[#allocation2 + $0x150] sm:$0xff]  ;;  %9095 = vst [vmem:[#allocation14_spill] sm:$0xff] %v7656_v16  ;;  %v3528_v59 = vand.u32 2147483647, %v7598_v30  ;;  %vm3524_vm11 = vweird.f32 %v7598_v30 }
 0xc9c   : > { %v3491_v51 = vsub.f32 1.0, %v3490_v60  ;;  %9094 = vst [vmem:[#allocation13_spill] sm:$0xff] %v7654_v38  ;;  %3815 = vmatpush.msra.mxu2 %v7656_v16  ;;  %v7886_v16 = vld [vmem:[#allocation2 + $0x2b8] sm:$0xff] }
 0xc9d   : > { %v3542_v34 = vsel %vm3541_vm14, %v5519_v2, %v3538_v7  ;;  %v7640_v2 = vld [vmem:[#allocation2 + $0x188] sm:$0xff]  ;;  %vm3529_vm13 = vcmp.eq.f32.partialorder %v3528_v59, 8.507059e+37  ;;  %v7722_v59 = vld [vmem:[#allocation2 + $0x430] sm:$0xff]  ;;  %9141 = vst [vmem:[#allocation60_spill] sm:$0xff] %v7886_v16  ;;  %vm4982_vm14 = vcmask 124928  }
 0xc9e   : > { %v3547_v54 = vsel %vm3544_vm15, %v3546_v11, %v3542_v34  ;;  %v3492_v49 = vmul.f32 %v5523_v15, %v3491_v51  ;;  %9091 = vst [vmem:[#allocation10_spill] sm:$0xff] %v7640_v2  ;;  %3788 = vmatpush.msra.mxu1 %v7640_v2  ;;  %v7663_v11 = vld [vmem:[#allocation2 + $0x5f0] sm:$0x3f]  ;;  %v7669_v34 = vld [vmem:[#allocation2 + $0x118] sm:$0xff]  ;;  %v7884_v2 = vld [vmem:[#allocation2 + $0x3c8] sm:$0xff] }
 0xc9f   : > { %v4385_v8 = vrot.slane %v3547_v54, 6  ;;  %9097 = vst [vmem:[#allocation16_spill] sm:$0xff] %v7669_v34  ;;  %5228 = vmatpush.msk.msrb.mxu2 %vm3758_vm8, %v7663_v11 }
 0xca0   : > { %v3493_v58 = vadd.f32 %v5523_v15, %v3492_v49  ;;  %3789 = vmatpush.msra.mxu1 %v7654_v38  ;;  %v7673_v49 = vld [vmem:[#allocation2 + $0x5b8] sm:$0xff]  ;;  %v7874_v38 = vld [vmem:[#allocation2 + $0x2f0] sm:$0xff]  ;;  %9140 = vst [vmem:[#allocation59_spill] sm:$0xff] %v7884_v2 }
 0xca1   : > { %v5525_v12 = vpop.eup %5524  ;;  %v4386_v21 = vsel %vm4380_vm1, %v4384_v48, %v4385_v8  ;;  %v7676_v48 = vld [vmem:[#allocation2 + $0x200] sm:$0xff]  ;;  %v4675_v8 = vrot.slane %v3547_v54, 1  ;;  %3845 = vmatpush.msrb.mxu2 %v7673_v49  ;;  %v7694_v54 = vld [vmem:[#allocation2 + $0x548] sm:$0xff]  ;;  %9138 = vst [vmem:[#allocation57_spill] sm:$0xff] %v7874_v38 }
 0xca2   : > { %v3520_v3 = vmul.f32 %v5525_v12, %v7598_v30  ;;  %4389 = vrot.lane.b32.xlu2 %v4386_v21, %s5746_s28  ;;  %v3497_v27 = vsel %vm3496_vm5, %v5523_v15, %v3493_v58  ;;  %v3530_v15 = vand.u32 2147483648, %v7598_v30  ;;  %vm3525_vm10 = vweird.f32 %v5525_v12  ;;  %9098 = vst [vmem:[#allocation17_spill] sm:$0xff] %v7676_v48  ;;  %v7682_v21 = vld [vmem:[#allocation2 + $0x580] sm:$0xff]  ;;  %3790 = vmatpush.msra.mxu1 %v7669_v34  ;;  %v7863_v34 = vld [vmem:[#allocation2 + $0x328] sm:$0xff] }
 0xca3   : > { %v7660_v60 = vsel %vm3499_vm9, %v3501_v18, %v3497_v27  ;;  %v7686_v18 = vld [vmem:[#allocation2 + $0xe0] sm:$0xff]  ;;  %vm3526_vm0 = vmor %vm3524_vm11, %vm3525_vm10  ;;  %3826 = vmatpush.msrb.mxu3 %v7676_v48  ;;  %3846 = vmatpush.msrb.mxu2 %v7682_v21  ;;  %9135 = vst [vmem:[#allocation54_spill] sm:$0xff] %v7863_v34 }
 0xca4   : > { %9096 = vst [vmem:[#allocation15_spill] sm:$0xff] %v7660_v60  ;;  %v3521_v7 = vsub.f32 1.0, %v3520_v3  ;;  %4274 = vmatmul.f32.vlgmr.msrb.gmra.mxu0 %v7660_v60  ;;  %v3747_v51 = vrot.slane %v7660_v60, 3  ;;  %v7691_v3 = vld [vmem:[#allocation2 + $0x1c8] sm:$0xff]  ;;  %3791 = vmatpush.msra.mxu1 %v7686_v18 }
 0xca5   : > { %4435 = vmatpush.msrb.mxu0 %v7585_v63  ;;  %9099 = vst [vmem:[#allocation18_spill] sm:$0xff] %v7686_v18  ;;  %v3531_v63 = vor.u32 1.1754944e-38, %v3530_v15  ;;  %v7700_v15 = vld [vmem:[#allocation2 + $0x510] sm:$0xff]  ;;  %3827 = vmatpush.msrb.mxu3 %v7691_v3 }
 0xca6   : > { %v3522_v41 = vmul.f32 %v5525_v12, %v3521_v7  ;;  %3749 = vrot.lane.b32.xlu0 %v3747_v51, %s5740_s24  ;;  %9100 = vst [vmem:[#allocation19_spill] sm:$0xff] %v7691_v3  ;;  %v4381_v7 = vrot.slane %v7660_v60, 6  ;;  %3847 = vmatpush.msrb.mxu2 %v7694_v54  ;;  %v7779_v60 = vld [vmem:[#allocation2 + $0x40] sm:$0xff]  ;;  %v7846_v18 = vld [vmem:[#allocation2 + $0x470] sm:$0xff]  ;;  %s5748_s24 = smov 1  }
 0xca7   : > { %4436 = vmatpush.msrb.mxu0 %v7592_v25  ;;  %9114 = vst [vmem:[#allocation33_spill] sm:$0xff] %v7779_v60 }
 0xca8   : > { %v3523_v58 = vadd.f32 %v5525_v12, %v3522_v41  ;;  %3848 = vmatpush.msrb.mxu2 %v7700_v15  ;;  %v7714_v41 = vld [vmem:[#allocation2 + $0x4a0] sm:$0xff]  ;;  %9132 = vst [vmem:[#allocation51_spill] sm:$0xff] %v7846_v18 }
 0xca9   : > { %4437 = vmatpush.msrb.mxu0 %v7605_v24  ;;  %9149 = vst [vmem:[#allocation68_spill] sm:$0xff] %v7931_v40 }
 0xcaa   : > { %4678 = vrot.lane.b32.xlu2 %v4675_v8, %s5747_s30  ;;  %v3527_v30 = vsel %vm3526_vm0, %v5525_v12, %v3523_v58  ;;  %v7709_v12 = vld [vmem:[#allocation2 + $0x4d8] sm:$0xff]  ;;  %v7729_v58 = vld [vmem:[#allocation2 + $0x3c0] sm:$0xff]  ;;  %9154 = vst [vmem:[#allocation73_spill] sm:$0xff] %v7949_v17 }
 0xcab   : > { %v3532_v25 = vsel %vm3529_vm13, %v3531_v63, %v3527_v30  ;;  %4438 = vmatpush.msrb.mxu0 %v7617_v35  ;;  %3849 = vmatpush.msrb.mxu2 %v7709_v12  ;;  %v7718_v35 = vld [vmem:[#allocation2 + $0x468] sm:$0xff]  ;;  %v7726_v8 = vld [vmem:[#allocation2 + $0x3f8] sm:$0xff] }
 0xcac   : > { %v4674_v27 = vrot.slane %v3532_v25, 1  ;;  %v4382_v51 = vrot.slane %v3532_v25, 6  ;;  %5253 = vmatmul.msk.f32.vlgmr.msra.gmra.mxu0 %vm3755_vm12, %v7580_v33  ;;  %v7733_v63 = vld [vmem:[#allocation2 + $0x388] sm:$0xff]  ;;  %v7739_v25 = vld [vmem:[#allocation2 + $0x190] sm:$0xff] }
 0xcad   : > { %4439 = vmatpush.msrb.mxu0 %v7627_v9  ;;  %3850 = vmatpush.msrb.mxu2 %v7714_v41  ;;  %v7735_v30 = vld [vmem:[#allocation2 + $0xa8] sm:$0xff]  ;;  %9102 = vst [vmem:[#allocation21_spill] sm:$0xff] %v7739_v25  ;;  %v7772_v9 = vld [vmem:[#allocation2 + $0x78] sm:$0xff] }
 0xcae   : > { %4676 = vrot.lane.b32.xlu1 %v4674_v27, %s5747_s30  ;;  %v4383_v24 = vsel %vm4380_vm1, %v4381_v7, %v4382_v51  ;;  %9101 = vst [vmem:[#allocation20_spill] sm:$0xff] %v7735_v30  ;;  %3792 = vmatpush.msra.mxu1 %v7735_v30  ;;  %v7742_v27 = vld [vmem:[#allocation2 + $0x70] sm:$0xff]  ;;  %v7744_v7 = vld [vmem:[#allocation2 + $0x158] sm:$0xff]  ;;  %v7807_v30 = vld [vmem:[#allocation2 + $0x588] sm:$0xff]  ;;  %s8878_s30 = scalar_lea.vmem %s8915_s13, %s5281_s26 }
 0xcaf   : > { %4387 = vrot.lane.b32.xlu0 %v4383_v24, %s5746_s28  ;;  %4440 = vmatpush.msrb.mxu0 %v7643_v22  ;;  %9103 = vst [vmem:[#allocation22_spill] sm:$0xff] %v7742_v27  ;;  %v7749_v51 = vld [vmem:[#allocation2 + $0x38] sm:$0xff]  ;;  %v7751_v24 = vld [vmem:[#allocation2 + $0x120] sm:$0xff]  ;;  %v7765_v22 = vld [vmem:[#allocation2 + $0xb0] sm:$0xff] }
 0xcb0   : > { %3851 = vmatpush.msrb.mxu2 %v7718_v35  ;;  %3828 = vmatpush.msrb.mxu3 %v7739_v25  ;;  %9104 = vst [vmem:[#allocation23_spill] sm:$0xff] %v7744_v7  ;;  %v7880_v33 = vld [vmem:[#allocation2 + $0x48] sm:$0xff] }
 0xcb1   : > { %4441 = vmatpush.msrb.mxu0 %v7676_v48  ;;  %3793 = vmatpush.msra.mxu1 %v7742_v27  ;;  %9105 = vst [vmem:[#allocation24_spill] sm:$0xff] %v7749_v51  ;;  %v7758_v48 = vld [vmem:[#allocation2 + $0xe8] sm:$0xff]  ;;  %v7801_v27 = vld [vmem:[#allocation2 + $0x5c0] sm:$0xff] }
 0xcb2   : > { %3852 = vmatpush.msrb.mxu2 %v7722_v59  ;;  %3829 = vmatpush.msrb.mxu3 %v7744_v7  ;;  %9106 = vst [vmem:[#allocation25_spill] sm:$0xff] %v7751_v24 }
 0xcb3   : > { %4442 = vmatpush.msrb.mxu0 %v7691_v3  ;;  %3794 = vmatpush.msra.mxu1 %v7749_v51  ;;  %v7756_v3 = vld [vmem:[#allocation2] sm:$0xff]  ;;  %9108 = vst [vmem:[#allocation27_spill] sm:$0xff] %v7758_v48  ;;  %v7793_v51 = vld [vmem:[#allocation2 + $0x5f8] sm:$0x3f] }
 0xcb4   : > { %3853 = vmatpush.msrb.mxu2 %v7726_v8  ;;  %3830 = vmatpush.msrb.mxu3 %v7751_v24  ;;  %9107 = vst [vmem:[#allocation26_spill] sm:$0xff] %v7756_v3 }
 0xcb5   : > { %4443 = vmatpush.msrb.mxu0 %v7739_v25  ;;  %3795 = vmatpush.msra.mxu1 %v7756_v3  ;;  %v7763_v25 = vld [vmem:[#allocation2 + $0x358] sm:$0xff]  ;;  %9110 = vst [vmem:[#allocation29_spill] sm:$0xff] %v7765_v22  ;;  %v7786_v3 = vld [vmem:[#allocation2 + $0x8] sm:$0xff] }
 0xcb6   : > { %3854 = vmatpush.msrb.mxu2 %v7729_v58  ;;  %3831 = vmatpush.msrb.mxu3 %v7758_v48  ;;  %9109 = vst [vmem:[#allocation28_spill] sm:$0xff] %v7763_v25 }
 0xcb7   : > { %4444 = vmatpush.msrb.mxu0 %v7744_v7  ;;  %3860 = vmatpush.msrb.mxu1 %v7763_v25  ;;  %v7770_v7 = vld [vmem:[#allocation2 + $0x320] sm:$0xff]  ;;  %9112 = vst [vmem:[#allocation31_spill] sm:$0xff] %v7772_v9  ;;  %v7878_v25 = vld [vmem:[#allocation2 + $0x4e8] sm:$0xff] }
 0xcb8   : > { %3855 = vmatpush.msrb.mxu2 %v7733_v63  ;;  %3832 = vmatpush.msrb.mxu3 %v7765_v22  ;;  %9111 = vst [vmem:[#allocation30_spill] sm:$0xff] %v7770_v7 }
 0xcb9   : > { %4445 = vmatpush.msrb.mxu0 %v7751_v24  ;;  %3861 = vmatpush.msrb.mxu1 %v7770_v7  ;;  %v7777_v24 = vld [vmem:[#allocation2 + $0x2e8] sm:$0xff]  ;;  %9116 = vst [vmem:[#allocation35_spill] sm:$0xff] %v7786_v3  ;;  %v7866_v7 = vld [vmem:[#allocation2 + $0x520] sm:$0xff] }
 0xcba   : > { %3833 = vmatpush.msrb.mxu3 %v7772_v9  ;;  %9113 = vst [vmem:[#allocation32_spill] sm:$0xff] %v7777_v24 }
 0xcbb   : > { %4446 = vmatpush.msrb.mxu0 %v7758_v48  ;;  %3862 = vmatpush.msrb.mxu1 %v7777_v24  ;;  %v7784_v48 = vld [vmem:[#allocation2 + $0x2b0] sm:$0xff]  ;;  %9118 = vst [vmem:[#allocation37_spill] sm:$0xff] %v7793_v51  ;;  %v7855_v24 = vld [vmem:[#allocation2 + $0x558] sm:$0xff] }
 0xcbc   : > { %3834 = vmatpush.msrb.mxu3 %v7779_v60  ;;  %9115 = vst [vmem:[#allocation34_spill] sm:$0xff] %v7784_v48 }
 0xcbd   : > { %4447 = vmatpush.msrb.mxu0 %v7765_v22  ;;  %3863 = vmatpush.msrb.mxu1 %v7784_v48  ;;  %v7791_v22 = vld [vmem:[#allocation2 + $0x278] sm:$0xff]  ;;  %9120 = vst [vmem:[#allocation39_spill] sm:$0xff] %v7801_v27  ;;  %v7844_v48 = vld [vmem:[#allocation2 + $0xf0] sm:$0xff] }
 0xcbe   : > { %3835 = vmatpush.msrb.mxu3 %v7786_v3  ;;  %9117 = vst [vmem:[#allocation36_spill] sm:$0xff] %v7791_v22 }
 0xcbf   : > { %4448 = vmatpush.msrb.mxu0 %v7772_v9  ;;  %3864 = vmatpush.msrb.mxu1 %v7791_v22  ;;  %v7799_v9 = vld [vmem:[#allocation2 + $0x240] sm:$0xff]  ;;  %9122 = vst [vmem:[#allocation41_spill] sm:$0xff] %v7807_v30  ;;  %v7813_v22 = vld [vmem:[#allocation2 + $0x550] sm:$0xff] }
 0xcc0   : > { %5230 = vmatpush.msk.msra.mxu3 %vm3758_vm8, %v7793_v51  ;;  %9119 = vst [vmem:[#allocation38_spill] sm:$0xff] %v7799_v9  ;;  %v7817_v51 = vld [vmem:[#allocation2 + $0x198] sm:$0xff] }
 0xcc1   : > { %4449 = vmatpush.msrb.mxu0 %v7779_v60  ;;  %3865 = vmatpush.msrb.mxu1 %v7799_v9  ;;  %v7805_v60 = vld [vmem:[#allocation2 + $0x208] sm:$0xff]  ;;  %9124 = vst [vmem:[#allocation43_spill] sm:$0xff] %v7813_v22  ;;  %v7819_v9 = vld [vmem:[#allocation2 + $0x518] sm:$0xff] }
 0xcc2   : > { %3885 = vmatpush.msra.mxu3 %v7801_v27  ;;  %9121 = vst [vmem:[#allocation40_spill] sm:$0xff] %v7805_v60  ;;  %v7823_v27 = vld [vmem:[#allocation2 + $0x600] sm:$0x3f] }
 0xcc3   : > { %4450 = vmatpush.msrb.mxu0 %v7786_v3  ;;  %3866 = vmatpush.msrb.mxu1 %v7805_v60  ;;  %v7811_v3 = vld [vmem:[#allocation2 + $0x1d0] sm:$0xff]  ;;  %9125 = vst [vmem:[#allocation44_spill] sm:$0xff] %v7817_v51  ;;  %v7825_v60 = vld [vmem:[#allocation2 + $0x160] sm:$0xff] }
 0xcc4   : > { %3886 = vmatpush.msra.mxu3 %v7807_v30  ;;  %9123 = vst [vmem:[#allocation42_spill] sm:$0xff] %v7811_v3  ;;  %v7827_v30 = vld [vmem:[#allocation2 + $0x4e0] sm:$0xff] }
 0xcc5   : > { %3867 = vmatpush.msrb.mxu1 %v7811_v3  ;;  %9126 = vst [vmem:[#allocation45_spill] sm:$0xff] %v7819_v9  ;;  %5260 = vmatpush.msk.msra.mxu0 %vm3758_vm8, %v7823_v27  ;;  %v7835_v3 = vld [vmem:[#allocation2 + $0x128] sm:$0xff] }
 0xcc6   : > { %3887 = vmatpush.msra.mxu3 %v7813_v22  ;;  %9127 = vst [vmem:[#allocation46_spill] sm:$0xff] %v7825_v60  ;;  %v7833_v22 = vld [vmem:[#allocation2 + $0x5c8] sm:$0xff] }
 0xcc7   : > { %3868 = vmatpush.msrb.mxu1 %v7817_v51  ;;  %9128 = vst [vmem:[#allocation47_spill] sm:$0xff] %v7827_v30  ;;  %v7837_v51 = vld [vmem:[#allocation2 + $0x4a8] sm:$0xff]  ;;  %4540 = vmatpush.msra.mxu0 %v7833_v22 }
 0xcc8   : > { %3888 = vmatpush.msra.mxu3 %v7819_v9  ;;  %9129 = vst [vmem:[#allocation48_spill] sm:$0xff] %v7835_v3  ;;  %v7842_v9 = vld [vmem:[#allocation2 + $0x590] sm:$0xff] }
 0xcc9   : > { %3869 = vmatpush.msrb.mxu1 %v7825_v60  ;;  %9130 = vst [vmem:[#allocation49_spill] sm:$0xff] %v7837_v51  ;;  %v7848_v60 = vld [vmem:[#allocation2 + $0x360] sm:$0xff]  ;;  %4541 = vmatpush.msra.mxu0 %v7842_v9 }
 0xcca   : > { %3889 = vmatpush.msra.mxu3 %v7827_v30  ;;  %9131 = vst [vmem:[#allocation50_spill] sm:$0xff] %v7844_v48 }
 0xccb   : > { %3870 = vmatpush.msrb.mxu1 %v7835_v3  ;;  %v7857_v3 = vld [vmem:[#allocation2 + $0xb8] sm:$0xff]  ;;  %4542 = vmatpush.msra.mxu0 %v7855_v24  ;;  %9139 = vst [vmem:[#allocation58_spill] sm:$0xff] %v7880_v33 }
 0xccc   : > { %3890 = vmatpush.msra.mxu3 %v7837_v51  ;;  %9133 = vst [vmem:[#allocation52_spill] sm:$0xff] %v7857_v3  ;;  %v7859_v51 = vld [vmem:[#allocation2 + $0x438] sm:$0xff] }
 0xccd   : > { %3871 = vmatpush.msrb.mxu1 %v7844_v48  ;;  %9134 = vst [vmem:[#allocation53_spill] sm:$0xff] %v7859_v51  ;;  %v7868_v48 = vld [vmem:[#allocation2 + $0x80] sm:$0xff]  ;;  %4543 = vmatpush.msra.mxu0 %v7866_v7 }
 0xcce   : > { %3891 = vmatpush.msra.mxu3 %v7846_v18  ;;  %9136 = vst [vmem:[#allocation55_spill] sm:$0xff] %v7868_v48  ;;  %v7872_v18 = vld [vmem:[#allocation2 + $0x400] sm:$0xff] }
 0xccf   : > { %3872 = vmatpush.msrb.mxu1 %v7857_v3  ;;  %9137 = vst [vmem:[#allocation56_spill] sm:$0xff] %v7872_v18  ;;  %4544 = vmatpush.msra.mxu0 %v7878_v25  ;;  %v7890_v3 = vld [vmem:[#allocation2 + $0x4b0] sm:$0xff] }
 0xcd0   : > { %3892 = vmatpush.msra.mxu3 %v7859_v51  ;;  %v7894_v51 = vld [vmem:[#allocation2 + $0x280] sm:$0xff] }
 0xcd1   : > { %3873 = vmatpush.msrb.mxu1 %v7868_v48  ;;  %9142 = vst [vmem:[#allocation61_spill] sm:$0xff] %v7894_v51  ;;  %4545 = vmatpush.msra.mxu0 %v7890_v3  ;;  %v7898_v48 = vld [vmem:[#allocation2 + $0x10] sm:$0xff] }
 0xcd2   : > { %3893 = vmatpush.msra.mxu3 %v7872_v18  ;;  %9143 = vst [vmem:[#allocation62_spill] sm:$0xff] %v7898_v48  ;;  %v7906_v18 = vld [vmem:[#allocation2 + $0x248] sm:$0xff] }
 0xcd3   : > { %3874 = vmatpush.msrb.mxu1 %v7880_v33  ;;  %9145 = vst [vmem:[#allocation64_spill] sm:$0xff] %v7906_v18  ;;  %v7909_v33 = vld [vmem:[#allocation2 + $0x478] sm:$0xff] }
 0xcd4   : > { %3894 = vmatpush.msra.mxu3 %v7884_v2  ;;  %4546 = vmatpush.msra.mxu0 %v7909_v33  ;;  %v7913_v2 = vld [vmem:[#allocation2 + $0x210] sm:$0xff] }
 0xcd5   : > { %3875 = vmatpush.msrb.mxu1 %v7898_v48  ;;  %9146 = vst [vmem:[#allocation65_spill] sm:$0xff] %v7913_v2  ;;  %v7919_v48 = vld [vmem:[#allocation2 + $0x1d8] sm:$0xff] }
 0xcd6   : > { %3895 = vmatpush.msra.mxu3 %v7900_v46  ;;  %9147 = vst [vmem:[#allocation66_spill] sm:$0xff] %v7919_v48  ;;  %v7925_v46 = vld [vmem:[#allocation2 + $0x1a0] sm:$0xff] }
 0xcd7   : > { %9148 = vst [vmem:[#allocation67_spill] sm:$0xff] %v7925_v46 }
 0xcf3   : > { %v7852_v30 = vpop.permute.xlu2 %3751 }
 0xcf4   : > { %5227 = vmatmul.msk.f32.vlgmr.msra.gmra.mxu2 %vm3755_vm12, %v7852_v30 }
 0xcf5   : > { %3900 = vmatpush.msra.mxu2 %v7848_v60 }
 0xcf7   : > { %3901 = vmatpush.msra.mxu2 %v7863_v34  ;;  %v7943_v34 = vld [vmem:[#allocation2 + $0xc0] sm:$0xff] }
 0xcf8   : > { %9152 = vst [vmem:[#allocation71_spill] sm:$0xff] %v7943_v34 }
 0xcf9   : > { %3902 = vmatpush.msra.mxu2 %v7874_v38  ;;  %v7915_v38 = vld [vmem:[#allocation2 + $0x440] sm:$0xff] }
 0xcfa   : > { %4547 = vmatpush.msra.mxu0 %v7915_v38 }
 0xcfb   : > { %3903 = vmatpush.msra.mxu2 %v7886_v16  ;;  %v7921_v16 = vld [vmem:[#allocation2 + $0x408] sm:$0xff] }
 0xcfc   : > { %5229 = vmatmul.msk.f32.vlgmr.msrb.gmra.mxu2 %vm3755_vm12, %v7852_v30  ;;  %4548 = vmatpush.msra.mxu0 %v7921_v16 }
 0xcfd   : > { %3904 = vmatpush.msra.mxu2 %v7894_v51  ;;  %v7927_v51 = vld [vmem:[#allocation2 + $0x3d0] sm:$0xff] }
 0xcfe   : > { %4549 = vmatpush.msra.mxu0 %v7927_v51 }
 0xcff   : > { %3905 = vmatpush.msra.mxu2 %v7906_v18  ;;  %v7933_v18 = vld [vmem:[#allocation2 + $0x398] sm:$0xff] }
 0xd00   : > { %4550 = vmatpush.msra.mxu0 %v7933_v18 }
 0xd01   : > { %3906 = vmatpush.msra.mxu2 %v7913_v2  ;;  %v7940_v2 = vld [vmem:[#allocation2 + $0xf8] sm:$0xff] }
 0xd02   : > { %9151 = vst [vmem:[#allocation70_spill] sm:$0xff] %v7940_v2 }
 0xd03   : > { %3907 = vmatpush.msra.mxu2 %v7919_v48  ;;  %v7946_v48 = vld [vmem:[#allocation2 + $0x88] sm:$0xff] }
 0xd04   : > { %9153 = vst [vmem:[#allocation72_spill] sm:$0xff] %v7946_v48 }
 0xd05   : > { %3908 = vmatpush.msra.mxu2 %v7925_v46  ;;  %v7952_v46 = vld [vmem:[#allocation2 + $0x18] sm:$0xff] }
 0xd06   : > { %9155 = vst [vmem:[#allocation74_spill] sm:$0xff] %v7952_v46 }
 0xd07   : > { %3909 = vmatpush.msra.mxu2 %v7931_v40  ;;  %v7955_v40 = vld [vmem:[#allocation2 + $0x608] sm:$0x3f] }
 0xd09   : > { %3910 = vmatpush.msra.mxu2 %v7937_v0  ;;  %v7958_v0 = vld [vmem:[#allocation2 + $0x5d0] sm:$0xff] }
 0xd0a   : > { %9156 = vst [vmem:[#allocation75_spill] sm:$0xff] %v7958_v0 }
 0xd0b   : > { %3911 = vmatpush.msra.mxu2 %v7940_v2  ;;  %v7962_v2 = vld [vmem:[#allocation2 + $0x598] sm:$0xff] }
 0xd0c   : > { %9157 = vst [vmem:[#allocation76_spill] sm:$0xff] %v7962_v2 }
 0xd0d   : > { %3912 = vmatpush.msra.mxu2 %v7943_v34  ;;  %v7965_v34 = vld [vmem:[#allocation2 + $0x560] sm:$0xff] }
 0xd0e   : > { %9158 = vst [vmem:[#allocation77_spill] sm:$0xff] %v7965_v34 }
 0xd0f   : > { %3913 = vmatpush.msra.mxu2 %v7946_v48 }
 0xd11   : > { %3914 = vmatpush.msra.mxu2 %v7949_v17 }
 0xd13   : > { %3915 = vmatpush.msra.mxu2 %v7952_v46  ;;  %v7973_v46 = vld [vmem:[#allocation2 + $0x528] sm:$0xff] }
 0xd15   : > { %5234 = vmatpush.msk.msrb.mxu2 %vm3758_vm8, %v7955_v40 }
 0xd17   : > { %3965 = vmatpush.msrb.mxu2 %v7958_v0  ;;  %v7980_v0 = vld [vmem:[#allocation2 + $0x4f0] sm:$0xff] }
 0xd18   : > { %v3750_v48 = vpop.permute.xlu0 %3749  ;;  %9159 = vst [vmem:[#allocation78_spill] sm:$0xff] %v7980_v0 }
 0xd19   : > { %3966 = vmatpush.msrb.mxu2 %v7962_v2  ;;  %v7970_v17 = vsel %vm3369_vm7, %v3750_v48, %v7852_v30  ;;  %v7985_v48 = vld [vmem:[#allocation2 + $0x4b8] sm:$0xff]  ;;  %vm4942_vm7 = vcmask 236544  }
 0xd1a   : > { %3796 = vmatmul.f32.vlgmr.msra.gmra.mxu1 %v7970_v17  ;;  %3836 = vmatmul.f32.vlgmr.msrb.gmra.mxu3 %v7970_v17  ;;  %9160 = vst [vmem:[#allocation79_spill] sm:$0xff] %v7985_v48 }
 0xd1b   : > { %3967 = vmatpush.msrb.mxu2 %v7965_v34  ;;  %5232 = vmatpush.msk.msrb.mxu3 %vm3758_vm8, %v7823_v27  ;;  %v7990_v34 = vld [vmem:[#allocation2 + $0x480] sm:$0xff] }
 0xd1c   : > { %3916 = vmatmul.f32.vlgmr.msra.gmra.mxu2 %v7970_v17  ;;  %3940 = vmatpush.msra.mxu1 %v7484_v56  ;;  %9161 = vst [vmem:[#allocation80_spill] sm:$0xff] %v7990_v34  ;;  %v7994_v56 = vpop.permute.xlu2 %4389 }
 0xd1d   : > { %3968 = vmatpush.msrb.mxu2 %v7973_v46  ;;  %3925 = vmatpush.msrb.mxu3 %v7833_v22  ;;  %9162 = vst [vmem:[#allocation81_spill] sm:$0xff] %v7994_v56 }
 0xd1e   : > { %3941 = vmatpush.msra.mxu1 %v7486_v62 }
 0xd1f   : > { %3969 = vmatpush.msrb.mxu2 %v7980_v0  ;;  %3926 = vmatpush.msrb.mxu3 %v7842_v9  ;;  %v8003_v0 = vld [vmem:[#allocation2 + $0x448] sm:$0xff] }
 0xd20   : > { %3942 = vmatpush.msra.mxu1 %v7489_v28  ;;  %9164 = vst [vmem:[#allocation83_spill] sm:$0xff] %v8003_v0  ;;  %v8008_v28 = vld [vmem:[#allocation2 + $0x370] sm:$0xff] }
 0xd21   : > { %3970 = vmatpush.msrb.mxu2 %v7985_v48  ;;  %v4388_v2 = vpop.permute.xlu0 %4387  ;;  %3927 = vmatpush.msrb.mxu3 %v7855_v24  ;;  %v8024_v48 = vld [vmem:[#allocation2 + $0x300] sm:$0xff] }
 0xd22   : > { %3943 = vmatpush.msra.mxu1 %v7492_v32  ;;  %v8001_v62 = vsel %vm3384_vm6, %v4388_v2, %v7994_v56  ;;  %5231 = vmatmul.msk.f32.vlgmr.msra.gmra.mxu3 %vm3755_vm12, %v7852_v30  ;;  %v8012_v32 = vld [vmem:[#allocation2 + $0x410] sm:$0xff]  ;;  %v8016_v2 = vld [vmem:[#allocation2 + $0x338] sm:$0xff]  ;;  %9168 = vst [vmem:[#allocation87_spill] sm:$0xff] %v8024_v48  ;;  %vm4653_vm6 = vcmask 228352  }
 0xd23   : > { %3971 = vmatpush.msrb.mxu2 %v7990_v34  ;;  %9163 = vst [vmem:[#allocation82_spill] sm:$0xff] %v8001_v62  ;;  %3876 = vmatmul.f32.vlgmr.msrb.gmra.mxu1 %v7970_v17  ;;  %v8020_v34 = vld [vmem:[#allocation2 + $0x3d8] sm:$0xff] }
 0xd24   : > { %3928 = vmatpush.msrb.mxu3 %v7866_v7  ;;  %3944 = vmatpush.msra.mxu1 %v7514_v39  ;;  %9165 = vst [vmem:[#allocation84_spill] sm:$0xff] %v8012_v32  ;;  %v8028_v39 = vld [vmem:[#allocation2 + $0x3a0] sm:$0xff] }
 0xd25   : > { %3972 = vmatpush.msrb.mxu2 %v8003_v0  ;;  %4451 = vmatmul.f32.vlgmr.msrb.gmra.mxu0 %v8001_v62  ;;  %9166 = vst [vmem:[#allocation85_spill] sm:$0xff] %v8016_v2  ;;  %v8032_v0 = vld [vmem:[#allocation2 + $0x2c8] sm:$0xff] }
 0xd26   : > { %4595 = vmatpush.msrb.mxu0 %v8008_v28  ;;  %3929 = vmatpush.msrb.mxu3 %v7878_v25  ;;  %9167 = vst [vmem:[#allocation86_spill] sm:$0xff] %v8020_v34 }
 0xd27   : > { %3945 = vmatpush.msra.mxu1 %v7517_v26  ;;  %3973 = vmatpush.msrb.mxu2 %v8012_v32  ;;  %9169 = vst [vmem:[#allocation88_spill] sm:$0xff] %v8028_v39  ;;  %v8038_v26 = vld [vmem:[#allocation2 + $0x378] sm:$0xff]  ;;  %v8042_v32 = vld [vmem:[#allocation2 + $0x290] sm:$0xff] }
 0xd28   : > { %4596 = vmatpush.msrb.mxu0 %v8016_v2  ;;  %3930 = vmatpush.msrb.mxu3 %v7890_v3  ;;  %9170 = vst [vmem:[#allocation89_spill] sm:$0xff] %v8032_v0 }
 0xd29   : > { %3946 = vmatpush.msra.mxu1 %v7520_v31  ;;  %3974 = vmatpush.msrb.mxu2 %v8020_v34  ;;  %9171 = vst [vmem:[#allocation90_spill] sm:$0xff] %v8038_v26  ;;  %v8047_v31 = vld [vmem:[#allocation2 + $0x340] sm:$0xff] }
 0xd2a   : > { %4597 = vmatpush.msrb.mxu0 %v8024_v48  ;;  %3931 = vmatpush.msrb.mxu3 %v7909_v33  ;;  %9172 = vst [vmem:[#allocation91_spill] sm:$0xff] %v8042_v32  ;;  %v8120_v34 = vld [vmem:[#allocation2 + $0x180] sm:$0xff] }
 0xd2b   : > { %3947 = vmatpush.msra.mxu1 %v7523_v52  ;;  %3975 = vmatpush.msrb.mxu2 %v8028_v39  ;;  %9173 = vst [vmem:[#allocation92_spill] sm:$0xff] %v8047_v31  ;;  %v8052_v52 = vld [vmem:[#allocation2 + $0x258] sm:$0xff]  ;;  %v8056_v39 = vld [vmem:[#allocation2 + $0x308] sm:$0xff] }
 0xd2c   : > { %4598 = vmatpush.msrb.mxu0 %v8032_v0  ;;  %3932 = vmatpush.msrb.mxu3 %v7915_v38  ;;  %9174 = vst [vmem:[#allocation93_spill] sm:$0xff] %v8052_v52 }
 0xd2d   : > { %3948 = vmatpush.msra.mxu1 %v7526_v42  ;;  %5235 = vmatmul.msk.f32.vlgmr.msrb.gmra.mxu2 %vm3755_vm12, %v7852_v30  ;;  %9175 = vst [vmem:[#allocation94_spill] sm:$0xff] %v8056_v39  ;;  %v8060_v42 = vld [vmem:[#allocation2 + $0x220] sm:$0xff] }
 0xd2e   : > { %4020 = vmatpush.msra.mxu2 %v8038_v26  ;;  %5261 = vmatmul.msk.f32.vlgmr.msra.gmra.mxu0 %vm3755_vm12, %v7994_v56  ;;  %9176 = vst [vmem:[#allocation95_spill] sm:$0xff] %v8060_v42  ;;  %v8064_v26 = vld [vmem:[#allocation2 + $0x2d0] sm:$0xff]  ;;  %v8068_v56 = vld [vmem:[#allocation2 + $0x1e8] sm:$0xff] }
 0xd2f   : > { %4599 = vmatpush.msrb.mxu0 %v8042_v32  ;;  %3933 = vmatpush.msrb.mxu3 %v7921_v16  ;;  %9177 = vst [vmem:[#allocation96_spill] sm:$0xff] %v8064_v26 }
 0xd30   : > { %3949 = vmatpush.msra.mxu1 %v7529_v47  ;;  %4021 = vmatpush.msra.mxu2 %v8047_v31  ;;  %9178 = vst [vmem:[#allocation97_spill] sm:$0xff] %v8068_v56  ;;  %v8074_v47 = vld [vmem:[#allocation2 + $0x298] sm:$0xff]  ;;  %v8076_v31 = vld [vmem:[#allocation2 + $0x1b0] sm:$0xff] }
 0xd31   : > { %4600 = vmatpush.msrb.mxu0 %v8052_v52  ;;  %3934 = vmatpush.msrb.mxu3 %v7927_v51  ;;  %9179 = vst [vmem:[#allocation98_spill] sm:$0xff] %v8074_v47 }
 0xd32   : > { %3950 = vmatpush.msra.mxu1 %v7532_v61  ;;  %4022 = vmatpush.msra.mxu2 %v8056_v39  ;;  %v8083_v61 = vld [vmem:[#allocation2 + $0x260] sm:$0xff]  ;;  %v8085_v39 = vld [vmem:[#allocation2 + $0x178] sm:$0xff]  ;;  %9187 = vst [vmem:[#allocation106_spill] sm:$0xff] %v8120_v34 }
 0xd33   : > { %4601 = vmatpush.msrb.mxu0 %v8060_v42  ;;  %3935 = vmatpush.msrb.mxu3 %v7933_v18  ;;  %9180 = vst [vmem:[#allocation99_spill] sm:$0xff] %v8083_v61 }
 0xd34   : > { %3951 = vmatpush.msra.mxu1 %v7535_v44  ;;  %4023 = vmatpush.msra.mxu2 %v8064_v26  ;;  %9181 = vst [vmem:[#allocation100_spill] sm:$0xff] %v8085_v39  ;;  %v8091_v44 = vld [vmem:[#allocation2 + $0x228] sm:$0xff]  ;;  %v8093_v26 = vld [vmem:[#allocation2 + $0x140] sm:$0xff] }
 0xd35   : > { %5233 = vmatmul.msk.f32.vlgmr.msrb.gmra.mxu3 %vm3755_vm12, %v7852_v30  ;;  %4602 = vmatpush.msrb.mxu0 %v8068_v56  ;;  %9182 = vst [vmem:[#allocation101_spill] sm:$0xff] %v8091_v44 }
 0xd36   : > { %3980 = vmatpush.msra.mxu3 %v8008_v28  ;;  %3952 = vmatpush.msra.mxu1 %v7538_v6  ;;  %v8099_v6 = vld [vmem:[#allocation2 + $0x1f0] sm:$0xff] }
 0xd37   : > { %4024 = vmatpush.msra.mxu2 %v8074_v47  ;;  %4603 = vmatpush.msrb.mxu0 %v8076_v31  ;;  %9183 = vst [vmem:[#allocation102_spill] sm:$0xff] %v8099_v6  ;;  %v8103_v47 = vld [vmem:[#allocation2 + $0x610] sm:$0x3f] }
 0xd38   : > { %3981 = vmatpush.msra.mxu3 %v8016_v2  ;;  %3953 = vmatpush.msra.mxu1 %v7541_v13  ;;  %v8107_v13 = vld [vmem:[#allocation2 + $0x108] sm:$0xff]  ;;  %v8150_v2 = vld [vmem:[#allocation2 + $0xd8] sm:$0xff] }
 0xd39   : > { %4025 = vmatpush.msra.mxu2 %v8083_v61  ;;  %4604 = vmatpush.msrb.mxu0 %v8085_v39  ;;  %9184 = vst [vmem:[#allocation103_spill] sm:$0xff] %v8107_v13  ;;  %v8109_v61 = vld [vmem:[#allocation2 + $0x1b8] sm:$0xff] }
 0xd3a   : > { %3982 = vmatpush.msra.mxu3 %v8024_v48  ;;  %3954 = vmatpush.msra.mxu1 %v7544_v20  ;;  %9185 = vst [vmem:[#allocation104_spill] sm:$0xff] %v8109_v61  ;;  %v8113_v20 = vld [vmem:[#allocation2 + $0x5d8] sm:$0xff]  ;;  %v8140_v48 = vld [vmem:[#allocation2 + $0x110] sm:$0xff] }
 0xd3b   : > { %4026 = vmatpush.msra.mxu2 %v8091_v44  ;;  %4605 = vmatpush.msrb.mxu0 %v8093_v26  ;;  %v8118_v44 = vld [vmem:[#allocation2 + $0xd0] sm:$0xff]  ;;  %9191 = vst [vmem:[#allocation110_spill] sm:$0xff] %v8140_v48 }
 0xd3c   : > { %3983 = vmatpush.msra.mxu3 %v8032_v0  ;;  %3955 = vmatpush.msra.mxu1 %v7547_v10  ;;  %9186 = vst [vmem:[#allocation105_spill] sm:$0xff] %v8118_v44  ;;  %v8124_v10 = vld [vmem:[#allocation2 + $0x5a0] sm:$0xff]  ;;  %v8134_v0 = vld [vmem:[#allocation2 + $0x568] sm:$0xff] }
 0xd3d   : > { %4027 = vmatpush.msra.mxu2 %v8099_v6  ;;  %3956 = vmatmul.f32.vlgmr.msra.gmra.mxu1 %v7970_v17  ;;  %v8128_v6 = vld [vmem:[#allocation2 + $0x98] sm:$0xff]  ;;  %9193 = vst [vmem:[#allocation112_spill] sm:$0xff] %v8150_v2 }
 0xd3e   : > { %3984 = vmatpush.msra.mxu3 %v8042_v32  ;;  %5236 = vmatpush.msk.msrb.mxu1 %vm3758_vm8, %v8103_v47  ;;  %9188 = vst [vmem:[#allocation107_spill] sm:$0xff] %v8128_v6  ;;  %v8130_v32 = vld [vmem:[#allocation2 + $0x148] sm:$0xff] }
 0xd3f   : > { %4606 = vmatpush.msrb.mxu0 %v8107_v13  ;;  %4028 = vmatpush.msra.mxu2 %v8109_v61  ;;  %9189 = vst [vmem:[#allocation108_spill] sm:$0xff] %v8130_v32  ;;  %v8138_v61 = vld [vmem:[#allocation2 + $0x60] sm:$0xff] }
 0xd40   : > { %3985 = vmatpush.msra.mxu3 %v8052_v52  ;;  %4005 = vmatpush.msrb.mxu1 %v8113_v20  ;;  %9190 = vst [vmem:[#allocation109_spill] sm:$0xff] %v8138_v61  ;;  %v8144_v52 = vld [vmem:[#allocation2 + $0x530] sm:$0xff] }
 0xd41   : > { %4607 = vmatpush.msrb.mxu0 %v8118_v44  ;;  %4029 = vmatpush.msra.mxu2 %v8120_v34  ;;  %v8148_v34 = vld [vmem:[#allocation2 + $0x28] sm:$0xff] }
 0xd42   : > { %3986 = vmatpush.msra.mxu3 %v8060_v42  ;;  %4006 = vmatpush.msrb.mxu1 %v8124_v10  ;;  %9192 = vst [vmem:[#allocation111_spill] sm:$0xff] %v8148_v34  ;;  %v8156_v42 = vld [vmem:[#allocation2 + $0x4f8] sm:$0xff] }
 0xd43   : > { %4608 = vmatpush.msrb.mxu0 %v8128_v6  ;;  %4030 = vmatpush.msra.mxu2 %v8130_v32  ;;  %v8160_v32 = vld [vmem:[#allocation2 + $0xa0] sm:$0xff] }
 0xd44   : > { %3987 = vmatpush.msra.mxu3 %v8068_v56  ;;  %4007 = vmatpush.msrb.mxu1 %v8134_v0  ;;  %9194 = vst [vmem:[#allocation113_spill] sm:$0xff] %v8160_v32  ;;  %v8164_v56 = vld [vmem:[#allocation2 + $0x4c0] sm:$0xff] }
 0xd45   : > { %4609 = vmatpush.msrb.mxu0 %v8138_v61  ;;  %4031 = vmatpush.msra.mxu2 %v8140_v48  ;;  %v8169_v48 = vld [vmem:[#allocation2 + $0x68] sm:$0xff] }
 0xd46   : > { %3988 = vmatpush.msra.mxu3 %v8076_v31  ;;  %4008 = vmatpush.msrb.mxu1 %v8144_v52  ;;  %9195 = vst [vmem:[#allocation114_spill] sm:$0xff] %v8169_v48 }
 0xd47   : > { %4610 = vmatpush.msrb.mxu0 %v8148_v34  ;;  %4032 = vmatpush.msra.mxu2 %v8150_v2  ;;  %v8173_v2 = vld [vmem:[#allocation2 + $0x488] sm:$0xff] }
 0xd48   : > { %4611 = vmatmul.f32.vlgmr.msrb.gmra.mxu0 %v8001_v62  ;;  %3989 = vmatpush.msra.mxu3 %v8085_v39  ;;  %v8177_v62 = vld [vmem:[#allocation2 + $0x30] sm:$0xff] }
 0xd49   : > { %5268 = vmatpush.msk.msra.mxu0 %vm3758_vm8, %v7663_v11  ;;  %4009 = vmatpush.msrb.mxu1 %v8156_v42  ;;  %9196 = vst [vmem:[#allocation115_spill] sm:$0xff] %v8177_v62  ;;  %v8181_v39 = vld [vmem:[#allocation2 + $0x450] sm:$0xff] }
 0xd4a   : > { %4033 = vmatpush.msra.mxu2 %v8160_v32  ;;  %3990 = vmatpush.msra.mxu3 %v8093_v26  ;;  %v8189_v32 = vld [vmem:[#allocation2 + $0x418] sm:$0xff] }
 0xd4b   : > { %4749 = vmatpush.msra.mxu0 %v7673_v49  ;;  %4010 = vmatpush.msrb.mxu1 %v8164_v56 }
 0xd4c   : > { %4034 = vmatpush.msra.mxu2 %v8169_v48  ;;  %3991 = vmatpush.msra.mxu3 %v8107_v13  ;;  %v8196_v48 = vld [vmem:[#allocation2 + $0x3e0] sm:$0xff]  ;;  %v9244_v13 = vld [vmem:[#allocation19_spill] sm:$0xff] }
 0xd4d   : > { %4750 = vmatpush.msra.mxu0 %v7682_v21  ;;  %4011 = vmatpush.msrb.mxu1 %v8173_v2 }
 0xd4e   : > { %4035 = vmatpush.msra.mxu2 %v8177_v62  ;;  %3992 = vmatpush.msra.mxu3 %v8118_v44  ;;  %v8202_v62 = vld [vmem:[#allocation2 + $0x3a8] sm:$0xff]  ;;  %v9243_v44 = vld [vmem:[#allocation48_spill] sm:$0xff] }
 0xd4f   : > { %4751 = vmatpush.msra.mxu0 %v7694_v54  ;;  %4012 = vmatpush.msrb.mxu1 %v8181_v39 }
 0xd50   : > { %4036 = vmatmul.f32.vlgmr.msra.gmra.mxu2 %v7970_v17  ;;  %3993 = vmatpush.msra.mxu3 %v8128_v6  ;;  %v9235_v6 = vld [vmem:[#allocation7_spill] sm:$0xff] }
 0xd51   : > { %5240 = vmatpush.msk.msrb.mxu2 %vm3758_vm8, %v7554_v55  ;;  %4752 = vmatpush.msra.mxu0 %v7700_v15  ;;  %v5526_v55 = vld [vmem:[#allocation2 + $0x618] sm:$0x3f] }
 0xd52   : > { %4013 = vmatpush.msrb.mxu1 %v8189_v32  ;;  %3994 = vmatpush.msra.mxu3 %v8138_v61  ;;  %v9232_v61 = vld [vmem:[#allocation26_spill] sm:$0xff] }
 0xd53   : > { %4123 = vmatpush.msrb.mxu2 %v7556_v45  ;;  %4753 = vmatpush.msra.mxu0 %v7709_v12  ;;  %v5527_v45 = vld [vmem:[#allocation2 + $0x5e0] sm:$0xff] }
 0xd54   : > { %4014 = vmatpush.msrb.mxu1 %v8196_v48  ;;  %3995 = vmatpush.msra.mxu3 %v8148_v34  ;;  %v9228_v34 = vld [vmem:[#allocation24_spill] sm:$0xff] }
 0xd55   : > { %4124 = vmatpush.msrb.mxu2 %v7560_v4  ;;  %4754 = vmatpush.msra.mxu0 %v7714_v41  ;;  %v5528_v4 = vld [vmem:[#allocation2 + $0x5a8] sm:$0xff] }
 0xd56   : > { %4015 = vmatpush.msrb.mxu1 %v8202_v62  ;;  %3996 = vmatmul.f32.vlgmr.msra.gmra.mxu3 %v7970_v17  ;;  %v9203_v17 = vld [vmem:[#allocation8_spill] sm:$0xff] }
 0xd57   : > { %4125 = vmatpush.msrb.mxu2 %v7567_v36  ;;  %5237 = vmatmul.msk.f32.vlgmr.msrb.gmra.mxu1 %vm3755_vm12, %v7852_v30  ;;  %v5530_v36 = vld [vmem:[#allocation2 + $0x538] sm:$0xff] }
 0xd58   : > { %5238 = vmatpush.msk.msrb.mxu3 %vm3758_vm8, %v5526_v55  ;;  %4098 = vmatpush.msra.mxu1 %v7565_v23  ;;  %v5529_v23 = vld [vmem:[#allocation2 + $0x570] sm:$0xff]  ;;  %v9204_v55 = vld [vmem:[#allocation14_spill] sm:$0xff] }
 0xd59   : > { %4755 = vmatpush.msra.mxu0 %v7718_v35  ;;  %4126 = vmatpush.msrb.mxu2 %v7577_v53  ;;  %v9198_v53 = vld [vmem:[#allocation9_spill] sm:$0xff] }
 0xd5a   : > { %4045 = vmatpush.msrb.mxu3 %v5527_v45  ;;  %4099 = vmatpush.msra.mxu1 %v7570_v29  ;;  %v8227_v29 = vpop.permute.xlu2 %4678  ;;  %v5534_v45 = vld [vmem:[#allocation2 + $0x458] sm:$0xff] }
 0xd5b   : > { %4756 = vmatpush.msra.mxu0 %v7722_v59  ;;  %4127 = vmatpush.msrb.mxu2 %v7588_v19  ;;  %9197 = vst [vmem:[#allocation116_spill] sm:$0xff] %v8227_v29  ;;  %v9199_v19 = vld [vmem:[#allocation54_spill] sm:$0xff] }
 0xd5c   : > { %4046 = vmatpush.msrb.mxu3 %v5528_v4  ;;  %4100 = vmatpush.msra.mxu1 %v7574_v50  ;;  %v5531_v50 = vld [vmem:[#allocation2 + $0x500] sm:$0xff]  ;;  %v9206_v4 = vld [vmem:[#allocation10_spill] sm:$0xff] }
 0xd5d   : > { %4757 = vmatpush.msra.mxu0 %v7726_v8  ;;  %4128 = vmatpush.msrb.mxu2 %v7602_v57  ;;  %v9201_v57 = vld [vmem:[#allocation12_spill] sm:$0xff] }
 0xd5e   : > { %4047 = vmatpush.msrb.mxu3 %v5529_v23  ;;  %4101 = vmatpush.msra.mxu1 %v7583_v14  ;;  %v5532_v14 = vld [vmem:[#allocation2 + $0x4c8] sm:$0xff]  ;;  %v9207_v23 = vld [vmem:[#allocation5_spill] sm:$0xff] }
 0xd5f   : > { %4758 = vmatpush.msra.mxu0 %v7729_v58  ;;  %4129 = vmatpush.msrb.mxu2 %v7614_v43  ;;  %v5533_v43 = vld [vmem:[#allocation2 + $0x490] sm:$0xff] }
 0xd60   : > { %4048 = vmatpush.msrb.mxu3 %v5530_v36  ;;  %4102 = vmatpush.msra.mxu1 %v7596_v37  ;;  %v9200_v37 = vld [vmem:[#allocation6_spill] sm:$0xff]  ;;  %v5535_v36 = vld [vmem:[#allocation2 + $0x420] sm:$0xff] }
 0xd61   : > { %4759 = vmatpush.msra.mxu0 %v7733_v63  ;;  %4130 = vmatpush.msrb.mxu2 %v7624_v5  ;;  %v9202_v5 = vld [vmem:[#allocation57_spill] sm:$0xff] }
 0xd62   : > { %5269 = vmatmul.msk.f32.vlgmr.msra.gmra.mxu0 %vm3755_vm12, %v8227_v29  ;;  %4049 = vmatpush.msrb.mxu3 %v5531_v50  ;;  %v9208_v50 = vld [vmem:[#allocation28_spill] sm:$0xff] }
 0xd63   : > { %4804 = vmatpush.msrb.mxu0 %v7848_v60  ;;  %4103 = vmatpush.msra.mxu1 %v7608_v1  ;;  %v9205_v1 = vld [vmem:[#allocation60_spill] sm:$0xff] }
 0xd64   : > { %4131 = vmatpush.msrb.mxu2 %v9198_v53  ;;  %4050 = vmatpush.msrb.mxu3 %v5532_v14  ;;  %v9209_v53 = vld [vmem:[#allocation61_spill] sm:$0xff] }
 0xd65   : > { %4805 = vmatpush.msrb.mxu0 %v9199_v19  ;;  %4104 = vmatpush.msra.mxu1 %v9200_v37  ;;  %v9210_v14 = vld [vmem:[#allocation13_spill] sm:$0xff]  ;;  %v5536_v37 = vld [vmem:[#allocation2 + $0x3e8] sm:$0xff] }
 0xd66   : > { %4132 = vmatpush.msrb.mxu2 %v9201_v57  ;;  %4051 = vmatpush.msrb.mxu3 %v5533_v43  ;;  %v9211_v57 = vld [vmem:[#allocation30_spill] sm:$0xff]  ;;  %v9212_v43 = vld [vmem:[#allocation64_spill] sm:$0xff] }
 0xd67   : > { %4806 = vmatpush.msrb.mxu0 %v9202_v5  ;;  %4105 = vmatpush.msra.mxu1 %v9203_v17  ;;  %v9213_v17 = vld [vmem:[#allocation16_spill] sm:$0xff] }
 0xd68   : > { %4133 = vmatpush.msrb.mxu2 %v9204_v55  ;;  %4052 = vmatpush.msrb.mxu3 %v5534_v45  ;;  %v5537_v55 = vld [vmem:[#allocation2 + $0x3b0] sm:$0xff]  ;;  %v9214_v45 = vld [vmem:[#allocation32_spill] sm:$0xff] }
 0xd69   : > { %4807 = vmatpush.msrb.mxu0 %v9205_v1  ;;  %4106 = vmatpush.msra.mxu1 %v9206_v4  ;;  %v9215_v4 = vld [vmem:[#allocation65_spill] sm:$0xff] }
 0xd6a   : > { %5241 = vmatmul.msk.f32.vlgmr.msrb.gmra.mxu2 %vm3755_vm12, %v9207_v23  ;;  %4053 = vmatpush.msrb.mxu3 %v5535_v36  ;;  %v9216_v36 = vld [vmem:[#allocation18_spill] sm:$0xff] }
 0xd6b   : > { %4178 = vmatpush.msra.mxu2 %v9208_v50  ;;  %4808 = vmatpush.msrb.mxu0 %v9209_v53  ;;  %v9217_v50 = vld [vmem:[#allocation34_spill] sm:$0xff] }
 0xd6c   : > { %4107 = vmatpush.msra.mxu1 %v9210_v14  ;;  %4054 = vmatpush.msrb.mxu3 %v5536_v37  ;;  %v8258_v14 = vld [vmem:[#allocation2 + $0x350] sm:$0xff]  ;;  %v9219_v37 = vld [vmem:[#allocation66_spill] sm:$0xff] }
 0xd6d   : > { %4179 = vmatpush.msra.mxu2 %v9211_v57  ;;  %4809 = vmatpush.msrb.mxu0 %v9212_v43  ;;  %9218 = vst [vmem:[#allocation9_spill] sm:$0xff] %v8258_v14  ;;  %v9220_v57 = vld [vmem:[#allocation20_spill] sm:$0xff] }
 0xd6e   : > { %4108 = vmatpush.msra.mxu1 %v9213_v17  ;;  %4055 = vmatpush.msrb.mxu3 %v5537_v55  ;;  %v9221_v17 = vld [vmem:[#allocation36_spill] sm:$0xff] }
 0xd6f   : > { %4180 = vmatpush.msra.mxu2 %v9214_v45  ;;  %4810 = vmatpush.msrb.mxu0 %v9215_v4  ;;  %v8264_v55 = vld [vmem:[#allocation2 + $0x318] sm:$0xff]  ;;  %v9223_v45 = vld [vmem:[#allocation67_spill] sm:$0xff] }
 0xd70   : > { %4109 = vmatpush.msra.mxu1 %v9216_v36  ;;  %5239 = vmatmul.msk.f32.vlgmr.msrb.gmra.mxu3 %vm3755_vm12, %v7852_v30  ;;  %9222 = vst [vmem:[#allocation54_spill] sm:$0xff] %v8264_v55  ;;  %v9224_v36 = vld [vmem:[#allocation22_spill] sm:$0xff] }
 0xd71   : > { %4181 = vmatpush.msra.mxu2 %v9217_v50  ;;  %4138 = vmatpush.msra.mxu3 %v8258_v14  ;;  %v9225_v30 = vld [vmem:[#allocation38_spill] sm:$0xff]  ;;  %v8270_v50 = vld [vmem:[#allocation2 + $0x2e0] sm:$0xff]  ;;  %v9227_v14 = vld [vmem:[#allocation68_spill] sm:$0xff] }
 0xd72   : > { %4811 = vmatpush.msrb.mxu0 %v9219_v37  ;;  %4110 = vmatpush.msra.mxu1 %v9220_v57  ;;  %9226 = vst [vmem:[#allocation6_spill] sm:$0xff] %v8270_v50  ;;  %v9229_v57 = vld [vmem:[#allocation40_spill] sm:$0xff] }
 0xd73   : > { %4182 = vmatpush.msra.mxu2 %v9221_v17  ;;  %4139 = vmatpush.msra.mxu3 %v8264_v55  ;;  %v8276_v17 = vld [vmem:[#allocation2 + $0x2a8] sm:$0xff]  ;;  %v9231_v55 = vld [vmem:[#allocation69_spill] sm:$0xff] }
 0xd74   : > { %4812 = vmatpush.msrb.mxu0 %v9223_v45  ;;  %4111 = vmatpush.msra.mxu1 %v9224_v36  ;;  %9230 = vst [vmem:[#allocation12_spill] sm:$0xff] %v8276_v17  ;;  %v9233_v36 = vld [vmem:[#allocation42_spill] sm:$0xff] }
 0xd75   : > { %4183 = vmatpush.msra.mxu2 %v9225_v30  ;;  %4140 = vmatpush.msra.mxu3 %v8270_v50  ;;  %v9234_v30 = vld [vmem:[#allocation15_spill] sm:$0xff] }
 0xd76   : > { %4813 = vmatpush.msrb.mxu0 %v9227_v14  ;;  %4112 = vmatpush.msra.mxu1 %v9228_v34  ;;  %v9236_v34 = vld [vmem:[#allocation70_spill] sm:$0xff]  ;;  %v9238_v50 = vld [vmem:[#allocation11_spill] sm:$0xff] }
 0xd77   : > { %4184 = vmatpush.msra.mxu2 %v9229_v57  ;;  %4141 = vmatpush.msra.mxu3 %v8276_v17  ;;  %v9237_v57 = vld [vmem:[#allocation44_spill] sm:$0xff]  ;;  %v9239_v17 = vld [vmem:[#allocation71_spill] sm:$0xff] }
 0xd78   : > { %4814 = vmatpush.msrb.mxu0 %v9231_v55  ;;  %4113 = vmatpush.msra.mxu1 %v9232_v61  ;;  %v9240_v61 = vld [vmem:[#allocation46_spill] sm:$0xff] }
 0xd79   : > { %4185 = vmatpush.msra.mxu2 %v9233_v36  ;;  %4114 = vmatmul.f32.vlgmr.msra.gmra.mxu1 %v9234_v30  ;;  %v9241_v36 = vld [vmem:[#allocation17_spill] sm:$0xff] }
 0xd7a   : > { %4142 = vmatpush.msra.mxu3 %v9235_v6  ;;  %5242 = vmatpush.msk.msrb.mxu1 %vm3758_vm8, %v7663_v11  ;;  %v9242_v6 = vld [vmem:[#allocation72_spill] sm:$0xff]  ;;  %v4677_v11 = vpop.permute.xlu1 %4676 }
 0xd7b   : > { %4815 = vmatpush.msrb.mxu0 %v9236_v34  ;;  %4186 = vmatpush.msra.mxu2 %v9237_v57  ;;  %v9247_v57 = vld [vmem:[#allocation21_spill] sm:$0xff] }
 0xd7c   : > { %4143 = vmatpush.msra.mxu3 %v9238_v50  ;;  %4163 = vmatpush.msrb.mxu1 %v7673_v49  ;;  %v9245_v50 = vld [vmem:[#allocation73_spill] sm:$0xff]  ;;  %v9246_v49 = vld [vmem:[#allocation50_spill] sm:$0xff] }
 0xd7d   : > { %4816 = vmatpush.msrb.mxu0 %v9239_v17  ;;  %4187 = vmatpush.msra.mxu2 %v9240_v61  ;;  %v9248_v61 = vld [vmem:[#allocation74_spill] sm:$0xff] }
 0xd7e   : > { %4144 = vmatpush.msra.mxu3 %v9241_v36  ;;  %4164 = vmatpush.msrb.mxu1 %v7682_v21  ;;  %v8304_v21 = vsel %vm3399_vm3, %v4677_v11, %v8227_v29  ;;  %v9253_v36 = vld [vmem:[#allocation58_spill] sm:$0xff]  ;;  %v9254_v11 = vld [vmem:[#allocation27_spill] sm:$0xff]  ;;  %vm4081_vm3 = vcmask 7168  }
 0xd7f   : > { %4817 = vmatpush.msrb.mxu0 %v9242_v6  ;;  %4188 = vmatpush.msra.mxu2 %v9243_v44  ;;  %v9249_v44 = vld [vmem:[#allocation52_spill] sm:$0xff] }
 0xd80   : > { %4145 = vmatpush.msra.mxu3 %v9244_v13  ;;  %4165 = vmatpush.msrb.mxu1 %v7694_v54  ;;  %v9250_v13 = vld [vmem:[#allocation23_spill] sm:$0xff] }
 0xd81   : > { %4818 = vmatpush.msrb.mxu0 %v9245_v50  ;;  %4189 = vmatpush.msra.mxu2 %v9246_v49  ;;  %v9251_v54 = vld [vmem:[#allocation55_spill] sm:$0xff]  ;;  %v9255_v49 = vld [vmem:[#allocation62_spill] sm:$0xff] }
 0xd82   : > { %4146 = vmatpush.msra.mxu3 %v9247_v57  ;;  %4166 = vmatpush.msrb.mxu1 %v7700_v15  ;;  %v9252_v15 = vld [vmem:[#allocation25_spill] sm:$0xff] }
 0xd83   : > { %4819 = vmatpush.msrb.mxu0 %v9248_v61  ;;  %4190 = vmatpush.msra.mxu2 %v9249_v44  ;;  %v9256_v57 = vld [vmem:[#allocation29_spill] sm:$0xff] }
 0xd84   : > { %4820 = vmatmul.f32.vlgmr.msrb.gmra.mxu0 %v8304_v21  ;;  %4147 = vmatpush.msra.mxu3 %v9250_v13  ;;  %v9279_v13 = vld [vmem:[#allocation80_spill] sm:$0xff] }
 0xd85   : > { %5276 = vmatpush.msk.msra.mxu0 %vm3758_vm8, %v8103_v47  ;;  %4167 = vmatpush.msrb.mxu1 %v7709_v12  ;;  %v9257_v12 = vld [vmem:[#allocation31_spill] sm:$0xff] }
 0xd86   : > { %4191 = vmatpush.msra.mxu2 %v9251_v54  ;;  %4148 = vmatpush.msra.mxu3 %v9252_v15  ;;  %v9281_v15 = vld [vmem:[#allocation83_spill] sm:$0xff] }
 0xd87   : > { %4909 = vmatpush.msra.mxu0 %v8113_v20  ;;  %4168 = vmatpush.msrb.mxu1 %v7714_v41  ;;  %v9258_v41 = vld [vmem:[#allocation33_spill] sm:$0xff] }
 0xd88   : > { %4192 = vmatpush.msra.mxu2 %v9253_v36  ;;  %4149 = vmatpush.msra.mxu3 %v9254_v11  ;;  %v9282_v36 = vld [vmem:[#allocation91_spill] sm:$0xff]  ;;  %v8427_v11 = vld [vmem:[#allocation2 + $0x5e8] sm:$0x3f] }
 0xd89   : > { %4910 = vmatpush.msra.mxu0 %v8124_v10  ;;  %4169 = vmatpush.msrb.mxu1 %v7718_v35  ;;  %v9259_v35 = vld [vmem:[#allocation35_spill] sm:$0xff] }
 0xd8a   : > { %4193 = vmatpush.msra.mxu2 %v9255_v49  ;;  %4150 = vmatpush.msra.mxu3 %v9256_v57  ;;  %v9283_v49 = vld [vmem:[#allocation84_spill] sm:$0xff]  ;;  %v9284_v57 = vld [vmem:[#allocation93_spill] sm:$0xff] }
 0xd8b   : > { %4911 = vmatpush.msra.mxu0 %v8134_v0  ;;  %4170 = vmatpush.msrb.mxu1 %v7722_v59  ;;  %v3817_v59 = vpop.f32.mrf.mxu2 }
 0xd8c   : > { %4194 = vmatmul.f32.vlgmr.msra.gmra.mxu2 %v9234_v30  ;;  %4151 = vmatpush.msra.mxu3 %v9257_v12  ;;  %v8433_v12 = vld [vmem:[#allocation2 + $0x5b0] sm:$0xff] }
 0xd8d   : > { %5246 = vmatpush.msk.msrb.mxu2 %vm3758_vm8, %v7823_v27  ;;  %4912 = vmatpush.msra.mxu0 %v8144_v52 }
 0xd8e   : > { %4171 = vmatpush.msrb.mxu1 %v7726_v8  ;;  %4152 = vmatpush.msra.mxu3 %v9258_v41  ;;  %v9262_v8 = vld [vmem:[#allocation41_spill] sm:$0xff]  ;;  %v9285_v41 = vld [vmem:[#allocation86_spill] sm:$0xff] }
 0xd8f   : > { %4243 = vmatpush.msrb.mxu2 %v7833_v22  ;;  %4913 = vmatpush.msra.mxu0 %v8156_v42  ;;  %v9260_v22 = vld [vmem:[#allocation37_spill] sm:$0xff] }
 0xd90   : > { %4172 = vmatpush.msrb.mxu1 %v7729_v58  ;;  %4153 = vmatpush.msra.mxu3 %v9259_v35  ;;  %v9263_v58 = vld [vmem:[#allocation43_spill] sm:$0xff] }
 0xd91   : > { %4244 = vmatpush.msrb.mxu2 %v7842_v9  ;;  %4914 = vmatpush.msra.mxu0 %v8164_v56  ;;  %v9261_v9 = vld [vmem:[#allocation39_spill] sm:$0xff] }
 0xd92   : > { %4173 = vmatpush.msrb.mxu1 %v7733_v63  ;;  %4154 = vmatmul.f32.vlgmr.msra.gmra.mxu3 %v9234_v30  ;;  %v9264_v63 = vld [vmem:[#allocation45_spill] sm:$0xff]  ;;  %v9286_v35 = vld [vmem:[#allocation95_spill] sm:$0xff] }
 0xd93   : > { %4245 = vmatpush.msrb.mxu2 %v7855_v24  ;;  %5243 = vmatmul.msk.f32.vlgmr.msrb.gmra.mxu1 %vm3755_vm12, %v9207_v23  ;;  %v3857_v27 = vpop.f32.mrf.mxu2 }
 0xd94   : > { %5244 = vmatpush.msk.msrb.mxu3 %vm3758_vm8, %v9260_v22  ;;  %4218 = vmatpush.msra.mxu1 %v7848_v60  ;;  %v9287_v22 = vld [vmem:[#allocation88_spill] sm:$0xff] }
 0xd95   : > { %4915 = vmatpush.msra.mxu0 %v8173_v2  ;;  %4246 = vmatpush.msrb.mxu2 %v7866_v7  ;;  %v9265_v7 = vld [vmem:[#allocation47_spill] sm:$0xff] }
 0xd96   : > { %4203 = vmatpush.msrb.mxu3 %v9261_v9  ;;  %4219 = vmatpush.msra.mxu1 %v9199_v19  ;;  %v9268_v19 = vld [vmem:[#allocation53_spill] sm:$0xff] }
 0xd97   : > { %4916 = vmatpush.msra.mxu0 %v8181_v39  ;;  %4247 = vmatpush.msrb.mxu2 %v7878_v25  ;;  %v3797_v60 = vpop.f32.mrf.mxu1  ;;  %v9288_v9 = vld [vmem:[#allocation97_spill] sm:$0xff] }
 0xd98   : > { %4204 = vmatpush.msrb.mxu3 %v9262_v8  ;;  %4220 = vmatpush.msra.mxu1 %v9202_v5  ;;  %v3818_v25 = vadd.f32 %v3817_v59, %v3797_v60  ;;  %v8438_v59 = vld [vmem:[#allocation2 + $0x578] sm:$0xff]  ;;  %v8445_v8 = vld [vmem:[#allocation2 + $0x540] sm:$0xff]  ;;  %v9289_v60 = vld [vmem:[#allocation90_spill] sm:$0xff] }
 0xd99   : > { %4917 = vmatpush.msra.mxu0 %v8189_v32  ;;  %4248 = vmatpush.msrb.mxu2 %v7890_v3 }
 0xd9a   : > { %4205 = vmatpush.msrb.mxu3 %v9263_v58  ;;  %4221 = vmatpush.msra.mxu1 %v9205_v1  ;;  %v8450_v58 = vld [vmem:[#allocation2 + $0x508] sm:$0xff] }
 0xd9b   : > { %4918 = vmatpush.msra.mxu0 %v8196_v48  ;;  %4249 = vmatpush.msrb.mxu2 %v7909_v33  ;;  %v9266_v33 = vld [vmem:[#allocation49_spill] sm:$0xff] }
 0xd9c   : > { %4206 = vmatpush.msrb.mxu3 %v9264_v63  ;;  %4222 = vmatpush.msra.mxu1 %v9209_v53  ;;  %v9271_v53 = vld [vmem:[#allocation63_spill] sm:$0xff]  ;;  %v9290_v63 = vld [vmem:[#allocation92_spill] sm:$0xff] }
 0xd9d   : > { %4919 = vmatpush.msra.mxu0 %v8202_v62  ;;  %4250 = vmatpush.msrb.mxu2 %v7915_v38  ;;  %v3837_v3 = vpop.f32.mrf.mxu3  ;;  %v9267_v38 = vld [vmem:[#allocation51_spill] sm:$0xff] }
 0xd9e   : > { %5277 = vmatmul.msk.f32.vlgmr.msra.gmra.mxu0 %vm3755_vm12, %v8227_v29  ;;  %4207 = vmatpush.msrb.mxu3 %v9265_v7  ;;  %v3858_v24 = vadd.f32 %v3857_v27, %v3837_v3  ;;  %v8455_v27 = vld [vmem:[#allocation2 + $0x4d0] sm:$0xff]  ;;  %v8460_v3 = vld [vmem:[#allocation2 + $0x498] sm:$0xff] }
 0xd9f   : > { %4223 = vmatpush.msra.mxu1 %v9212_v43  ;;  %4251 = vmatpush.msrb.mxu2 %v7921_v16  ;;  %v9269_v16 = vld [vmem:[#allocation56_spill] sm:$0xff]  ;;  %v9272_v43 = vld [vmem:[#allocation75_spill] sm:$0xff] }
 0xda0   : > { %4208 = vmatpush.msrb.mxu3 %v9266_v33  ;;  %4067 = vrot.lane.b32.xlu0 %v3818_v25, %s5748_s24  ;;  %v9291_v25 = vld [vmem:[#allocation100_spill] sm:$0xff]  ;;  %v9294_v7 = vld [vmem:[#allocation103_spill] sm:$0xff]  ;;  %v9295_v33 = vld [vmem:[#allocation98_spill] sm:$0xff] }
 0xda1   : > { %4224 = vmatpush.msra.mxu1 %v9215_v4  ;;  %4252 = vmatpush.msrb.mxu2 %v7927_v51  ;;  %v3877_v51 = vpop.f32.mrf.mxu1  ;;  %v9273_v4 = vld [vmem:[#allocation76_spill] sm:$0xff] }
 0xda2   : > { %4209 = vmatpush.msrb.mxu3 %v9267_v38  ;;  %4069 = vrot.lane.b32.xlu1 %v3858_v24, %s5748_s24  ;;  %v8465_v24 = vld [vmem:[#allocation2 + $0x460] sm:$0xff] }
 0xda3   : > { %4225 = vmatpush.msra.mxu1 %v9219_v37  ;;  %4253 = vmatpush.msrb.mxu2 %v7933_v18  ;;  %v9270_v18 = vld [vmem:[#allocation59_spill] sm:$0xff]  ;;  %v9274_v37 = vld [vmem:[#allocation77_spill] sm:$0xff] }
 0xda4   : > { %4210 = vmatpush.msrb.mxu3 %v9268_v19  ;;  %5247 = vmatmul.msk.f32.vlgmr.msrb.gmra.mxu2 %vm3755_vm12, %v9207_v23  ;;  %v9296_v38 = vld [vmem:[#allocation105_spill] sm:$0xff]  ;;  %v8470_v19 = vld [vmem:[#allocation2 + $0x428] sm:$0xff] }
 0xda5   : > { %4226 = vmatpush.msra.mxu1 %v9223_v45  ;;  %5250 = vmatpush.msk.msra.mxu2 %vm3758_vm8, %v8103_v47  ;;  %v3897_v5 = vpop.f32.mrf.mxu3  ;;  %v9276_v45 = vld [vmem:[#allocation85_spill] sm:$0xff] }
 0xda6   : > { %4211 = vmatpush.msrb.mxu3 %v9269_v16  ;;  %v3898_v1 = vadd.f32 %v3897_v5, %v3877_v51  ;;  %v9298_v16 = vld [vmem:[#allocation107_spill] sm:$0xff]  ;;  %v9299_v5 = vld [vmem:[#allocation101_spill] sm:$0xff] }
 0xda7   : > { %4227 = vmatpush.msra.mxu1 %v9227_v14  ;;  %4323 = vmatpush.msra.mxu2 %v8113_v20  ;;  %v3917_v14 = vpop.f32.mrf.mxu2  ;;  %v8475_v51 = vld [vmem:[#allocation2 + $0x3f0] sm:$0xff] }
 0xda8   : > { %4212 = vmatpush.msrb.mxu3 %v9270_v18  ;;  %4071 = vrot.lane.b32.xlu2 %v3898_v1, %s5748_s24  ;;  %v9300_v1 = vld [vmem:[#allocation109_spill] sm:$0xff]  ;;  %v8480_v18 = vld [vmem:[#allocation2 + $0x3b8] sm:$0xff] }
 0xda9   : > { %4228 = vmatpush.msra.mxu1 %v9231_v55  ;;  %4324 = vmatpush.msra.mxu2 %v8124_v10  ;;  %v9275_v55 = vld [vmem:[#allocation78_spill] sm:$0xff]  ;;  %9301 = vst [vmem:[#allocation57_spill] sm:$0xff] %v8480_v18 }
 0xdaa   : > { %4213 = vmatpush.msrb.mxu3 %v9271_v53  ;;  %v9302_v53 = vld [vmem:[#allocation102_spill] sm:$0xff] }
 0xdab   : > { %4229 = vmatpush.msra.mxu1 %v9236_v34  ;;  %4325 = vmatpush.msra.mxu2 %v8134_v0  ;;  %v9277_v34 = vld [vmem:[#allocation79_spill] sm:$0xff] }
 0xdac   : > { %5245 = vmatmul.msk.f32.vlgmr.msrb.gmra.mxu3 %vm3755_vm12, %v9207_v23 }
 0xdad   : > { %5248 = vmatpush.msk.msra.mxu3 %vm3758_vm8, %v7955_v40  ;;  %4230 = vmatpush.msra.mxu1 %v9239_v17 }
 0xdae   : > { %4326 = vmatpush.msra.mxu2 %v8144_v52 }
 0xdaf   : > { %4283 = vmatpush.msra.mxu3 %v9272_v43  ;;  %4231 = vmatpush.msra.mxu1 %v9242_v6  ;;  %v9278_v6 = vld [vmem:[#allocation87_spill] sm:$0xff] }
 0xdb0   : > { %4327 = vmatpush.msra.mxu2 %v8156_v42 }
 0xdb1   : > { %4284 = vmatpush.msra.mxu3 %v9273_v4  ;;  %4232 = vmatpush.msra.mxu1 %v9245_v50 }
 0xdb2   : > { %4328 = vmatpush.msra.mxu2 %v8164_v56 }
 0xdb3   : > { %4285 = vmatpush.msra.mxu3 %v9274_v37  ;;  %4233 = vmatpush.msra.mxu1 %v9248_v61  ;;  %v3977_v61 = vpop.f32.mrf.mxu2 }
 0xdb4   : > { %4329 = vmatpush.msra.mxu2 %v8173_v2  ;;  %4234 = vmatmul.f32.vlgmr.msra.gmra.mxu1 %v9234_v30 }
 0xdb5   : > { %4286 = vmatpush.msra.mxu3 %v7973_v46  ;;  %4298 = vmatpush.msrb.mxu1 %v8008_v28  ;;  %v9280_v28 = vld [vmem:[#allocation89_spill] sm:$0xff] }
 0xdb6   : > { %4330 = vmatpush.msra.mxu2 %v8181_v39 }
 0xdb7   : > { %4287 = vmatpush.msra.mxu3 %v9275_v55  ;;  %4299 = vmatpush.msrb.mxu1 %v9276_v45  ;;  %v8485_v45 = vld [vmem:[#allocation2 + $0x380] sm:$0xff] }
 0xdb8   : > { %4331 = vmatpush.msra.mxu2 %v8189_v32  ;;  %v3937_v17 = vpop.f32.mrf.mxu3  ;;  %9304 = vst [vmem:[#allocation8_spill] sm:$0xff] %v8485_v45 }
 0xdb9   : > { %4288 = vmatpush.msra.mxu3 %v9277_v34  ;;  %4300 = vmatpush.msrb.mxu1 %v9278_v6  ;;  %v3938_v50 = vadd.f32 %v3937_v17, %v3917_v14  ;;  %v9303_v14 = vld [vmem:[#allocation111_spill] sm:$0xff]  ;;  %v9305_v17 = vld [vmem:[#allocation104_spill] sm:$0xff]  ;;  %v8490_v6 = vld [vmem:[#allocation2 + $0x348] sm:$0xff] }
 0xdba   : > { %4332 = vmatpush.msra.mxu2 %v8196_v48  ;;  %v3957_v44 = vpop.f32.mrf.mxu1 }
 0xdbb   : > { %4289 = vmatpush.msra.mxu3 %v9279_v13  ;;  %4301 = vmatpush.msrb.mxu1 %v9280_v28  ;;  %v3978_v54 = vadd.f32 %v3977_v61, %v3957_v44  ;;  %v8495_v61 = vld [vmem:[#allocation2 + $0x358] sm:$0xff]  ;;  %v9308_v44 = vld [vmem:[#allocation106_spill] sm:$0xff]  ;;  %v8499_v28 = vld [vmem:[#allocation2 + $0x310] sm:$0xff] }
 0xdbc   : > { %4333 = vmatpush.msra.mxu2 %v8202_v62  ;;  %4073 = vrot.lane.b32.xlu0 %v3938_v50, %s5748_s24  ;;  %v9306_v50 = vld [vmem:[#allocation81_spill] sm:$0xff]  ;;  %9307 = vst [vmem:[#allocation14_spill] sm:$0xff] %v8495_v61 }
 0xdbd   : > { %4290 = vmatpush.msra.mxu3 %v9281_v15  ;;  %4302 = vmatpush.msrb.mxu1 %v9282_v36 }
 0xdbe   : > { %5251 = vmatmul.msk.f32.vlgmr.msra.gmra.mxu2 %vm3755_vm12, %v9207_v23  ;;  %4075 = vrot.lane.b32.xlu1 %v3978_v54, %s5748_s24 }
 0xdbf   : > { %5254 = vmatpush.msk.msrb.mxu2 %vm3758_vm8, %v8427_v11  ;;  %4291 = vmatpush.msra.mxu3 %v9283_v49 }
 0xdc0   : > { %4303 = vmatpush.msrb.mxu1 %v9284_v57  ;;  %v8502_v57 = vld [vmem:[#allocation2 + $0x320] sm:$0xff] }
 0xdc1   : > { %4420 = vmatpush.msrb.mxu2 %v8433_v12  ;;  %4292 = vmatpush.msra.mxu3 %v9285_v41  ;;  %9309 = vst [vmem:[#allocation60_spill] sm:$0xff] %v8502_v57 }
 0xdc2   : > { %4304 = vmatpush.msrb.mxu1 %v9286_v35  ;;  %v9310_v35 = vld [vmem:[#allocation108_spill] sm:$0xff] }
 0xdc3   : > { %4421 = vmatpush.msrb.mxu2 %v8438_v59  ;;  %4293 = vmatpush.msra.mxu3 %v9287_v22 }
 0xdc4   : > { %4305 = vmatpush.msrb.mxu1 %v9288_v9  ;;  %5249 = vmatmul.msk.f32.vlgmr.msra.gmra.mxu3 %vm3755_vm12, %v9207_v23  ;;  %v9292_v23 = vld [vmem:[#allocation94_spill] sm:$0xff] }
 0xdc5   : > { %4422 = vmatpush.msrb.mxu2 %v8445_v8  ;;  %4338 = vmatpush.msrb.mxu3 %v9289_v60  ;;  %v8506_v60 = vld [vmem:[#allocation2 + $0x2d8] sm:$0xff] }
 0xdc6   : > { %4306 = vmatpush.msrb.mxu1 %v8076_v31  ;;  %v9293_v31 = vld [vmem:[#allocation96_spill] sm:$0xff] }
 0xdc7   : > { %4423 = vmatpush.msrb.mxu2 %v8450_v58  ;;  %4339 = vmatpush.msrb.mxu3 %v9290_v63  ;;  %v8509_v63 = vld [vmem:[#allocation2 + $0x2e8] sm:$0xff] }
 0xdc8   : > { %4307 = vmatpush.msrb.mxu1 %v9291_v25  ;;  %9311 = vst [vmem:[#allocation10_spill] sm:$0xff] %v8509_v63  ;;  %v9312_v25 = vld [vmem:[#allocation110_spill] sm:$0xff] }
 0xdc9   : > { %4424 = vmatpush.msrb.mxu2 %v8455_v27  ;;  %4340 = vmatpush.msrb.mxu3 %v9292_v23  ;;  %v8513_v23 = vld [vmem:[#allocation2 + $0x2a0] sm:$0xff] }
 0xdca   : > { %4308 = vmatpush.msrb.mxu1 %v8093_v26  ;;  %v9297_v26 = vld [vmem:[#allocation99_spill] sm:$0xff] }
 0xdcb   : > { %4425 = vmatpush.msrb.mxu2 %v8460_v3  ;;  %4341 = vmatpush.msrb.mxu3 %v9293_v31  ;;  %v8517_v31 = vld [vmem:[#allocation2 + $0x2b0] sm:$0xff] }
 0xdcc   : > { %4309 = vmatpush.msrb.mxu1 %v9294_v7  ;;  %9313 = vst [vmem:[#allocation5_spill] sm:$0xff] %v8517_v31  ;;  %v9314_v7 = vld [vmem:[#allocation112_spill] sm:$0xff] }
 0xdcd   : > { %4426 = vmatpush.msrb.mxu2 %v8465_v24  ;;  %4342 = vmatpush.msrb.mxu3 %v9295_v33  ;;  %v8521_v33 = vld [vmem:[#allocation2 + $0x268] sm:$0xff] }
 0xdce   : > { %4310 = vmatpush.msrb.mxu1 %v9296_v38  ;;  %v8524_v38 = vld [vmem:[#allocation2 + $0x278] sm:$0xff] }
 0xdcf   : > { %4427 = vmatpush.msrb.mxu2 %v8470_v19  ;;  %4343 = vmatpush.msrb.mxu3 %v9297_v26  ;;  %9315 = vst [vmem:[#allocation28_spill] sm:$0xff] %v8524_v38  ;;  %v9316_v26 = vld [vmem:[#allocation113_spill] sm:$0xff] }
 0xdd0   : > { %4311 = vmatpush.msrb.mxu1 %v9298_v16  ;;  %v8528_v16 = vld [vmem:[#allocation2 + $0x230] sm:$0xff] }
 0xdd1   : > { %4428 = vmatpush.msrb.mxu2 %v8475_v51  ;;  %4344 = vmatpush.msrb.mxu3 %v9299_v5  ;;  %v8531_v5 = vld [vmem:[#allocation2 + $0x240] sm:$0xff] }
 0xdd2   : > { %4312 = vmatpush.msrb.mxu1 %v9300_v1  ;;  %9317 = vst [vmem:[#allocation61_spill] sm:$0xff] %v8531_v5  ;;  %v9318_v1 = vld [vmem:[#allocation114_spill] sm:$0xff] }
 0xdd3   : > { %4429 = vmatpush.msrb.mxu2 %v8480_v18  ;;  %4345 = vmatpush.msrb.mxu3 %v9302_v53  ;;  %v8535_v53 = vld [vmem:[#allocation2 + $0x1f8] sm:$0xff] }
 0xdd4   : > { %4313 = vmatpush.msrb.mxu1 %v9303_v14  ;;  %v4017_v54 = vpop.f32.mrf.mxu1  ;;  %v8538_v14 = vld [vmem:[#allocation2 + $0x208] sm:$0xff] }
 0xdd5   : > { %4430 = vmatpush.msrb.mxu2 %v8485_v45  ;;  %4314 = vmatmul.f32.vlgmr.msrb.gmra.mxu1 %v9234_v30  ;;  %9319 = vst [vmem:[#allocation13_spill] sm:$0xff] %v8538_v14  ;;  %v8668_v45 = vld [vmem:[#allocation2 + $0x2f8] sm:$0xff] }
 0xdd6   : > { %4346 = vmatpush.msrb.mxu3 %v9305_v17  ;;  %4395 = vmatpush.msra.mxu1 %v8490_v6  ;;  %v9320_v17 = vld [vmem:[#allocation115_spill] sm:$0xff]  ;;  %9336 = vst [vmem:[#allocation24_spill] sm:$0xff] %v8668_v45 }
 0xdd7   : > { %5255 = vmatmul.msk.f32.vlgmr.msrb.gmra.mxu2 %vm3755_vm12, %v9306_v50 }
 0xdd8   : > { %4475 = vmatpush.msra.mxu2 %v8495_v61  ;;  %4347 = vmatpush.msrb.mxu3 %v9308_v44  ;;  %v8542_v44 = vld [vmem:[#allocation2 + $0x1c0] sm:$0xff]  ;;  %v8600_v61 = vld [vmem:[#allocation2 + $0x5f8] sm:$0x3f] }
 0xdd9   : > { %4396 = vmatpush.msra.mxu1 %v8499_v28  ;;  %v3997_v36 = vpop.f32.mrf.mxu3 }
 0xdda   : > { %4476 = vmatpush.msra.mxu2 %v8502_v57  ;;  %4348 = vmatpush.msrb.mxu3 %v9310_v35  ;;  %v4018_v9 = vadd.f32 %v4017_v54, %v3997_v36  ;;  %v8546_v54 = vld [vmem:[#allocation2 + $0x1d0] sm:$0xff]  ;;  %v8550_v35 = vld [vmem:[#allocation2 + $0x188] sm:$0xff] }
 0xddb   : > { %4397 = vmatpush.msra.mxu1 %v8506_v60  ;;  %9321 = vst [vmem:[#allocation30_spill] sm:$0xff] %v8546_v54  ;;  %v5570_v36 = vld [vmem:[#allocation2 + $0x5f0] sm:$0x3f] }
 0xddc   : > { %4477 = vmatpush.msra.mxu2 %v8509_v63  ;;  %4349 = vmatpush.msrb.mxu3 %v9312_v25  ;;  %v5573_v25 = vld [vmem:[#allocation2 + $0x5b8] sm:$0xff]  ;;  %v5594_v57 = vld [vmem:[#allocation2 + $0x430] sm:$0xff] }
 0xddd   : > { %4398 = vmatpush.msra.mxu1 %v8513_v23  ;;  %4077 = vrot.lane.b32.xlu2 %v4018_v9, %s5748_s24  ;;  %v8553_v9 = vld [vmem:[#allocation2 + $0x198] sm:$0xff] }
 0xdde   : > { %4478 = vmatpush.msra.mxu2 %v8517_v31  ;;  %4350 = vmatpush.msrb.mxu3 %v9314_v7  ;;  %9322 = vst [vmem:[#allocation64_spill] sm:$0xff] %v8553_v9  ;;  %v8556_v7 = vld [vmem:[#allocation2 + $0x150] sm:$0xff]  ;;  %v8589_v31 = vld [vmem:[#allocation2 + $0x48] sm:$0xff] }
 0xddf   : > { %4399 = vmatpush.msra.mxu1 %v8521_v33  ;;  %9328 = vst [vmem:[#allocation66_spill] sm:$0xff] %v8589_v31 }
 0xde0   : > { %4479 = vmatpush.msra.mxu2 %v8524_v38  ;;  %4351 = vmatpush.msrb.mxu3 %v9316_v26  ;;  %v5576_v26 = vld [vmem:[#allocation2 + $0x580] sm:$0xff]  ;;  %v4037_v38 = vpop.f32.mrf.mxu2 }
 0xde1   : > { %4400 = vmatpush.msra.mxu1 %v8528_v16 }
 0xde2   : > { %4480 = vmatpush.msra.mxu2 %v8531_v5  ;;  %4352 = vmatpush.msrb.mxu3 %v9318_v1  ;;  %v8562_v1 = vld [vmem:[#allocation2 + $0x118] sm:$0xff] }
 0xde3   : > { %4401 = vmatpush.msra.mxu1 %v8535_v53 }
 0xde4   : > { %4481 = vmatpush.msra.mxu2 %v8538_v14  ;;  %4353 = vmatpush.msrb.mxu3 %v9320_v17  ;;  %v8565_v17 = vld [vmem:[#allocation2 + $0x128] sm:$0xff]  ;;  %v8583_v14 = vld [vmem:[#allocation2 + $0x80] sm:$0xff] }
 0xde5   : > { %4402 = vmatpush.msra.mxu1 %v8542_v44  ;;  %4354 = vmatmul.f32.vlgmr.msrb.gmra.mxu3 %v9234_v30  ;;  %v8559_v30 = vld [vmem:[#allocation2 + $0x160] sm:$0xff]  ;;  %9324 = vst [vmem:[#allocation32_spill] sm:$0xff] %v8565_v17 }
 0xde6   : > { %4482 = vmatpush.msra.mxu2 %v8546_v54  ;;  %5256 = vmatpush.msk.msra.mxu3 %vm3758_vm8, %v5570_v36  ;;  %9323 = vst [vmem:[#allocation16_spill] sm:$0xff] %v8559_v30  ;;  %v5579_v36 = vld [vmem:[#allocation2 + $0x548] sm:$0xff]  ;;  %v8577_v54 = vld [vmem:[#allocation2 + $0xb8] sm:$0xff] }
 0xde7   : > { %4403 = vmatpush.msra.mxu1 %v8550_v35  ;;  %9326 = vst [vmem:[#allocation18_spill] sm:$0xff] %v8577_v54 }
 0xde8   : > { %4483 = vmatpush.msra.mxu2 %v8553_v9  ;;  %4460 = vmatpush.msra.mxu3 %v5573_v25  ;;  %v8568_v25 = vld [vmem:[#allocation2 + $0xe0] sm:$0xff]  ;;  %v8571_v9 = vld [vmem:[#allocation2 + $0xf0] sm:$0xff]  ;;  %9327 = vst [vmem:[#allocation34_spill] sm:$0xff] %v8583_v14 }
 0xde9   : > { %4404 = vmatpush.msra.mxu1 %v8556_v7  ;;  %9325 = vst [vmem:[#allocation65_spill] sm:$0xff] %v8571_v9 }
 0xdea   : > { %4484 = vmatpush.msra.mxu2 %v8559_v30  ;;  %4461 = vmatpush.msra.mxu3 %v5576_v26  ;;  %v5582_v30 = vld [vmem:[#allocation2 + $0x510] sm:$0xff]  ;;  %v8574_v26 = vld [vmem:[#allocation2 + $0xa8] sm:$0xff] }
 0xdeb   : > { %4405 = vmatpush.msra.mxu1 %v8562_v1 }
 0xdec   : > { %4485 = vmatpush.msra.mxu2 %v8565_v17  ;;  %4462 = vmatpush.msra.mxu3 %v5579_v36  ;;  %v5585_v17 = vld [vmem:[#allocation2 + $0x4d8] sm:$0xff]  ;;  %v8580_v36 = vld [vmem:[#allocation2 + $0x70] sm:$0xff] }
 0xded   : > { %4406 = vmatpush.msra.mxu1 %v8568_v25 }
 0xdee   : > { %4486 = vmatpush.msra.mxu2 %v8571_v9  ;;  %4463 = vmatpush.msra.mxu3 %v5582_v30  ;;  %v5588_v9 = vld [vmem:[#allocation2 + $0x4a0] sm:$0xff]  ;;  %v8586_v30 = vld [vmem:[#allocation2 + $0x38] sm:$0xff] }
 0xdef   : > { %4407 = vmatpush.msra.mxu1 %v8574_v26 }
 0xdf0   : > { %4487 = vmatpush.msra.mxu2 %v8577_v54  ;;  %4464 = vmatpush.msra.mxu3 %v5585_v17  ;;  %v5591_v17 = vld [vmem:[#allocation2 + $0x468] sm:$0xff]  ;;  %v8592_v54 = vld [vmem:[#allocation2] sm:$0xff] }
 0xdf1   : > { %4408 = vmatpush.msra.mxu1 %v8580_v36 }
 0xdf2   : > { %4488 = vmatpush.msra.mxu2 %v8583_v14  ;;  %4465 = vmatpush.msra.mxu3 %v5588_v9  ;;  %v8595_v14 = vld [vmem:[#allocation2 + $0x10] sm:$0xff]  ;;  %v9330_v9 = vld [vmem:[#allocation82_spill] sm:$0xff] }
 0xdf3   : > { %4409 = vmatpush.msra.mxu1 %v8586_v30  ;;  %v4057_v5 = vpop.f32.mrf.mxu3  ;;  %9329 = vst [vmem:[#allocation20_spill] sm:$0xff] %v8595_v14 }
 0xdf4   : > { %4489 = vmatpush.msra.mxu2 %v8589_v31  ;;  %4466 = vmatpush.msra.mxu3 %v5591_v17  ;;  %v4058_v63 = vadd.f32 %v4057_v5, %v4037_v38  ;;  %v5596_v17 = vld [vmem:[#allocation2 + $0x3f8] sm:$0xff]  ;;  %v8607_v38 = vld [vmem:[#allocation2 + $0x5c0] sm:$0xff]  ;;  %v8611_v5 = vld [vmem:[#allocation2 + $0x588] sm:$0xff] }
 0xdf5   : > { %4410 = vmatpush.msra.mxu1 %v8592_v54  ;;  %v8661_v31 = vld [vmem:[#allocation2 + $0x330] sm:$0xff] }
 0xdf6   : > { %4490 = vmatpush.msra.mxu2 %v8595_v14  ;;  %4411 = vmatmul.f32.vlgmr.msra.gmra.mxu1 %v9330_v9  ;;  %v5600_v14 = vld [vmem:[#allocation2 + $0x388] sm:$0xff]  ;;  %9335 = vst [vmem:[#allocation68_spill] sm:$0xff] %v8661_v31 }
 0xdf7   : > { %4467 = vmatpush.msra.mxu3 %v5594_v57  ;;  %4491 = vmatmul.f32.vlgmr.msra.gmra.mxu2 %v9330_v9  ;;  %v5598_v57 = vld [vmem:[#allocation2 + $0x3c0] sm:$0xff] }
 0xdf8   : > { %5258 = vmatpush.msk.msrb.mxu1 %vm3758_vm8, %v8600_v61  ;;  %5262 = vmatpush.msk.msrb.mxu2 %vm3758_vm8, %v7955_v40  ;;  %v8615_v40 = vld [vmem:[#allocation2 + $0x550] sm:$0xff] }
 0xdf9   : > { %4468 = vmatpush.msra.mxu3 %v5596_v17  ;;  %4079 = vrot.lane.b32.xlu0 %v4058_v63, %s5748_s24  ;;  %v8621_v63 = vld [vmem:[#allocation2 + $0x518] sm:$0xff]  ;;  %v8629_v17 = vld [vmem:[#allocation2 + $0x4a8] sm:$0xff] }
 0xdfa   : > { %4500 = vmatpush.msrb.mxu1 %v8607_v38  ;;  %4580 = vmatpush.msrb.mxu2 %v9272_v43  ;;  %v5602_v43 = vld [vmem:[#allocation2 + $0x360] sm:$0xff] }
 0xdfb   : > { %4469 = vmatpush.msra.mxu3 %v5598_v57  ;;  %v5608_v57 = vld [vmem:[#allocation2 + $0x2b8] sm:$0xff] }
 0xdfc   : > { %4501 = vmatpush.msrb.mxu1 %v8611_v5  ;;  %4581 = vmatpush.msrb.mxu2 %v9273_v4  ;;  %v5604_v4 = vld [vmem:[#allocation2 + $0x328] sm:$0xff] }
 0xdfd   : > { %4470 = vmatpush.msra.mxu3 %v5600_v14  ;;  %v8625_v14 = vld [vmem:[#allocation2 + $0x4e0] sm:$0xff] }
 0xdfe   : > { %4502 = vmatpush.msrb.mxu1 %v8615_v40  ;;  %4582 = vmatpush.msrb.mxu2 %v9274_v37  ;;  %v5606_v37 = vld [vmem:[#allocation2 + $0x2f0] sm:$0xff] }
 0xdff   : > { %5257 = vmatmul.msk.f32.vlgmr.msra.gmra.mxu3 %vm3755_vm12, %v9306_v50 }
 0xe00   : > { %4515 = vmatpush.msrb.mxu3 %v5602_v43  ;;  %4503 = vmatpush.msrb.mxu1 %v8621_v63  ;;  %v8633_v43 = vld [vmem:[#allocation2 + $0x470] sm:$0xff] }
 0xe01   : > { %4583 = vmatpush.msrb.mxu2 %v7973_v46  ;;  %v5610_v46 = vld [vmem:[#allocation2 + $0x280] sm:$0xff] }
 0xe02   : > { %4516 = vmatpush.msrb.mxu3 %v5604_v4  ;;  %4504 = vmatpush.msrb.mxu1 %v8625_v14  ;;  %v8637_v4 = vld [vmem:[#allocation2 + $0x438] sm:$0xff] }
 0xe03   : > { %4584 = vmatpush.msrb.mxu2 %v9275_v55  ;;  %v5612_v55 = vld [vmem:[#allocation2 + $0x248] sm:$0xff] }
 0xe04   : > { %4517 = vmatpush.msrb.mxu3 %v5606_v37  ;;  %4505 = vmatpush.msrb.mxu1 %v8629_v17  ;;  %v8641_v37 = vld [vmem:[#allocation2 + $0x400] sm:$0xff] }
 0xe05   : > { %4585 = vmatpush.msrb.mxu2 %v9277_v34  ;;  %9331 = vst [vmem:[#allocation36_spill] sm:$0xff] %v8641_v37  ;;  %v5614_v34 = vld [vmem:[#allocation2 + $0x210] sm:$0xff] }
 0xe06   : > { %4518 = vmatpush.msrb.mxu3 %v5608_v57  ;;  %4506 = vmatpush.msrb.mxu1 %v8633_v43  ;;  %v8645_v57 = vld [vmem:[#allocation2 + $0x3c8] sm:$0xff] }
 0xe07   : > { %4586 = vmatpush.msrb.mxu2 %v9279_v13  ;;  %9332 = vst [vmem:[#allocation67_spill] sm:$0xff] %v8645_v57  ;;  %v4135_v13 = vpop.f32.mrf.mxu2 }
 0xe08   : > { %4519 = vmatpush.msrb.mxu3 %v5610_v46  ;;  %4507 = vmatpush.msrb.mxu1 %v8637_v4  ;;  %v5616_v46 = vld [vmem:[#allocation2 + $0x1d8] sm:$0xff] }
 0xe09   : > { %4587 = vmatpush.msrb.mxu2 %v9281_v15  ;;  %v8649_v15 = vld [vmem:[#allocation2 + $0x390] sm:$0xff] }
 0xe0a   : > { %4520 = vmatpush.msrb.mxu3 %v5612_v55  ;;  %4508 = vmatpush.msrb.mxu1 %v8641_v37  ;;  %9333 = vst [vmem:[#allocation22_spill] sm:$0xff] %v8649_v15  ;;  %v4115_v55 = vpop.f32.mrf.mxu1 }
 0xe0b   : > { %4588 = vmatpush.msrb.mxu2 %v9283_v49  ;;  %v5618_v49 = vld [vmem:[#allocation2 + $0x1a0] sm:$0xff] }
 0xe0c   : > { %4521 = vmatpush.msrb.mxu3 %v5614_v34  ;;  %4509 = vmatpush.msrb.mxu1 %v8645_v57  ;;  %v8655_v34 = vld [vmem:[#allocation2 + $0x368] sm:$0xff] }
 0xe0d   : > { %4589 = vmatpush.msrb.mxu2 %v9285_v41  ;;  %9334 = vst [vmem:[#allocation38_spill] sm:$0xff] %v8655_v34  ;;  %v5620_v41 = vld [vmem:[#allocation2 + $0x168] sm:$0xff] }
 0xe0e   : > { %4522 = vmatpush.msrb.mxu3 %v5616_v46  ;;  %4510 = vmatpush.msrb.mxu1 %v8649_v15 }
 0xe0f   : > { %4590 = vmatpush.msrb.mxu2 %v9287_v22  ;;  %5259 = vmatmul.msk.f32.vlgmr.msrb.gmra.mxu1 %vm3755_vm12, %v9306_v50 }
 0xe10   : > { %4523 = vmatpush.msrb.mxu3 %v5618_v49  ;;  %4555 = vmatpush.msra.mxu1 %v8655_v34  ;;  %v5622_v49 = vld [vmem:[#allocation2 + $0x130] sm:$0xff]  ;;  %v8666_v34 = vpop.permute.xlu2 %4071 }
 0xe11   : > { %5263 = vmatmul.msk.f32.vlgmr.msrb.gmra.mxu2 %vm3755_vm12, %v9306_v50 }
 0xe12   : > { %4684 = vmatpush.msra.mxu2 %v8490_v6  ;;  %4524 = vmatpush.msrb.mxu3 %v5620_v41  ;;  %v4068_v46 = vpop.permute.xlu0 %4067  ;;  %v4195_v6 = vpop.f32.mrf.mxu2 }
 0xe13   : > { %4556 = vmatpush.msra.mxu1 %v8661_v31  ;;  %v4095_v22 = vsel %vm4081_vm3, 0.0, %v4068_v46 }
 0xe14   : > { %4685 = vmatpush.msra.mxu2 %v8499_v28  ;;  %4525 = vmatpush.msrb.mxu3 %v5622_v49  ;;  %v4116_v29 = vadd.f32 %v4115_v55, %v4095_v22  ;;  %v4070_v15 = vpop.permute.xlu1 %4069  ;;  %v5624_v28 = vld [vmem:[#allocation2 + $0xf8] sm:$0xff]  ;;  %v8679_v22 = vld [vmem:[#allocation2 + $0x2c0] sm:$0xff] }
 0xe15   : > { %4557 = vmatpush.msra.mxu1 %v8668_v45  ;;  %v4155_v41 = vpop.f32.mrf.mxu3  ;;  %v4082_v57 = vsel %vm4081_vm3, %v4068_v46, %v4070_v15  ;;  %v4083_v31 = vsel %vm4081_vm3, %v4070_v15, %v8666_v34  ;;  %v4175_v45 = vpop.f32.mrf.mxu1  ;;  %v5626_v46 = vld [vmem:[#allocation2 + $0xc0] sm:$0xff]  ;;  %v8685_v15 = vld [vmem:[#allocation2 + $0x288] sm:$0xff] }
 0xe16   : > { %4686 = vmatpush.msra.mxu2 %v8506_v60  ;;  %4526 = vmatpush.msrb.mxu3 %v5624_v28  ;;  %v4156_v49 = vadd.f32 %v4155_v41, %v4082_v57  ;;  %v8675_v18 = vadd.f32 %v4195_v6, %v4083_v31  ;;  %v8677_v55 = vadd.f32 %v4135_v13, %v4116_v29  ;;  %v5628_v60 = vld [vmem:[#allocation2 + $0x88] sm:$0xff]  ;;  %v8689_v29 = vld [vmem:[#allocation2 + $0x250] sm:$0xff]  ;;  %v8697_v57 = vld [vmem:[#allocation2 + $0x1e0] sm:$0xff] }
 0xe17   : > { %4558 = vmatpush.msra.mxu1 %v8679_v22  ;;  %v5630_v31 = vld [vmem:[#allocation2 + $0x50] sm:$0xff]  ;;  %v9354_v13 = vld [vmem:[#allocation28_spill] sm:$0xff]  ;;  %v9355_v28 = vld [vmem:[#allocation61_spill] sm:$0xff] }
 0xe18   : > { %4687 = vmatpush.msra.mxu2 %v8513_v23  ;;  %4527 = vmatpush.msrb.mxu3 %v5626_v46  ;;  %v8683_v37 = vadd.f32 %v4175_v45, %v4156_v49  ;;  %v8693_v23 = vld [vmem:[#allocation2 + $0x218] sm:$0xff]  ;;  %v9356_v46 = vld [vmem:[#allocation13_spill] sm:$0xff] }
 0xe19   : > { %4559 = vmatpush.msra.mxu1 %v8685_v15  ;;  %v5632_v45 = vld [vmem:[#allocation2 + $0x18] sm:$0xff] }
 0xe1a   : > { %4688 = vmatpush.msra.mxu2 %v8521_v33  ;;  %4528 = vmatpush.msrb.mxu3 %v5628_v60  ;;  %v8704_v33 = vld [vmem:[#allocation2 + $0x1a8] sm:$0xff]  ;;  %v5651_v41 = vld [vmem:[#allocation2 + $0x78] sm:$0xff] }
 0xe1b   : > { %4560 = vmatpush.msra.mxu1 %v8689_v29  ;;  %v5653_v60 = vld [vmem:[#allocation2 + $0x8] sm:$0xff] }
 0xe1c   : > { %4689 = vmatpush.msra.mxu2 %v8528_v16  ;;  %4529 = vmatpush.msrb.mxu3 %v5630_v31  ;;  %v8709_v16 = vld [vmem:[#allocation2 + $0x170] sm:$0xff]  ;;  %v9357_v31 = vld [vmem:[#allocation30_spill] sm:$0xff] }
 0xe1d   : > { %4561 = vmatpush.msra.mxu1 %v8693_v23 }
 0xe1e   : > { %4690 = vmatpush.msra.mxu2 %v8535_v53  ;;  %4530 = vmatpush.msrb.mxu3 %v5632_v45  ;;  %v8714_v53 = vld [vmem:[#allocation2 + $0x138] sm:$0xff] }
 0xe1f   : > { %4562 = vmatpush.msra.mxu1 %v8697_v57  ;;  %4531 = vmatmul.f32.vlgmr.msrb.gmra.mxu3 %v9330_v9  ;;  %v9358_v45 = vld [vmem:[#allocation64_spill] sm:$0xff] }
 0xe20   : > { %4691 = vmatpush.msra.mxu2 %v8542_v44  ;;  %5264 = vmatpush.msk.msra.mxu3 %vm3758_vm8, %v8103_v47  ;;  %v8719_v47 = vld [vmem:[#allocation2 + $0x100] sm:$0xff] }
 0xe21   : > { %4563 = vmatpush.msra.mxu1 %v8704_v33  ;;  %v8741_v44 = vld [vmem:[#allocation2 + $0x20] sm:$0xff] }
 0xe22   : > { %4692 = vmatpush.msra.mxu2 %v8550_v35  ;;  %4620 = vmatpush.msra.mxu3 %v8113_v20  ;;  %v8724_v20 = vld [vmem:[#allocation2 + $0xc8] sm:$0xff] }
 0xe23   : > { %4564 = vmatpush.msra.mxu1 %v8709_v16 }
 0xe24   : > { %4693 = vmatpush.msra.mxu2 %v8556_v7  ;;  %4621 = vmatpush.msra.mxu3 %v8124_v10  ;;  %v8729_v10 = vld [vmem:[#allocation2 + $0x90] sm:$0xff] }
 0xe25   : > { %4565 = vmatpush.msra.mxu1 %v8714_v53 }
 0xe26   : > { %4694 = vmatpush.msra.mxu2 %v8562_v1  ;;  %4622 = vmatpush.msra.mxu3 %v8134_v0  ;;  %v8734_v0 = vld [vmem:[#allocation2 + $0x58] sm:$0xff] }
 0xe27   : > { %4566 = vmatpush.msra.mxu1 %v8719_v47  ;;  %v4255_v1 = vpop.f32.mrf.mxu2 }
 0xe28   : > { %4695 = vmatpush.msra.mxu2 %v8568_v25  ;;  %4623 = vmatpush.msra.mxu3 %v8144_v52  ;;  %v5647_v25 = vld [vmem:[#allocation2 + $0x158] sm:$0xff] }
 0xe29   : > { %4567 = vmatpush.msra.mxu1 %v8724_v20 }
 0xe2a   : > { %4696 = vmatpush.msra.mxu2 %v8574_v26  ;;  %4624 = vmatpush.msra.mxu3 %v8156_v42  ;;  %v9349_v26 = vld [vmem:[#allocation60_spill] sm:$0xff] }
 0xe2b   : > { %4568 = vmatpush.msra.mxu1 %v8729_v10 }
 0xe2c   : > { %4697 = vmatpush.msra.mxu2 %v8580_v36  ;;  %4625 = vmatpush.msra.mxu3 %v8164_v56  ;;  %v9350_v36 = vld [vmem:[#allocation68_spill] sm:$0xff] }
 0xe2d   : > { %4569 = vmatpush.msra.mxu1 %v8734_v0 }
 0xe2e   : > { %4698 = vmatpush.msra.mxu2 %v8586_v30  ;;  %4626 = vmatpush.msra.mxu3 %v8173_v2  ;;  %v8739_v52 = vpop.permute.xlu0 %4073  ;;  %v5648_v30 = vld [vmem:[#allocation2 + $0x120] sm:$0xff] }
 0xe2f   : > { %4570 = vmatpush.msra.mxu1 %v8741_v44  ;;  %v4215_v42 = vpop.f32.mrf.mxu3  ;;  %v4084_v35 = vsel %vm4081_vm3, %v8666_v34, %v8739_v52 }
 0xe30   : > { %4699 = vmatpush.msra.mxu2 %v8592_v54  ;;  %4571 = vmatmul.f32.vlgmr.msra.gmra.mxu1 %v9330_v9  ;;  %v8750_v56 = vadd.f32 %v4215_v42, %v8675_v18  ;;  %v9348_v54 = vld [vmem:[#allocation38_spill] sm:$0xff]  ;;  %v9359_v42 = vld [vmem:[#allocation16_spill] sm:$0xff] }
 0xe31   : > { %4627 = vmatpush.msra.mxu3 %v8181_v39  ;;  %4700 = vmatmul.f32.vlgmr.msra.gmra.mxu2 %v8304_v21  ;;  %v4235_v2 = vpop.f32.mrf.mxu1  ;;  %v9340_v39 = vld [vmem:[#allocation12_spill] sm:$0xff] }
 0xe32   : > { %5266 = vmatpush.msk.msrb.mxu1 %vm3758_vm8, %v8427_v11  ;;  %5270 = vmatpush.msk.msrb.mxu2 %vm3758_vm8, %v8600_v61  ;;  %v4236_v7 = vadd.f32 %v4235_v2, %v4084_v35  ;;  %v5642_v11 = vld [vmem:[#allocation2 + $0x270] sm:$0xff]  ;;  %v9360_v35 = vld [vmem:[#allocation32_spill] sm:$0xff]  ;;  %v9361_v2 = vld [vmem:[#allocation65_spill] sm:$0xff] }
 0xe33   : > { %4628 = vmatpush.msra.mxu3 %v8189_v32  ;;  %v9337_v32 = vld [vmem:[#allocation9_spill] sm:$0xff]  ;;  %v5646_v61 = vld [vmem:[#allocation2 + $0x190] sm:$0xff] }
 0xe34   : > { %4709 = vmatpush.msrb.mxu1 %v8433_v12  ;;  %4789 = vmatpush.msrb.mxu2 %v8607_v38  ;;  %v8761_v18 = vadd.f32 %v4255_v1, %v4236_v7  ;;  %v5643_v12 = vld [vmem:[#allocation2 + $0x238] sm:$0xff]  ;;  %v9351_v38 = vld [vmem:[#allocation10_spill] sm:$0xff]  ;;  %v5658_v7 = vld [vmem:[#allocation2 + $0x520] sm:$0xff] }
 0xe35   : > { %4629 = vmatpush.msra.mxu3 %v8196_v48  ;;  %v9338_v48 = vld [vmem:[#allocation54_spill] sm:$0xff] }
 0xe36   : > { %4710 = vmatpush.msrb.mxu1 %v8438_v59  ;;  %4790 = vmatpush.msrb.mxu2 %v8611_v5  ;;  %v9341_v59 = vld [vmem:[#allocation36_spill] sm:$0xff]  ;;  %v5659_v1 = vld [vmem:[#allocation2 + $0x4e8] sm:$0xff] }
 0xe37   : > { %4630 = vmatpush.msra.mxu3 %v8202_v62  ;;  %v9339_v62 = vld [vmem:[#allocation6_spill] sm:$0xff]  ;;  %v8799_v9 = vpop.permute.xlu2 %4077  ;;  %v9352_v5 = vld [vmem:[#allocation24_spill] sm:$0xff] }
 0xe38   : > { %4711 = vmatpush.msrb.mxu1 %v8445_v8  ;;  %4791 = vmatpush.msrb.mxu2 %v8615_v40  ;;  %v5644_v8 = vld [vmem:[#allocation2 + $0x200] sm:$0xff]  ;;  %v5649_v40 = vld [vmem:[#allocation2 + $0xe8] sm:$0xff] }
 0xe39   : > { %5265 = vmatmul.msk.f32.vlgmr.msra.gmra.mxu3 %vm3755_vm12, %v9306_v50  ;;  %v9345_v50 = vld [vmem:[#allocation22_spill] sm:$0xff] }
 0xe3a   : > { %4724 = vmatpush.msrb.mxu3 %v9337_v32  ;;  %4712 = vmatpush.msrb.mxu1 %v8450_v58  ;;  %v9342_v58 = vld [vmem:[#allocation57_spill] sm:$0xff]  ;;  %v5660_v32 = vld [vmem:[#allocation2 + $0x4b0] sm:$0xff] }
 0xe3b   : > { %4792 = vmatpush.msrb.mxu2 %v8621_v63  ;;  %v8803_v63 = vpop.permute.xlu1 %4075 }
 0xe3c   : > { %4725 = vmatpush.msrb.mxu3 %v9338_v48  ;;  %4713 = vmatpush.msrb.mxu1 %v8455_v27  ;;  %v9343_v27 = vld [vmem:[#allocation67_spill] sm:$0xff]  ;;  %v5661_v48 = vld [vmem:[#allocation2 + $0x478] sm:$0xff] }
 0xe3d   : > { %4793 = vmatpush.msrb.mxu2 %v8625_v14  ;;  %v9353_v14 = vld [vmem:[#allocation5_spill] sm:$0xff] }
 0xe3e   : > { %4726 = vmatpush.msrb.mxu3 %v9339_v62  ;;  %4714 = vmatpush.msrb.mxu1 %v8460_v3  ;;  %v5645_v3 = vld [vmem:[#allocation2 + $0x1c8] sm:$0xff] }
 0xe3f   : > { %4794 = vmatpush.msrb.mxu2 %v8629_v17  ;;  %v5650_v17 = vld [vmem:[#allocation2 + $0xb0] sm:$0xff]  ;;  %v5663_v62 = vld [vmem:[#allocation2 + $0x608] sm:$0x3f] }
 0xe40   : > { %4727 = vmatpush.msrb.mxu3 %v9340_v39  ;;  %4715 = vmatpush.msrb.mxu1 %v8465_v24  ;;  %v9344_v24 = vld [vmem:[#allocation8_spill] sm:$0xff]  ;;  %v5665_v39 = vld [vmem:[#allocation2 + $0x5d0] sm:$0xff] }
 0xe41   : > { %4795 = vmatpush.msrb.mxu2 %v8633_v43  ;;  %v4086_v43 = vsel %vm4081_vm3, %v8803_v63, %v8799_v9  ;;  %v4335_v6 = vpop.f32.mrf.mxu2 }
 0xe42   : > { %4728 = vmatpush.msrb.mxu3 %v5642_v11  ;;  %4716 = vmatpush.msrb.mxu1 %v8470_v19  ;;  %v9346_v19 = vld [vmem:[#allocation116_spill] sm:$0xff]  ;;  %v8841_v11 = vpop.f32.mrf.mxu0 }
 0xe43   : > { %4796 = vmatpush.msrb.mxu2 %v8637_v4 }
 0xe44   : > { %4729 = vmatpush.msrb.mxu3 %v5643_v12  ;;  %4717 = vmatpush.msrb.mxu1 %v8475_v51  ;;  %v9347_v51 = vld [vmem:[#allocation14_spill] sm:$0xff]  ;;  %v5667_v12 = vld [vmem:[#allocation2 + $0x598] sm:$0xff] }
 0xe45   : > { %4797 = vmatpush.msrb.mxu2 %v9341_v59 }
 0xe46   : > { %4730 = vmatpush.msrb.mxu3 %v5644_v8  ;;  %4718 = vmatpush.msrb.mxu1 %v9342_v58  ;;  %v5669_v8 = vld [vmem:[#allocation2 + $0x560] sm:$0xff] }
 0xe47   : > { %4798 = vmatpush.msrb.mxu2 %v9343_v27  ;;  %v8843_v59 = vpop.f32.mrf.mxu3  ;;  %v5670_v27 = vld [vmem:[#allocation2 + $0x370] sm:$0xff] }
 0xe48   : > { %4731 = vmatpush.msrb.mxu3 %v5645_v3  ;;  %4719 = vmatpush.msrb.mxu1 %v9344_v24  ;;  %v5671_v24 = vld [vmem:[#allocation2 + $0x528] sm:$0xff] }
 0xe49   : > { %4799 = vmatpush.msrb.mxu2 %v9345_v50  ;;  %5267 = vmatmul.msk.f32.vlgmr.msrb.gmra.mxu1 %vm3755_vm12, %v9346_v19 }
 0xe4a   : > { %4732 = vmatpush.msrb.mxu3 %v5646_v61  ;;  %4764 = vmatpush.msra.mxu1 %v9347_v51  ;;  %v5672_v61 = vld [vmem:[#allocation2 + $0x338] sm:$0xff]  ;;  %v5673_v51 = vld [vmem:[#allocation2 + $0x4f0] sm:$0xff] }
 0xe4b   : > { %5271 = vmatmul.msk.f32.vlgmr.msrb.gmra.mxu2 %vm3755_vm12, %v9346_v19 }
 0xe4c   : > { %4844 = vmatpush.msra.mxu2 %v9348_v54  ;;  %4733 = vmatpush.msrb.mxu3 %v5647_v25  ;;  %v5674_v54 = vld [vmem:[#allocation2 + $0x300] sm:$0xff]  ;;  %v5675_v25 = vld [vmem:[#allocation2 + $0x4b8] sm:$0xff] }
 0xe4d   : > { %4765 = vmatpush.msra.mxu1 %v9349_v26  ;;  %v5676_v26 = vld [vmem:[#allocation2 + $0x2c8] sm:$0xff] }
 0xe4e   : > { %4845 = vmatpush.msra.mxu2 %v9350_v36  ;;  %4734 = vmatpush.msrb.mxu3 %v5648_v30  ;;  %v8848_v36 = vpop.f32.mrf.mxu0 }
 0xe4f   : > { %4766 = vmatpush.msra.mxu1 %v9351_v38  ;;  %v5677_v38 = vld [vmem:[#allocation2 + $0x480] sm:$0xff] }
 0xe50   : > { %4846 = vmatpush.msra.mxu2 %v9352_v5  ;;  %4735 = vmatpush.msrb.mxu3 %v5649_v40  ;;  %v5678_v5 = vld [vmem:[#allocation2 + $0x290] sm:$0xff]  ;;  %v5679_v40 = vld [vmem:[#allocation2 + $0x448] sm:$0xff] }
 0xe51   : > { %4767 = vmatpush.msra.mxu1 %v9353_v14  ;;  %v5680_v14 = vld [vmem:[#allocation2 + $0x258] sm:$0xff] }
 0xe52   : > { %4847 = vmatpush.msra.mxu2 %v8679_v22  ;;  %4736 = vmatpush.msrb.mxu3 %v5650_v17  ;;  %v4315_v4 = vpop.f32.mrf.mxu1  ;;  %v5652_v22 = vld [vmem:[#allocation2 + $0x40] sm:$0xff]  ;;  %v5681_v17 = vld [vmem:[#allocation2 + $0x410] sm:$0xff] }
 0xe53   : > { %4768 = vmatpush.msra.mxu1 %v9354_v13  ;;  %v4316_v34 = vadd.f32 %v4315_v4, %v4086_v43  ;;  %v5682_v43 = vld [vmem:[#allocation2 + $0x220] sm:$0xff]  ;;  %v5683_v4 = vld [vmem:[#allocation2 + $0x3d8] sm:$0xff]  ;;  %v5684_v13 = vld [vmem:[#allocation2 + $0x1e8] sm:$0xff] }
 0xe54   : > { %4848 = vmatpush.msra.mxu2 %v8685_v15  ;;  %4737 = vmatpush.msrb.mxu3 %v5651_v41  ;;  %v5654_v15 = vld [vmem:[#allocation2 + $0x600] sm:$0x3f] }
 0xe55   : > { %4769 = vmatpush.msra.mxu1 %v9355_v28  ;;  %v8813_v49 = vadd.f32 %v4335_v6, %v4316_v34  ;;  %v5685_v6 = vld [vmem:[#allocation2 + $0x3a0] sm:$0xff]  ;;  %v5686_v28 = vld [vmem:[#allocation2 + $0x1b0] sm:$0xff] }
 0xe56   : > { %4849 = vmatpush.msra.mxu2 %v8689_v29  ;;  %4738 = vmatpush.msrb.mxu3 %v5652_v22  ;;  %v5655_v29 = vld [vmem:[#allocation2 + $0x5c8] sm:$0xff]  ;;  %v4452_v34 = vpop.f32.mrf.mxu0 }
 0xe57   : > { %4770 = vmatpush.msra.mxu1 %v9356_v46  ;;  %v5687_v46 = vld [vmem:[#allocation2 + $0x178] sm:$0xff] }
 0xe58   : > { %4850 = vmatpush.msra.mxu2 %v8693_v23  ;;  %4739 = vmatpush.msrb.mxu3 %v5653_v60  ;;  %v5656_v23 = vld [vmem:[#allocation2 + $0x590] sm:$0xff]  ;;  %v5688_v60 = vld [vmem:[#allocation2 + $0x140] sm:$0xff] }
 0xe59   : > { %4771 = vmatpush.msra.mxu1 %v9357_v31  ;;  %4740 = vmatmul.f32.vlgmr.msrb.gmra.mxu3 %v8304_v21  ;;  %v5689_v31 = vld [vmem:[#allocation2 + $0x108] sm:$0xff] }
 0xe5a   : > { %4851 = vmatpush.msra.mxu2 %v8697_v57  ;;  %5272 = vmatpush.msk.msra.mxu3 %vm3758_vm8, %v5654_v15  ;;  %v5657_v57 = vld [vmem:[#allocation2 + $0x558] sm:$0xff]  ;;  %v4432_v58 = vpop.f32.mrf.mxu2  ;;  %v5690_v15 = vld [vmem:[#allocation2 + $0xd0] sm:$0xff] }
 0xe5b   : > { %4772 = vmatpush.msra.mxu1 %v9358_v45 }
 0xe5c   : > { %4852 = vmatpush.msra.mxu2 %v8704_v33  ;;  %4829 = vmatpush.msra.mxu3 %v5655_v29  ;;  %v9362_v33 = vld [vmem:[#allocation18_spill] sm:$0xff] }
 0xe5d   : > { %4773 = vmatpush.msra.mxu1 %v9359_v42  ;;  %v5691_v42 = vld [vmem:[#allocation2 + $0x98] sm:$0xff] }
 0xe5e   : > { %4853 = vmatpush.msra.mxu2 %v8709_v16  ;;  %4830 = vmatpush.msra.mxu3 %v5656_v23  ;;  %v9363_v16 = vld [vmem:[#allocation34_spill] sm:$0xff] }
 0xe5f   : > { %4774 = vmatpush.msra.mxu1 %v9360_v35  ;;  %v5692_v35 = vld [vmem:[#allocation2 + $0x60] sm:$0xff] }
 0xe60   : > { %4854 = vmatpush.msra.mxu2 %v8714_v53  ;;  %4831 = vmatpush.msra.mxu3 %v5657_v57  ;;  %v9364_v53 = vld [vmem:[#allocation66_spill] sm:$0xff]  ;;  %v4552_v57 = vpop.f32.mrf.mxu0 }
 0xe61   : > { %4775 = vmatpush.msra.mxu1 %v9361_v2 }
 0xe62   : > { %4855 = vmatpush.msra.mxu2 %v8719_v47  ;;  %4832 = vmatpush.msra.mxu3 %v5658_v7  ;;  %v9365_v47 = vld [vmem:[#allocation20_spill] sm:$0xff] }
 0xe63   : > { %4776 = vmatpush.msra.mxu1 %v9362_v33 }
 0xe64   : > { %4856 = vmatpush.msra.mxu2 %v8724_v20  ;;  %4833 = vmatpush.msra.mxu3 %v5659_v1  ;;  %v5662_v20 = vld [vmem:[#allocation2 + $0x440] sm:$0xff] }
 0xe65   : > { %4777 = vmatpush.msra.mxu1 %v9363_v16 }
 0xe66   : > { %4857 = vmatpush.msra.mxu2 %v8729_v10  ;;  %4834 = vmatpush.msra.mxu3 %v5660_v32  ;;  %v5664_v10 = vld [vmem:[#allocation2 + $0x408] sm:$0xff] }
 0xe67   : > { %4778 = vmatpush.msra.mxu1 %v9364_v53 }
 0xe68   : > { %4858 = vmatpush.msra.mxu2 %v8734_v0  ;;  %4835 = vmatpush.msra.mxu3 %v5661_v48  ;;  %v5666_v0 = vld [vmem:[#allocation2 + $0x3d0] sm:$0xff]  ;;  %v8850_v30 = vpop.f32.mrf.mxu3  ;;  %v4612_v32 = vpop.f32.mrf.mxu0 }
 0xe69   : > { %4779 = vmatpush.msra.mxu1 %v9365_v47 }
 0xe6a   : > { %4859 = vmatpush.msra.mxu2 %v8741_v44  ;;  %4780 = vmatmul.f32.vlgmr.msra.gmra.mxu1 %v8304_v21  ;;  %v5668_v44 = vld [vmem:[#allocation2 + $0x398] sm:$0xff] }
 0xe6b   : > { %4836 = vmatpush.msra.mxu3 %v5662_v20  ;;  %4860 = vmatmul.f32.vlgmr.msra.gmra.mxu2 %v8304_v21 }
 0xe6c   : > { %5274 = vmatpush.msk.msrb.mxu1 %vm3758_vm8, %v5663_v62  ;;  %vm4972_vm8 = vcmask 1043456  }
 0xe6d   : > { %4837 = vmatpush.msra.mxu3 %v5664_v10 }
 0xe6e   : > { %4869 = vmatpush.msrb.mxu1 %v5665_v39 }
 0xe6f   : > { %4838 = vmatpush.msra.mxu3 %v5666_v0 }
 0xe70   : > { %4870 = vmatpush.msrb.mxu1 %v5667_v12 }
 0xe71   : > { %4839 = vmatpush.msra.mxu3 %v5668_v44 }
 0xe72   : > { %4871 = vmatpush.msrb.mxu1 %v5669_v8  ;;  %5273 = vmatmul.msk.f32.vlgmr.msra.gmra.mxu3 %vm3755_vm12, %v9346_v19 }
 0xe73   : > { %4884 = vmatpush.msrb.mxu3 %v5670_v27  ;;  %v4412_v3 = vpop.f32.mrf.mxu1 }
 0xe74   : > { %4872 = vmatpush.msrb.mxu1 %v5671_v24  ;;  %v4433_v50 = vadd.f32 %v4432_v58, %v4412_v3 }
 0xe75   : > { %4885 = vmatpush.msrb.mxu3 %v5672_v61 }
 0xe76   : > { %4873 = vmatpush.msrb.mxu1 %v5673_v51  ;;  %4641 = vrot.lane.b32.xlu1 %v4433_v50, %s5749_s22 }
 0xe77   : > { %4886 = vmatpush.msrb.mxu3 %v5674_v54  ;;  %v4085_v54 = vsel %vm4081_vm3, %v8739_v52, %v8803_v63 }
 0xe78   : > { %4874 = vmatpush.msrb.mxu1 %v5675_v25 }
 0xe79   : > { %4887 = vmatpush.msrb.mxu3 %v5676_v26  ;;  %v4276_v26 = vadd.f32 %v8841_v11, %v4085_v54 }
 0xe7a   : > { %4875 = vmatpush.msrb.mxu1 %v5677_v38  ;;  %v4492_v45 = vpop.f32.mrf.mxu2 }
 0xe7b   : > { %4888 = vmatpush.msrb.mxu3 %v5678_v5 }
 0xe7c   : > { %4876 = vmatpush.msrb.mxu1 %v5679_v40  ;;  %v4296_v40 = vadd.f32 %v8843_v59, %v4276_v26 }
 0xe7d   : > { %4889 = vmatpush.msrb.mxu3 %v5680_v14 }
 0xe7e   : > { %4877 = vmatpush.msrb.mxu1 %v5681_v17 }
 0xe7f   : > { %4890 = vmatpush.msrb.mxu3 %v5682_v43 }
 0xe80   : > { %4878 = vmatpush.msrb.mxu1 %v5683_v4 }
 0xe81   : > { %4891 = vmatpush.msrb.mxu3 %v5684_v13  ;;  %v4080_v13 = vpop.permute.xlu0 %4079 }
 0xe82   : > { %4879 = vmatpush.msrb.mxu1 %v5685_v6  ;;  %v4472_v41 = vpop.f32.mrf.mxu3 }
 0xe83   : > { %5275 = vmatmul.msk.f32.vlgmr.msrb.gmra.mxu1 %vm3755_vm12, %v9346_v19  ;;  %4892 = vmatpush.msrb.mxu3 %v5686_v28  ;;  %v4473_v22 = vadd.f32 %v4472_v41, %v4452_v34  ;;  %v5693_v19 = vld [vmem:[#allocation2 + $0x28] sm:$0xff] }
 0xe85   : > { %4893 = vmatpush.msrb.mxu3 %v5687_v46  ;;  %4643 = vrot.lane.b32.xlu2 %v4473_v22, %s5749_s22 }
 0xe87   : > { %4894 = vmatpush.msrb.mxu3 %v5688_v60 }
 0xe89   : > { %4895 = vmatpush.msrb.mxu3 %v5689_v31 }
 0xe8b   : > { %4896 = vmatpush.msrb.mxu3 %v5690_v15 }
 0xe8c   : > { %v4512_v29 = vpop.f32.mrf.mxu1 }
 0xe8d   : > { %4897 = vmatpush.msrb.mxu3 %v5691_v42  ;;  %v4513_v23 = vadd.f32 %v4512_v29, %v4492_v45 }
 0xe8f   : > { %4898 = vmatpush.msrb.mxu3 %v5692_v35  ;;  %4645 = vrot.lane.b32.xlu0 %v4513_v23, %s5749_s22 }
 0xe91   : > { %4899 = vmatpush.msrb.mxu3 %v5693_v19 }
 0xe92   : > { %4900 = vmatmul.f32.vlgmr.msrb.gmra.mxu3 %v8304_v21  ;;  %v4761_v21 = vpop.f32.mrf.mxu0 }
 0xe94   : > { %v4592_v33 = vpop.f32.mrf.mxu2 }
 0xe9a   : > { %v4821_v8 = vpop.f32.mrf.mxu0 }
 0xea2   : > { %v4532_v2 = vpop.f32.mrf.mxu3  ;;  %v4921_v25 = vpop.f32.mrf.mxu0 }
 0xea3   : > { %v4553_v7 = vadd.f32 %v4552_v57, %v4532_v2 }
 0xea5   : > { %4647 = vrot.lane.b32.xlu1 %v4553_v7, %s5749_s22 }
 0xead   : > { %v4572_v1 = vpop.f32.mrf.mxu1 }
 0xeae   : > { %v4593_v16 = vadd.f32 %v4592_v33, %v4572_v1 }
 0xeb0   : > { %4649 = vrot.lane.b32.xlu2 %v4593_v16, %s5749_s22 }
 0xeb4   : > { %v4701_v47 = vpop.f32.mrf.mxu2 }
 0xebc   : > { %v4632_v53 = vpop.f32.mrf.mxu3 }
 0xebd   : > { %v4633_v48 = vadd.f32 %v4632_v53, %v4612_v32  ;;  %v4087_v32 = vsel %vm4081_vm3, %v8799_v9, %v4080_v13 }
 0xebf   : > { %4651 = vrot.lane.b32.xlu0 %v4633_v48, %s5749_s22 }
 0xec6   : > { %v4721_v20 = vpop.f32.mrf.mxu1 }
 0xec7   : > { %v4722_v62 = vadd.f32 %v4721_v20, %v4701_v47 }
 0xec9   : > { %4930 = vrot.lane.b32.xlu1 %v4722_v62, %s5750_s23 }
 0xece   : > { %v4801_v0 = vpop.f32.mrf.mxu2 }
 0xedc   : > { %v4741_v10 = vpop.f32.mrf.mxu3 }
 0xedd   : > { %v4762_v39 = vadd.f32 %v4761_v21, %v4741_v10 }
 0xedf   : > { %4932 = vrot.lane.b32.xlu2 %v4762_v39, %s5750_s23  ;;  %v4644_v61 = vpop.permute.xlu2 %4643 }
 0xee7   : > { %v4781_v12 = vpop.f32.mrf.mxu1 }
 0xee8   : > { %v4802_v44 = vadd.f32 %v4801_v0, %v4781_v12  ;;  %v4642_v51 = vpop.permute.xlu1 %4641 }
 0xee9   : > { %v4654_v11 = vsel %vm4653_vm6, %v4642_v51, %v4644_v61  ;;  %v4666_v41 = vsel %vm4653_vm6, 0.0, %v4642_v51 }
 0xeea   : > { %4934 = vrot.lane.b32.xlu0 %v4802_v44, %s5750_s23  ;;  %v4668_v59 = vadd.f32 %v4654_v11, %v8683_v37  ;;  %v4667_v31 = vadd.f32 %v4666_v41, %v8677_v55 }
 0xeee   : > { %v4861_v3 = vpop.f32.mrf.mxu2 }
 0xef5   : > { %v4841_v58 = vpop.f32.mrf.mxu3 }
 0xef6   : > { %v4842_v27 = vadd.f32 %v4841_v58, %v4821_v8 }
 0xef8   : > { %4936 = vrot.lane.b32.xlu1 %v4842_v27, %s5750_s23 }
 0xf00   : > { %v4881_v24 = vpop.f32.mrf.mxu1 }
 0xf01   : > { %v4882_v50 = vadd.f32 %v4881_v24, %v4861_v3  ;;  %v4646_v34 = vpop.permute.xlu0 %4645 }
 0xf02   : > { %v4655_v23 = vsel %vm4653_vm6, %v4644_v61, %v4646_v34 }
 0xf03   : > { %4938 = vrot.lane.b32.xlu2 %v4882_v50, %s5750_s23  ;;  %v4669_v2 = vadd.f32 %v4655_v23, %v8750_v56 }
 0xf0a   : > { %v4650_v14 = vpop.permute.xlu2 %4649 }
 0xf15   : > { %v4901_v38 = vpop.f32.mrf.mxu3 }
 0xf16   : > { %v4922_v5 = vadd.f32 %v4921_v25, %v4901_v38 }
 0xf17   : > { %v4648_v17 = vpop.permute.xlu1 %4647 }
 0xf18   : > { %4940 = vrot.lane.b32.xlu0 %v4922_v5, %s5750_s23  ;;  %v4657_v43 = vsel %vm4653_vm6, %v4648_v17, %v4650_v14  ;;  %v4656_v29 = vsel %vm4653_vm6, %v4646_v34, %v4648_v17 }
 0xf19   : > { %v4671_v4 = vadd.f32 %v4657_v43, %v4296_v40  ;;  %v4670_v55 = vadd.f32 %v4656_v29, %v8761_v18  ;;  %v4356_v18 = vadd.f32 %v8850_v30, %v4087_v32 }
 0xf1b   : > { %v4376_v53 = vadd.f32 %v8848_v36, %v4356_v18 }
 0xf31   : > { %v4652_v6 = vpop.permute.xlu0 %4651 }
 0xf32   : > { %v4658_v52 = vsel %vm4653_vm6, %v4650_v14, %v4652_v6  ;;  %v4673_v48 = vadd.f32 %v4652_v6, %v4376_v53 }
 0xf33   : > { %v4672_v63 = vadd.f32 %v4658_v52, %v8813_v49 }
 0xf39   : > { %v4933_v28 = vpop.permute.xlu2 %4932 }
 0xf3b   : > { %v4931_v22 = vpop.permute.xlu1 %4930 }
 0xf3c   : > { %v4943_v46 = vsel %vm4942_vm7, %v4931_v22, %v4933_v28  ;;  %v4955_v60 = vsel %vm4942_vm7, 0.0, %v4931_v22 }
 0xf3d   : > { %v4957_v15 = vadd.f32 %v4943_v46, %v4668_v59  ;;  %v4956_v49 = vadd.f32 %v4955_v60, %v4667_v31 }
 0xf3f   : > { %v4969_v45 = vrot.slane %v4957_v15, 4 }
 0xf41   : > { %v4973_v37 = vsel %vm4972_vm8, %v4956_v49, %v4969_v45 }
 0xf42   : > { %4979 = vst [vmem:[%s8878_s30] sm:$0x77] %v4973_v37 }
 0xf5c   : > { %v4935_v42 = vpop.permute.xlu0 %4934 }
 0xf5d   : > { %v4944_v19 = vsel %vm4942_vm7, %v4933_v28, %v4935_v42  ;;  %v4939_v47 = vpop.permute.xlu2 %4938 }
 0xf5e   : > { %v4958_v33 = vadd.f32 %v4944_v19, %v4669_v2 }
 0xf6a   : > { %v4937_v35 = vpop.permute.xlu1 %4936 }
 0xf6b   : > { %v4945_v57 = vsel %vm4942_vm7, %v4935_v42, %v4937_v35  ;;  %v4946_v56 = vsel %vm4942_vm7, %v4937_v35, %v4939_v47 }
 0xf6c   : > { %v4959_v7 = vadd.f32 %v4945_v57, %v4670_v55  ;;  %v4960_v39 = vadd.f32 %v4946_v56, %v4671_v4 }
 0xf6e   : > { %v4970_v1 = vrot.slane %v4959_v7, 4 }
 0xf70   : > { %v4974_v16 = vsel %vm4972_vm8, %v4958_v33, %v4970_v1 }
 0xf71   : > { %4980 = vst [vmem:[%s8878_s30 + $0x8] sm:$0x77] %v4974_v16 }
 0xf8a   : > { %v4941_v20 = vpop.permute.xlu0 %4940 }
 0xf8b   : > { %v4947_v62 = vsel %vm4942_vm7, %v4939_v47, %v4941_v20  ;;  %v4962_v21 = vadd.f32 %v4941_v20, %v4673_v48 }
 0xf8c   : > { %v4961_v10 = vadd.f32 %v4947_v62, %v4672_v63 }
 0xf8d   : > { %4983 = vst.msk [vmem:[%s8878_s30 + $0x18] sm:$0x7] %vm4982_vm14, %v4962_v21 }
 0xf8e   : > { %v4971_v0 = vrot.slane %v4961_v10, 4 }
 0xf90   : > { %v4975_v12 = vsel %vm4972_vm8, %v4960_v39, %v4971_v0 }
 0xf91   : > { %4981 = vst [vmem:[%s8878_s30 + $0x10] sm:$0x77] %v4975_v12 }
 0xf92 PF: > { %s24_s25 = sadd.s32 1, %s5734_s25  }
 0xf93   : > { %p21_p7 = scmp.ge.s32.totalorder %s24_s25, 4  }
 0xf95   :  { %23 = sbr.rel (!%p21_p7) target bundleno = 1 (0x1), region = 113 }
 0xf9a   :  { %5005 = vsyncpa [#allocation3], 1 }
 0xf9b   :  { %5007 = vsyncpa [#allocation3 + $0x1], 1 }

</bundles_post_ra>
